<compile_context>
chip_gen: v6e
topology: v6e:2x2x1
jax: 0.10.0
libtpu: 0.0.40
codegen_flags: <defaults>
</compile_context>

<pallas_src>
import functools

import jax
import jax.numpy as jnp
import numpy as np
from jax.experimental import pallas as pl
from jax.experimental.pallas import tpu as pltpu


# ---------------------------------------------------------------------------
# Fused CABottleneck kernel (one image per grid step)
# ---------------------------------------------------------------------------
def _ca_kernel(*refs, H, W, Wq, c_, c2, add):
    if add:
        (xq_ref, xres_ref, w1_ref, w2_ref, s2_ref, b2_ref,
         wa_ref, ba_ref, wh_ref, bh_ref, ww_ref, bw_ref,
         o_ref, t_ref, p_ref) = refs
    else:
        (xq_ref, w1_ref, w2_ref, s2_ref, b2_ref,
         wa_ref, ba_ref, wh_ref, bh_ref, ww_ref, bw_ref,
         o_ref, t_ref, p_ref) = refs
        xres_ref = None

    Mq = H * Wq
    f32 = jnp.float32

    # ---- cv1: 1x1 conv + folded BN + SiLU ----------------------------------
    # BN scale is folded into the weight columns; the folded bias rides on the
    # always-one input channel, so all-zero pad rows of the slab give exactly
    # silu(0) = 0 -> the halo ring of t is correct without any mask constant.
    z1 = jnp.dot(xq_ref[...], w1_ref[...], preferred_element_type=f32)
    t_int = z1 * jax.nn.sigmoid(z1)                          # SiLU in f32
    t_ref[:Wq, :] = jnp.zeros((Wq, c_), t_ref.dtype)         # top halo row
    t_ref[Wq:Wq + Mq, :] = t_int.astype(t_ref.dtype)         # image rows (aligned)
    t_ref[Wq + Mq:(H + 3) * Wq, :] = jnp.zeros((2 * Wq, c_), t_ref.dtype)  # bottom halo + slack

    # ---- cv2: 3x3 conv as ONE K=9*c_ matmul over a packed im2col LHS -------
    # The dx in {1,2} re-layouts are fused into the packing copies.
    for k in range(9):
        dy, dx = divmod(k, 3)
        s = dy * Wq + dx
        p_ref[:, k * c_:(k + 1) * c_] = t_ref[s:s + Mq, :]
    z2 = jnp.dot(p_ref[...], w2_ref[...], preferred_element_type=f32)
    z2 = z2 * s2_ref[...] + b2_ref[...]
    x1 = z2 * jax.nn.sigmoid(z2)                             # (Mq, c2) f32

    # ---- coordinate attention: pools are XLU reductions, not matmuls -------
    x1_3d = x1.reshape(H, Wq, c2)
    p_h = jnp.sum(x1_3d[:, :W, :], axis=1) * (1.0 / W)       # (H, c2)  (valid cols only)
    p_w = jnp.sum(x1_3d, axis=0) * (1.0 / H)                 # (Wq, c2) (pad cols garbage, discarded)

    def squeeze(p):  # conv1 (+bias) + bn1 folded, then Hardswish
        z = jnp.dot(p, wa_ref[...], preferred_element_type=f32) + ba_ref[...]
        return z * jnp.clip(z + 3.0, 0.0, 6.0) * (1.0 / 6.0)

    a_h = jax.nn.sigmoid(jnp.dot(squeeze(p_h), wh_ref[...],
                                 preferred_element_type=f32) + bh_ref[...])   # (H, c2)
    a_w = jax.nn.sigmoid(jnp.dot(squeeze(p_w), ww_ref[...],
                                 preferred_element_type=f32) + bw_ref[...])   # (Wq, c2)

    # Fused epilogue: broadcast-multiply (no full-size ah/aw temporaries) + residual.
    out = x1_3d * a_w[None, :, :] * a_h[:, None, :]
    if add:
        out = out + xres_ref[...].astype(f32)
    o_ref[...] = out.astype(o_ref.dtype)


# ---------------------------------------------------------------------------
# Wrapper: layout plumbing in XLA, all math in the Pallas kernel
# ---------------------------------------------------------------------------
def ca_bottleneck_forward(x_nchw, params, *, shortcut=True):
    N, c1, H, W = x_nchw.shape
    c_ = int(params["w1"].shape[1])
    c2 = int(params["w2"].shape[2])
    add = bool(shortcut and c1 == c2)

    Wq = -(-(W + 2) // 8) * 8          # row stride >= W+2, multiple of 8 (aligned taps)
    Hp = H + 3                         # 1 top halo + 1 bottom halo + slack for slicing
    Mq = H * Wq

    x_nhwc = jnp.transpose(x_nchw, (0, 2, 3, 1))

    # cv1 input slab: image pixel (y, x) at flat row y*Wq + (x+1) (matches the
    # interior of the t scratch); channels = [x, 1] so the folded BN bias rides
    # on the ones channel and pad columns stay exactly zero through cv1+SiLU.
    ones = jnp.ones(x_nhwc.shape[:3] + (1,), x_nhwc.dtype)
    xa = jnp.concatenate([x_nhwc, ones], axis=-1)
    xq = jnp.pad(xa, ((0, 0), (0, 0), (1, Wq - W - 1), (0, 0)))
    xq = xq.reshape(N, Mq, c1 + 1).astype(jnp.bfloat16)

    # Fold BatchNorms into the matmul weights (eval semantics).
    s1, b1 = params["bn1f"]
    w1aug = jnp.concatenate([params["w1"] * s1[None, :], b1[None, :]], axis=0)
    w1aug = w1aug.astype(jnp.bfloat16)                       # (c1+1, c_)
    w2p = params["w2"].reshape(9 * c_, c2).astype(jnp.bfloat16)
    row = lambda a: jnp.asarray(a, jnp.float32).reshape(1, -1)
    s2, b2 = map(row, params["bn2f"])
    wa_f = (params["wa"] * params["a_scale"][None, :]).astype(jnp.float32)
    ba = row(params["a_bias"])
    wh = params["wh"].astype(jnp.float32)
    ww_ = params["ww"].astype(jnp.float32)
    bh, bw = row(params["bh"]), row(params["bw"])
    consts = [w1aug, w2p, s2, b2, wa_f, ba, wh, bh, ww_, bw]

    inputs = [xq]
    in_specs = [pl.BlockSpec((None, Mq, c1 + 1), lambda n: (n, 0, 0))]
    if add:
        # Residual laid out 1:1 with the output block -> aligned, pipelined DMA.
        xres = jnp.pad(x_nhwc, ((0, 0), (0, 0), (0, Wq - W), (0, 0)))
        inputs.append(xres)
        in_specs.append(pl.BlockSpec((None, H, Wq, c1), lambda n: (n, 0, 0, 0)))

    def const_spec(a):
        nd = a.ndim
        return pl.BlockSpec(a.shape, lambda n, _nd=nd: (0,) * _nd)

    inputs += consts
    in_specs += [const_spec(a) for a in consts]

    # VMEM budget derived from the actual per-step buffers (double-buffered
    # activations + scratch + f32 intermediates + headroom), clamped so the
    # request stays safe on every generation.
    est = (2 * (Mq * (c1 + 1) * 2 + (Mq * c1 * 4 if add else 0) + Mq * c2 * 4)
           + Hp * Wq * c_ * 2 + Mq * 9 * c_ * 2 + 4 * Mq * c2 * 4 + (2 << 20))
    vmem_limit = int(min(max(est, 16 << 20), 96 << 20))

    kernel = functools.partial(_ca_kernel, H=H, W=W, Wq=Wq, c_=c_, c2=c2, add=add)

    out4 = pl.pallas_call(
        kernel,
        out_shape=jax.ShapeDtypeStruct((N, H, Wq, c2), x_nchw.dtype),
        grid_spec=pltpu.PrefetchScalarGridSpec(
            num_scalar_prefetch=0,
            grid=(N,),
            in_specs=in_specs,
            out_specs=pl.BlockSpec((None, H, Wq, c2), lambda n: (n, 0, 0, 0)),
            scratch_shapes=[pltpu.VMEM((Hp * Wq, c_), jnp.bfloat16),   # cv1 output (padded)
                            pltpu.VMEM((Mq, 9 * c_), jnp.bfloat16)],   # packed im2col LHS
        ),
        compiler_params=pltpu.CompilerParams(
            dimension_semantics=("parallel",),    # batch axis -> both v7x TensorCores
            vmem_limit_bytes=vmem_limit,
        ),
    )(*inputs)

    out = out4[:, :, :W, :]                       # drop the pad columns
    return jnp.transpose(out, (0, 3, 1, 2))       # back to NCHW


# ---------------------------------------------------------------------------
# Deterministic synthetic parameters (BatchNorm folded to scale/bias)
# ---------------------------------------------------------------------------
def init_params(key, c1, c2, e=0.5, ratio=32):
    assert c1 == c2, "CABottleneck's conv1 takes c1 channels but sees c2 -> needs c1 == c2"
    c_ = int(c2 * e)
    mip = max(8, c1 // ratio)
    keys = iter(jax.random.split(key, 32))

    def w(shape):
        return jax.random.normal(next(keys), shape, jnp.float32) * 0.1

    def bn(c, eps=1e-5):
        gamma = jax.random.uniform(next(keys), (c,), jnp.float32, 0.5, 1.5)
        beta = jax.random.normal(next(keys), (c,), jnp.float32) * 0.1
        mean = jax.random.normal(next(keys), (c,), jnp.float32) * 0.1
        var = jax.random.uniform(next(keys), (c,), jnp.float32, 0.5, 1.5)
        scale = gamma / jnp.sqrt(var + eps)
        return scale, beta - mean * scale

    w1 = w((c1, c_));      bn1f = bn(c_)          # cv1: 1x1 conv (no bias) + BN
    w2 = w((9, c_, c2));   bn2f = bn(c2)          # cv2: 3x3 conv, tap index = dy*3+dx
    wa = w((c1, mip));     bc1 = w((mip,))        # conv1 (with bias)
    sbn, bbn = bn(mip)                            # bn1
    wh = w((mip, c2));     bh = w((c2,))          # conv_h (with bias)
    ww_ = w((mip, c2));    bw = w((c2,))          # conv_w (with bias)

    return {
        "w1": w1, "bn1f": bn1f,
        "w2": w2, "bn2f": bn2f,
        "wa": wa, "a_scale": sbn, "a_bias": bc1 * sbn + bbn,
        "wh": wh, "bh": bh, "ww": ww_, "bw": bw,
    }


# ---------------------------------------------------------------------------
# Pure-JAX reference (same folded eval-mode BN), for correctness checking only
# ---------------------------------------------------------------------------
def ref_forward(x_nchw, params, *, shortcut=True):
    hp = "highest"
    x = jnp.transpose(x_nchw, (0, 2, 3, 1)).astype(jnp.float32)   # NHWC
    N, H, W, c1 = x.shape
    c2 = params["w2"].shape[2]
    silu = lambda v: v * jax.nn.sigmoid(v)
    hswish = lambda v: v * jnp.clip(v + 3.0, 0.0, 6.0) / 6.0

    t = silu(jnp.einsum('nhwc,cd->nhwd', x, params["w1"], precision=hp)
             * params["bn1f"][0] + params["bn1f"][1])
    tp = jnp.pad(t, ((0, 0), (1, 1), (1, 1), (0, 0)))
    acc = 0.0
    for dy in range(3):
        for dx in range(3):
            acc = acc + jnp.einsum('nhwc,cd->nhwd',
                                   tp[:, dy:dy + H, dx:dx + W, :],
                                   params["w2"][dy * 3 + dx], precision=hp)
    x1 = silu(acc * params["bn2f"][0] + params["bn2f"][1])

    p_h = x1.mean(axis=2)   # (N, H, c2) : pool over W
    p_w = x1.mean(axis=1)   # (N, W, c2) : pool over H

    def squeeze(p):
        z = (jnp.einsum('nsc,cm->nsm', p, params["wa"], precision=hp)
             * params["a_scale"] + params["a_bias"])
        return hswish(z)

    a_h = jax.nn.sigmoid(jnp.einsum('nsm,mc->nsc', squeeze(p_h), params["wh"],
                                    precision=hp) + params["bh"])
    a_w = jax.nn.sigmoid(jnp.einsum('nsm,mc->nsc', squeeze(p_w), params["ww"],
                                    precision=hp) + params["bw"])

    out = x1 * a_w[:, None, :, :] * a_h[:, :, None, :]
    if shortcut and c1 == c2:
        out = out + x
    return jnp.transpose(out, (0, 3, 1, 2))


if __name__ == "__main__":
    key = jax.random.PRNGKey(0)
    kx, kp = jax.random.split(key)

    N, c1, c2, H, W = 2, 8, 8, 16, 16          # c1 == c2 required by the module
    x = jax.random.normal(kx, (N, c1, H, W), jnp.float32)
    params = init_params(kp, c1, c2, e=0.5, ratio=32)

    fwd = jax.jit(lambda v: ca_bottleneck_forward(v, params, shortcut=True))
    out = jax.block_until_ready(fwd(x))

    ref = jax.block_until_ready(ref_forward(x, params, shortcut=True))
    np.testing.assert_allclose(np.asarray(out), np.asarray(ref), rtol=3e-2, atol=2e-2)
    assert out.shape == (N, c2, H, W)

    print("KERNEL_OK")
</pallas_src>

<mosaic_0001>
module attributes {stable_mosaic.version = 11 : i64} {
  func.func @_ca_kernel(%arg0: i32, %arg1: memref<1x384x9xbf16, #tpu.memory_space<vmem>>, %arg2: memref<1x16x24x8xf32, #tpu.memory_space<vmem>>, %arg3: memref<9x4xbf16, #tpu.memory_space<vmem>>, %arg4: memref<36x8xbf16, #tpu.memory_space<vmem>>, %arg5: memref<1x8xf32, #tpu.memory_space<vmem>>, %arg6: memref<1x8xf32, #tpu.memory_space<vmem>>, %arg7: memref<8x8xf32, #tpu.memory_space<vmem>>, %arg8: memref<1x8xf32, #tpu.memory_space<vmem>>, %arg9: memref<8x8xf32, #tpu.memory_space<vmem>>, %arg10: memref<1x8xf32, #tpu.memory_space<vmem>>, %arg11: memref<8x8xf32, #tpu.memory_space<vmem>>, %arg12: memref<1x8xf32, #tpu.memory_space<vmem>>, %arg13: memref<1x16x24x8xf32, #tpu.memory_space<vmem>>, %arg14: memref<456x4xbf16, #tpu.memory_space<vmem>>, %arg15: memref<384x36xbf16, #tpu.memory_space<vmem>>) attributes {dimension_semantics = [#tpu.dimension_semantics<parallel>], iteration_bounds = array<i64: 2>, scalar_prefetch = 0 : i64, scratch_operands = 2 : i64, tpu.core_type = #tpu.core_type<tc>, window_params = [{transform_indices = @transform_0, window_bounds = array<i64: 1, 384, 9>}, {transform_indices = @transform_1, window_bounds = array<i64: 1, 16, 24, 8>}, {pipeline_mode = #tpu.pipeline_mode<synchronous>, transform_indices = @transform_2, window_bounds = array<i64: 9, 4>}, {pipeline_mode = #tpu.pipeline_mode<synchronous>, transform_indices = @transform_3, window_bounds = array<i64: 36, 8>}, {pipeline_mode = #tpu.pipeline_mode<synchronous>, transform_indices = @transform_4, window_bounds = array<i64: 1, 8>}, {pipeline_mode = #tpu.pipeline_mode<synchronous>, transform_indices = @transform_5, window_bounds = array<i64: 1, 8>}, {pipeline_mode = #tpu.pipeline_mode<synchronous>, transform_indices = @transform_6, window_bounds = array<i64: 8, 8>}, {pipeline_mode = #tpu.pipeline_mode<synchronous>, transform_indices = @transform_7, window_bounds = array<i64: 1, 8>}, {pipeline_mode = #tpu.pipeline_mode<synchronous>, transform_indices = @transform_8, window_bounds = array<i64: 8, 8>}, {pipeline_mode = #tpu.pipeline_mode<synchronous>, transform_indices = @transform_9, window_bounds = array<i64: 1, 8>}, {pipeline_mode = #tpu.pipeline_mode<synchronous>, transform_indices = @transform_10, window_bounds = array<i64: 8, 8>}, {pipeline_mode = #tpu.pipeline_mode<synchronous>, transform_indices = @transform_11, window_bounds = array<i64: 1, 8>}, {transform_indices = @transform_12, window_bounds = array<i64: 1, 16, 24, 8>}]} {
    %c0 = arith.constant 0 : index
    %c0_0 = arith.constant 0 : index
    %c0_1 = arith.constant 0 : index
    %0 = vector.load %arg1[%c0, %c0_0, %c0_1] : memref<1x384x9xbf16, #tpu.memory_space<vmem>>, vector<1x384x9xbf16>
    %1 = vector.shape_cast %0 : vector<1x384x9xbf16> to vector<384x9xbf16>
    %c0_2 = arith.constant 0 : index
    %c0_3 = arith.constant 0 : index
    %2 = vector.load %arg3[%c0_2, %c0_3] : memref<9x4xbf16, #tpu.memory_space<vmem>>, vector<9x4xbf16>
    %cst = arith.constant dense<0.000000e+00> : vector<384x4xf32>
    %3 = tpu.matmul %1, %2, %cst {dimension_numbers = #tpu.dot_dimension_numbers<[1], [0], [0], [1], [0, 0, 1, 1], [], []>} : vector<384x9xbf16>, vector<9x4xbf16>, vector<384x4xf32> -> vector<384x4xf32>
    %4 = arith.negf %3 : vector<384x4xf32>
    %5 = math.exp %4 : vector<384x4xf32>
    %cst_4 = arith.constant 1.000000e+00 : f32
    %6 = vector.broadcast %cst_4 : f32 to vector<384x4xf32>
    %7 = arith.addf %6, %5 : vector<384x4xf32>
    %8 = arith.divf %6, %7 : vector<384x4xf32>
    %9 = arith.mulf %3, %8 : vector<384x4xf32>
    %cst_5 = arith.constant 0.000000e+00 : bf16
    %10 = vector.broadcast %cst_5 : bf16 to vector<24x4xbf16>
    %c0_6 = arith.constant 0 : index
    %c0_7 = arith.constant 0 : index
    %11 = vector.load %arg14[%c0_6, %c0_7] : memref<456x4xbf16, #tpu.memory_space<vmem>>, vector<24x4xbf16>
    tpu.vector_store %arg14[%c0_6, %c0_7], %10 {strides = array<i32>} : memref<456x4xbf16, #tpu.memory_space<vmem>>, vector<24x4xbf16>,
    %12 = arith.truncf %9 : vector<384x4xf32> to vector<384x4xbf16>
    %c24 = arith.constant 24 : index
    %c0_8 = arith.constant 0 : index
    %13 = vector.load %arg14[%c24, %c0_8] : memref<456x4xbf16, #tpu.memory_space<vmem>>, vector<384x4xbf16>
    tpu.vector_store %arg14[%c24, %c0_8], %12 {strides = array<i32>} : memref<456x4xbf16, #tpu.memory_space<vmem>>, vector<384x4xbf16>,
    %cst_9 = arith.constant 0.000000e+00 : bf16
    %14 = vector.broadcast %cst_9 : bf16 to vector<48x4xbf16>
    %c408 = arith.constant 408 : index
    %c0_10 = arith.constant 0 : index
    %15 = vector.load %arg14[%c408, %c0_10] : memref<456x4xbf16, #tpu.memory_space<vmem>>, vector<48x4xbf16>
    tpu.vector_store %arg14[%c408, %c0_10], %14 {strides = array<i32>} : memref<456x4xbf16, #tpu.memory_space<vmem>>, vector<48x4xbf16>,
    %c0_11 = arith.constant 0 : index
    %c0_12 = arith.constant 0 : index
    %16 = vector.load %arg14[%c0_11, %c0_12] : memref<456x4xbf16, #tpu.memory_space<vmem>>, vector<384x4xbf16>
    %c0_13 = arith.constant 0 : index
    %c0_14 = arith.constant 0 : index
    %17 = vector.load %arg15[%c0_13, %c0_14] : memref<384x36xbf16, #tpu.memory_space<vmem>>, vector<384x4xbf16>
    tpu.vector_store %arg15[%c0_13, %c0_14], %16 {strides = array<i32>} : memref<384x36xbf16, #tpu.memory_space<vmem>>, vector<384x4xbf16>,
    %c1 = arith.constant 1 : index
    %c0_15 = arith.constant 0 : index
    %18 = vector.load %arg14[%c1, %c0_15] : memref<456x4xbf16, #tpu.memory_space<vmem>>, vector<384x4xbf16>
    %c0_16 = arith.constant 0 : index
    %c4 = arith.constant 4 : index
    %19 = vector.load %arg15[%c0_16, %c4] : memref<384x36xbf16, #tpu.memory_space<vmem>>, vector<384x4xbf16>
    tpu.vector_store %arg15[%c0_16, %c4], %18 {strides = array<i32>} : memref<384x36xbf16, #tpu.memory_space<vmem>>, vector<384x4xbf16>,
    %c2 = arith.constant 2 : index
    %c0_17 = arith.constant 0 : index
    %20 = vector.load %arg14[%c2, %c0_17] : memref<456x4xbf16, #tpu.memory_space<vmem>>, vector<384x4xbf16>
    %c0_18 = arith.constant 0 : index
    %c8 = arith.constant 8 : index
    %21 = vector.load %arg15[%c0_18, %c8] : memref<384x36xbf16, #tpu.memory_space<vmem>>, vector<384x4xbf16>
    tpu.vector_store %arg15[%c0_18, %c8], %20 {strides = array<i32>} : memref<384x36xbf16, #tpu.memory_space<vmem>>, vector<384x4xbf16>,
    %c24_19 = arith.constant 24 : index
    %c0_20 = arith.constant 0 : index
    %22 = vector.load %arg14[%c24_19, %c0_20] : memref<456x4xbf16, #tpu.memory_space<vmem>>, vector<384x4xbf16>
    %c0_21 = arith.constant 0 : index
    %c12 = arith.constant 12 : index
    %23 = vector.load %arg15[%c0_21, %c12] : memref<384x36xbf16, #tpu.memory_space<vmem>>, vector<384x4xbf16>
    tpu.vector_store %arg15[%c0_21, %c12], %22 {strides = array<i32>} : memref<384x36xbf16, #tpu.memory_space<vmem>>, vector<384x4xbf16>,
    %c25 = arith.constant 25 : index
    %c0_22 = arith.constant 0 : index
    %24 = vector.load %arg14[%c25, %c0_22] : memref<456x4xbf16, #tpu.memory_space<vmem>>, vector<384x4xbf16>
    %c0_23 = arith.constant 0 : index
    %c16 = arith.constant 16 : index
    %25 = vector.load %arg15[%c0_23, %c16] : memref<384x36xbf16, #tpu.memory_space<vmem>>, vector<384x4xbf16>
    tpu.vector_store %arg15[%c0_23, %c16], %24 {strides = array<i32>} : memref<384x36xbf16, #tpu.memory_space<vmem>>, vector<384x4xbf16>,
    %c26 = arith.constant 26 : index
    %c0_24 = arith.constant 0 : index
    %26 = vector.load %arg14[%c26, %c0_24] : memref<456x4xbf16, #tpu.memory_space<vmem>>, vector<384x4xbf16>
    %c0_25 = arith.constant 0 : index
    %c20 = arith.constant 20 : index
    %27 = vector.load %arg15[%c0_25, %c20] : memref<384x36xbf16, #tpu.memory_space<vmem>>, vector<384x4xbf16>
    tpu.vector_store %arg15[%c0_25, %c20], %26 {strides = array<i32>} : memref<384x36xbf16, #tpu.memory_space<vmem>>, vector<384x4xbf16>,
    %c48 = arith.constant 48 : index
    %c0_26 = arith.constant 0 : index
    %28 = vector.load %arg14[%c48, %c0_26] : memref<456x4xbf16, #tpu.memory_space<vmem>>, vector<384x4xbf16>
    %c0_27 = arith.constant 0 : index
    %c24_28 = arith.constant 24 : index
    %29 = vector.load %arg15[%c0_27, %c24_28] : memref<384x36xbf16, #tpu.memory_space<vmem>>, vector<384x4xbf16>
    tpu.vector_store %arg15[%c0_27, %c24_28], %28 {strides = array<i32>} : memref<384x36xbf16, #tpu.memory_space<vmem>>, vector<384x4xbf16>,
    %c49 = arith.constant 49 : index
    %c0_29 = arith.constant 0 : index
    %30 = vector.load %arg14[%c49, %c0_29] : memref<456x4xbf16, #tpu.memory_space<vmem>>, vector<384x4xbf16>
    %c0_30 = arith.constant 0 : index
    %c28 = arith.constant 28 : index
    %31 = vector.load %arg15[%c0_30, %c28] : memref<384x36xbf16, #tpu.memory_space<vmem>>, vector<384x4xbf16>
    tpu.vector_store %arg15[%c0_30, %c28], %30 {strides = array<i32>} : memref<384x36xbf16, #tpu.memory_space<vmem>>, vector<384x4xbf16>,
    %c50 = arith.constant 50 : index
    %c0_31 = arith.constant 0 : index
    %32 = vector.load %arg14[%c50, %c0_31] : memref<456x4xbf16, #tpu.memory_space<vmem>>, vector<384x4xbf16>
    %c0_32 = arith.constant 0 : index
    %c32 = arith.constant 32 : index
    %33 = vector.load %arg15[%c0_32, %c32] : memref<384x36xbf16, #tpu.memory_space<vmem>>, vector<384x4xbf16>
    tpu.vector_store %arg15[%c0_32, %c32], %32 {strides = array<i32>} : memref<384x36xbf16, #tpu.memory_space<vmem>>, vector<384x4xbf16>,
    %c0_33 = arith.constant 0 : index
    %c0_34 = arith.constant 0 : index
    %34 = vector.load %arg15[%c0_33, %c0_34] : memref<384x36xbf16, #tpu.memory_space<vmem>>, vector<384x36xbf16>
    %c0_35 = arith.constant 0 : index
    %c0_36 = arith.constant 0 : index
    %35 = vector.load %arg4[%c0_35, %c0_36] : memref<36x8xbf16, #tpu.memory_space<vmem>>, vector<36x8xbf16>
    %cst_37 = arith.constant dense<0.000000e+00> : vector<384x8xf32>
    %36 = tpu.matmul %34, %35, %cst_37 {dimension_numbers = #tpu.dot_dimension_numbers<[1], [0], [0], [1], [0, 0, 1, 1], [], []>} : vector<384x36xbf16>, vector<36x8xbf16>, vector<384x8xf32> -> vector<384x8xf32>
    %c0_38 = arith.constant 0 : index
    %c0_39 = arith.constant 0 : index
    %37 = vector.load %arg5[%c0_38, %c0_39] : memref<1x8xf32, #tpu.memory_space<vmem>>, vector<1x8xf32>
    %38 = vector.broadcast %37 : vector<1x8xf32> to vector<384x8xf32>
    %39 = arith.mulf %36, %38 : vector<384x8xf32>
    %c0_40 = arith.constant 0 : index
    %c0_41 = arith.constant 0 : index
    %40 = vector.load %arg6[%c0_40, %c0_41] : memref<1x8xf32, #tpu.memory_space<vmem>>, vector<1x8xf32>
    %41 = vector.broadcast %40 : vector<1x8xf32> to vector<384x8xf32>
    %42 = arith.addf %39, %41 : vector<384x8xf32>
    %43 = arith.negf %42 : vector<384x8xf32>
    %44 = math.exp %43 : vector<384x8xf32>
    %cst_42 = arith.constant 1.000000e+00 : f32
    %45 = vector.broadcast %cst_42 : f32 to vector<384x8xf32>
    %46 = arith.addf %45, %44 : vector<384x8xf32>
    %47 = arith.divf %45, %46 : vector<384x8xf32>
    %48 = arith.mulf %42, %47 : vector<384x8xf32>
    %49 = vector.shape_cast %48 : vector<384x8xf32> to vector<16x24x8xf32>
    %50 = vector.extract_strided_slice %49 {offsets = [0, 0, 0], sizes = [16, 16, 8], strides = [1, 1, 1]} : vector<16x24x8xf32> to vector<16x16x8xf32>
    %cst_43 = arith.constant dense<0.000000e+00> : vector<16x8xf32>
    %51 = vector.multi_reduction <add>, %50, %cst_43 [1] : vector<16x16x8xf32> to vector<16x8xf32>
    %cst_44 = arith.constant 6.250000e-02 : f32
    %52 = vector.broadcast %cst_44 : f32 to vector<16x8xf32>
    %53 = arith.mulf %51, %52 : vector<16x8xf32>
    %cst_45 = arith.constant dense<0.000000e+00> : vector<24x8xf32>
    %54 = vector.multi_reduction <add>, %49, %cst_45 [0] : vector<16x24x8xf32> to vector<24x8xf32>
    %cst_46 = arith.constant 6.250000e-02 : f32
    %55 = vector.broadcast %cst_46 : f32 to vector<24x8xf32>
    %56 = arith.mulf %54, %55 : vector<24x8xf32>
    %c0_47 = arith.constant 0 : index
    %c0_48 = arith.constant 0 : index
    %57 = vector.load %arg7[%c0_47, %c0_48] : memref<8x8xf32, #tpu.memory_space<vmem>>, vector<8x8xf32>
    %cst_49 = arith.constant dense<0.000000e+00> : vector<16x8xf32>
    %58 = tpu.matmul %53, %57, %cst_49 {dimension_numbers = #tpu.dot_dimension_numbers<[1], [0], [0], [1], [0, 0, 1, 1], [], []>} : vector<16x8xf32>, vector<8x8xf32>, vector<16x8xf32> -> vector<16x8xf32>
    %c0_50 = arith.constant 0 : index
    %c0_51 = arith.constant 0 : index
    %59 = vector.load %arg8[%c0_50, %c0_51] : memref<1x8xf32, #tpu.memory_space<vmem>>, vector<1x8xf32>
    %60 = vector.broadcast %59 : vector<1x8xf32> to vector<16x8xf32>
    %61 = arith.addf %58, %60 : vector<16x8xf32>
    %cst_52 = arith.constant 3.000000e+00 : f32
    %62 = vector.broadcast %cst_52 : f32 to vector<16x8xf32>
    %63 = arith.addf %61, %62 : vector<16x8xf32>
    %cst_53 = arith.constant 0.000000e+00 : f32
    %cst_54 = arith.constant 6.000000e+00 : f32
    %64 = vector.broadcast %cst_53 : f32 to vector<16x8xf32>
    %65 = arith.maximumf %64, %63 : vector<16x8xf32>
    %66 = vector.broadcast %cst_54 : f32 to vector<16x8xf32>
    %67 = arith.minimumf %66, %65 : vector<16x8xf32>
    %68 = arith.mulf %61, %67 : vector<16x8xf32>
    %cst_55 = arith.constant 0.166666672 : f32
    %69 = vector.broadcast %cst_55 : f32 to vector<16x8xf32>
    %70 = arith.mulf %68, %69 : vector<16x8xf32>
    %c0_56 = arith.constant 0 : index
    %c0_57 = arith.constant 0 : index
    %71 = vector.load %arg9[%c0_56, %c0_57] : memref<8x8xf32, #tpu.memory_space<vmem>>, vector<8x8xf32>
    %cst_58 = arith.constant dense<0.000000e+00> : vector<16x8xf32>
    %72 = tpu.matmul %70, %71, %cst_58 {dimension_numbers = #tpu.dot_dimension_numbers<[1], [0], [0], [1], [0, 0, 1, 1], [], []>} : vector<16x8xf32>, vector<8x8xf32>, vector<16x8xf32> -> vector<16x8xf32>
    %c0_59 = arith.constant 0 : index
    %c0_60 = arith.constant 0 : index
    %73 = vector.load %arg10[%c0_59, %c0_60] : memref<1x8xf32, #tpu.memory_space<vmem>>, vector<1x8xf32>
    %74 = vector.broadcast %73 : vector<1x8xf32> to vector<16x8xf32>
    %75 = arith.addf %72, %74 : vector<16x8xf32>
    %76 = arith.negf %75 : vector<16x8xf32>
    %77 = math.exp %76 : vector<16x8xf32>
    %cst_61 = arith.constant 1.000000e+00 : f32
    %78 = vector.broadcast %cst_61 : f32 to vector<16x8xf32>
    %79 = arith.addf %78, %77 : vector<16x8xf32>
    %80 = arith.divf %78, %79 : vector<16x8xf32>
    %c0_62 = arith.constant 0 : index
    %c0_63 = arith.constant 0 : index
    %81 = vector.load %arg7[%c0_62, %c0_63] : memref<8x8xf32, #tpu.memory_space<vmem>>, vector<8x8xf32>
    %cst_64 = arith.constant dense<0.000000e+00> : vector<24x8xf32>
    %82 = tpu.matmul %56, %81, %cst_64 {dimension_numbers = #tpu.dot_dimension_numbers<[1], [0], [0], [1], [0, 0, 1, 1], [], []>} : vector<24x8xf32>, vector<8x8xf32>, vector<24x8xf32> -> vector<24x8xf32>
    %c0_65 = arith.constant 0 : index
    %c0_66 = arith.constant 0 : index
    %83 = vector.load %arg8[%c0_65, %c0_66] : memref<1x8xf32, #tpu.memory_space<vmem>>, vector<1x8xf32>
    %84 = vector.broadcast %83 : vector<1x8xf32> to vector<24x8xf32>
    %85 = arith.addf %82, %84 : vector<24x8xf32>
    %cst_67 = arith.constant 3.000000e+00 : f32
    %86 = vector.broadcast %cst_67 : f32 to vector<24x8xf32>
    %87 = arith.addf %85, %86 : vector<24x8xf32>
    %cst_68 = arith.constant 0.000000e+00 : f32
    %cst_69 = arith.constant 6.000000e+00 : f32
    %88 = vector.broadcast %cst_68 : f32 to vector<24x8xf32>
    %89 = arith.maximumf %88, %87 : vector<24x8xf32>
    %90 = vector.broadcast %cst_69 : f32 to vector<24x8xf32>
    %91 = arith.minimumf %90, %89 : vector<24x8xf32>
    %92 = arith.mulf %85, %91 : vector<24x8xf32>
    %cst_70 = arith.constant 0.166666672 : f32
    %93 = vector.broadcast %cst_70 : f32 to vector<24x8xf32>
    %94 = arith.mulf %92, %93 : vector<24x8xf32>
    %c0_71 = arith.constant 0 : index
    %c0_72 = arith.constant 0 : index
    %95 = vector.load %arg11[%c0_71, %c0_72] : memref<8x8xf32, #tpu.memory_space<vmem>>, vector<8x8xf32>
    %cst_73 = arith.constant dense<0.000000e+00> : vector<24x8xf32>
    %96 = tpu.matmul %94, %95, %cst_73 {dimension_numbers = #tpu.dot_dimension_numbers<[1], [0], [0], [1], [0, 0, 1, 1], [], []>} : vector<24x8xf32>, vector<8x8xf32>, vector<24x8xf32> -> vector<24x8xf32>
    %c0_74 = arith.constant 0 : index
    %c0_75 = arith.constant 0 : index
    %97 = vector.load %arg12[%c0_74, %c0_75] : memref<1x8xf32, #tpu.memory_space<vmem>>, vector<1x8xf32>
    %98 = vector.broadcast %97 : vector<1x8xf32> to vector<24x8xf32>
    %99 = arith.addf %96, %98 : vector<24x8xf32>
    %100 = arith.negf %99 : vector<24x8xf32>
    %101 = math.exp %100 : vector<24x8xf32>
    %cst_76 = arith.constant 1.000000e+00 : f32
    %102 = vector.broadcast %cst_76 : f32 to vector<24x8xf32>
    %103 = arith.addf %102, %101 : vector<24x8xf32>
    %104 = arith.divf %102, %103 : vector<24x8xf32>
    %105 = vector.shape_cast %104 : vector<24x8xf32> to vector<1x24x8xf32>
    %106 = vector.broadcast %105 : vector<1x24x8xf32> to vector<16x24x8xf32>
    %107 = arith.mulf %49, %106 : vector<16x24x8xf32>
    %108 = vector.shape_cast %80 : vector<16x8xf32> to vector<16x1x8xf32>
    %109 = vector.broadcast %108 : vector<16x1x8xf32> to vector<16x24x8xf32>
    %110 = arith.mulf %107, %109 : vector<16x24x8xf32>
    %c0_77 = arith.constant 0 : index
    %c0_78 = arith.constant 0 : index
    %c0_79 = arith.constant 0 : index
    %c0_80 = arith.constant 0 : index
    %111 = vector.load %arg2[%c0_77, %c0_78, %c0_79, %c0_80] : memref<1x16x24x8xf32, #tpu.memory_space<vmem>>, vector<1x16x24x8xf32>
    %112 = vector.shape_cast %111 : vector<1x16x24x8xf32> to vector<16x24x8xf32>
    %113 = arith.addf %110, %112 : vector<16x24x8xf32>
    %c0_81 = arith.constant 0 : index
    %c0_82 = arith.constant 0 : index
    %c0_83 = arith.constant 0 : index
    %c0_84 = arith.constant 0 : index
    %114 = vector.load %arg13[%c0_81, %c0_82, %c0_83, %c0_84] : memref<1x16x24x8xf32, #tpu.memory_space<vmem>>, vector<1x16x24x8xf32>
    %115 = vector.shape_cast %114 : vector<1x16x24x8xf32> to vector<16x24x8xf32>
    %116 = vector.shape_cast %113 : vector<16x24x8xf32> to vector<1x16x24x8xf32>
    tpu.vector_store %arg13[%c0_81, %c0_82, %c0_83, %c0_84], %116 {strides = array<i32>} : memref<1x16x24x8xf32, #tpu.memory_space<vmem>>, vector<1x16x24x8xf32>,
    return
  }
  func.func @transform_0(%arg0: i32) -> (i32, i32, i32) {
    %c0_i32 = arith.constant 0 : i32
    %c0_i32_0 = arith.constant 0 : i32
    %c0_i32_1 = arith.constant 0 : i32
    return %arg0, %c0_i32, %c0_i32_0 : i32, i32, i32
  }
  func.func @transform_1(%arg0: i32) -> (i32, i32, i32, i32) {
    %c0_i32 = arith.constant 0 : i32
    %c0_i32_0 = arith.constant 0 : i32
    %c0_i32_1 = arith.constant 0 : i32
    %c0_i32_2 = arith.constant 0 : i32
    return %arg0, %c0_i32, %c0_i32_0, %c0_i32_1 : i32, i32, i32, i32
  }
  func.func @transform_2(%arg0: i32) -> (i32, i32) {
    %c0_i32 = arith.constant 0 : i32
    %c0_i32_0 = arith.constant 0 : i32
    %c0_i32_1 = arith.constant 0 : i32
    return %c0_i32, %c0_i32_0 : i32, i32
  }
  func.func @transform_3(%arg0: i32) -> (i32, i32) {
    %c0_i32 = arith.constant 0 : i32
    %c0_i32_0 = arith.constant 0 : i32
    %c0_i32_1 = arith.constant 0 : i32
    return %c0_i32, %c0_i32_0 : i32, i32
  }
  func.func @transform_4(%arg0: i32) -> (i32, i32) {
    %c0_i32 = arith.constant 0 : i32
    %c0_i32_0 = arith.constant 0 : i32
    %c0_i32_1 = arith.constant 0 : i32
    return %c0_i32, %c0_i32_0 : i32, i32
  }
  func.func @transform_5(%arg0: i32) -> (i32, i32) {
    %c0_i32 = arith.constant 0 : i32
    %c0_i32_0 = arith.constant 0 : i32
    %c0_i32_1 = arith.constant 0 : i32
    return %c0_i32, %c0_i32_0 : i32, i32
  }
  func.func @transform_6(%arg0: i32) -> (i32, i32) {
    %c0_i32 = arith.constant 0 : i32
    %c0_i32_0 = arith.constant 0 : i32
    %c0_i32_1 = arith.constant 0 : i32
    return %c0_i32, %c0_i32_0 : i32, i32
  }
  func.func @transform_7(%arg0: i32) -> (i32, i32) {
    %c0_i32 = arith.constant 0 : i32
    %c0_i32_0 = arith.constant 0 : i32
    %c0_i32_1 = arith.constant 0 : i32
    return %c0_i32, %c0_i32_0 : i32, i32
  }
  func.func @transform_8(%arg0: i32) -> (i32, i32) {
    %c0_i32 = arith.constant 0 : i32
    %c0_i32_0 = arith.constant 0 : i32
    %c0_i32_1 = arith.constant 0 : i32
    return %c0_i32, %c0_i32_0 : i32, i32
  }
  func.func @transform_9(%arg0: i32) -> (i32, i32) {
    %c0_i32 = arith.constant 0 : i32
    %c0_i32_0 = arith.constant 0 : i32
    %c0_i32_1 = arith.constant 0 : i32
    return %c0_i32, %c0_i32_0 : i32, i32
  }
  func.func @transform_10(%arg0: i32) -> (i32, i32) {
    %c0_i32 = arith.constant 0 : i32
    %c0_i32_0 = arith.constant 0 : i32
    %c0_i32_1 = arith.constant 0 : i32
    return %c0_i32, %c0_i32_0 : i32, i32
  }
  func.func @transform_11(%arg0: i32) -> (i32, i32) {
    %c0_i32 = arith.constant 0 : i32
    %c0_i32_0 = arith.constant 0 : i32
    %c0_i32_1 = arith.constant 0 : i32
    return %c0_i32, %c0_i32_0 : i32, i32
  }
  func.func @transform_12(%arg0: i32) -> (i32, i32, i32, i32) {
    %c0_i32 = arith.constant 0 : i32
    %c0_i32_0 = arith.constant 0 : i32
    %c0_i32_1 = arith.constant 0 : i32
    %c0_i32_2 = arith.constant 0 : i32
    return %arg0, %c0_i32, %c0_i32_0, %c0_i32_1 : i32, i32, i32, i32
  }
}

</mosaic_0001>

<bundles_post_ra>
// kernel: _lambda_.1
= control target key start
LH: loop header
LB: loop body
LE: loop exit
PB: predicated region body
PF: predicated region fallthrough
CT: control target
= control target key end

     0   :  { %s8868_s21 = smov 0   ;;  %s13275_s0 = inlined_call_operand.vmem [shape: bf16[2,384,9], index: 0, kind: input, shape index: {}]   ;;  %s13276_s1 = inlined_call_operand.vmem [shape: f32[2,16,24,8], index: 1, kind: input, shape index: {}]   ;;  %s13277_s2 = inlined_call_operand.vmem [shape: bf16[9,4], index: 2, kind: input, shape index: {}]   ;;  %s13278_s3 = inlined_call_operand.vmem [shape: bf16[36,8], index: 3, kind: input, shape index: {}]   ;;  %s13279_s4 = inlined_call_operand.vmem [shape: f32[1,8], index: 4, kind: input, shape index: {}]   ;;  %s13280_s5 = inlined_call_operand.vmem [shape: f32[1,8], index: 5, kind: input, shape index: {}]   ;;  %s13281_s6 = inlined_call_operand.vmem [shape: f32[8,8], index: 6, kind: input, shape index: {}]   ;;  %s13282_s7 = inlined_call_operand.vmem [shape: f32[1,8], index: 7, kind: input, shape index: {}]   ;;  %s13283_s8 = inlined_call_operand.vmem [shape: f32[8,8], index: 8, kind: input, shape index: {}]   ;;  %s13284_s9 = inlined_call_operand.vmem [shape: f32[1,8], index: 9, kind: input, shape index: {}]   ;;  %s13285_s10 = inlined_call_operand.vmem [shape: f32[8,8], index: 10, kind: input, shape index: {}]   ;;  %s13286_s11 = inlined_call_operand.vmem [shape: f32[1,8], index: 11, kind: input, shape index: {}]   ;;  %s13287_s12 = inlined_call_operand.vmem [shape: f32[2,16,24,8], index: 12, kind: output, shape index: {}]  }
   0x1 LB: > { %s7769_s22 = sadd.s32 4294967295, %s8788_s21   ;;  %p7773_p0 = scmp.ge.s32.totalorder %s8788_s21, 1  ;;  %s8788_s21 = sphi %s8868_s21, %s22_s21  }
   0x2   : > { %p372_p1 = scmp.lt.s32.totalorder %s8788_s21, 3 }
   0x4   : > { %p373_p2 = pnand %p7773_p0, %p372_p1 }
   0x6   : > { %376 = sbr.rel (%p373_p2) target bundleno = 2090 (0x82a), region = 68 }
   0xb   : > { %v8320_v0 = vld [vmem:[%s13277_s2] sm:$0x1f]   ;;  %vm683_vm0 = vcmask 1043456   ;;  %vm684_vm1 = vcmask 1044480   ;;  %p419_p3 = scmp.lt.s32.totalorder %s7769_s22, 1  ;;  %v8790_v1 = vmov 65535  }
   0xc   : > { %v685_v2 = vsel %vm683_vm0, 4294967295, %v8790_v1  ;;  %vm610_vm2 = vcmask 72704   ;;  %vm1251_vm3 = vcmask 27648   ;;  %v8791_v17 = vmov 0   ;;  %s8792_s29 = smov 8   ;;  %s8793_s30 = smov 4  }
   0xd   : > { %v686_v3 = vsel %vm684_vm1, %v685_v2, 0  ;;  %s13421_s22 = smov (!%p419_p3, %s7769_s22), 1  ;;  %1252 = vst.msk [vmem:[#allocation2] sm:$0xf] %vm1251_vm3, %v8791_v17  ;;  %1253 = vst.msk [vmem:[#allocation2 + $0x4] sm:$0xf] %vm1251_vm3, %v8791_v17 }
   0xe   : > { %v688_v4 = vand.u32 %v8320_v0, %v686_v3  ;;  %s8297_s25 = smul.u32 192, %s13421_s22  ;;  %1254 = vst.msk [vmem:[#allocation2 + $0x8] sm:$0xf] %vm1251_vm3, %v8791_v17  ;;  %1495 = vst.msk [vmem:[#allocation2 + $0xcc] sm:$0xf] %vm1251_vm3, %v8791_v17  ;;  %vm2424_vm4 = vcmask 1042432  }
   0xf   : > { %1496 = vst.msk [vmem:[#allocation2 + $0xd0] sm:$0xf] %vm1251_vm3, %v8791_v17  ;;  %1497 = vst.msk [vmem:[#allocation2 + $0xd4] sm:$0xf] %vm1251_vm3, %v8791_v17  ;;  %vm2425_vm5 = vcmask 1046532   ;;  %vm2277_vm10 = vcmask 60448  }
  0x10   : > { %8160 = vmatprep.subr.bf16.mxu0 %v688_v4  ;;  %s8885_s28 = scalar_lea.vmem %s13275_s0, %s8297_s25  ;;  %1498 = vst.msk [vmem:[#allocation2 + $0xd8] sm:$0xf] %vm1251_vm3, %v8791_v17  ;;  %vm8918_vm6 = vmor %vm2424_vm4, %vm2425_vm5  ;;  %vm1646_vm7 = vsmask.f32 3328  ;;  %vm1647_vm8 = vsmask.f32 7440 }
  0x11   : > { %8161 = vmatpush3.bf16.msra.mxu0 %v688_v4  ;;  %v8321_v5 = vld [vmem:[%s8885_s28] sm:$0xff]   ;;  %v8322_v6 = vld [vmem:[%s8885_s28 + $0x8] sm:$0xff]   ;;  %v8323_v7 = vld [vmem:[%s8885_s28 + $0x10] sm:$0xff]   ;;  %vm2716_vm11 = vcmask 93248   ;;  %s8794_s13 = smov 12   ;;  %s8795_s14 = smov 24  }
  0x12   : > { %8162 = vmatprep.mubr.msk.bf16.mxu0 %vm610_vm2, %v8321_v5  ;;  %v8324_v8 = vld [vmem:[%s8885_s28 + $0x18] sm:$0xff]   ;;  %v8325_v9 = vld [vmem:[%s8885_s28 + $0x20] sm:$0xff]   ;;  %v8326_v10 = vld [vmem:[%s8885_s28 + $0x28] sm:$0xff]   ;;  %s8796_s15 = smov 20   ;;  %s8797_s16 = smov 16   ;;  %vm3005_vm12 = vcmask 126048  }
  0x13   : > { %v8327_v11 = vld [vmem:[%s8885_s28 + $0x30] sm:$0xff]   ;;  %v8328_v12 = vld [vmem:[%s8885_s28 + $0x38] sm:$0xff]   ;;  %v8329_v13 = vld [vmem:[%s8885_s28 + $0x40] sm:$0xff]   ;;  %s8798_s17 = smov 32   ;;  %s8799_s18 = smov 28   ;;  %vm5928_vm13 = vcmask 1041408  }
  0x14   : > { %8163 = vmatmul.mubr.msk.bf16.vlgmr.msra.gmra.mxu0 %vm610_vm2, %v8322_v6  ;;  %v8330_v14 = vld [vmem:[%s8885_s28 + $0x48] sm:$0xff]   ;;  %v8331_v15 = vld [vmem:[%s8885_s28 + $0x50] sm:$0xff]   ;;  %v8332_v16 = vld [vmem:[%s8885_s28 + $0x58] sm:$0xff]   ;;  %vm3731_vm14 = vcmask 158848   ;;  %vm4167_vm15 = vcmask 191648   ;;  %vm4456_vm0 = vcmask 224448  }
  0x15   : > { %8166 = vmatprep.mubr.msk.bf16.mxu0 %vm610_vm2, %v8323_v7  ;;  %v1597_v18 = vld [vmem:[#allocation2] sm:$0xf]  ;;  %v2327_v22 = vld [vmem:[#allocation2 + $0x4] sm:$0xf]  ;;  %vm8925_vm9 = vmor %vm1646_vm7, %vm1647_vm8  ;;  %vm5182_vm1 = vcmask 257248   ;;  %vm5618_vm4 = vcmask 290048  }
  0x16   : > { %v1650_v19 = vshrl.u32 %v1597_v18, 16  ;;  %v1653_v20 = vshll.u32 %v1597_v18, 16  ;;  %v2326_v21 = vld [vmem:[#allocation2] sm:$0xe]  ;;  %v2429_v24 = vrot.slane %v2327_v22, 5  ;;  %v8334_v52 = vld [vmem:[%s8885_s28 + $0x68] sm:$0xff]  }
  0x17   : > { %v7922_v23 = vrot.slane %v2326_v21, 9  ;;  %v1598_v26 = vld [vmem:[#allocation2 + $0x4] sm:$0xf]  ;;  %v1599_v37 = vld [vmem:[#allocation2 + $0x8] sm:$0xf]  ;;  %v8335_v53 = vld [vmem:[%s8885_s28 + $0x70] sm:$0xff]  }
  0x18   : > { %v1652_v27 = vrot.slane %v1650_v19, 4  ;;  %v1655_v28 = vrot.slane %v1653_v20, 5  ;;  %v1659_v30 = vshll.u32 %v1598_v26, 16  ;;  %v1663_v31 = vshrl.u32 %v1598_v26, 16  ;;  %v8937_v44 = vld [vmem:[#allocation2 + $0x8] sm:$0xf] }
  0x19   : > { %v2430_v29 = vsel %vm8918_vm6, %v7922_v23, %v2429_v24  ;;  %v1669_v39 = vshll.u32 %v1599_v37, 16  ;;  %v2431_v45 = vrot.slane %v2429_v24, 4  ;;  %v2432_v46 = vrot.slane %v8937_v44, 5  ;;  %v8333_v51 = vld [vmem:[%s8885_s28 + $0x60] sm:$0xff]   ;;  %v8336_v54 = vld [vmem:[%s8885_s28 + $0x78] sm:$0xff]  }
  0x1a   : > { %2572 = vrot.lane.b32.xlu0 %v2430_v29, %s8792_s29  ;;  %v1656_v32 = vor.u32 %v1655_v28, %v1652_v27  ;;  %v1661_v33 = vrot.slane %v1659_v30, 5  ;;  %v1665_v34 = vrot.slane %v1663_v31, 4  ;;  %v1673_v47 = vshrl.u32 %v1599_v37, 16  ;;  %v1501_v20 = vld [vmem:[#allocation2] sm:$0xf] }
  0x1b   : > { %v8932_v42 = vrot.slane %v1669_v39, 5  ;;  %v2433_v48 = vsel %vm8918_vm6, %v2431_v45, %v2432_v46  ;;  %1549 = vst.msk [vmem:[#allocation3] sm:$0xf] %vm1251_vm3, %v1501_v20  ;;  %v1502_v31 = vld [vmem:[#allocation2 + $0x4] sm:$0xf]  ;;  %vm6603_vm5 = vcmask 64512  }
  0x1c   : > { %8167 = vmatmul.mubr.msk.bf16.gmra.mxu0 %vm610_vm2, %v8324_v8  ;;  %v1657_v36 = vrot.slane %v1656_v32, 4  ;;  %v1666_v38 = vor.u32 %v1665_v34, %v1661_v33  ;;  %2574 = vrot.lane.b32.xlu1 %v2433_v48, %s8792_s29  ;;  %v8946_v49 = vrot.slane %v1673_v47, 4  ;;  %1550 = vst.msk [vmem:[#allocation3 + $0x4] sm:$0xf] %vm1251_vm3, %v1502_v31  ;;  %vm13307_vm7 = vcmask 1042434  }
  0x1d   : > { %8170 = vmatprep.mubr.msk.bf16.mxu0 %vm610_vm2, %v8325_v9  ;;  %vm13306_vm8 = vcmask 1043459  }
  0x1e   : > { %v1662_v40 = vsel %vm8925_vm9, %v1657_v36, %v1661_v33  ;;  %v1667_v41 = vrot.slane %v1666_v38, 4  ;;  %v1676_v50 = vor.u32 %v8946_v49, %v8932_v42 }
  0x1f   : > { %2133 = vrot.lane.b32.xlu0 %v1662_v40, %s8793_s30 }
  0x20   : > { %v1672_v43 = vsel %vm8925_vm9, %v1667_v41, %v8932_v42 }
  0x23   : > { %2135 = vrot.lane.b32.xlu0 %v1672_v43, %s8793_s30 }
  0x24   : > { %8171 = vmatmul.mubr.msk.bf16.gmra.mxu0 %vm610_vm2, %v8326_v10 }
  0x25   : > { %8174 = vmatprep.mubr.msk.bf16.mxu0 %vm610_vm2, %v8327_v11 }
  0x2c   : > { %8175 = vmatmul.mubr.msk.bf16.gmra.mxu0 %vm610_vm2, %v8328_v12 }
  0x2d   : > { %8178 = vmatprep.mubr.msk.bf16.mxu0 %vm610_vm2, %v8329_v13 }
  0x34   : > { %8179 = vmatmul.mubr.msk.bf16.gmra.mxu0 %vm610_vm2, %v8330_v14 }
  0x35   : > { %8182 = vmatprep.mubr.msk.bf16.mxu0 %vm610_vm2, %v8331_v15 }
  0x3c   : > { %8183 = vmatmul.mubr.msk.bf16.gmra.mxu0 %vm610_vm2, %v8332_v16 }
  0x3d   : > { %8186 = vmatprep.mubr.msk.bf16.mxu0 %vm610_vm2, %v8333_v51 }
  0x44   : > { %8187 = vmatmul.mubr.msk.bf16.gmra.mxu0 %vm610_vm2, %v8334_v52 }
  0x45   : > { %8190 = vmatprep.mubr.msk.bf16.mxu0 %vm610_vm2, %v8335_v53 }
  0x4c   : > { %8191 = vmatmul.mubr.msk.bf16.gmra.mxu0 %vm610_vm2, %v8336_v54 }
  0x8c   : > { %v2573_v17 = vpop.permute.xlu0 %2572 }
  0x8e   : > { %v2575_v45 = vpop.permute.xlu1 %2574 }
  0x91   : > { %v2134_v30 = vpop.permute.xlu0 %2133 }
  0x92   : > { %2278 = vst.msk [vmem:[#allocation3] sm:$0xf] %vm2277_vm10, %v2134_v30 }
  0x93   : > { %2717 = vst.msk [vmem:[#allocation3] sm:$0xf] %vm2716_vm11, %v2573_v17 }
  0x95   : > { %v2136_v39 = vpop.permute.xlu0 %2135 }
  0x96   : > { %2279 = vst.msk [vmem:[#allocation3 + $0x4] sm:$0xf] %vm2277_vm10, %v2136_v39 }
  0x97   : > { %2718 = vst.msk [vmem:[#allocation3 + $0x4] sm:$0xf] %vm2716_vm11, %v2575_v45 }
  0xd4   : > { %v8958_v55 = vpop.f32.mrf.mxu0 }
  0xd5   : > { %v7828_v56 = vmul.f32 -1.442695, %v8958_v55 }
  0xd6   : > { %v8961_v57 = vpop.f32.mrf.mxu0 }
  0xd7   : > { %8372 = vpow2.f32 %v7828_v56  ;;  %v7826_v58 = vmul.f32 -1.442695, %v8961_v57 }
  0xd8   : > { %v8964_v59 = vpop.f32.mrf.mxu0 }
  0xd9   : > { %8374 = vpow2.f32 %v7826_v58  ;;  %v7829_v60 = vmul.f32 -1.442695, %v8964_v59 }
  0xda   : > { %v8967_v61 = vpop.f32.mrf.mxu0 }
  0xdb   : > { %8376 = vpow2.f32 %v7829_v60  ;;  %v7827_v62 = vmul.f32 -1.442695, %v8967_v61 }
  0xdc   : > { %v8970_v63 = vpop.f32.mrf.mxu0 }
  0xdd   : > { %8378 = vpow2.f32 %v7827_v62  ;;  %v7832_v0 = vmul.f32 -1.442695, %v8970_v63 }
  0xde   : > { %v8973_v1 = vpop.f32.mrf.mxu0 }
  0xdf   : > { %8380 = vpow2.f32 %v7832_v0  ;;  %v7830_v2 = vmul.f32 -1.442695, %v8973_v1 }
  0xe0   : > { %v8976_v3 = vpop.f32.mrf.mxu0 }
  0xe1   : > { %8382 = vpow2.f32 %v7830_v2  ;;  %v7833_v4 = vmul.f32 -1.442695, %v8976_v3 }
  0xe2   : > { %v8979_v5 = vpop.f32.mrf.mxu0 }
  0xe3   : > { %8384 = vpow2.f32 %v7833_v4  ;;  %v7831_v6 = vmul.f32 -1.442695, %v8979_v5 }
  0xe4   : > { %v8373_v7 = vpop.eup %8372  ;;  %v8982_v8 = vpop.f32.mrf.mxu0 }
  0xe5   : > { %v1061_v9 = vadd.f32 1.0, %v8373_v7  ;;  %8386 = vpow2.f32 %v7831_v6  ;;  %v7836_v10 = vmul.f32 -1.442695, %v8982_v8 }
  0xe6   : > { %v8375_v11 = vpop.eup %8374  ;;  %v8985_v12 = vpop.f32.mrf.mxu0 }
  0xe7   : > { %8388 = vrcp.f32 %v1061_v9  ;;  %v1059_v13 = vadd.f32 1.0, %v8375_v11  ;;  %v7834_v14 = vmul.f32 -1.442695, %v8985_v12 }
  0xe8   : > { %v8377_v15 = vpop.eup %8376  ;;  %8390 = vpow2.f32 %v7836_v10  ;;  %v8988_v16 = vpop.f32.mrf.mxu0 }
  0xe9   : > { %8392 = vrcp.f32 %v1059_v13  ;;  %v1062_v18 = vadd.f32 1.0, %v8377_v15  ;;  %v7837_v19 = vmul.f32 -1.442695, %v8988_v16 }
  0xea   : > { %v8379_v21 = vpop.eup %8378  ;;  %8394 = vpow2.f32 %v7834_v14  ;;  %v8991_v22 = vpop.f32.mrf.mxu0 }
  0xeb   : > { %8396 = vrcp.f32 %v1062_v18  ;;  %v1060_v23 = vadd.f32 1.0, %v8379_v21  ;;  %v7835_v24 = vmul.f32 -1.442695, %v8991_v22 }
  0xec   : > { %v8381_v26 = vpop.eup %8380  ;;  %8398 = vpow2.f32 %v7837_v19  ;;  %v8995_v27 = vpop.f32.mrf.mxu0 }
  0xed   : > { %8400 = vrcp.f32 %v1060_v23  ;;  %v1065_v28 = vadd.f32 1.0, %v8381_v26  ;;  %v7840_v29 = vmul.f32 -1.442695, %v8995_v27  ;;  %v1503_v23 = vld [vmem:[#allocation2 + $0x8] sm:$0xf] }
  0xee   : > { %v8383_v32 = vpop.eup %8382  ;;  %8402 = vpow2.f32 %v7835_v24  ;;  %v8998_v33 = vpop.f32.mrf.mxu0  ;;  %1551 = vst.msk [vmem:[#allocation3 + $0x8] sm:$0xf] %vm1251_vm3, %v1503_v23 }
  0xef   : > { %8404 = vrcp.f32 %v1065_v28  ;;  %v1063_v34 = vadd.f32 1.0, %v8383_v32  ;;  %v7838_v36 = vmul.f32 -1.442695, %v8998_v33  ;;  %v9033_v32 = vrot.slane %v1676_v50, 4 }
  0xf0   : > { %v8385_v37 = vpop.eup %8384  ;;  %8406 = vpow2.f32 %v7840_v29  ;;  %v9008_v62 = vpop.f32.mrf.mxu0 }
  0xf1   : > { %8408 = vrcp.f32 %v1063_v34  ;;  %v1066_v38 = vadd.f32 1.0, %v8385_v37  ;;  %v7841_v44 = vmul.f32 -1.442695, %v9008_v62 }
  0xf2   : > { %v8387_v40 = vpop.eup %8386  ;;  %8410 = vpow2.f32 %v7838_v36  ;;  %v9014_v13 = vpop.f32.mrf.mxu0 }
  0xf3   : > { %8412 = vrcp.f32 %v1066_v38  ;;  %v1064_v41 = vadd.f32 1.0, %v8387_v40  ;;  %v7839_v40 = vmul.f32 -1.442695, %v9014_v13 }
  0xf4   : > { %v8389_v43 = vpop.eup %8388  ;;  %v9018_v19 = vpop.f32.mrf.mxu0 }
  0xf5   : > { %v8391_v47 = vpop.eup %8390  ;;  %v1205_v48 = vmul.f32 %v8389_v43, %v8958_v55  ;;  %8414 = vrcp.f32 %v1064_v41 }
  0xf6   : > { %v8393_v51 = vpop.eup %8392  ;;  %v1069_v52 = vadd.f32 1.0, %v8391_v47  ;;  %v9035_v34 = vpop.f32.mrf.mxu0 }
  0xf7   : > { %v8395_v53 = vpop.eup %8394  ;;  %v8048_v54 = vpack.c.bf16 %v1205_v48, %v1205_v48  ;;  %v1203_v56 = vmul.f32 %v8393_v51, %v8961_v57  ;;  %v7842_v41 = vmul.f32 -1.442695, %v9035_v34 }
  0xf8   : > { %v8397_v58 = vpop.eup %8396  ;;  %8416 = vrcp.f32 %v1069_v52  ;;  %v1067_v60 = vadd.f32 1.0, %v8395_v53 }
  0xf9   : > { %v8399_v0 = vpop.eup %8398  ;;  %1449 = vst.msk [vmem:[#allocation2 + $0x14] sm:$0xf] %vm1251_vm3, %v8048_v54  ;;  %v8046_v2 = vpack.c.bf16 %v1203_v56, %v1203_v56  ;;  %v1206_v55 = vmul.f32 %v8397_v58, %v8964_v59  ;;  %v8337_v56 = vld [vmem:[%s8885_s28 + $0x80] sm:$0xff]  }
  0xfa   : > { %v8401_v4 = vpop.eup %8400  ;;  %8418 = vrcp.f32 %v1067_v60  ;;  %v1070_v6 = vadd.f32 1.0, %v8399_v0  ;;  %8194 = vmatprep.mubr.msk.bf16.mxu0 %vm610_vm2, %v8337_v56 }
  0xfb   : > { %v8403_v7 = vpop.eup %8402  ;;  %1447 = vst.msk [vmem:[#allocation2 + $0xc] sm:$0xf] %vm1251_vm3, %v8046_v2  ;;  %v8049_v9 = vpack.c.bf16 %v1206_v55, %v1206_v55  ;;  %v1204_v57 = vmul.f32 %v8401_v4, %v8967_v61  ;;  %v8338_v55 = vld [vmem:[%s8885_s28 + $0x88] sm:$0xff]  }
  0xfc   : > { %v8405_v10 = vpop.eup %8404  ;;  %8420 = vrcp.f32 %v1070_v6  ;;  %v1068_v11 = vadd.f32 1.0, %v8403_v7  ;;  %8195 = vmatmul.mubr.msk.bf16.gmra.mxu0 %vm610_vm2, %v8338_v55 }
  0xfd   : > { %v8407_v14 = vpop.eup %8406  ;;  %1450 = vst.msk [vmem:[#allocation2 + $0x18] sm:$0xf] %vm1251_vm3, %v8049_v9  ;;  %v8047_v15 = vpack.c.bf16 %v1204_v57, %v1204_v57  ;;  %v1209_v59 = vmul.f32 %v8405_v10, %v8970_v63 }
  0xfe   : > { %v8409_v17 = vpop.eup %8408  ;;  %8422 = vrcp.f32 %v1068_v11  ;;  %v1073_v18 = vadd.f32 1.0, %v8407_v14 }
  0xff   : > { %v8411_v20 = vpop.eup %8410  ;;  %1448 = vst.msk [vmem:[#allocation2 + $0x10] sm:$0xf] %vm1251_vm3, %v8047_v15  ;;  %v8052_v61 = vpack.c.bf16 %v1209_v59, %v1209_v59  ;;  %v1207_v21 = vmul.f32 %v8409_v17, %v8973_v1  ;;  %v2434_v1 = vrot.slane %v2432_v46, 4 }
 0x100   : > { %v8413_v24 = vpop.eup %8412  ;;  %8424 = vrcp.f32 %v1073_v18  ;;  %v1071_v26 = vadd.f32 1.0, %v8411_v20  ;;  %v2767_v28 = vld [vmem:[#allocation2 + $0x14] sm:$0xf] }
 0x101   : > { %1453 = vst.msk [vmem:[#allocation2 + $0x24] sm:$0xf] %vm1251_vm3, %v8052_v61  ;;  %v8050_v63 = vpack.c.bf16 %v1207_v21, %v1207_v21  ;;  %v1210_v29 = vmul.f32 %v8413_v24, %v8976_v3  ;;  %2865 = vrot.lane.b32.xlu0 %v2767_v28, %s8794_s13  ;;  %v3056_v50 = vld [vmem:[#allocation2 + $0x14] sm:$0xf] }
 0x102   : > { %v8415_v30 = vpop.eup %8414  ;;  %8426 = vrcp.f32 %v1071_v26  ;;  %v9028_v31 = vld [vmem:[#allocation2 + $0xc] sm:$0xf]  ;;  %v9051_v47 = vld [vmem:[#allocation2 + $0x14] sm:$0xf]  ;;  %v3123_v2 = vshll.u32 %v3056_v50, 16  ;;  %v3127_v9 = vshrl.u32 %v3056_v50, 16 }
 0x103   : > { %1451 = vst.msk [vmem:[#allocation2 + $0x1c] sm:$0xf] %vm1251_vm3, %v8050_v63  ;;  %v8053_v3 = vpack.c.bf16 %v1210_v29, %v1210_v29  ;;  %v1208_v36 = vmul.f32 %v8415_v30, %v8979_v5  ;;  %v9039_v37 = vld [vmem:[#allocation2 + $0xc] sm:$0xf]  ;;  %v1679_v38 = vshll.u32 %v9028_v31, 16  ;;  %8428 = vpow2.f32 %v7841_v44 }
 0x104   : > { %v2765_v46 = vld [vmem:[#allocation2 + $0xc] sm:$0xf]  ;;  %v2768_v39 = vld [vmem:[#allocation2 + $0x18] sm:$0xf]  ;;  %v7844_v5 = vmul.f32 -1.442695, %v9018_v19  ;;  %8430 = vpow2.f32 %v7839_v40 }
 0x105   : > { %v8417_v42 = vpop.eup %8416  ;;  %1454 = vst.msk [vmem:[#allocation2 + $0x28] sm:$0xf] %vm1251_vm3, %v8053_v3  ;;  %v8051_v49 = vpack.c.bf16 %v1208_v36, %v1208_v36  ;;  %2861 = vrot.lane.b32.xlu0 %v2765_v46, %s8794_s13  ;;  %2867 = vrot.lane.b32.xlu1 %v2768_v39, %s8794_s13  ;;  %v2435_v45 = vrot.slane %v9039_v37, 5  ;;  %v9053_v48 = vld [vmem:[#allocation2 + $0x14] sm:$0xf]  ;;  %v9056_v53 = vrot.slane %v1679_v38, 5 }
 0x106   : > { %v1213_v43 = vmul.f32 %v8417_v42, %v8982_v8  ;;  %v4216_v52 = vld [vmem:[#allocation2 + $0x18] sm:$0xf]  ;;  %v2766_v60 = vld [vmem:[#allocation2 + $0x10] sm:$0xf]  ;;  %v3883_v6 = vrot.slane %v9051_v47, 5  ;;  %v2441_v7 = vrot.slane %v9053_v48, 5  ;;  %8432 = vpow2.f32 %v7844_v5 }
 0x107   : > { %v8419_v51 = vpop.eup %8418  ;;  %1452 = vst.msk [vmem:[#allocation2 + $0x20] sm:$0xf] %vm1251_vm3, %v8051_v49  ;;  %v9058_v54 = vld [vmem:[#allocation2 + $0x18] sm:$0xf]  ;;  %v1602_v57 = vld [vmem:[#allocation2 + $0x14] sm:$0xf]  ;;  %v2436_v11 = vsel %vm8918_vm6, %v2434_v1, %v2435_v45  ;;  %v1682_v59 = vsel %vm8925_vm9, %v9033_v32, %v9056_v53  ;;  %8434 = vpow2.f32 %v7842_v41 }
 0x108   : > { %v8056_v58 = vpack.c.bf16 %v1213_v43, %v1213_v43  ;;  %v1211_v8 = vmul.f32 %v8419_v51, %v8985_v12  ;;  %v9062_v0 = vld [vmem:[#allocation2 + $0x18] sm:$0xf]  ;;  %v3886_v14 = vrot.slane %v9058_v54, 5  ;;  %v9082_v18 = vrot.slane %v3123_v2, 5  ;;  %v9105_v3 = vld [vmem:[#allocation2 + $0x10] sm:$0xf] }
 0x109   : > { %v8421_v4 = vpop.eup %8420  ;;  %4312 = vrot.lane.b32.xlu0 %v4216_v52, %s8795_s14  ;;  %2863 = vrot.lane.b32.xlu1 %v2766_v60, %s8794_s13  ;;  %v2444_v17 = vrot.slane %v9062_v0, 5  ;;  %v9087_v21 = vld [vmem:[#allocation2 + $0x18] sm:$0xf]  ;;  %v1699_v23 = vshll.u32 %v1602_v57, 16  ;;  %v1703_v24 = vshrl.u32 %v1602_v57, 16  ;;  %v3885_v28 = vrot.slane %v3883_v6, 4 }
 0x10a   : > { %1457 = vst.msk [vmem:[#allocation2 + $0x34] sm:$0xf] %vm1251_vm3, %v8056_v58  ;;  %v8054_v12 = vpack.c.bf16 %v1211_v8, %v1211_v8  ;;  %v1214_v10 = vmul.f32 %v8421_v4, %v8988_v16  ;;  %v3129_v16 = vrot.slane %v3127_v9, 4  ;;  %v2443_v63 = vrot.slane %v2441_v7, 4  ;;  %v9109_v44 = vld [vmem:[#allocation2 + $0x18] sm:$0xf] }
 0x10b   : > { %v8423_v15 = vpop.eup %8422  ;;  %v3887_v1 = vsel %vm8918_vm6, %v3885_v28, %v3886_v14  ;;  %v3133_v38 = vshll.u32 %v9087_v21, 16  ;;  %v9113_v39 = vrot.slane %v1699_v23, 5  ;;  %v1705_v40 = vrot.slane %v1703_v24, 4  ;;  %v3054_v42 = vld [vmem:[#allocation2 + $0xc] sm:$0xf] }
 0x10c   : > { %1455 = vst.msk [vmem:[#allocation2 + $0x2c] sm:$0xf] %vm1251_vm3, %v8054_v12  ;;  %v8057_v20 = vpack.c.bf16 %v1214_v10, %v1214_v10  ;;  %v1212_v61 = vmul.f32 %v8423_v15, %v8991_v22  ;;  %v2445_v32 = vsel %vm8918_vm6, %v2443_v63, %v2444_v17  ;;  %v3130_v36 = vor.u32 %v3129_v16, %v9082_v18  ;;  %v4219_v43 = vld [vmem:[#allocation2 + $0x24] sm:$0xf]  ;;  %v3781_v60 = vld [vmem:[#allocation2 + $0x10] sm:$0xf] }
 0x10d   : > { %v8425_v26 = vpop.eup %8424  ;;  %2576 = vrot.lane.b32.xlu0 %v2436_v11, %s8792_s29  ;;  %2137 = vrot.lane.b32.xlu1 %v1682_v59, %s8793_s30  ;;  %v2438_v50 = vrot.slane %v9105_v3, 5  ;;  %v1709_v5 = vshll.u32 %v9109_v44, 16  ;;  %v1683_v41 = vshrl.u32 %v9028_v31, 16  ;;  %v9123_v52 = vrot.slane %v3133_v38, 5  ;;  %v2771_v58 = vld [vmem:[#allocation2 + $0x24] sm:$0xf]  ;;  %v9154_v38 = vpop.f32.mrf.mxu0 }
 0x10e   : > { %1458 = vst.msk [vmem:[#allocation2 + $0x38] sm:$0xf] %vm1251_vm3, %v8057_v20  ;;  %v8055_v29 = vpack.c.bf16 %v1212_v61, %v1212_v61  ;;  %v1217_v22 = vmul.f32 %v8425_v26, %v8995_v27  ;;  %v3131_v51 = vrot.slane %v3130_v36, 4  ;;  %v1706_v8 = vor.u32 %v1705_v40, %v9113_v39  ;;  %v3780_v9 = vld [vmem:[#allocation2 + $0xc] sm:$0xe] }
 0x10f   : > { %v8427_v30 = vpop.eup %8426  ;;  %v3104_v2 = vshrl.u32 %v3054_v42, 16  ;;  %v3107_v55 = vshll.u32 %v3054_v42, 16  ;;  %v3880_v12 = vrot.slane %v3781_v60, 5  ;;  %v1685_v10 = vrot.slane %v1683_v41, 4  ;;  %v9138_v59 = vld [vmem:[#allocation2 + $0x10] sm:$0xf] }
 0x110   : > { %1456 = vst.msk [vmem:[#allocation2 + $0x30] sm:$0xf] %vm1251_vm3, %v8055_v29  ;;  %v8060_v27 = vpack.c.bf16 %v1217_v22, %v1217_v22  ;;  %v1215_v46 = vmul.f32 %v8427_v30, %v8998_v33  ;;  %v2437_v33 = vrot.slane %v2435_v45, 4  ;;  %v8429_v56 = vpop.eup %8428  ;;  %v9133_v45 = vrot.slane %v1709_v5, 5  ;;  %v9142_v24 = vld [vmem:[#allocation2 + $0x10] sm:$0xf] }
 0x111   : > { %4027 = vrot.lane.b32.xlu0 %v3887_v1, %s8796_s15  ;;  %2582 = vrot.lane.b32.xlu1 %v2445_v32, %s8792_s29  ;;  %v8431_v4 = vpop.eup %8430  ;;  %v3136_v57 = vsel %vm8925_vm9, %v3131_v51, %v9123_v52  ;;  %v1074_v11 = vadd.f32 1.0, %v8429_v56  ;;  %v1707_v15 = vrot.slane %v1706_v8, 4  ;;  %v3106_v16 = vrot.slane %v3104_v2, 4 }
 0x112   : > { %1461 = vst.msk [vmem:[#allocation2 + $0x44] sm:$0xf] %vm1251_vm3, %v8060_v27  ;;  %v8058_v49 = vpack.c.bf16 %v1215_v46, %v1215_v46  ;;  %v2439_v37 = vsel %vm8918_vm6, %v2437_v33, %v2438_v50  ;;  %v3109_v20 = vrot.slane %v3107_v55, 5  ;;  %v1072_v61 = vadd.f32 1.0, %v8431_v4  ;;  %v4217_v27 = vld [vmem:[#allocation2 + $0x1c] sm:$0xf] }
 0x113   : > { %v8433_v31 = vpop.eup %8432  ;;  %v7923_v23 = vrot.slane %v3780_v9, 9  ;;  %8436 = vrcp.f32 %v1074_v11  ;;  %v1689_v29 = vshll.u32 %v9138_v59, 16  ;;  %v1712_v22 = vsel %vm8925_vm9, %v1707_v15, %v9133_v45  ;;  %v2769_v46 = vld [vmem:[#allocation2 + $0x1c] sm:$0xf]  ;;  %v5231_v11 = vld [vmem:[#allocation2 + $0x18] sm:$0xe] }
 0x114   : > { %1459 = vst.msk [vmem:[#allocation2 + $0x3c] sm:$0xf] %vm1251_vm3, %v8058_v49  ;;  %v1077_v26 = vadd.f32 1.0, %v8433_v31  ;;  %v8435_v28 = vpop.eup %8434  ;;  %8438 = vrcp.f32 %v1072_v61  ;;  %v1686_v30 = vor.u32 %v1685_v10, %v9056_v53  ;;  %v3110_v1 = vor.u32 %v3109_v20, %v3106_v16  ;;  %v9162_v53 = vpop.f32.mrf.mxu0  ;;  %v4505_v10 = vld [vmem:[#allocation2 + $0x18] sm:$0xf] }
 0x115   : > { %4318 = vrot.lane.b32.xlu1 %v4219_v43, %s8795_s14  ;;  %2873 = vrot.lane.b32.xlu0 %v2771_v58, %s8794_s13  ;;  %v3881_v63 = vsel %vm8918_vm6, %v7923_v23, %v3880_v12  ;;  %v3113_v32 = vshll.u32 %v9142_v24, 16  ;;  %v1075_v36 = vadd.f32 1.0, %v8435_v28  ;;  %v9156_v42 = vrot.slane %v1689_v29, 5  ;;  %v2772_v20 = vld [vmem:[#allocation2 + $0x28] sm:$0xf] }
 0x116   : > { %8440 = vrcp.f32 %v1077_v26  ;;  %v1687_v40 = vrot.slane %v1686_v30, 4  ;;  %v3111_v49 = vrot.slane %v3110_v1, 4  ;;  %v3882_v33 = vrot.slane %v3880_v12, 4  ;;  %v9172_v56 = vpop.f32.mrf.mxu0  ;;  %v9196_v12 = vld [vmem:[#allocation2 + $0x1c] sm:$0xf] }
 0x117   : > { %8442 = vrcp.f32 %v1075_v36  ;;  %v9158_v5 = vrot.slane %v3113_v32, 5  ;;  %v2440_v51 = vrot.slane %v2438_v50, 4  ;;  %v7845_v58 = vmul.f32 -1.442695, %v9154_v38  ;;  %v9207_v26 = vld [vmem:[#allocation2 + $0x1c] sm:$0xf] }
 0x118   : > { %v1692_v41 = vsel %vm8925_vm9, %v1687_v40, %v9156_v42  ;;  %v7843_v60 = vmul.f32 -1.442695, %v9162_v53  ;;  %v7848_v4 = vmul.f32 -1.442695, %v9172_v56  ;;  %v3117_v3 = vshrl.u32 %v9142_v24, 16 }
 0x119   : > { %2578 = vrot.lane.b32.xlu1 %v2439_v37, %s8792_s29  ;;  %3591 = vrot.lane.b32.xlu0 %v3136_v57, %s8797_s16  ;;  %v3116_v43 = vsel %vm8925_vm9, %v3111_v49, %v9158_v5  ;;  %v3884_v50 = vsel %vm8918_vm6, %v3882_v33, %v3883_v6  ;;  %v2442_v37 = vsel %vm8918_vm6, %v2440_v51, %v2441_v7  ;;  %v9190_v57 = vpop.f32.mrf.mxu0  ;;  %8444 = vpow2.f32 %v7845_v58  ;;  %v4220_v7 = vld [vmem:[#allocation2 + $0x28] sm:$0xf]  ;;  %v2770_v33 = vld [vmem:[#allocation2 + $0x20] sm:$0xf] }
 0x11a   : > { %8446 = vpow2.f32 %v7843_v60  ;;  %v7846_v15 = vmul.f32 -1.442695, %v9190_v57  ;;  %v3889_v23 = vrot.slane %v9196_v12, 5  ;;  %v3137_v24 = vshrl.u32 %v9087_v21, 16 }
 0x11b   : > { %8448 = vpow2.f32 %v7848_v4  ;;  %v4555_v28 = vshrl.u32 %v4505_v10, 16  ;;  %v7924_v30 = vrot.slane %v5231_v11, 9  ;;  %v3888_v1 = vrot.slane %v3886_v14, 4  ;;  %v9245_v4 = vld [vmem:[#allocation2 + $0x24] sm:$0xf] }
 0x11c   : > { %8450 = vpow2.f32 %v7846_v15  ;;  %v3139_v40 = vrot.slane %v3137_v24, 4  ;;  %v2446_v49 = vrot.slane %v2444_v17, 4 }
 0x11d   : > { %2143 = vrot.lane.b32.xlu1 %v1712_v22, %s8793_s30  ;;  %4023 = vrot.lane.b32.xlu0 %v3881_v63, %s8796_s15  ;;  %v4558_v63 = vshll.u32 %v4505_v10, 16  ;;  %v1693_v22 = vshrl.u32 %v9138_v59, 16  ;;  %v3890_v36 = vsel %vm8918_vm6, %v3888_v1, %v3889_v23  ;;  %v4557_v54 = vrot.slane %v4555_v28, 4  ;;  %v9259_v10 = vld [vmem:[#allocation2 + $0x28] sm:$0xf] }
 0x11e   : > { %v3140_v17 = vor.u32 %v3139_v40, %v9123_v52  ;;  %v9274_v1 = vld [vmem:[#allocation2 + $0x28] sm:$0xf] }
 0x11f   : > { %v4560_v14 = vrot.slane %v4558_v63, 5  ;;  %v9284_v40 = vld [vmem:[#allocation2 + $0x28] sm:$0xf] }
 0x120   : > { %v8437_v8 = vpop.eup %8436 }
 0x121   : > { %4314 = vrot.lane.b32.xlu1 %v4217_v27, %s8795_s14  ;;  %2869 = vrot.lane.b32.xlu0 %v2769_v46, %s8794_s13  ;;  %v8439_v2 = vpop.eup %8438  ;;  %v1218_v55 = vmul.f32 %v8437_v8, %v9008_v62  ;;  %v9194_v62 = vld [vmem:[#allocation2 + $0x1c] sm:$0xf]  ;;  %v4561_v0 = vor.u32 %v4560_v14, %v4557_v54 }
 0x122   : > { %v1216_v9 = vmul.f32 %v8439_v2, %v9014_v13  ;;  %v5331_v61 = vrot.slane %v9194_v62, 5  ;;  %v9224_v27 = vld [vmem:[#allocation2 + $0x1c] sm:$0xf]  ;;  %v1713_v2 = vshrl.u32 %v9109_v44, 16 }
 0x123   : > { %v8441_v31 = vpop.eup %8440  ;;  %v8061_v47 = vpack.c.bf16 %v1218_v55, %v1218_v55  ;;  %v9228_v46 = vld [vmem:[#allocation2 + $0x1c] sm:$0xf]  ;;  %v4564_v58 = vshll.u32 %v9224_v27, 16  ;;  %v4562_v44 = vrot.slane %v4561_v0, 4 }
 0x124   : > { %v1221_v6 = vmul.f32 %v8441_v31, %v9018_v19  ;;  %v8059_v48 = vpack.c.bf16 %v1216_v9, %v1216_v9  ;;  %v8443_v16 = vpop.eup %8442  ;;  %v3119_v19 = vrot.slane %v3117_v3, 4  ;;  %v5332_v21 = vsel %vm8918_vm6, %v7924_v30, %v5331_v61  ;;  %v9247_v3 = vld [vmem:[#allocation2 + $0x1c] sm:$0xf]  ;;  %v4218_v9 = vld [vmem:[#allocation2 + $0x20] sm:$0xf] }
 0x125   : > { %2139 = vrot.lane.b32.xlu1 %v1692_v41, %s8793_s30  ;;  %3587 = vrot.lane.b32.xlu0 %v3116_v43, %s8797_s16  ;;  %1462 = vst.msk [vmem:[#allocation2 + $0x48] sm:$0xf] %vm1251_vm3, %v8061_v47  ;;  %v1219_v29 = vmul.f32 %v8443_v16, %v9035_v34  ;;  %v2447_v34 = vrot.slane %v9207_v26, 5  ;;  %v1695_v41 = vrot.slane %v1693_v22, 4  ;;  %v1506_v43 = vld [vmem:[#allocation2 + $0x14] sm:$0xf] }
 0x126   : > { %v8064_v13 = vpack.c.bf16 %v1221_v6, %v1221_v6  ;;  %1460 = vst.msk [vmem:[#allocation2 + $0x40] sm:$0xf] %vm1251_vm3, %v8059_v48  ;;  %v3120_v59 = vor.u32 %v3119_v19, %v9158_v5  ;;  %1554 = vst.msk [vmem:[#allocation3 + $0x14] sm:$0xf] %vm1251_vm3, %v1506_v43  ;;  %v3143_v8 = vshll.u32 %v9228_v46, 16  ;;  %v8445_v60 = vpop.eup %8444  ;;  %v9252_v6 = vrot.slane %v4564_v58, 5 }
 0x127   : > { %v8062_v32 = vpack.c.bf16 %v1219_v29, %v1219_v29  ;;  %v2448_v5 = vsel %vm8918_vm6, %v2446_v49, %v2447_v34  ;;  %v1696_v55 = vor.u32 %v1695_v41, %v9156_v42  ;;  %v8447_v31 = vpop.eup %8446  ;;  %v4508_v48 = vld [vmem:[#allocation2 + $0x24] sm:$0xf]  ;;  %v3141_v42 = vrot.slane %v3140_v17, 4  ;;  %v9296_v58 = vld [vmem:[#allocation2 + $0x28] sm:$0xf] }
 0x128   : > { %1465 = vst.msk [vmem:[#allocation2 + $0x54] sm:$0xf] %vm1251_vm3, %v8064_v13  ;;  %v3121_v51 = vrot.slane %v3120_v59, 4  ;;  %v9254_v52 = vrot.slane %v3143_v8, 5  ;;  %v1078_v11 = vadd.f32 1.0, %v8445_v60  ;;  %v1719_v15 = vshll.u32 %v9247_v3, 16 }
 0x129   : > { %4025 = vrot.lane.b32.xlu1 %v3884_v50, %s8796_s15  ;;  %2580 = vrot.lane.b32.xlu0 %v2442_v37, %s8792_s29  ;;  %1463 = vst.msk [vmem:[#allocation2 + $0x4c] sm:$0xf] %vm1251_vm3, %v8062_v32  ;;  %v1504_v50 = vld [vmem:[#allocation2 + $0xc] sm:$0xf]  ;;  %v8449_v37 = vpop.eup %8448  ;;  %v1697_v13 = vrot.slane %v1696_v55, 4  ;;  %v1076_v16 = vadd.f32 1.0, %v8447_v31  ;;  %v4567_v29 = vsel %vm8925_vm9, %v4562_v44, %v9252_v6 }
 0x12a   : > { %v3126_v47 = vsel %vm8925_vm9, %v3121_v51, %v9082_v18  ;;  %1552 = vst.msk [vmem:[#allocation3 + $0xc] sm:$0xf] %vm1251_vm3, %v1504_v50  ;;  %v1715_v18 = vrot.slane %v1713_v2, 4  ;;  %v4584_v19 = vshll.u32 %v4508_v48, 16  ;;  %v4588_v24 = vshrl.u32 %v4508_v48, 16  ;;  %v8451_v63 = vpop.eup %8450 }
 0x12b   : > { %8452 = vrcp.f32 %v1078_v11  ;;  %v1081_v28 = vadd.f32 1.0, %v8449_v37  ;;  %v3146_v22 = vsel %vm8925_vm9, %v3141_v42, %v9254_v52  ;;  %v5340_v30 = vrot.slane %v9259_v10, 5  ;;  %v9276_v32 = vld [vmem:[#allocation2 + $0x24] sm:$0xf] }
 0x12c   : > { %8454 = vrcp.f32 %v1076_v16  ;;  %v1716_v59 = vor.u32 %v1715_v18, %v9133_v45  ;;  %v9281_v54 = vrot.slane %v1719_v15, 5  ;;  %v1702_v49 = vsel %vm8925_vm9, %v1697_v13, %v9113_v39  ;;  %v1507_v39 = vld [vmem:[#allocation2 + $0x18] sm:$0xf]  ;;  %v1606_v42 = vld [vmem:[#allocation2 + $0x24] sm:$0xf] }
 0x12d   : > { %4320 = vrot.lane.b32.xlu0 %v4220_v7, %s8795_s14  ;;  %2875 = vrot.lane.b32.xlu1 %v2772_v20, %s8794_s13  ;;  %v5337_v7 = vrot.slane %v9245_v4, 5  ;;  %v9263_v20 = vld [vmem:[#allocation2 + $0x24] sm:$0xf]  ;;  %8456 = vrcp.f32 %v1081_v28  ;;  %v9289_v41 = vrot.slane %v4584_v19, 5  ;;  %v4590_v43 = vrot.slane %v4588_v24, 4 }
 0x12e   : > { %v2453_v14 = vrot.slane %v9263_v20, 5  ;;  %v2456_v51 = vrot.slane %v9274_v1, 5  ;;  %v1717_v17 = vrot.slane %v1716_v59, 4  ;;  %v3895_v2 = vrot.slane %v9276_v32, 5  ;;  %1555 = vst.msk [vmem:[#allocation3 + $0x18] sm:$0xf] %vm1251_vm3, %v1507_v39 }
 0x12f   : > { %v3898_v55 = vrot.slane %v9284_v40, 5  ;;  %v4591_v31 = vor.u32 %v4590_v43, %v9289_v41  ;;  %v4594_v50 = vshll.u32 %v9296_v58, 16  ;;  %v9325_v15 = vld [vmem:[#allocation2 + $0x20] sm:$0xf]  ;;  %v4223_v28 = vld [vmem:[#allocation2 + $0x34] sm:$0xf] }
 0x130   : > { %v2455_v60 = vrot.slane %v2453_v14, 4  ;;  %v1722_v37 = vsel %vm8925_vm9, %v1717_v17, %v9281_v54  ;;  %v3897_v11 = vrot.slane %v3895_v2, 4  ;;  %v9346_v17 = vld [vmem:[#allocation2 + $0x20] sm:$0xf]  ;;  %v1515_v4 = vld [vmem:[#allocation2 + $0x38] sm:$0xf] }
 0x131   : > { %5474 = vrot.lane.b32.xlu0 %v5332_v21, %s8798_s17  ;;  %4029 = vrot.lane.b32.xlu1 %v3890_v36, %s8796_s15  ;;  %v3060_v21 = vld [vmem:[#allocation2 + $0x24] sm:$0xf]  ;;  %v5339_v36 = vrot.slane %v5337_v7, 4  ;;  %v4592_v13 = vrot.slane %v4591_v31, 4  ;;  %v9323_v18 = vrot.slane %v4594_v50, 5  ;;  %v5342_v32 = vrot.slane %v5340_v30, 4 }
 0x132   : > { %v3163_v8 = vshll.u32 %v3060_v21, 16  ;;  %v3167_v0 = vshrl.u32 %v3060_v21, 16  ;;  %v3899_v24 = vsel %vm8918_vm6, %v3897_v11, %v3898_v55  ;;  %v8339_v21 = vld [vmem:[%s8885_s28 + $0x90] sm:$0xff]   ;;  %v9351_v31 = vld [vmem:[#allocation2 + $0x20] sm:$0xf]  ;;  %v4568_v11 = vshrl.u32 %v9224_v27, 16 }
 0x133   : > { %v5341_v45 = vsel %vm8918_vm6, %v5339_v36, %v5340_v30  ;;  %v8340_v36 = vld [vmem:[%s8885_s28 + $0x98] sm:$0xff]   ;;  %8198 = vmatprep.mubr.msk.bf16.mxu0 %vm610_vm2, %v8339_v21  ;;  %1563 = vst.msk [vmem:[#allocation3 + $0x38] sm:$0xf] %vm1251_vm3, %v1515_v4  ;;  %v2458_v30 = vrot.slane %v2456_v51, 4  ;;  %v4222_v4 = vld [vmem:[#allocation2 + $0x30] sm:$0xf] }
 0x134   : > { %v9317_v48 = vrot.slane %v3163_v8, 5  ;;  %v3169_v44 = vrot.slane %v3167_v0, 4  ;;  %v4597_v8 = vsel %vm8925_vm9, %v4592_v13, %v9323_v18  ;;  %v2775_v0 = vld [vmem:[#allocation2 + $0x34] sm:$0xf]  ;;  %8199 = vmatmul.mubr.msk.bf16.gmra.mxu0 %vm610_vm2, %v8340_v36  ;;  %v5333_v13 = vrot.slane %v5331_v61, 4 }
 0x135   : > { %2584 = vrot.lane.b32.xlu0 %v2448_v5, %s8792_s29  ;;  %2871 = vrot.lane.b32.xlu1 %v2770_v33, %s8794_s13  ;;  %v1079_v5 = vadd.f32 1.0, %v8451_v63  ;;  %v1505_v33 = vld [vmem:[#allocation2 + $0x10] sm:$0xf] }
 0x136   : > { %1553 = vst.msk [vmem:[#allocation3 + $0x10] sm:$0xf] %vm1251_vm3, %v1505_v33  ;;  %v3170_v63 = vor.u32 %v3169_v44, %v9317_v48  ;;  %v9357_v44 = vld [vmem:[#allocation2 + $0x28] sm:$0xf] }
 0x137   : > { %8458 = vrcp.f32 %v1079_v5  ;;  %v5334_v5 = vrot.slane %v9325_v15, 5  ;;  %v3147_v15 = vshrl.u32 %v9228_v46, 16  ;;  %v1749_v27 = vshll.u32 %v9357_v44, 16  ;;  %v1508_v46 = vld [vmem:[#allocation2 + $0x1c] sm:$0xf] }
 0x138   : > { %v8453_v19 = vpop.eup %8452  ;;  %1556 = vst.msk [vmem:[#allocation3 + $0x1c] sm:$0xf] %vm1251_vm3, %v1508_v46 }
 0x139   : > { %4316 = vrot.lane.b32.xlu0 %v4218_v9, %s8795_s14  ;;  %3589 = vrot.lane.b32.xlu1 %v3126_v47, %s8797_s16  ;;  %v2457_v9 = vsel %vm8918_vm6, %v2455_v60, %v2456_v51  ;;  %v9315_v47 = vld [vmem:[#allocation2 + $0x28] sm:$0xf]  ;;  %v8455_v59 = vpop.eup %8454  ;;  %v9393_v12 = vrot.slane %v1749_v27, 5 }
 0x13a   : > { %v3173_v16 = vshll.u32 %v9315_v47, 16  ;;  %v8457_v43 = vpop.eup %8456  ;;  %v1220_v33 = vmul.f32 %v8455_v59, %v9162_v53  ;;  %v3171_v53 = vrot.slane %v3170_v63, 4  ;;  %v2449_v63 = vrot.slane %v2447_v34, 4  ;;  %v9390_v59 = vld [vmem:[#allocation2 + $0x20] sm:$0xf] }
 0x13b   : > { %v9395_v34 = vld [vmem:[#allocation2 + $0x20] sm:$0xf]  ;;  %v3177_v10 = vshrl.u32 %v9315_v47, 16 }
 0x13c   : > { %v9344_v39 = vrot.slane %v3173_v16, 5  ;;  %v2450_v16 = vrot.slane %v9346_v17, 5  ;;  %v2773_v17 = vld [vmem:[#allocation2 + $0x2c] sm:$0xf]  ;;  %v3157_v20 = vshrl.u32 %v9395_v34, 16 }
 0x13d   : > { %5038 = vrot.lane.b32.xlu0 %v4567_v29, %s8799_s18  ;;  %3593 = vrot.lane.b32.xlu1 %v3146_v22, %s8797_s16  ;;  %v1739_v29 = vshll.u32 %v1606_v42, 16  ;;  %v1743_v22 = vshrl.u32 %v1606_v42, 16 }
 0x13e   : > { %v3176_v62 = vsel %vm8925_vm9, %v3171_v53, %v9344_v39  ;;  %v2451_v21 = vsel %vm8918_vm6, %v2449_v63, %v2450_v16  ;;  %v9407_v53 = vld [vmem:[#allocation2 + $0x20] sm:$0xf] }
 0x13f   : > { %v9353_v50 = vrot.slane %v1739_v29, 5 }
 0x141   : > { %2141 = vrot.lane.b32.xlu0 %v1702_v49, %s8793_s30  ;;  %5480 = vrot.lane.b32.xlu1 %v5341_v45, %s8798_s17  ;;  %v1222_v49 = vmul.f32 %v8453_v19, %v9154_v38  ;;  %v1510_v45 = vld [vmem:[#allocation2 + $0x24] sm:$0xf]  ;;  %v1225_v38 = vmul.f32 %v8457_v43, %v9172_v56  ;;  %v3892_v19 = vrot.slane %v9351_v31, 5  ;;  %v5336_v43 = vrot.slane %v5334_v5, 4 }
 0x142   : > { %1558 = vst.msk [vmem:[#allocation3 + $0x24] sm:$0xf] %vm1251_vm3, %v1510_v45  ;;  %v3153_v45 = vshll.u32 %v9395_v34, 16 }
 0x143   : > { %v8065_v60 = vpack.c.bf16 %v1222_v49, %v1222_v49  ;;  %v8068_v56 = vpack.c.bf16 %v1225_v38, %v1225_v38  ;;  %v3149_v49 = vrot.slane %v3147_v15, 4  ;;  %v1514_v15 = vld [vmem:[#allocation2 + $0x34] sm:$0xf] }
 0x144   : > { %v8459_v42 = vpop.eup %8458  ;;  %1562 = vst.msk [vmem:[#allocation3 + $0x34] sm:$0xf] %vm1251_vm3, %v1514_v15 }
 0x145   : > { %2145 = vrot.lane.b32.xlu0 %v1722_v37, %s8793_s30  ;;  %2590 = vrot.lane.b32.xlu1 %v2457_v9, %s8792_s29  ;;  %v1745_v37 = vrot.slane %v1743_v22, 4  ;;  %v8063_v9 = vpack.c.bf16 %v1220_v33, %v1220_v33  ;;  %1466 = vst.msk [vmem:[#allocation2 + $0x58] sm:$0xf] %vm1251_vm3, %v8065_v60  ;;  %1469 = vst.msk [vmem:[#allocation2 + $0x64] sm:$0xf] %vm1251_vm3, %v8068_v56  ;;  %v1723_v22 = vshrl.u32 %v9247_v3, 16 }
 0x146   : > { %v1509_v3 = vld [vmem:[#allocation2 + $0x20] sm:$0xf]  ;;  %v4574_v33 = vshll.u32 %v9390_v59, 16  ;;  %v3150_v38 = vor.u32 %v3149_v49, %v9254_v52  ;;  %v9414_v56 = vrot.slane %v3153_v45, 5 }
 0x147   : > { %1464 = vst.msk [vmem:[#allocation2 + $0x50] sm:$0xf] %vm1251_vm3, %v8063_v9  ;;  %v1746_v61 = vor.u32 %v1745_v37, %v9353_v50  ;;  %1557 = vst.msk [vmem:[#allocation3 + $0x20] sm:$0xf] %vm1251_vm3, %v1509_v3  ;;  %v1725_v37 = vrot.slane %v1723_v22, 4  ;;  %v4578_v3 = vshrl.u32 %v9390_v59, 16 }
 0x148   : > { %v9412_v9 = vrot.slane %v4574_v33, 5  ;;  %v9474_v59 = vld [vmem:[#allocation2 + $0x2c] sm:$0xf] }
 0x149   : > { %4035 = vrot.lane.b32.xlu0 %v3899_v24, %s8796_s15  ;;  %4326 = vrot.lane.b32.xlu1 %v4223_v28, %s8795_s14  ;;  %v1223_v24 = vmul.f32 %v8459_v42, %v9190_v57  ;;  %v5335_v28 = vsel %vm8918_vm6, %v5333_v13, %v5334_v5  ;;  %v3891_v57 = vrot.slane %v3889_v23, 4  ;;  %v1747_v26 = vrot.slane %v1746_v61, 4  ;;  %v4221_v5 = vld [vmem:[#allocation2 + $0x2c] sm:$0xf]  ;;  %v9427_v61 = vpop.f32.mrf.mxu0 }
 0x14a   : > { %v4570_v23 = vrot.slane %v4568_v11, 4  ;;  %v1729_v42 = vshll.u32 %v9407_v53, 16  ;;  %v3151_v11 = vrot.slane %v3150_v38, 4  ;;  %v1726_v13 = vor.u32 %v1725_v37, %v9281_v54  ;;  %v1516_v54 = vld [vmem:[#allocation2 + $0x3c] sm:$0xf] }
 0x14b   : > { %v8066_v29 = vpack.c.bf16 %v1223_v24, %v1223_v24  ;;  %v3893_v36 = vsel %vm8918_vm6, %v3891_v57, %v3892_v19  ;;  %v1512_v24 = vld [vmem:[#allocation2 + $0x2c] sm:$0xf]  ;;  %1564 = vst.msk [vmem:[#allocation3 + $0x3c] sm:$0xf] %vm1251_vm3, %v1516_v54  ;;  %v9444_v22 = vpop.f32.mrf.mxu0  ;;  %v7849_v33 = vmul.f32 -1.442695, %v9427_v61 }
 0x14c   : > { %v4571_v60 = vor.u32 %v4570_v23, %v9252_v6  ;;  %v5338_v6 = vsel %vm8918_vm6, %v5336_v43, %v5337_v7  ;;  %1560 = vst.msk [vmem:[#allocation3 + $0x2c] sm:$0xf] %vm1251_vm3, %v1512_v24  ;;  %v2452_v7 = vrot.slane %v2450_v16, 4  ;;  %v3156_v46 = vsel %vm8925_vm9, %v3151_v11, %v9414_v56  ;;  %v1517_v16 = vld [vmem:[#allocation2 + $0x40] sm:$0xf] }
 0x14d   : > { %5044 = vrot.lane.b32.xlu1 %v4597_v8, %s8799_s18  ;;  %2881 = vrot.lane.b32.xlu0 %v2775_v0, %s8794_s13  ;;  %1467 = vst.msk [vmem:[#allocation2 + $0x5c] sm:$0xf] %vm1251_vm3, %v8066_v29  ;;  %v1511_v8 = vld [vmem:[#allocation2 + $0x28] sm:$0xf]  ;;  %v1752_v0 = vsel %vm8925_vm9, %v1747_v26, %v9393_v12  ;;  %v1727_v63 = vrot.slane %v1726_v13, 4  ;;  %v9437_v57 = vrot.slane %v1729_v42, 5  ;;  %v9459_v49 = vpop.f32.mrf.mxu0  ;;  %8460 = vpow2.f32 %v7849_v33 }
 0x14e   : > { %1559 = vst.msk [vmem:[#allocation3 + $0x28] sm:$0xf] %vm1251_vm3, %v1511_v8  ;;  %v4572_v52 = vrot.slane %v4571_v60, 4  ;;  %1565 = vst.msk [vmem:[#allocation3 + $0x40] sm:$0xf] %vm1251_vm3, %v1517_v16  ;;  %v3894_v26 = vrot.slane %v3892_v19, 4 }
 0x14f   : > { %v1519_v29 = vld [vmem:[#allocation2 + $0x48] sm:$0xf]  ;;  %v9457_v23 = vld [vmem:[#allocation2 + $0x2c] sm:$0xf]  ;;  %v4224_v43 = vld [vmem:[#allocation2 + $0x38] sm:$0xf]  ;;  %v9477_v8 = vpop.f32.mrf.mxu0 }
 0x150   : > { %v4577_v27 = vsel %vm8925_vm9, %v4572_v52, %v9412_v9  ;;  %1567 = vst.msk [vmem:[#allocation3 + $0x48] sm:$0xf] %vm1251_vm3, %v1519_v29  ;;  %v5343_v31 = vrot.slane %v9457_v23, 5  ;;  %v9469_v19 = vld [vmem:[#allocation2 + $0x2c] sm:$0xf]  ;;  %v3901_v37 = vrot.slane %v9474_v59, 5 }
 0x151   : > { %5476 = vrot.lane.b32.xlu1 %v5335_v28, %s8798_s17  ;;  %3599 = vrot.lane.b32.xlu0 %v3176_v62, %s8797_s16  ;;  %v1513_v28 = vld [vmem:[#allocation2 + $0x30] sm:$0xf]  ;;  %v1518_v62 = vld [vmem:[#allocation2 + $0x44] sm:$0xf]  ;;  %v7847_v45 = vmul.f32 -1.442695, %v9444_v22 }
 0x152   : > { %1561 = vst.msk [vmem:[#allocation3 + $0x30] sm:$0xf] %vm1251_vm3, %v1513_v28  ;;  %1566 = vst.msk [vmem:[#allocation3 + $0x44] sm:$0xf] %vm1251_vm3, %v1518_v62  ;;  %v7852_v34 = vmul.f32 -1.442695, %v9459_v49  ;;  %v5344_v60 = vsel %vm8918_vm6, %v5342_v32, %v5343_v31 }
 0x153   : > { %8462 = vpow2.f32 %v7847_v45  ;;  %v2776_v38 = vld [vmem:[#allocation2 + $0x38] sm:$0xf]  ;;  %v7850_v42 = vmul.f32 -1.442695, %v9477_v8  ;;  %v9498_v11 = vld [vmem:[#allocation2 + $0x2c] sm:$0xf] }
 0x154   : > { %8464 = vpow2.f32 %v7852_v34  ;;  %v9517_v28 = vld [vmem:[#allocation2 + $0x34] sm:$0xf]  ;;  %v2774_v62 = vld [vmem:[#allocation2 + $0x30] sm:$0xf]  ;;  %v9541_v45 = vld [vmem:[#allocation2 + $0x2c] sm:$0xf] }
 0x155   : > { %2586 = vrot.lane.b32.xlu1 %v2451_v21, %s8792_s29  ;;  %4031 = vrot.lane.b32.xlu0 %v3893_v36, %s8796_s15  ;;  %v1732_v21 = vsel %vm8925_vm9, %v1727_v63, %v9437_v57  ;;  %v2454_v36 = vsel %vm8918_vm6, %v2452_v7, %v2453_v14  ;;  %v3896_v14 = vsel %vm8918_vm6, %v3894_v26, %v3895_v2  ;;  %v4598_v2 = vshrl.u32 %v9296_v58, 16  ;;  %v4512_v34 = vld [vmem:[#allocation2 + $0x34] sm:$0xf] }
 0x156   : > { %v3900_v58 = vrot.slane %v3898_v55, 4  ;;  %8466 = vpow2.f32 %v7850_v42  ;;  %v9509_v55 = vld [vmem:[#allocation2 + $0x2c] sm:$0xf]  ;;  %v5349_v29 = vrot.slane %v9517_v28, 5 }
 0x157   : > { %v4600_v51 = vrot.slane %v4598_v2, 4  ;;  %v3183_v24 = vshll.u32 %v9509_v55, 16 }
 0x158   : > { %v3902_v1 = vsel %vm8918_vm6, %v3900_v58, %v3901_v37 }
 0x159   : > { %2151 = vrot.lane.b32.xlu1 %v1752_v0, %s8793_s30  ;;  %2877 = vrot.lane.b32.xlu0 %v2773_v17, %s8794_s13  ;;  %v2459_v0 = vrot.slane %v9469_v19, 5  ;;  %v4580_v17 = vrot.slane %v4578_v3, 4  ;;  %v4601_v7 = vor.u32 %v4600_v51, %v9323_v18  ;;  %v9534_v3 = vld [vmem:[#allocation2 + $0x38] sm:$0xf]  ;;  %v1759_v51 = vshll.u32 %v9541_v45, 16 }
 0x15a   : > { %v8461_v63 = vpop.eup %8460 }
 0x15b   : > { %v4581_v52 = vor.u32 %v4580_v17, %v9412_v9  ;;  %v2460_v47 = vsel %vm8918_vm6, %v2458_v30, %v2459_v0  ;;  %v4604_v9 = vshll.u32 %v9498_v11, 16  ;;  %v9545_v17 = vld [vmem:[#allocation2 + $0x34] sm:$0xf] }
 0x15d   : > { %4322 = vrot.lane.b32.xlu1 %v4221_v5, %s8795_s14  ;;  %5478 = vrot.lane.b32.xlu0 %v5338_v6, %s8798_s17  ;;  %v3159_v5 = vrot.slane %v3157_v20, 4  ;;  %v1733_v6 = vshrl.u32 %v9407_v53, 16  ;;  %v3179_v53 = vrot.slane %v3177_v10, 4  ;;  %v4582_v15 = vrot.slane %v4581_v52, 4 }
 0x15e   : > { %v9524_v16 = vrot.slane %v4604_v9, 5  ;;  %v4602_v20 = vrot.slane %v4601_v7, 4  ;;  %v4624_v52 = vshll.u32 %v4512_v34, 16 }
 0x15f   : > { %v3160_v40 = vor.u32 %v3159_v5, %v9414_v56  ;;  %v1735_v54 = vrot.slane %v1733_v6, 4  ;;  %v4587_v18 = vsel %vm8925_vm9, %v4582_v15, %v9289_v41  ;;  %v8342_v5 = vld [vmem:[%s13278_s3 + $0x10] ss:$0 sps:$4 sm:$0x33]   ;;  %v9561_v6 = vld [vmem:[#allocation2 + $0x38] sm:$0xf] }
 0x160   : > { %v8343_v15 = vld [vmem:[%s13278_s3 + $0x8] sm:$0xff]   ;;  %8296 = vmatprep.subr.msk.bf16.mxu1 %vm5928_vm13, %v8342_v5  ;;  %v5930_v7 = vsel %vm5928_vm13, %v8342_v5, 0  ;;  %v1521_v5 = vld [vmem:[#allocation2 + $0x50] sm:$0xf]  ;;  %vm6858_vm13 = vcmask 1044484  }
 0x161   : > { %5040 = vrot.lane.b32.xlu1 %v4577_v27, %s8799_s18  ;;  %3595 = vrot.lane.b32.xlu0 %v3156_v46, %s8797_s16  ;;  %v3161_v56 = vrot.slane %v3160_v40, 4  ;;  %v1753_v27 = vshrl.u32 %v9357_v44, 16  ;;  %v3180_v46 = vor.u32 %v3179_v53, %v9344_v39  ;;  %v9532_v44 = vrot.slane %v3183_v24, 5  ;;  %1569 = vst.msk [vmem:[#allocation3 + $0x50] sm:$0xf] %vm1251_vm3, %v1521_v5 }
 0x162   : > { %v2465_v53 = vrot.slane %v9545_v17, 5  ;;  %8211 = vmatpush3.bf16.msra.mxu1 %v5930_v7 }
 0x163   : > { %v3166_v39 = vsel %vm8925_vm9, %v3161_v56, %v9317_v48  ;;  %v3181_v41 = vrot.slane %v3180_v46, 4  ;;  %v1755_v2 = vrot.slane %v1753_v27, 4  ;;  %v4607_v48 = vsel %vm8925_vm9, %v4602_v20, %v9524_v16  ;;  %v9579_v46 = vld [vmem:[#allocation2 + $0x38] sm:$0xf]  ;;  %8212 = vmatprep.subr.bf16.mxu1 %v8343_v15  ;;  %v8344_v20 = vld [vmem:[%s13278_s3] sm:$0xff]  }
 0x164   : > { %v2468_v56 = vrot.slane %v9561_v6, 5 }
 0x165   : > { %2147 = vrot.lane.b32.xlu1 %v1732_v21, %s8793_s30  ;;  %2588 = vrot.lane.b32.xlu0 %v2454_v36, %s8792_s29  ;;  %v8463_v21 = vpop.eup %8462  ;;  %v3186_v58 = vsel %vm8925_vm9, %v3181_v41, %v9532_v44  ;;  %v1756_v24 = vor.u32 %v1755_v2, %v9393_v12 }
 0x166   : > { %v8465_v33 = vpop.eup %8464  ;;  %v1080_v32 = vadd.f32 1.0, %v8463_v21  ;;  %8213 = vmatpush3.bf16.msra.mxu1 %v8343_v15 }
 0x167   : > { %v8467_v42 = vpop.eup %8466  ;;  %8214 = vmatprep.subr.bf16.mxu1 %v8344_v20 }
 0x168   : > { %v1083_v9 = vadd.f32 1.0, %v8467_v42  ;;  %v1523_v42 = vld [vmem:[#allocation2 + $0x58] sm:$0xf] }
 0x169   : > { %4033 = vrot.lane.b32.xlu1 %v3896_v14, %s8796_s15  ;;  %4328 = vrot.lane.b32.xlu0 %v4224_v43, %s8795_s14  ;;  %v1082_v43 = vadd.f32 1.0, %v8461_v63  ;;  %v1736_v14 = vor.u32 %v1735_v54, %v9437_v57  ;;  %v5351_v57 = vrot.slane %v5349_v29, 4  ;;  %v9581_v63 = vrot.slane %v4624_v52, 5  ;;  %1571 = vst.msk [vmem:[#allocation3 + $0x58] sm:$0xf] %vm1251_vm3, %v1523_v42 }
 0x16a   : > { %8215 = vmatpush3.bf16.msra.mxu1 %v8344_v20 }
 0x16b   : > { %8468 = vrcp.f32 %v1082_v43  ;;  %v1737_v40 = vrot.slane %v1736_v14, 4  ;;  %v9587_v43 = vrot.slane %v1759_v51, 5  ;;  %v9598_v14 = vld [vmem:[#allocation2 + $0x38] sm:$0xf]  ;;  %v9627_v51 = vpop.f32.mrf.mxu0 }
 0x16c   : > { %8470 = vrcp.f32 %v1080_v32  ;;  %v1520_v32 = vld [vmem:[#allocation2 + $0x4c] sm:$0xf]  ;;  %v3910_v52 = vrot.slane %v9598_v14, 5 }
 0x16d   : > { %5482 = vrot.lane.b32.xlu0 %v5344_v60, %s8798_s17  ;;  %2883 = vrot.lane.b32.xlu1 %v2776_v38, %s8794_s13  ;;  %v1085_v60 = vadd.f32 1.0, %v8465_v33  ;;  %v5352_v38 = vrot.slane %v9534_v3, 5  ;;  %v2467_v33 = vrot.slane %v2465_v53, 4  ;;  %1568 = vst.msk [vmem:[#allocation3 + $0x4c] sm:$0xf] %vm1251_vm3, %v1520_v32  ;;  %v9646_v42 = vpop.f32.mrf.mxu0 }
 0x16e   : > { %v9813_v3 = vld [vmem:[#allocation2 + $0x3c] sm:$0xf] }
 0x16f   : > { %8472 = vrcp.f32 %v1085_v60  ;;  %v5354_v17 = vrot.slane %v5352_v38, 4 }
 0x170   : > { %8474 = vrcp.f32 %v1083_v9 }
 0x171   : > { %2592 = vrot.lane.b32.xlu0 %v2460_v47, %s8792_s29  ;;  %4037 = vrot.lane.b32.xlu1 %v3902_v1, %s8796_s15  ;;  %v4628_v47 = vshrl.u32 %v4512_v34, 16  ;;  %v3064_v1 = vld [vmem:[#allocation2 + $0x34] sm:$0xf]  ;;  %v4634_v34 = vshll.u32 %v9579_v46, 16 }
 0x172   : > { %v3203_v21 = vshll.u32 %v3064_v1, 16 }
 0x173   : > { %v9514_v13 = vpop.permute.xlu0 %2865  ;;  %v4630_v12 = vrot.slane %v4628_v47, 4  ;;  %v9621_v47 = vld [vmem:[#allocation2 + $0x38] sm:$0xf]  ;;  %v9630_v15 = vrot.slane %v4634_v34, 5  ;;  %v4227_v34 = vld [vmem:[#allocation2 + $0x44] sm:$0xf] }
 0x175   : > { %4324 = vrot.lane.b32.xlu0 %v4222_v4, %s8795_s14  ;;  %2879 = vrot.lane.b32.xlu1 %v2774_v62, %s8794_s13  ;;  %v9572_v4 = vld [vmem:[#allocation2 + $0x34] sm:$0xf]  ;;  %v5353_v62 = vsel %vm8918_vm6, %v5351_v57, %v5352_v38  ;;  %v4631_v60 = vor.u32 %v4630_v12, %v9581_v63  ;;  %v3213_v12 = vshll.u32 %v9621_v47, 16  ;;  %v4638_v38 = vshrl.u32 %v9579_v46, 16  ;;  %v2780_v46 = vld [vmem:[#allocation2 + $0x48] sm:$0xf] }
 0x177   : > { %v2862_v36 = vpop.permute.xlu0 %2861  ;;  %v9527_v26 = vpop.permute.xlu1 %2867  ;;  %v4640_v14 = vrot.slane %v4638_v38, 4 }
 0x178   : > { %3006 = vst.msk [vmem:[#allocation3] sm:$0xf] %vm3005_vm12, %v2862_v36  ;;  %v3207_v36 = vshrl.u32 %v3064_v1, 16  ;;  %v1522_v1 = vld [vmem:[#allocation2 + $0x54] sm:$0xf]  ;;  %v8469_v9 = vpop.eup %8468 }
 0x179   : > { %5042 = vrot.lane.b32.xlu0 %v4587_v18, %s8799_s18  ;;  %3597 = vrot.lane.b32.xlu1 %v3166_v39, %s8797_s16  ;;  %v1742_v18 = vsel %vm8925_vm9, %v1737_v40, %v9353_v50  ;;  %v3907_v39 = vrot.slane %v9572_v4, 5  ;;  %v1757_v50 = vrot.slane %v1756_v24, 4  ;;  %v1610_v40 = vld [vmem:[#allocation2 + $0x34] sm:$0xf]  ;;  %1570 = vst.msk [vmem:[#allocation3 + $0x54] sm:$0xf] %vm1251_vm3, %v1522_v1  ;;  %v8471_v24 = vpop.eup %8470 }
 0x17a   : > { %v3209_v57 = vrot.slane %v3207_v36, 4  ;;  %v8346_v36 = vld [vmem:[%s8885_s28 + $0xa0] sm:$0xff]   ;;  %v1779_v32 = vshll.u32 %v1610_v40, 16  ;;  %v1783_v5 = vshrl.u32 %v1610_v40, 16 }
 0x17b   : > { %v9556_v10 = vpop.permute.xlu0 %4312  ;;  %v2864_v30 = vpop.permute.xlu1 %2863  ;;  %8202 = vmatprep.mubr.msk.bf16.mxu0 %vm610_vm2, %v8346_v36 }
 0x17c   : > { %3007 = vst.msk [vmem:[#allocation3 + $0x4] sm:$0xf] %vm3005_vm12, %v2864_v30  ;;  %v2469_v30 = vsel %vm8918_vm6, %v2467_v33, %v2468_v56  ;;  %v8473_v33 = vpop.eup %8472  ;;  %v9669_v36 = vrot.slane %v1779_v32, 5  ;;  %v7851_v32 = vmul.f32 -1.442695, %v9646_v42 }
 0x17d   : > { %5046 = vrot.lane.b32.xlu0 %v4607_v48, %s8799_s18  ;;  %3601 = vrot.lane.b32.xlu1 %v3186_v58, %s8797_s16  ;;  %v9608_v48 = vrot.slane %v3203_v21, 5  ;;  %v3909_v58 = vrot.slane %v3907_v39, 4  ;;  %v1226_v21 = vmul.f32 %v8469_v9, %v9427_v61  ;;  %v1229_v20 = vmul.f32 %v8473_v33, %v9459_v49  ;;  %v8475_v1 = vpop.eup %8474 }
 0x17e   : > { %v1785_v33 = vrot.slane %v1783_v5, 4 }
 0x17f   : > { %v2577_v54 = vpop.permute.xlu0 %2576  ;;  %v2138_v27 = vpop.permute.xlu1 %2137  ;;  %v8069_v61 = vpack.c.bf16 %v1226_v21, %v1226_v21  ;;  %v9664_v21 = vrot.slane %v3213_v12, 5  ;;  %v8072_v23 = vpack.c.bf16 %v1229_v20, %v1229_v20  ;;  %v9680_v12 = vld [vmem:[#allocation2 + $0x38] sm:$0xf] }
 0x180   : > { %2280 = vst.msk [vmem:[#allocation3 + $0x8] sm:$0xf] %vm2277_vm10, %v2138_v27  ;;  %v3210_v27 = vor.u32 %v3209_v57, %v9608_v48  ;;  %v9651_v57 = vld [vmem:[#allocation2 + $0x30] sm:$0xf] }
 0x181   : > { %2719 = vst.msk [vmem:[#allocation3 + $0x8] sm:$0xf] %vm2716_vm11, %v2577_v54  ;;  %2149 = vrot.lane.b32.xlu0 %v1742_v18, %s8793_s30  ;;  %5488 = vrot.lane.b32.xlu1 %v5353_v62, %s8798_s17  ;;  %v4632_v54 = vrot.slane %v4631_v60, 4  ;;  %v8347_v18 = vld [vmem:[%s8885_s28 + $0xa8] sm:$0xff]   ;;  %v1224_v60 = vmul.f32 %v8471_v24, %v9444_v22  ;;  %v9657_v22 = vpop.f32.mrf.mxu0 }
 0x182   : > { %3008 = vst.msk [vmem:[#allocation3 + $0x8] sm:$0xf] %vm3005_vm12, %v9514_v13  ;;  %v1762_v13 = vsel %vm8925_vm9, %v1757_v50, %v9587_v43  ;;  %v3911_v50 = vsel %vm8918_vm6, %v3909_v58, %v3910_v52  ;;  %v7853_v58 = vmul.f32 -1.442695, %v9627_v51  ;;  %v3211_v24 = vrot.slane %v3210_v27, 4  ;;  %8203 = vmatmul.mubr.msk.bf16.gmra.mxu0 %vm610_vm2, %v8347_v18 }
 0x183   : > { %v9603_v41 = vpop.permute.xlu0 %4027  ;;  %v9605_v2 = vpop.permute.xlu1 %2582  ;;  %v4637_v49 = vsel %vm8925_vm9, %v4632_v54, %v9630_v15  ;;  %1470 = vst.msk [vmem:[#allocation2 + $0x68] sm:$0xf] %vm1251_vm3, %v8069_v61  ;;  %v5346_v54 = vrot.slane %v9651_v57, 5  ;;  %v9676_v27 = vld [vmem:[#allocation2 + $0x30] sm:$0xf]  ;;  %v4608_v18 = vshrl.u32 %v9498_v11, 16 }
 0x184   : > { %8476 = vpow2.f32 %v7853_v58  ;;  %1473 = vst.msk [vmem:[#allocation2 + $0x74] sm:$0xf] %vm1251_vm3, %v8072_v23  ;;  %v9687_v5 = vpop.f32.mrf.mxu0  ;;  %v2461_v57 = vrot.slane %v2459_v0, 4  ;;  %v3903_v11 = vrot.slane %v3901_v37, 4  ;;  %v1786_v58 = vor.u32 %v1785_v33, %v9669_v36 }
 0x185   : > { %2153 = vrot.lane.b32.xlu0 %v1762_v13, %s8793_s30  ;;  %2598 = vrot.lane.b32.xlu1 %v2469_v30, %s8792_s29  ;;  %v5345_v13 = vrot.slane %v5343_v31, 4  ;;  %v8067_v30 = vpack.c.bf16 %v1224_v60, %v1224_v60  ;;  %v2779_v31 = vld [vmem:[#allocation2 + $0x44] sm:$0xf]  ;;  %v3187_v60 = vshrl.u32 %v9509_v55, 16  ;;  %v1789_v55 = vshll.u32 %v9680_v12, 16 }
 0x186   : > { %8478 = vpow2.f32 %v7851_v32  ;;  %v2462_v19 = vrot.slane %v9676_v27, 5  ;;  %v7856_v0 = vmul.f32 -1.442695, %v9657_v22  ;;  %v7854_v37 = vmul.f32 -1.442695, %v9687_v5 }
 0x187   : > { %v9632_v62 = vpop.permute.xlu1 %4318  ;;  %v9634_v7 = vpop.permute.xlu0 %2873  ;;  %1468 = vst.msk [vmem:[#allocation2 + $0x60] sm:$0xf] %vm1251_vm3, %v8067_v30  ;;  %v3216_v30 = vsel %vm8925_vm9, %v3211_v24, %v9664_v21  ;;  %v4610_v24 = vrot.slane %v4608_v18, 4  ;;  %v1787_v23 = vrot.slane %v1786_v58, 4  ;;  %v3189_v33 = vrot.slane %v3187_v60, 4 }
 0x188   : > { %8480 = vpow2.f32 %v7856_v0  ;;  %v9729_v32 = vld [vmem:[#allocation2 + $0x30] sm:$0xf]  ;;  %v2777_v60 = vld [vmem:[#allocation2 + $0x3c] sm:$0xf] }
 0x189   : > { %4043 = vrot.lane.b32.xlu0 %v3911_v50, %s8796_s15  ;;  %4334 = vrot.lane.b32.xlu1 %v4227_v34, %s8795_s14  ;;  %v1227_v50 = vmul.f32 %v8475_v1, %v9477_v8  ;;  %v9684_v34 = vld [vmem:[#allocation2 + $0x30] sm:$0xf]  ;;  %8482 = vpow2.f32 %v7854_v37 }
 0x18a   : > { %v3904_v59 = vrot.slane %v9684_v34, 5  ;;  %v9752_v58 = vld [vmem:[#allocation2 + $0x30] sm:$0xf]  ;;  %v3197_v34 = vshrl.u32 %v9729_v32, 16 }
 0x18b   : > { %v9659_v40 = vpop.permute.xlu1 %2578  ;;  %v3592_v9 = vpop.permute.xlu0 %3591  ;;  %v8070_v8 = vpack.c.bf16 %v1227_v50, %v1227_v50  ;;  %v1773_v6 = vshrl.u32 %v9752_v58, 16 }
 0x18c   : > { %3734 = vst.msk [vmem:[#allocation3 + $0x8] sm:$0xf] %vm3731_vm14, %v3592_v9 }
 0x18d   : > { %5052 = vrot.lane.b32.xlu1 %v4637_v49, %s8799_s18  ;;  %2889 = vrot.lane.b32.xlu0 %v2779_v31, %s8794_s13  ;;  %4170 = vst.msk [vmem:[#allocation3 + $0x8] sm:$0xf] %vm4167_vm15, %v9603_v41  ;;  %v5347_v41 = vsel %vm8918_vm6, %v5345_v13, %v5346_v54  ;;  %v1763_v13 = vshrl.u32 %v9541_v45, 16  ;;  %v3905_v49 = vsel %vm8918_vm6, %v3903_v11, %v3904_v59  ;;  %v9722_v31 = vrot.slane %v1789_v55, 5  ;;  %v9726_v45 = vld [vmem:[#allocation2 + $0x30] sm:$0xf] }
 0x18e   : > { %1471 = vst.msk [vmem:[#allocation2 + $0x6c] sm:$0xf] %vm1251_vm3, %v8070_v8  ;;  %v4611_v8 = vor.u32 %v4610_v24, %v9524_v16  ;;  %v4614_v16 = vshll.u32 %v9726_v45, 16  ;;  %v4225_v55 = vld [vmem:[#allocation2 + $0x3c] sm:$0xf] }
 0x18f   : > { %v2144_v61 = vpop.permute.xlu1 %2143  ;;  %v4024_v20 = vpop.permute.xlu0 %4023  ;;  %v1792_v18 = vsel %vm8925_vm9, %v1787_v23, %v9722_v31 }
 0x190   : > { %2283 = vst.msk [vmem:[#allocation3 + $0x14] sm:$0xf] %vm2277_vm10, %v2144_v61  ;;  %v5348_v61 = vrot.slane %v5346_v54, 4  ;;  %v3193_v54 = vshll.u32 %v9729_v32, 16  ;;  %v3217_v32 = vshrl.u32 %v9621_v47, 16  ;;  %v3912_v47 = vrot.slane %v3910_v52, 4 }
 0x191   : > { %2722 = vst.msk [vmem:[#allocation3 + $0x14] sm:$0xf] %vm2716_vm11, %v9605_v2  ;;  %5484 = vrot.lane.b32.xlu1 %v5347_v41, %s8798_s17  ;;  %3607 = vrot.lane.b32.xlu0 %v3216_v30, %s8797_s16  ;;  %v2463_v2 = vsel %vm8918_vm6, %v2461_v57, %v2462_v19  ;;  %v3190_v41 = vor.u32 %v3189_v33, %v9532_v44  ;;  %v1765_v57 = vrot.slane %v1763_v13, 4  ;;  %v8477_v11 = vpop.eup %8476 }
 0x192   : > { %v1086_v44 = vadd.f32 1.0, %v8477_v11  ;;  %v5350_v0 = vsel %vm8918_vm6, %v5348_v61, %v5349_v29 }
 0x193   : > { %v9712_v1 = vpop.permute.xlu1 %4314  ;;  %v9714_v9 = vpop.permute.xlu0 %2869  ;;  %v1766_v37 = vor.u32 %v1765_v57, %v9587_v43 }
 0x194   : > { %8484 = vrcp.f32 %v1086_v44  ;;  %v8479_v13 = vpop.eup %8478  ;;  %v4618_v44 = vshrl.u32 %v9726_v45, 16 }
 0x195   : > { %2594 = vrot.lane.b32.xlu1 %v2463_v2, %s8792_s29  ;;  %4039 = vrot.lane.b32.xlu0 %v3905_v49, %s8796_s15  ;;  %v9763_v2 = vrot.slane %v3193_v54, 5  ;;  %v1769_v49 = vshll.u32 %v9752_v58, 16  ;;  %v1084_v24 = vadd.f32 1.0, %v8479_v13  ;;  %v1767_v33 = vrot.slane %v1766_v37, 4  ;;  %v9793_v54 = vld [vmem:[#allocation2 + $0x3c] sm:$0xf] }
 0x196   : > { %v4620_v4 = vrot.slane %v4618_v44, 4  ;;  %v9851_v58 = vld [vmem:[#allocation2 + $0x3c] sm:$0xf]  ;;  %v4641_v44 = vor.u32 %v4640_v14, %v9630_v15 }
 0x197   : > { %v2140_v50 = vpop.permute.xlu1 %2139  ;;  %v3588_v27 = vpop.permute.xlu0 %3587  ;;  %8486 = vrcp.f32 %v1084_v24  ;;  %v2470_v24 = vrot.slane %v2468_v56, 4 }
 0x198   : > { %2281 = vst.msk [vmem:[#allocation3 + $0xc] sm:$0xf] %vm2277_vm10, %v2140_v50  ;;  %v2464_v50 = vrot.slane %v2462_v19, 4 }
 0x199   : > { %3732 = vst.msk [vmem:[#allocation3] sm:$0xf] %vm3731_vm14, %v3588_v27  ;;  %2159 = vrot.lane.b32.xlu1 %v1792_v18, %s8793_s30  ;;  %2885 = vrot.lane.b32.xlu0 %v2777_v60, %s8794_s13  ;;  %v8481_v27 = vpop.eup %8480  ;;  %v9778_v18 = vrot.slane %v1769_v49, 5 }
 0x19a   : > { %2720 = vst.msk [vmem:[#allocation3 + $0xc] sm:$0xf] %vm2716_vm11, %v9659_v40  ;;  %v1089_v60 = vadd.f32 1.0, %v8481_v27  ;;  %v2466_v19 = vsel %vm8918_vm6, %v2464_v50, %v2465_v53  ;;  %v5355_v53 = vrot.slane %v9793_v54, 5 }
 0x19b   : > { %4168 = vst.msk [vmem:[#allocation3] sm:$0xf] %vm4167_vm15, %v4024_v20  ;;  %v9748_v30 = vpop.permute.xlu1 %4025  ;;  %v9750_v40 = vpop.permute.xlu0 %2580  ;;  %v4612_v20 = vrot.slane %v4611_v8, 4  ;;  %v1772_v11 = vsel %vm8925_vm9, %v1767_v33, %v9778_v18 }
 0x19c   : > { %3009 = vst.msk [vmem:[#allocation3 + $0xc] sm:$0xf] %vm3005_vm12, %v9527_v26  ;;  %v3191_v26 = vrot.slane %v3190_v41, 4  ;;  %v8483_v8 = vpop.eup %8482  ;;  %8488 = vrcp.f32 %v1089_v60 }
 0x19d   : > { %4457 = vst.msk [vmem:[#allocation3] sm:$0xf] %vm4456_vm0, %v9556_v10  ;;  %4330 = vrot.lane.b32.xlu1 %v4225_v55, %s8795_s14  ;;  %5486 = vrot.lane.b32.xlu0 %v5350_v0, %s8798_s17  ;;  %v9761_v10 = vrot.slane %v4614_v16, 5  ;;  %v1087_v57 = vadd.f32 1.0, %v8483_v8  ;;  %v3906_v16 = vrot.slane %v3904_v59, 4 }
 0x19e   : > { %v3196_v43 = vsel %vm8925_vm9, %v3191_v26, %v9763_v2  ;;  %v4228_v0 = vld [vmem:[#allocation2 + $0x48] sm:$0xf]  ;;  %v9809_v26 = vld [vmem:[#allocation2 + $0x3c] sm:$0xf] }
 0x19f   : > { %v9766_v28 = vpop.permute.xlu0 %4320  ;;  %v9768_v23 = vpop.permute.xlu1 %2875  ;;  %v4617_v29 = vsel %vm8925_vm9, %v4612_v20, %v9761_v10  ;;  %8490 = vrcp.f32 %v1087_v57  ;;  %v3908_v59 = vsel %vm8918_vm6, %v3906_v16, %v3907_v39  ;;  %v5356_v39 = vsel %vm8918_vm6, %v5354_v17, %v5355_v53 }
 0x1a0   : > { %v4621_v52 = vor.u32 %v4620_v4, %v9761_v10  ;;  %v3219_v10 = vrot.slane %v3217_v32, 4  ;;  %v1775_v16 = vrot.slane %v1773_v6, 4  ;;  %v9883_v4 = vld [vmem:[#allocation2 + $0x48] sm:$0xf] }
 0x1a1   : > { %5048 = vrot.lane.b32.xlu1 %v4617_v29, %s8799_s18  ;;  %3603 = vrot.lane.b32.xlu0 %v3196_v43, %s8797_s16  ;;  %v8485_v45 = vpop.eup %8484  ;;  %v2471_v29 = vrot.slane %v9809_v26, 5  ;;  %v3199_v43 = vrot.slane %v3197_v34, 4  ;;  %v4644_v34 = vshll.u32 %v9851_v58, 16  ;;  %v5364_v6 = vrot.slane %v9883_v4, 5 }
 0x1a2   : > { %v1230_v37 = vmul.f32 %v8485_v45, %v9627_v51  ;;  %v3913_v51 = vrot.slane %v9813_v3, 5  ;;  %v4622_v17 = vrot.slane %v4621_v52, 4  ;;  %v3220_v38 = vor.u32 %v3219_v10, %v9664_v21 }
 0x1a3   : > { %v9780_v61 = vpop.permute.xlu0 %5474  ;;  %v9782_v41 = vpop.permute.xlu1 %4029  ;;  %v2472_v8 = vsel %vm8918_vm6, %v2470_v24, %v2471_v29  ;;  %v9892_v24 = vld [vmem:[#allocation2 + $0x3c] sm:$0xf] }
 0x1a4   : > { %v8073_v33 = vpack.c.bf16 %v1230_v37, %v1230_v37  ;;  %v8487_v50 = vpop.eup %8486 }
 0x1a5   : > { %2155 = vrot.lane.b32.xlu1 %v1772_v11, %s8793_s30  ;;  %2596 = vrot.lane.b32.xlu0 %v2466_v19, %s8792_s29  ;;  %v1228_v56 = vmul.f32 %v8487_v50, %v9646_v42  ;;  %v3200_v42 = vor.u32 %v3199_v43, %v9763_v2  ;;  %v9859_v11 = vld [vmem:[#allocation2 + $0x3c] sm:$0xf]  ;;  %v1793_v2 = vshrl.u32 %v9680_v12, 16 }
 0x1a6   : > { %1474 = vst.msk [vmem:[#allocation2 + $0x78] sm:$0xf] %vm1251_vm3, %v8073_v33 }
 0x1a7   : > { %v9798_v20 = vpop.permute.xlu0 %2584  ;;  %v2872_v55 = vpop.permute.xlu1 %2871  ;;  %v8071_v60 = vpack.c.bf16 %v1228_v56, %v1228_v56  ;;  %v3201_v45 = vrot.slane %v3200_v42, 4  ;;  %v1795_v37 = vrot.slane %v1793_v2, 4  ;;  %v3068_v42 = vld [vmem:[#allocation2 + $0x44] sm:$0xf] }
 0x1a8   : > { %3011 = vst.msk [vmem:[#allocation3 + $0x14] sm:$0xf] %vm3005_vm12, %v2872_v55 }
 0x1a9   : > { %4041 = vrot.lane.b32.xlu1 %v3908_v59, %s8796_s15  ;;  %4336 = vrot.lane.b32.xlu0 %v4228_v0, %s8795_s14  ;;  %v8489_v57 = vpop.eup %8488  ;;  %1472 = vst.msk [vmem:[#allocation2 + $0x70] sm:$0xf] %vm1251_vm3, %v8071_v60  ;;  %v9870_v59 = vld [vmem:[#allocation2 + $0x44] sm:$0xf]  ;;  %v4226_v0 = vld [vmem:[#allocation2 + $0x40] sm:$0xf]  ;;  %v1796_v33 = vor.u32 %v1795_v37, %v9722_v31 }
 0x1aa   : > { %v5361_v21 = vrot.slane %v9870_v59, 5 }
 0x1ab   : > { %v4317_v13 = vpop.permute.xlu0 %4316  ;;  %v3590_v49 = vpop.permute.xlu1 %3589 }
 0x1ac   : > { %4459 = vst.msk [vmem:[#allocation3 + $0x8] sm:$0xf] %vm4456_vm0, %v4317_v13  ;;  %v8491_v19 = vpop.eup %8490  ;;  %v5363_v50 = vrot.slane %v5361_v21, 4 }
 0x1ad   : > { %3733 = vst.msk [vmem:[#allocation3 + $0x4] sm:$0xf] %vm3731_vm14, %v3590_v49  ;;  %5490 = vrot.lane.b32.xlu0 %v5356_v39, %s8798_s17  ;;  %2891 = vrot.lane.b32.xlu1 %v2780_v46, %s8794_s13  ;;  %v1231_v12 = vmul.f32 %v8491_v19, %v9687_v5  ;;  %v1776_v5 = vor.u32 %v1775_v16, %v9778_v18  ;;  %v4642_v39 = vrot.slane %v4641_v44, 4  ;;  %v4516_v18 = vld [vmem:[#allocation2 + $0x44] sm:$0xf]  ;;  %v9899_v46 = vrot.slane %v4644_v34, 5 }
 0x1ae   : > { %4169 = vst.msk [vmem:[#allocation3 + $0x4] sm:$0xf] %vm4167_vm15, %v9748_v30  ;;  %v4664_v52 = vshll.u32 %v4516_v18, 16  ;;  %v5365_v60 = vsel %vm8918_vm6, %v5363_v50, %v5364_v6 }
 0x1af   : > { %4458 = vst.msk [vmem:[#allocation3 + $0x4] sm:$0xf] %vm4456_vm0, %v9712_v1  ;;  %v5039_v27 = vpop.permute.xlu0 %5038  ;;  %v3594_v30 = vpop.permute.xlu1 %3593  ;;  %v3914_v1 = vsel %vm8918_vm6, %v3912_v47, %v3913_v51  ;;  %v8074_v32 = vpack.c.bf16 %v1231_v12, %v1231_v12  ;;  %v3221_v47 = vrot.slane %v3220_v38, 4  ;;  %v4647_v31 = vsel %vm8925_vm9, %v4642_v39, %v9899_v46  ;;  %v9951_v12 = vld [vmem:[#allocation2 + $0x48] sm:$0xf] }
 0x1b0   : > { %5183 = vst.msk [vmem:[#allocation3] sm:$0xf] %vm5182_vm1, %v5039_v27  ;;  %v4668_v27 = vshrl.u32 %v4516_v18, 16  ;;  %v4674_v37 = vshll.u32 %v9951_v12, 16  ;;  %v1614_v18 = vld [vmem:[#allocation2 + $0x44] sm:$0xf] }
 0x1b1   : > { %3735 = vst.msk [vmem:[#allocation3 + $0xc] sm:$0xf] %vm3731_vm14, %v3594_v30  ;;  %2600 = vrot.lane.b32.xlu0 %v2472_v8, %s8792_s29  ;;  %4045 = vrot.lane.b32.xlu1 %v3914_v1, %s8796_s15  ;;  %v9925_v8 = vld [vmem:[#allocation2 + $0x44] sm:$0xf]  ;;  %v9929_v1 = vld [vmem:[#allocation2 + $0x48] sm:$0xf] }
 0x1b2   : > { %5619 = vst.msk [vmem:[#allocation3] sm:$0xf] %vm5618_vm4, %v9780_v61  ;;  %v1233_v61 = vmul.f32 %v8489_v57, %v9657_v22  ;;  %v3223_v22 = vshll.u32 %v9859_v11, 16  ;;  %v1797_v57 = vrot.slane %v1796_v33, 4  ;;  %v3919_v44 = vrot.slane %v9925_v8, 5 }
 0x1b3   : > { %4171 = vst.msk [vmem:[#allocation3 + $0xc] sm:$0xf] %vm4167_vm15, %v9782_v41  ;;  %v2142_v41 = vpop.permute.xlu0 %2141  ;;  %v9867_v55 = vpop.permute.xlu1 %5480  ;;  %v2480_v34 = vrot.slane %v9929_v1, 5  ;;  %v10176_v1 = vld [vmem:[#allocation2 + $0x4c] sm:$0xf] }
 0x1b4   : > { %4460 = vst.msk [vmem:[#allocation3 + $0xc] sm:$0xf] %vm4456_vm0, %v9632_v62  ;;  %v2778_v62 = vld [vmem:[#allocation2 + $0x40] sm:$0xf]  ;;  %v8076_v15 = vpack.c.bf16 %v1233_v61, %v1233_v61  ;;  %v9901_v43 = vrot.slane %v3223_v22, 5  ;;  %v3921_v22 = vrot.slane %v3919_v44, 4 }
 0x1b5   : > { %2282 = vst.msk [vmem:[#allocation3 + $0x10] sm:$0xf] %vm2277_vm10, %v2142_v41  ;;  %4332 = vrot.lane.b32.xlu0 %v4226_v0, %s8795_s14  ;;  %2887 = vrot.lane.b32.xlu1 %v2778_v62, %s8794_s13  ;;  %v9942_v61 = vld [vmem:[#allocation2 + $0x48] sm:$0xf]  ;;  %v9945_v41 = vrot.slane %v4664_v52, 5  ;;  %v3243_v0 = vshll.u32 %v3068_v42, 16 }
 0x1b6   : > { %2721 = vst.msk [vmem:[#allocation3 + $0x10] sm:$0xf] %vm2716_vm11, %v9750_v40  ;;  %v4627_v40 = vsel %vm8925_vm9, %v4622_v17, %v9581_v63  ;;  %v9907_v63 = vld [vmem:[#allocation2 + $0x44] sm:$0xf]  ;;  %v4670_v17 = vrot.slane %v4668_v27, 4  ;;  %v3247_v62 = vshrl.u32 %v3068_v42, 16 }
 0x1b7   : > { %3010 = vst.msk [vmem:[#allocation3 + $0x10] sm:$0xf] %vm3005_vm12, %v9714_v9  ;;  %v2146_v13 = vpop.permute.xlu0 %2145  ;;  %v9887_v49 = vpop.permute.xlu1 %2590  ;;  %v3206_v9 = vsel %vm8925_vm9, %v3201_v45, %v9608_v48  ;;  %v1777_v48 = vrot.slane %v1776_v5, 4  ;;  %v2477_v30 = vrot.slane %v9907_v63, 5  ;;  %v8350_v27 = vld [vmem:[%s8885_s28 + $0xb0] sm:$0xff]  }
 0x1b8   : > { %1477 = vst.msk [vmem:[#allocation2 + $0x84] sm:$0xf] %vm1251_vm3, %v8076_v15  ;;  %1475 = vst.msk [vmem:[#allocation2 + $0x7c] sm:$0xf] %vm1251_vm3, %v8074_v32  ;;  %v3922_v15 = vrot.slane %v9942_v61, 5  ;;  %v4671_v32 = vor.u32 %v4670_v17, %v9945_v41  ;;  %v3249_v39 = vrot.slane %v3247_v62, 4  ;;  %8206 = vmatprep.mubr.msk.bf16.mxu0 %vm610_vm2, %v8350_v27 }
 0x1b9   : > { %2284 = vst.msk [vmem:[#allocation3 + $0x18] sm:$0xf] %vm2277_vm10, %v2146_v13  ;;  %5050 = vrot.lane.b32.xlu0 %v4627_v40, %s8799_s18  ;;  %3605 = vrot.lane.b32.xlu1 %v3206_v9, %s8797_s16  ;;  %v1782_v10 = vsel %vm8925_vm9, %v1777_v48, %v9669_v36  ;;  %v2479_v36 = vrot.slane %v2477_v30, 4  ;;  %v9972_v13 = vld [vmem:[#allocation2 + $0x48] sm:$0xf]  ;;  %v9974_v40 = vrot.slane %v3243_v0, 5  ;;  %v9979_v9 = vpop.f32.mrf.mxu0 }
 0x1ba   : > { %2723 = vst.msk [vmem:[#allocation3 + $0x18] sm:$0xf] %vm2716_vm11, %v9798_v20  ;;  %v1799_v20 = vshll.u32 %v9892_v24, 16  ;;  %v3923_v50 = vsel %vm8918_vm6, %v3921_v22, %v3922_v15  ;;  %v3253_v52 = vshll.u32 %v9972_v13, 16  ;;  %v10001_v17 = vld [vmem:[#allocation2 + $0x40] sm:$0xf] }
 0x1bb   : > { %3012 = vst.msk [vmem:[#allocation3 + $0x18] sm:$0xf] %vm3005_vm12, %v9634_v7  ;;  %v4036_v56 = vpop.permute.xlu0 %4035  ;;  %v9915_v14 = vpop.permute.xlu1 %4326  ;;  %v3226_v7 = vsel %vm8925_vm9, %v3221_v47, %v9901_v43  ;;  %v2481_v5 = vsel %vm8918_vm6, %v2479_v36, %v2480_v34  ;;  %v7857_v47 = vmul.f32 -1.442695, %v9979_v9  ;;  %v3250_v42 = vor.u32 %v3249_v39, %v9974_v40 }
 0x1bc   : > { %v9940_v16 = vrot.slane %v1799_v20, 5  ;;  %v4672_v20 = vrot.slane %v4671_v32, 4  ;;  %v5357_v62 = vrot.slane %v5355_v53, 4  ;;  %v2783_v32 = vld [vmem:[#allocation2 + $0x54] sm:$0xf]  ;;  %v5358_v54 = vrot.slane %v10001_v17, 5 }
 0x1bd   : > { %5054 = vrot.lane.b32.xlu0 %v4647_v31, %s8799_s18  ;;  %3609 = vrot.lane.b32.xlu1 %v3226_v7, %s8797_s16  ;;  %v8351_v31 = vld [vmem:[%s8885_s28 + $0xb8] sm:$0xff]   ;;  %v4231_v7 = vld [vmem:[#allocation2 + $0x54] sm:$0xf]  ;;  %8492 = vpow2.f32 %v7857_v47  ;;  %v10024_v53 = vld [vmem:[#allocation2 + $0x48] sm:$0xf]  ;;  %v4648_v47 = vshrl.u32 %v9851_v58, 16 }
 0x1be   : > { %8207 = vmatmul.mubr.msk.bf16.gmra.mxu0 %vm610_vm2, %v8351_v31  ;;  %v1829_v17 = vshll.u32 %v10024_v53, 16  ;;  %vm5855_vm2 = vcmask 293888  }
 0x1bf   : > { %v5045_v19 = vpop.permute.xlu1 %5044  ;;  %v9938_v2 = vpop.permute.xlu0 %2881 }
 0x1c0   : > { %5186 = vst.msk [vmem:[#allocation3 + $0xc] sm:$0xf] %vm5182_vm1, %v5045_v19 }
 0x1c1   : > { %5622 = vst.msk [vmem:[#allocation3 + $0xc] sm:$0xf] %vm5618_vm4, %v9867_v55  ;;  %2157 = vrot.lane.b32.xlu0 %v1782_v10, %s8793_s30  ;;  %5496 = vrot.lane.b32.xlu1 %v5365_v60, %s8798_s17  ;;  %v1802_v55 = vsel %vm8925_vm9, %v1797_v57, %v9940_v16  ;;  %v1819_v10 = vshll.u32 %v1614_v18, 16  ;;  %v1823_v60 = vshrl.u32 %v1614_v18, 16  ;;  %v9996_v57 = vpop.f32.mrf.mxu0 }
 0x1c2   : > { %v7855_v19 = vmul.f32 -1.442695, %v9996_v57 }
 0x1c3   : > { %v9957_v45 = vpop.permute.xlu1 %5476  ;;  %v3600_v38 = vpop.permute.xlu0 %3599 }
 0x1c4   : > { %3738 = vst.msk [vmem:[#allocation3 + $0x18] sm:$0xf] %vm3731_vm14, %v3600_v38  ;;  %v10008_v38 = vrot.slane %v3253_v52, 5  ;;  %8494 = vpow2.f32 %v7855_v19  ;;  %v10017_v39 = vpop.f32.mrf.mxu0  ;;  %v10031_v52 = vld [vmem:[#allocation2 + $0x40] sm:$0xf] }
 0x1c5   : > { %4174 = vst.msk [vmem:[#allocation3 + $0x18] sm:$0xf] %vm4167_vm15, %v4036_v56  ;;  %2161 = vrot.lane.b32.xlu0 %v1802_v55, %s8793_s30  ;;  %2606 = vrot.lane.b32.xlu1 %v2481_v5, %s8792_s29  ;;  %v9990_v56 = vrot.slane %v4674_v37, 5  ;;  %v3251_v37 = vrot.slane %v3250_v42, 4  ;;  %v10015_v55 = vrot.slane %v1819_v10, 5  ;;  %v1825_v5 = vrot.slane %v1823_v60, 4 }
 0x1c6   : > { %v7860_v18 = vmul.f32 -1.442695, %v10017_v39  ;;  %v10033_v27 = vpop.f32.mrf.mxu0  ;;  %v2473_v42 = vrot.slane %v2471_v29, 4  ;;  %v3915_v60 = vrot.slane %v3913_v51, 4  ;;  %v1527_v29 = vld [vmem:[#allocation2 + $0x68] sm:$0xf] }
 0x1c7   : > { %v9982_v33 = vpop.permute.xlu1 %2586  ;;  %v9984_v48 = vpop.permute.xlu0 %4031  ;;  %v4677_v22 = vsel %vm8925_vm9, %v4672_v20, %v9990_v56  ;;  %v10029_v20 = vld [vmem:[#allocation2 + $0x40] sm:$0xf]  ;;  %v7858_v58 = vmul.f32 -1.442695, %v10033_v27  ;;  %v3256_v10 = vsel %vm8925_vm9, %v3251_v37, %v10008_v38  ;;  %v1826_v19 = vor.u32 %v1825_v5, %v10015_v55  ;;  %1575 = vst.msk [vmem:[#allocation3 + $0x68] sm:$0xf] %vm1251_vm3, %v1527_v29 }
 0x1c8   : > { %8496 = vpow2.f32 %v7860_v18  ;;  %v2474_v26 = vrot.slane %v10029_v20, 5  ;;  %v3916_v3 = vrot.slane %v10031_v52, 5  ;;  %v1526_v51 = vld [vmem:[#allocation2 + $0x64] sm:$0xf]  ;;  %v10156_v52 = vld [vmem:[#allocation2 + $0x4c] sm:$0xf] }
 0x1c9   : > { %4051 = vrot.lane.b32.xlu0 %v3923_v50, %s8796_s15  ;;  %4342 = vrot.lane.b32.xlu1 %v4231_v7, %s8795_s14  ;;  %v3227_v50 = vshrl.u32 %v9859_v11, 16  ;;  %v5359_v7 = vsel %vm8918_vm6, %v5357_v62, %v5358_v54  ;;  %v1524_v11 = vld [vmem:[#allocation2 + $0x5c] sm:$0xf]  ;;  %8498 = vpow2.f32 %v7858_v58  ;;  %1574 = vst.msk [vmem:[#allocation3 + $0x64] sm:$0xf] %vm1251_vm3, %v1526_v51 }
 0x1ca   : > { %1572 = vst.msk [vmem:[#allocation3 + $0x5c] sm:$0xf] %vm1251_vm3, %v1524_v11  ;;  %v2475_v5 = vsel %vm8918_vm6, %v2473_v42, %v2474_v26  ;;  %v3917_v18 = vsel %vm8918_vm6, %v3915_v60, %v3916_v3  ;;  %v8493_v58 = vpop.eup %8492 }
 0x1cb   : > { %v2152_v36 = vpop.permute.xlu1 %2151  ;;  %v10004_v0 = vpop.permute.xlu0 %2877  ;;  %v3229_v62 = vrot.slane %v3227_v50, 4  ;;  %v1827_v50 = vrot.slane %v1826_v19, 4  ;;  %v1090_v42 = vadd.f32 1.0, %v8493_v58  ;;  %v10083_v19 = vld [vmem:[#allocation2 + $0x40] sm:$0xf] }
 0x1cc   : > { %2287 = vst.msk [vmem:[#allocation3 + $0x24] sm:$0xf] %vm2277_vm10, %v2152_v36  ;;  %v1525_v36 = vld [vmem:[#allocation2 + $0x60] sm:$0xf] }
 0x1cd   : > { %2726 = vst.msk [vmem:[#allocation3 + $0x24] sm:$0xf] %vm2716_vm11, %v9887_v49  ;;  %5060 = vrot.lane.b32.xlu1 %v4677_v22, %s8799_s18  ;;  %2897 = vrot.lane.b32.xlu0 %v2783_v32, %s8794_s13  ;;  %v1803_v22 = vshrl.u32 %v9892_v24, 16  ;;  %v10070_v24 = vrot.slane %v1829_v17, 5  ;;  %v3230_v11 = vor.u32 %v3229_v62, %v9901_v43  ;;  %8500 = vrcp.f32 %v1090_v42 }
 0x1ce   : > { %1573 = vst.msk [vmem:[#allocation3 + $0x60] sm:$0xf] %vm1251_vm3, %v1525_v36  ;;  %v2781_v36 = vld [vmem:[#allocation2 + $0x4c] sm:$0xf] }
 0x1cf   : > { %v10035_v49 = vpop.permute.xlu1 %4322  ;;  %v10037_v31 = vpop.permute.xlu0 %5478  ;;  %v1805_v29 = vrot.slane %v1803_v22, 4  ;;  %v4229_v22 = vld [vmem:[#allocation2 + $0x4c] sm:$0xf] }
 0x1d1   : > { %5492 = vrot.lane.b32.xlu1 %v5359_v7, %s8798_s17  ;;  %3615 = vrot.lane.b32.xlu0 %v3256_v10, %s8797_s16  ;;  %v4650_v7 = vrot.slane %v4648_v47, 4  ;;  %v5360_v47 = vrot.slane %v5358_v54, 4  ;;  %v8495_v17 = vpop.eup %8494  ;;  %v4654_v54 = vshll.u32 %v10083_v19, 16 }
 0x1d2   : > { %v1088_v43 = vadd.f32 1.0, %v8495_v17 }
 0x1d3   : > { %v5041_v32 = vpop.permute.xlu1 %5040  ;;  %v3596_v37 = vpop.permute.xlu0 %3595  ;;  %v10114_v42 = vrot.slane %v4654_v54, 5 }
 0x1d4   : > { %5184 = vst.msk [vmem:[#allocation3 + $0x4] sm:$0xf] %vm5182_vm1, %v5041_v32  ;;  %v10104_v32 = vld [vmem:[#allocation2 + $0x40] sm:$0xf]  ;;  %8502 = vrcp.f32 %v1088_v43  ;;  %v4658_v43 = vshrl.u32 %v10083_v19, 16 }
 0x1d5   : > { %3736 = vst.msk [vmem:[#allocation3 + $0x10] sm:$0xf] %vm3731_vm14, %v3596_v37  ;;  %2602 = vrot.lane.b32.xlu1 %v2475_v5, %s8792_s29  ;;  %4047 = vrot.lane.b32.xlu0 %v3917_v18, %s8796_s15  ;;  %v5362_v37 = vsel %vm8918_vm6, %v5360_v47, %v5361_v21  ;;  %v3231_v18 = vrot.slane %v3230_v11, 4  ;;  %v1809_v59 = vshll.u32 %v10104_v32, 16 }
 0x1d6   : > { %5620 = vst.msk [vmem:[#allocation3 + $0x4] sm:$0xf] %vm5618_vm4, %v9957_v45  ;;  %v10085_v45 = vld [vmem:[#allocation2 + $0x40] sm:$0xf] }
 0x1d7   : > { %4172 = vst.msk [vmem:[#allocation3 + $0x10] sm:$0xf] %vm4167_vm15, %v9984_v48  ;;  %v2148_v10 = vpop.permute.xlu1 %2147  ;;  %v10081_v60 = vpop.permute.xlu0 %2588  ;;  %v1832_v48 = vsel %vm8925_vm9, %v1827_v50, %v10070_v24  ;;  %v3233_v51 = vshll.u32 %v10085_v45, 16  ;;  %v1806_v50 = vor.u32 %v1805_v29, %v9940_v16  ;;  %v10135_v29 = vrot.slane %v1809_v59, 5 }
 0x1d8   : > { %4461 = vst.msk [vmem:[#allocation3 + $0x10] sm:$0xf] %vm4456_vm0, %v9766_v28  ;;  %v4651_v28 = vor.u32 %v4650_v7, %v9899_v46  ;;  %v3237_v63 = vshrl.u32 %v10085_v45, 16  ;;  %v4660_v45 = vrot.slane %v4658_v43, 4  ;;  %v3924_v59 = vrot.slane %v3922_v15, 4 }
 0x1d9   : > { %2285 = vst.msk [vmem:[#allocation3 + $0x1c] sm:$0xf] %vm2277_vm10, %v2148_v10  ;;  %2167 = vrot.lane.b32.xlu1 %v1832_v48, %s8793_s30  ;;  %2893 = vrot.lane.b32.xlu0 %v2781_v36, %s8794_s13  ;;  %v10116_v10 = vrot.slane %v3233_v51, 5  ;;  %v1807_v48 = vrot.slane %v1806_v50, 4  ;;  %v2476_v36 = vrot.slane %v2474_v26, 4  ;;  %v1813_v50 = vshrl.u32 %v10104_v32, 16 }
 0x1da   : > { %2724 = vst.msk [vmem:[#allocation3 + $0x1c] sm:$0xf] %vm2716_vm11, %v9982_v33  ;;  %v8497_v33 = vpop.eup %8496  ;;  %v4652_v5 = vrot.slane %v4651_v28, 4  ;;  %v10133_v28 = vld [vmem:[#allocation2 + $0x4c] sm:$0xf]  ;;  %v3925_v32 = vrot.slane %v10176_v1, 5 }
 0x1db   : > { %3013 = vst.msk [vmem:[#allocation3 + $0x1c] sm:$0xf] %vm3005_vm12, %v9768_v23  ;;  %v10100_v62 = vpop.permute.xlu1 %4033  ;;  %v10102_v46 = vpop.permute.xlu0 %4328  ;;  %v1093_v7 = vadd.f32 1.0, %v8497_v33  ;;  %v3236_v17 = vsel %vm8925_vm9, %v3231_v18, %v10116_v10  ;;  %v1812_v20 = vsel %vm8925_vm9, %v1807_v48, %v10135_v29  ;;  %v2478_v26 = vsel %vm8918_vm6, %v2476_v36, %v2477_v30  ;;  %v10192_v36 = vld [vmem:[#allocation2 + $0x4c] sm:$0xf] }
 0x1dc   : > { %v8499_v58 = vpop.eup %8498  ;;  %v4657_v11 = vsel %vm8925_vm9, %v4652_v5, %v10114_v42  ;;  %v5366_v33 = vrot.slane %v5364_v6, 4  ;;  %v5367_v19 = vrot.slane %v10133_v28, 5  ;;  %v2482_v6 = vrot.slane %v2480_v34, 4 }
 0x1dd   : > { %v8341_v23 = vld [vmem:[#allocation3] sm:$0xff]   ;;  %4338 = vrot.lane.b32.xlu1 %v4229_v22, %s8795_s14  ;;  %5494 = vrot.lane.b32.xlu0 %v5362_v37, %s8798_s17  ;;  %8504 = vrcp.f32 %v1093_v7  ;;  %v1091_v16 = vadd.f32 1.0, %v8499_v58  ;;  %v3918_v22 = vrot.slane %v3916_v3, 4  ;;  %v8501_v37 = vpop.eup %8500  ;;  %v3257_v34 = vshrl.u32 %v9972_v13, 16 }
 0x1de   : > { %8216 = vmatprep.mubr.msk.bf16.mxu1 %vm5855_vm2, %v8341_v23  ;;  %v1234_v3 = vmul.f32 %v8501_v37, %v9979_v9  ;;  %v4678_v23 = vshrl.u32 %v9951_v12, 16  ;;  %v5368_v12 = vsel %vm8918_vm6, %v5366_v33, %v5367_v19  ;;  %v2483_v9 = vrot.slane %v10156_v52, 5  ;;  %v10207_v37 = vld [vmem:[#allocation2 + $0x4c] sm:$0xf] }
 0x1df   : > { %v10119_v21 = vpop.permute.xlu0 %5482  ;;  %v10121_v47 = vpop.permute.xlu1 %2883  ;;  %8506 = vrcp.f32 %v1091_v16  ;;  %v3920_v4 = vsel %vm8918_vm6, %v3918_v22, %v3919_v44  ;;  %v4661_v48 = vor.u32 %v4660_v45, %v10114_v42  ;;  %v3239_v61 = vrot.slane %v3237_v63, 4 }
 0x1e0   : > { %v8077_v8 = vpack.c.bf16 %v1234_v3, %v1234_v3  ;;  %v4680_v16 = vrot.slane %v4678_v23, 4  ;;  %v2484_v13 = vsel %vm8918_vm6, %v2482_v6, %v2483_v9  ;;  %v1833_v42 = vshrl.u32 %v10024_v53, 16  ;;  %v4230_v53 = vld [vmem:[#allocation2 + $0x50] sm:$0xf] }
 0x1e1   : > { %5056 = vrot.lane.b32.xlu1 %v4657_v11, %s8799_s18  ;;  %3611 = vrot.lane.b32.xlu0 %v3236_v17, %s8797_s16  ;;  %v8503_v18 = vpop.eup %8502  ;;  %v1815_v22 = vrot.slane %v1813_v50, 4  ;;  %v4684_v33 = vshll.u32 %v10192_v36, 16  ;;  %v10244_v50 = vld [vmem:[#allocation2 + $0x54] sm:$0xf] }
 0x1e2   : > { %v1232_v44 = vmul.f32 %v8503_v18, %v9996_v57  ;;  %1478 = vst.msk [vmem:[#allocation2 + $0x88] sm:$0xf] %vm1251_vm3, %v8077_v8  ;;  %v2784_v57 = vld [vmem:[#allocation2 + $0x58] sm:$0xf]  ;;  %v1835_v45 = vrot.slane %v1833_v42, 4 }
 0x1e3   : > { %v10138_v54 = vpop.permute.xlu0 %2592  ;;  %v10140_v51 = vpop.permute.xlu1 %4037  ;;  %v3072_v8 = vld [vmem:[#allocation2 + $0x54] sm:$0xf]  ;;  %v10273_v42 = vld [vmem:[#allocation2 + $0x58] sm:$0xf] }
 0x1e4   : > { %v8075_v11 = vpack.c.bf16 %v1232_v44, %v1232_v44 }
 0x1e5   : > { %2163 = vrot.lane.b32.xlu1 %v1812_v20, %s8793_s30  ;;  %2604 = vrot.lane.b32.xlu0 %v2478_v26, %s8792_s29  ;;  %v3259_v20 = vrot.slane %v3257_v34, 4 }
 0x1e6   : > { %1476 = vst.msk [vmem:[#allocation2 + $0x80] sm:$0xf] %vm1251_vm3, %v8075_v11 }
 0x1e7   : > { %v4325_v5 = vpop.permute.xlu0 %4324  ;;  %v2880_v30 = vpop.permute.xlu1 %2879 }
 0x1e8   : > { %4463 = vst.msk [vmem:[#allocation3 + $0x18] sm:$0xf] %vm4456_vm0, %v4325_v5  ;;  %v2782_v5 = vld [vmem:[#allocation2 + $0x50] sm:$0xf] }
 0x1e9   : > { %3015 = vst.msk [vmem:[#allocation3 + $0x24] sm:$0xf] %vm3005_vm12, %v2880_v30  ;;  %4049 = vrot.lane.b32.xlu1 %v3920_v4, %s8796_s15  ;;  %5498 = vrot.lane.b32.xlu0 %v5368_v12, %s8798_s17  ;;  %v3260_v30 = vor.u32 %v3259_v20, %v10008_v38  ;;  %v10229_v4 = vld [vmem:[#allocation2 + $0x4c] sm:$0xf]  ;;  %v10233_v12 = vrot.slane %v4684_v33, 5 }
 0x1ea   : > { %v8505_v17 = vpop.eup %8504  ;;  %v10288_v33 = vld [vmem:[#allocation2 + $0x58] sm:$0xf] }
 0x1eb   : > { %v5043_v7 = vpop.permute.xlu0 %5042  ;;  %v3598_v58 = vpop.permute.xlu1 %3597  ;;  %v1237_v15 = vmul.f32 %v8505_v17, %v10017_v39  ;;  %v3926_v39 = vsel %vm8918_vm6, %v3924_v59, %v3925_v32  ;;  %v1839_v59 = vshll.u32 %v10229_v4, 16  ;;  %v1836_v17 = vor.u32 %v1835_v45, %v10070_v24  ;;  %v10271_v24 = vld [vmem:[#allocation2 + $0x54] sm:$0xf] }
 0x1ec   : > { %5185 = vst.msk [vmem:[#allocation3 + $0x8] sm:$0xf] %vm5182_vm1, %v5043_v7  ;;  %v8507_v43 = vpop.eup %8506 }
 0x1ed   : > { %3737 = vst.msk [vmem:[#allocation3 + $0x14] sm:$0xf] %vm3731_vm14, %v3598_v58  ;;  %2608 = vrot.lane.b32.xlu0 %v2484_v13, %s8792_s29  ;;  %2899 = vrot.lane.b32.xlu1 %v2784_v57, %s8794_s13  ;;  %v8080_v3 = vpack.c.bf16 %v1237_v15, %v1237_v15  ;;  %v1235_v23 = vmul.f32 %v8507_v43, %v10033_v27  ;;  %v4520_v27 = vld [vmem:[#allocation2 + $0x54] sm:$0xf]  ;;  %v10258_v13 = vld [vmem:[#allocation2 + $0x58] sm:$0xf] }
 0x1ee   : > { %5621 = vst.msk [vmem:[#allocation3 + $0x8] sm:$0xf] %vm5618_vm4, %v10037_v31  ;;  %v4704_v44 = vshll.u32 %v4520_v27, 16  ;;  %v4708_v34 = vshrl.u32 %v4520_v27, 16  ;;  %v3287_v57 = vshrl.u32 %v3072_v8, 16 }
 0x1ef   : > { %4173 = vst.msk [vmem:[#allocation3 + $0x14] sm:$0xf] %vm4167_vm15, %v10100_v62  ;;  %v5047_v31 = vpop.permute.xlu0 %5046  ;;  %v3602_v26 = vpop.permute.xlu1 %3601  ;;  %v4681_v62 = vor.u32 %v4680_v16, %v9990_v56  ;;  %v3240_v56 = vor.u32 %v3239_v61, %v10116_v10  ;;  %v8078_v63 = vpack.c.bf16 %v1235_v23, %v1235_v23  ;;  %v1816_v10 = vor.u32 %v1815_v22, %v10135_v29 }
 0x1f0   : > { %4462 = vst.msk [vmem:[#allocation3 + $0x14] sm:$0xf] %vm4456_vm0, %v10035_v49  ;;  %v4662_v49 = vrot.slane %v4661_v48, 4  ;;  %v5373_v61 = vrot.slane %v10244_v50, 5  ;;  %v10265_v15 = vrot.slane %v4704_v44, 5  ;;  %v4710_v43 = vrot.slane %v4708_v34, 4 }
 0x1f1   : > { %5187 = vst.msk [vmem:[#allocation3 + $0x10] sm:$0xf] %vm5182_vm1, %v5047_v31  ;;  %4053 = vrot.lane.b32.xlu1 %v3926_v39, %s8796_s15  ;;  %4340 = vrot.lane.b32.xlu0 %v4230_v53, %s8795_s14  ;;  %v4682_v18 = vrot.slane %v4681_v62, 4  ;;  %v3241_v29 = vrot.slane %v3240_v56, 4  ;;  %v1817_v7 = vrot.slane %v1816_v10, 4  ;;  %v5376_v62 = vrot.slane %v10258_v13, 5 }
 0x1f2   : > { %3739 = vst.msk [vmem:[#allocation3 + $0x1c] sm:$0xf] %vm3731_vm14, %v3602_v26  ;;  %v1837_v26 = vrot.slane %v1836_v17, 4  ;;  %v3931_v23 = vrot.slane %v10271_v24, 5  ;;  %v4711_v39 = vor.u32 %v4710_v43, %v10265_v15  ;;  %v4714_v53 = vshll.u32 %v10273_v42, 16 }
 0x1f3   : > { %5623 = vst.msk [vmem:[#allocation3 + $0x10] sm:$0xf] %vm5618_vm4, %v10119_v21  ;;  %v3263_v21 = vshll.u32 %v10207_v37, 16  ;;  %v10231_v6 = vpop.permute.xlu1 %5488  ;;  %v3246_v48 = vsel %vm8925_vm9, %v3241_v29, %v9974_v40  ;;  %v1822_v40 = vsel %vm8925_vm9, %v1817_v7, %v10015_v55  ;;  %v5375_v55 = vrot.slane %v5373_v61, 4 }
 0x1f4   : > { %4175 = vst.msk [vmem:[#allocation3 + $0x1c] sm:$0xf] %vm4167_vm15, %v10140_v51  ;;  %v2150_v51 = vpop.permute.xlu0 %2149  ;;  %v4688_v56 = vshrl.u32 %v10192_v36, 16  ;;  %v3934_v10 = vrot.slane %v10288_v33, 5  ;;  %v10317_v45 = vrot.slane %v4714_v53, 5  ;;  %v1843_v29 = vshrl.u32 %v10229_v4, 16 }
 0x1f5   : > { %1481 = vst.msk [vmem:[#allocation2 + $0x94] sm:$0xf] %vm1251_vm3, %v8080_v3  ;;  %1479 = vst.msk [vmem:[#allocation2 + $0x8c] sm:$0xf] %vm1251_vm3, %v8078_v63  ;;  %v8345_v38 = vld [vmem:[#allocation3 + $0x8] sm:$0xff]   ;;  %2895 = vrot.lane.b32.xlu1 %v2782_v5, %s8794_s13  ;;  %v10249_v58 = vrot.slane %v3263_v21, 5  ;;  %v5377_v36 = vsel %vm8918_vm6, %v5375_v55, %v5376_v62 }
 0x1f6   : > { %4464 = vst.msk [vmem:[#allocation3 + $0x1c] sm:$0xf] %vm4456_vm0, %v9915_v14  ;;  %v4667_v14 = vsel %vm8925_vm9, %v4662_v49, %v9945_v41  ;;  %8217 = vmatmul.mubr.msk.bf16.vlgmr.msra.gmra.mxu1 %vm5855_vm2, %v8345_v38  ;;  %v3261_v41 = vrot.slane %v3260_v30, 4  ;;  %v10297_v49 = vld [vmem:[#allocation2 + $0x58] sm:$0xf]  ;;  %v3267_v38 = vshrl.u32 %v10207_v37, 16 }
 0x1f7   : > { %2286 = vst.msk [vmem:[#allocation3 + $0x20] sm:$0xf] %vm2277_vm10, %v2150_v51  ;;  %5058 = vrot.lane.b32.xlu0 %v4667_v14, %s8799_s18  ;;  %v10252_v11 = vpop.permute.xlu1 %2598  ;;  %v3293_v21 = vshll.u32 %v10297_v49, 16  ;;  %v3933_v51 = vrot.slane %v3931_v23, 4  ;;  %v5369_v14 = vrot.slane %v5367_v19, 4  ;;  %v4690_v4 = vrot.slane %v4688_v56, 4 }
 0x1f8   : > { %2725 = vst.msk [vmem:[#allocation3 + $0x20] sm:$0xf] %vm2716_vm11, %v10081_v60  ;;  %v2154_v16 = vpop.permute.xlu0 %2153  ;;  %v4687_v60 = vsel %vm8925_vm9, %v4682_v18, %v10233_v12  ;;  %v3266_v22 = vsel %vm8925_vm9, %v3261_v41, %v10249_v58  ;;  %v4712_v18 = vrot.slane %v4711_v39, 4  ;;  %v4519_v37 = vld [vmem:[#allocation2 + $0x50] sm:$0xf]  ;;  %v3927_v17 = vrot.slane %v3925_v32, 4 }
 0x1f9   : > { %3014 = vst.msk [vmem:[#allocation3 + $0x20] sm:$0xf] %vm3005_vm12, %v10004_v0  ;;  %v3283_v0 = vshll.u32 %v3072_v8, 16  ;;  %3613 = vrot.lane.b32.xlu1 %v3246_v48, %s8797_s16  ;;  %v5245_v8 = vld [vmem:[#allocation2 + $0x50] sm:$0xf]  ;;  %v10329_v41 = vrot.slane %v3293_v21, 5  ;;  %v4691_v1 = vor.u32 %v4690_v4, %v10233_v12 }
 0x1fa   : > { %2288 = vst.msk [vmem:[#allocation3 + $0x28] sm:$0xf] %vm2277_vm10, %v2154_v16  ;;  %v4717_v28 = vsel %vm8925_vm9, %v4712_v18, %v10317_v45  ;;  %v5370_v19 = vrot.slane %v5245_v8, 5  ;;  %v10344_v16 = vpop.f32.mrf.mxu0  ;;  %v3269_v32 = vrot.slane %v3267_v38, 4  ;;  %v3071_v21 = vld [vmem:[#allocation2 + $0x50] sm:$0xf] }
 0x1fb   : > { %2727 = vst.msk [vmem:[#allocation3 + $0x28] sm:$0xf] %vm2716_vm11, %v10138_v54  ;;  %5062 = vrot.lane.b32.xlu0 %v4687_v60, %s8799_s18  ;;  %v10283_v54 = vrot.slane %v1839_v59, 5  ;;  %v10285_v31 = vpop.permute.xlu1 %4334  ;;  %v10290_v3 = vrot.slane %v3283_v0, 5  ;;  %v10342_v59 = vld [vmem:[#allocation2 + $0x50] sm:$0xf] }
 0x1fc   : > { %3016 = vst.msk [vmem:[#allocation3 + $0x28] sm:$0xf] %vm3005_vm12, %v9938_v2  ;;  %v4044_v20 = vpop.permute.xlu0 %4043  ;;  %v3289_v2 = vrot.slane %v3287_v57, 4  ;;  %v5371_v60 = vsel %vm8918_vm6, %v5369_v14, %v5370_v19  ;;  %v10350_v0 = vld [vmem:[#allocation2 + $0x50] sm:$0xf]  ;;  %v10363_v55 = vpop.f32.mrf.mxu0  ;;  %v3928_v39 = vrot.slane %v10342_v59, 5  ;;  %v3270_v18 = vor.u32 %v3269_v32, %v10249_v58 }
 0x1fd   : > { %3617 = vrot.lane.b32.xlu1 %v3266_v22, %s8797_s16  ;;  %v1842_v5 = vsel %vm8925_vm9, %v1837_v26, %v10283_v54  ;;  %v7861_v57 = vmul.f32 -1.442695, %v10344_v16  ;;  %v2485_v22 = vrot.slane %v2483_v9, 4  ;;  %v4698_v26 = vshrl.u32 %v4519_v37, 16  ;;  %v1529_v58 = vld [vmem:[#allocation2 + $0x70] sm:$0xf] }
 0x1fe   : > { %v3290_v30 = vor.u32 %v3289_v2, %v10290_v3  ;;  %v1845_v2 = vrot.slane %v1843_v29, 4  ;;  %v2486_v53 = vrot.slane %v10350_v0, 5  ;;  %v7859_v52 = vmul.f32 -1.442695, %v10363_v55  ;;  %v10383_v38 = vpop.f32.mrf.mxu0  ;;  %1577 = vst.msk [vmem:[#allocation3 + $0x70] sm:$0xf] %vm1251_vm3, %v1529_v58 }
 0x1ff   : > { %2165 = vrot.lane.b32.xlu0 %v1822_v40, %s8793_s30  ;;  %v5053_v27 = vpop.permute.xlu1 %5052  ;;  %8508 = vpow2.f32 %v7861_v57  ;;  %v5372_v9 = vrot.slane %v5370_v19, 4  ;;  %v3929_v12 = vsel %vm8918_vm6, %v3927_v17, %v3928_v39  ;;  %v4700_v14 = vrot.slane %v4698_v26, 4  ;;  %v1531_v59 = vld [vmem:[#allocation2 + $0x78] sm:$0xf]  ;;  %v10444_v33 = vld [vmem:[#allocation2 + $0x5c] sm:$0xf] }
 0x200   : > { %v10302_v63 = vpop.permute.xlu0 %2889  ;;  %5190 = vst.msk [vmem:[#allocation3 + $0x1c] sm:$0xf] %vm5182_vm1, %v5053_v27  ;;  %v3291_v7 = vrot.slane %v3290_v30, 4  ;;  %8510 = vpow2.f32 %v7859_v52  ;;  %v1846_v8 = vor.u32 %v1845_v2, %v10283_v54  ;;  %v7864_v29 = vmul.f32 -1.442695, %v10383_v38 }
 0x201   : > { %5626 = vst.msk [vmem:[#allocation3 + $0x1c] sm:$0xf] %vm5618_vm4, %v10231_v6  ;;  %5504 = vrot.lane.b32.xlu1 %v5377_v36, %s8798_s17  ;;  %v3935_v6 = vsel %vm8918_vm6, %v3933_v51, %v3934_v10  ;;  %v10378_v36 = vld [vmem:[#allocation2 + $0x50] sm:$0xf]  ;;  %v4692_v51 = vrot.slane %v4691_v1, 4  ;;  %v3271_v17 = vrot.slane %v3270_v18, 4 }
 0x202   : > { %v3296_v40 = vsel %vm8925_vm9, %v3291_v7, %v10329_v41  ;;  %v3273_v7 = vshll.u32 %v3071_v21, 16  ;;  %8512 = vpow2.f32 %v7864_v29  ;;  %v1847_v57 = vrot.slane %v1846_v8, 4  ;;  %1579 = vst.msk [vmem:[#allocation3 + $0x78] sm:$0xf] %vm1251_vm3, %v1531_v59  ;;  %v4232_v58 = vld [vmem:[#allocation2 + $0x58] sm:$0xf] }
 0x203   : > { %2169 = vrot.lane.b32.xlu0 %v1842_v5, %s8793_s30  ;;  %v10327_v44 = vpop.permute.xlu1 %5484  ;;  %v2487_v5 = vsel %vm8918_vm6, %v2485_v22, %v2486_v53  ;;  %v1530_v22 = vld [vmem:[#allocation2 + $0x74] sm:$0xf]  ;;  %v3297_v50 = vshrl.u32 %v10297_v49, 16  ;;  %v4718_v26 = vshrl.u32 %v10273_v42, 16  ;;  %v3930_v2 = vrot.slane %v3928_v39, 4 }
 0x204   : > { %v3608_v34 = vpop.permute.xlu0 %3607  ;;  %1578 = vst.msk [vmem:[#allocation3 + $0x74] sm:$0xf] %vm1251_vm3, %v1530_v22  ;;  %v4523_v42 = vld [vmem:[#allocation2 + $0x60] sm:$0xf]  ;;  %v3936_v39 = vrot.slane %v3934_v10, 4  ;;  %v1853_v22 = vshrl.u32 %v10378_v36, 16 }
 0x205   : > { %3742 = vst.msk [vmem:[#allocation3 + $0x28] sm:$0xf] %vm3731_vm14, %v3608_v34  ;;  %5068 = vrot.lane.b32.xlu1 %v4717_v28, %s8799_s18  ;;  %v1528_v34 = vld [vmem:[#allocation2 + $0x6c] sm:$0xf]  ;;  %v10391_v28 = vpop.f32.mrf.mxu0  ;;  %v4522_v10 = vld [vmem:[#allocation2 + $0x5c] sm:$0xf] }
 0x206   : > { %4178 = vst.msk [vmem:[#allocation3 + $0x28] sm:$0xf] %vm4167_vm15, %v4044_v20  ;;  %v4694_v20 = vshll.u32 %v4519_v37, 16  ;;  %v3277_v37 = vshrl.u32 %v3071_v21, 16  ;;  %v7862_v4 = vmul.f32 -1.442695, %v10391_v28 }
 0x207   : > { %4059 = vrot.lane.b32.xlu0 %v3935_v6, %s8796_s15  ;;  %v10353_v48 = vpop.permute.xlu1 %2594  ;;  %v1849_v6 = vshll.u32 %v10378_v36, 16  ;;  %1576 = vst.msk [vmem:[#allocation3 + $0x6c] sm:$0xf] %vm1251_vm3, %v1528_v34  ;;  %v4734_v34 = vshll.u32 %v4523_v42, 16 }
 0x208   : > { %v10355_v43 = vpop.permute.xlu0 %4039  ;;  %v4696_v30 = vrot.slane %v4694_v20, 5  ;;  %8514 = vpow2.f32 %v7862_v4  ;;  %v3279_v52 = vrot.slane %v3277_v37, 4  ;;  %v4724_v37 = vshll.u32 %v4522_v10, 16 }
 0x209   : > { %5500 = vrot.lane.b32.xlu1 %v5371_v60, %s8798_s17  ;;  %v10411_v20 = vrot.slane %v1849_v6, 5 }
 0x20a   : > { %v4697_v60 = vsel %vm8925_vm9, %v4692_v51, %v4696_v30 }
 0x20b   : > { %3623 = vrot.lane.b32.xlu0 %v3296_v40, %s8797_s16  ;;  %v2160_v56 = vpop.permute.xlu1 %2159  ;;  %v4701_v40 = vor.u32 %v4700_v14, %v4696_v30  ;;  %v1852_v49 = vsel %vm8925_vm9, %v1847_v57, %v10411_v20  ;;  %v3299_v30 = vrot.slane %v3297_v50, 4  ;;  %v4720_v14 = vrot.slane %v4718_v26, 4 }
 0x20c   : > { %v10370_v27 = vpop.permute.xlu0 %2885  ;;  %2291 = vst.msk [vmem:[#allocation3 + $0x34] sm:$0xf] %vm2277_vm10, %v2160_v56 }
 0x20d   : > { %2730 = vst.msk [vmem:[#allocation3 + $0x34] sm:$0xf] %vm2716_vm11, %v10252_v11  ;;  %2610 = vrot.lane.b32.xlu1 %v2487_v5, %s8792_s29  ;;  %v5374_v11 = vsel %vm8918_vm6, %v5372_v9, %v5373_v61  ;;  %v3275_v61 = vrot.slane %v3273_v7, 5  ;;  %v4702_v56 = vrot.slane %v4701_v40, 4  ;;  %v8509_v5 = vpop.eup %8508  ;;  %v4738_v7 = vshrl.u32 %v4523_v42, 16 }
 0x20e   : > { %v1094_v21 = vadd.f32 1.0, %v8509_v5  ;;  %v8511_v29 = vpop.eup %8510 }
 0x20f   : > { %4055 = vrot.lane.b32.xlu0 %v3929_v12, %s8796_s15  ;;  %v10394_v54 = vpop.permute.xlu1 %4330  ;;  %v3276_v9 = vsel %vm8925_vm9, %v3271_v17, %v3275_v61  ;;  %v10421_v12 = vld [vmem:[#allocation2 + $0x5c] sm:$0xf]  ;;  %v3280_v8 = vor.u32 %v3279_v52, %v3275_v61  ;;  %v1092_v24 = vadd.f32 1.0, %v8511_v29  ;;  %v8513_v4 = vpop.eup %8512  ;;  %v4740_v17 = vrot.slane %v4738_v7, 4  ;;  %v1619_v29 = vld [vmem:[#allocation2 + $0x58] sm:$0xf] }
 0x210   : > { %v10396_v19 = vpop.permute.xlu0 %5486  ;;  %8516 = vrcp.f32 %v1094_v21  ;;  %v1097_v57 = vadd.f32 1.0, %v8513_v4  ;;  %v1855_v21 = vrot.slane %v1853_v22, 4  ;;  %v1873_v4 = vshrl.u32 %v1619_v29, 16 }
 0x211   : > { %5064 = vrot.lane.b32.xlu1 %v4697_v60, %s8799_s18  ;;  %8518 = vrcp.f32 %v1092_v24  ;;  %v3281_v60 = vrot.slane %v3280_v8, 4  ;;  %v1618_v24 = vld [vmem:[#allocation2 + $0x54] sm:$0xf] }
 0x212   : > { %8520 = vrcp.f32 %v1097_v57  ;;  %v10514_v57 = vld [vmem:[#allocation2 + $0x60] sm:$0xf] }
 0x213   : > { %5502 = vrot.lane.b32.xlu0 %v5374_v11, %s8798_s17  ;;  %v5049_v1 = vpop.permute.xlu1 %5048  ;;  %v3303_v11 = vshll.u32 %v10444_v33, 16  ;;  %v3286_v52 = vsel %vm8925_vm9, %v3281_v60, %v10290_v3  ;;  %v10490_v3 = vld [vmem:[#allocation2 + $0x5c] sm:$0xf] }
 0x214   : > { %v3604_v32 = vpop.permute.xlu0 %3603  ;;  %5188 = vst.msk [vmem:[#allocation3 + $0x14] sm:$0xf] %vm5182_vm1, %v5049_v1  ;;  %v5379_v7 = vrot.slane %v10490_v3, 5  ;;  %v4233_v60 = vld [vmem:[#allocation2 + $0x5c] sm:$0xf]  ;;  %v2488_v3 = vrot.slane %v2486_v53, 4 }
 0x215   : > { %3740 = vst.msk [vmem:[#allocation3 + $0x20] sm:$0xf] %vm3731_vm14, %v3604_v32  ;;  %2171 = vrot.lane.b32.xlu1 %v1852_v49, %s8793_s30  ;;  %v8515_v40 = vpop.eup %8514  ;;  %v10473_v1 = vrot.slane %v3303_v11, 5  ;;  %v4524_v32 = vld [vmem:[#allocation2 + $0x64] sm:$0xf]  ;;  %v4728_v49 = vshrl.u32 %v4522_v10, 16  ;;  %v1856_v11 = vor.u32 %v1855_v21, %v10411_v20 }
 0x216   : > { %5624 = vst.msk [vmem:[#allocation3 + $0x14] sm:$0xf] %vm5618_vm4, %v10327_v44  ;;  %v3932_v44 = vsel %vm8918_vm6, %v3930_v2, %v3931_v23  ;;  %v3300_v23 = vor.u32 %v3299_v30, %v10329_v41  ;;  %v10463_v41 = vrot.slane %v4734_v34, 5  ;;  %v1095_v2 = vadd.f32 1.0, %v8515_v40  ;;  %v10595_v53 = vld [vmem:[#allocation2 + $0x68] sm:$0xf] }
 0x217   : > { %4176 = vst.msk [vmem:[#allocation3 + $0x20] sm:$0xf] %vm4167_vm15, %v10355_v43  ;;  %3619 = vrot.lane.b32.xlu0 %v3276_v9, %s8797_s16  ;;  %v2156_v51 = vpop.permute.xlu1 %2155  ;;  %v3937_v43 = vrot.slane %v10421_v12, 5  ;;  %v4234_v9 = vld [vmem:[#allocation2 + $0x60] sm:$0xf]  ;;  %v4744_v5 = vshll.u32 %v4524_v32, 16 }
 0x218   : > { %4465 = vst.msk [vmem:[#allocation3 + $0x20] sm:$0xf] %vm4456_vm0, %v10102_v46  ;;  %v10433_v18 = vpop.permute.xlu0 %2596  ;;  %v4707_v46 = vsel %vm8925_vm9, %v4702_v56, %v10265_v15  ;;  %v3301_v50 = vrot.slane %v3300_v23, 4  ;;  %v4741_v56 = vor.u32 %v4740_v17, %v10463_v41  ;;  %8522 = vrcp.f32 %v1095_v2  ;;  %v10512_v17 = vld [vmem:[#allocation2 + $0x68] sm:$0xf] }
 0x219   : > { %2289 = vst.msk [vmem:[#allocation3 + $0x2c] sm:$0xf] %vm2277_vm10, %v2156_v51  ;;  %4057 = vrot.lane.b32.xlu1 %v3932_v44, %s8796_s15  ;;  %v4748_v8 = vshrl.u32 %v4524_v32, 16  ;;  %v10497_v10 = vrot.slane %v4744_v5, 5  ;;  %v5378_v34 = vrot.slane %v5376_v62, 4  ;;  %v1859_v20 = vshll.u32 %v1618_v24, 16 }
 0x21a   : > { %2728 = vst.msk [vmem:[#allocation3 + $0x2c] sm:$0xf] %vm2716_vm11, %v10353_v48  ;;  %v3938_v48 = vsel %vm8918_vm6, %v3936_v39, %v3937_v43  ;;  %v3306_v30 = vsel %vm8925_vm9, %v3301_v50, %v10473_v1  ;;  %v4742_v44 = vrot.slane %v4741_v56, 4  ;;  %v1863_v50 = vshrl.u32 %v1618_v24, 16 }
 0x21b   : > { %5066 = vrot.lane.b32.xlu0 %v4707_v46, %s8799_s18  ;;  %3017 = vst.msk [vmem:[#allocation3 + $0x2c] sm:$0xf] %vm3005_vm12, %v10121_v47  ;;  %v10453_v15 = vpop.permute.xlu1 %4041  ;;  %v4721_v47 = vor.u32 %v4720_v14, %v10317_v45  ;;  %v10475_v45 = vrot.slane %v4724_v37, 5  ;;  %v4730_v14 = vrot.slane %v4728_v49, 4  ;;  %v1869_v37 = vshll.u32 %v1619_v29, 16 }
 0x21c   : > { %v10455_v6 = vpop.permute.xlu0 %4336  ;;  %v4747_v13 = vsel %vm8925_vm9, %v4742_v44, %v10497_v10  ;;  %v5380_v22 = vsel %vm8918_vm6, %v5378_v34, %v5379_v7  ;;  %v1857_v2 = vrot.slane %v1856_v11, 4  ;;  %v4754_v21 = vshll.u32 %v10512_v17, 16  ;;  %v5250_v34 = vld [vmem:[#allocation2 + $0x64] sm:$0xf] }
 0x21d   : > { %v8348_v59 = vld [vmem:[#allocation3 + $0x10] sm:$0xff]   ;;  %4061 = vrot.lane.b32.xlu1 %v3938_v48, %s8796_s15  ;;  %v4722_v36 = vrot.slane %v4721_v47, 4  ;;  %v8517_v46 = vpop.eup %8516  ;;  %v4731_v62 = vor.u32 %v4730_v14, %v10475_v45  ;;  %v4750_v47 = vrot.slane %v4748_v8, 4  ;;  %v1861_v44 = vrot.slane %v1859_v20, 5 }
 0x21e   : > { %8220 = vmatprep.mubr.msk.bf16.mxu1 %vm5855_vm2, %v8348_v59  ;;  %v1238_v23 = vmul.f32 %v8517_v46, %v10344_v16  ;;  %v8519_v59 = vpop.eup %8518  ;;  %v1865_v46 = vrot.slane %v1863_v50, 4  ;;  %v2347_v20 = vld [vmem:[#allocation2 + $0x54] sm:$0xf]  ;;  %v2349_v50 = vld [vmem:[#allocation2 + $0x5c] sm:$0xf]  ;;  %v4758_v12 = vshrl.u32 %v10512_v17, 16 }
 0x21f   : > { %4344 = vrot.lane.b32.xlu0 %v4232_v58, %s8795_s14  ;;  %v10471_v26 = vpop.permute.xlu1 %2891  ;;  %v4727_v51 = vsel %vm8925_vm9, %v4722_v36, %v10475_v45  ;;  %v1236_v40 = vmul.f32 %v8519_v59, %v10363_v55  ;;  %v1875_v36 = vrot.slane %v1873_v4, 4  ;;  %v8521_v56 = vpop.eup %8520  ;;  %v4235_v55 = vld [vmem:[#allocation2 + $0x64] sm:$0xf]  ;;  %v4732_v5 = vrot.slane %v4731_v62, 4 }
 0x220   : > { %v10469_v61 = vpop.permute.xlu0 %5490  ;;  %v8081_v16 = vpack.c.bf16 %v1238_v23, %v1238_v23  ;;  %v1241_v8 = vmul.f32 %v8521_v56, %v10383_v38  ;;  %v2489_v0 = vrot.slane %v2347_v20, 5  ;;  %v10606_v56 = vld [vmem:[#allocation2 + $0x60] sm:$0xf] }
 0x221   : > { %3621 = vrot.lane.b32.xlu1 %v3286_v52, %s8797_s16  ;;  %v10522_v52 = vld [vmem:[#allocation2 + $0x5c] sm:$0xf]  ;;  %v8079_v49 = vpack.c.bf16 %v1236_v40, %v1236_v40  ;;  %v4737_v38 = vsel %vm8925_vm9, %v4732_v5, %v10463_v41  ;;  %v5385_v41 = vrot.slane %v5250_v34, 5 }
 0x222   : > { %1482 = vst.msk [vmem:[#allocation2 + $0x98] sm:$0xf] %vm1251_vm3, %v8081_v16  ;;  %v1879_v29 = vshll.u32 %v10522_v52, 16  ;;  %v8084_v23 = vpack.c.bf16 %v1241_v8, %v1241_v8  ;;  %v1883_v16 = vshrl.u32 %v10522_v52, 16 }
 0x223   : > { %4348 = vrot.lane.b32.xlu0 %v4234_v9, %s8795_s14  ;;  %v10485_v39 = vpop.permute.xlu1 %4045  ;;  %v10524_v9 = vrot.slane %v1869_v37, 5  ;;  %1480 = vst.msk [vmem:[#allocation2 + $0x90] sm:$0xf] %vm1251_vm3, %v8079_v49  ;;  %v2495_v49 = vrot.slane %v2349_v50, 5  ;;  %v5387_v5 = vrot.slane %v5385_v41, 4 }
 0x224   : > { %v10483_v42 = vpop.permute.xlu0 %2600  ;;  %1485 = vst.msk [vmem:[#allocation2 + $0xa4] sm:$0xf] %vm1251_vm3, %v8084_v23  ;;  %v3075_v23 = vld [vmem:[#allocation2 + $0x60] sm:$0xf] }
 0x225   : > { %3625 = vrot.lane.b32.xlu1 %v3306_v30, %s8797_s16  ;;  %v4751_v30 = vor.u32 %v4750_v47, %v10497_v10  ;;  %v8523_v14 = vpop.eup %8522  ;;  %v1876_v24 = vor.u32 %v1875_v36, %v10524_v9  ;;  %v5381_v47 = vrot.slane %v5379_v7, 4  ;;  %v2490_v36 = vsel %vm8918_vm6, %v2488_v3, %v2489_v0 }
 0x227   : > { %5070 = vrot.lane.b32.xlu0 %v4727_v51, %s8799_s18  ;;  %v2888_v48 = vpop.permute.xlu1 %2887  ;;  %v5382_v51 = vrot.slane %v10514_v57, 5  ;;  %v1877_v59 = vrot.slane %v1876_v24, 4  ;;  %v2491_v24 = vrot.slane %v2489_v0, 4 }
 0x228   : > { %v4333_v58 = vpop.permute.xlu0 %4332  ;;  %3019 = vst.msk [vmem:[#allocation3 + $0x34] sm:$0xf] %vm3005_vm12, %v2888_v48  ;;  %v10551_v48 = vrot.slane %v4754_v21, 5  ;;  %v1889_v21 = vshll.u32 %v10606_v56, 16 }
 0x229   : > { %4467 = vst.msk [vmem:[#allocation3 + $0x28] sm:$0xf] %vm4456_vm0, %v4333_v58  ;;  %4346 = vrot.lane.b32.xlu1 %v4233_v60, %s8795_s14  ;;  %v1239_v58 = vmul.f32 %v8523_v14, %v10391_v28  ;;  %v5384_v11 = vrot.slane %v5382_v51, 4  ;;  %v1881_v60 = vrot.slane %v1879_v29, 5 }
 0x22b   : > { %5074 = vrot.lane.b32.xlu0 %v4747_v13, %s8799_s18  ;;  %v3606_v32 = vpop.permute.xlu1 %3605  ;;  %v8082_v28 = vpack.c.bf16 %v1239_v58, %v1239_v58  ;;  %v1866_v13 = vor.u32 %v1865_v46, %v1861_v44  ;;  %v5386_v62 = vsel %vm8918_vm6, %v5384_v11, %v5385_v41  ;;  %v2785_v58 = vld [vmem:[#allocation2 + $0x5c] sm:$0xf]  ;;  %v3077_v41 = vld [vmem:[#allocation2 + $0x68] sm:$0xf] }
 0x22c   : > { %v5051_v45 = vpop.permute.xlu0 %5050  ;;  %3741 = vst.msk [vmem:[#allocation3 + $0x24] sm:$0xf] %vm3731_vm14, %v3606_v32  ;;  %v3307_v32 = vshrl.u32 %v10444_v33, 16 }
 0x22d   : > { %5189 = vst.msk [vmem:[#allocation3 + $0x18] sm:$0xf] %vm5182_vm1, %v5051_v45  ;;  %4350 = vrot.lane.b32.xlu1 %v4235_v55, %s8795_s14  ;;  %v1885_v45 = vrot.slane %v1883_v16, 4  ;;  %v3333_v16 = vshll.u32 %v3077_v41, 16 }
 0x22e   : > { %5625 = vst.msk [vmem:[#allocation3 + $0x18] sm:$0xf] %vm5618_vm4, %v10396_v19  ;;  %v3309_v46 = vrot.slane %v3307_v32, 4  ;;  %v1532_v32 = vld [vmem:[#allocation2 + $0x7c] sm:$0xf] }
 0x22f   : > { %4177 = vst.msk [vmem:[#allocation3 + $0x24] sm:$0xf] %vm4167_vm15, %v10453_v15  ;;  %5506 = vrot.lane.b32.xlu0 %v5380_v22, %s8798_s17  ;;  %v3610_v10 = vpop.permute.xlu1 %3609  ;;  %v1862_v15 = vsel %vm8925_vm9, %v1857_v2, %v1861_v44  ;;  %v1882_v22 = vsel %vm8925_vm9, %v1877_v59, %v1881_v60  ;;  %v1886_v33 = vor.u32 %v1885_v45, %v1881_v60  ;;  %v3335_v50 = vrot.slane %v3333_v16, 5  ;;  %v10662_v45 = vld [vmem:[#allocation2 + $0x64] sm:$0xf] }
 0x230   : > { %4466 = vst.msk [vmem:[#allocation3 + $0x24] sm:$0xf] %vm4456_vm0, %v10394_v54  ;;  %v5055_v19 = vpop.permute.xlu0 %5054  ;;  %v4752_v54 = vrot.slane %v4751_v30, 4  ;;  %v3076_v30 = vld [vmem:[#allocation2 + $0x64] sm:$0xf] }
 0x231   : > { %5191 = vst.msk [vmem:[#allocation3 + $0x20] sm:$0xf] %vm5182_vm1, %v5055_v19  ;;  %5072 = vrot.lane.b32.xlu1 %v4737_v38, %s8799_s18  ;;  %v3323_v14 = vshll.u32 %v3076_v30, 16  ;;  %v1887_v29 = vrot.slane %v1886_v33, 4  ;;  %v3327_v19 = vshrl.u32 %v3076_v30, 16 }
 0x232   : > { %3743 = vst.msk [vmem:[#allocation3 + $0x2c] sm:$0xf] %vm3731_vm14, %v3610_v10  ;;  %v10627_v10 = vrot.slane %v1889_v21, 5  ;;  %v3801_v33 = vld [vmem:[#allocation2 + $0x60] sm:$0xf] }
 0x233   : > { %5627 = vst.msk [vmem:[#allocation3 + $0x20] sm:$0xf] %vm5618_vm4, %v10469_v61  ;;  %2173 = vrot.lane.b32.xlu0 %v1862_v15, %s8793_s30  ;;  %v5497_v4 = vpop.permute.xlu1 %5496  ;;  %v10562_v61 = vld [vmem:[#allocation2 + $0x58] sm:$0xf]  ;;  %v10636_v11 = vrot.slane %v3323_v14, 5 }
 0x234   : > { %4179 = vst.msk [vmem:[#allocation3 + $0x2c] sm:$0xf] %vm4167_vm15, %v10485_v39  ;;  %v2158_v37 = vpop.permute.xlu0 %2157  ;;  %v4757_v39 = vsel %vm8925_vm9, %v4752_v54, %v10551_v48  ;;  %v2492_v7 = vrot.slane %v10562_v61, 5  ;;  %v1892_v38 = vsel %vm8925_vm9, %v1887_v29, %v10627_v10  ;;  %v3310_v54 = vor.u32 %v3309_v46, %v10473_v1  ;;  %v4236_v16 = vld [vmem:[#allocation2 + $0x68] sm:$0xf] }
 0x235   : > { %4468 = vst.msk [vmem:[#allocation3 + $0x2c] sm:$0xf] %vm4456_vm0, %v10285_v31  ;;  %v8349_v31 = vld [vmem:[#allocation3 + $0x18] sm:$0xff]   ;;  %5076 = vrot.lane.b32.xlu1 %v4757_v39, %s8799_s18  ;;  %v2497_v39 = vrot.slane %v2495_v49, 4  ;;  %v3940_v29 = vrot.slane %v3801_v33, 5 }
 0x236   : > { %1483 = vst.msk [vmem:[#allocation2 + $0x9c] sm:$0xf] %vm1251_vm3, %v8082_v28  ;;  %8221 = vmatmul.mubr.msk.bf16.gmra.mxu1 %vm5855_vm2, %v8349_v31  ;;  %v3329_v28 = vrot.slane %v3327_v19, 4  ;;  %v2493_v1 = vsel %vm8918_vm6, %v2491_v24, %v2492_v7  ;;  %v3311_v31 = vrot.slane %v3310_v54, 4  ;;  %1580 = vst.msk [vmem:[#allocation3 + $0x7c] sm:$0xf] %vm1251_vm3, %v1532_v32 }
 0x237   : > { %2290 = vst.msk [vmem:[#allocation3 + $0x30] sm:$0xf] %vm2277_vm10, %v2158_v37  ;;  %5510 = vrot.lane.b32.xlu0 %v5386_v62, %s8798_s17  ;;  %v10581_v40 = vpop.permute.xlu1 %2606  ;;  %v3313_v37 = vshll.u32 %v3075_v23, 16  ;;  %v2787_v62 = vld [vmem:[#allocation2 + $0x64] sm:$0xf] }
 0x238   : > { %2729 = vst.msk [vmem:[#allocation3 + $0x30] sm:$0xf] %vm2716_vm11, %v10433_v18  ;;  %v2162_v57 = vpop.permute.xlu0 %2161  ;;  %v5383_v18 = vsel %vm8918_vm6, %v5381_v47, %v5382_v51  ;;  %v3330_v47 = vor.u32 %v3329_v28, %v10636_v11  ;;  %v4527_v28 = vld [vmem:[#allocation2 + $0x70] sm:$0xf] }
 0x239   : > { %3018 = vst.msk [vmem:[#allocation3 + $0x30] sm:$0xf] %vm3005_vm12, %v10370_v27  ;;  %v1867_v27 = vrot.slane %v1866_v13, 4  ;;  %5508 = vrot.lane.b32.xlu1 %v5383_v18, %s8798_s17  ;;  %v3317_v13 = vshrl.u32 %v3075_v23, 16 }
 0x23a   : > { %2292 = vst.msk [vmem:[#allocation3 + $0x38] sm:$0xf] %vm2277_vm10, %v2162_v57  ;;  %v3315_v57 = vrot.slane %v3313_v37, 5 }
 0x23b   : > { %2731 = vst.msk [vmem:[#allocation3 + $0x38] sm:$0xf] %vm2716_vm11, %v10483_v42  ;;  %2177 = vrot.lane.b32.xlu0 %v1882_v22, %s8793_s30  ;;  %v10600_v52 = vpop.permute.xlu1 %4342  ;;  %v2494_v42 = vrot.slane %v2492_v7, 4  ;;  %v1872_v55 = vsel %vm8925_vm9, %v1867_v27, %v10524_v9  ;;  %v3337_v7 = vshrl.u32 %v3077_v41, 16  ;;  %v3331_v27 = vrot.slane %v3330_v47, 4 }
 0x23c   : > { %3020 = vst.msk [vmem:[#allocation3 + $0x38] sm:$0xf] %vm3005_vm12, %v10302_v63  ;;  %v4052_v2 = vpop.permute.xlu0 %4051  ;;  %v5388_v63 = vrot.slane %v10595_v53, 5  ;;  %v3316_v22 = vsel %vm8925_vm9, %v3311_v31, %v3315_v57  ;;  %v3319_v0 = vrot.slane %v3317_v13, 4  ;;  %v4778_v31 = vshrl.u32 %v4527_v28, 16 }
 0x23d   : > { %2175 = vrot.lane.b32.xlu1 %v1872_v55, %s8793_s30  ;;  %v2496_v8 = vsel %vm8918_vm6, %v2494_v42, %v2495_v49  ;;  %v1534_v42 = vld [vmem:[#allocation2 + $0x84] sm:$0xf]  ;;  %v3339_v30 = vrot.slane %v3337_v7, 4  ;;  %v3336_v21 = vsel %vm8925_vm9, %v3331_v27, %v3335_v50 }
 0x23e   : > { %v5389_v9 = vsel %vm8918_vm6, %v5387_v5, %v5388_v63  ;;  %v2786_v5 = vld [vmem:[#allocation2 + $0x60] sm:$0xf]  ;;  %1582 = vst.msk [vmem:[#allocation3 + $0x84] sm:$0xf] %vm1251_vm3, %v1534_v42  ;;  %v3320_v14 = vor.u32 %v3319_v0, %v3315_v57  ;;  %v10720_v57 = vld [vmem:[#allocation2 + $0x6c] sm:$0xf] }
 0x23f   : > { %2612 = vrot.lane.b32.xlu0 %v2490_v36, %s8792_s29  ;;  %v5061_v51 = vpop.permute.xlu1 %5060  ;;  %v1535_v36 = vld [vmem:[#allocation2 + $0x88] sm:$0xf]  ;;  %v3340_v23 = vor.u32 %v3339_v30, %v3335_v50  ;;  %v4780_v27 = vrot.slane %v4778_v31, 4  ;;  %v4238_v42 = vld [vmem:[#allocation2 + $0x70] sm:$0xf] }
 0x240   : > { %v10615_v44 = vpop.permute.xlu0 %2897  ;;  %5194 = vst.msk [vmem:[#allocation3 + $0x2c] sm:$0xf] %vm5182_vm1, %v5061_v51  ;;  %v3939_v51 = vrot.slane %v3937_v43, 4  ;;  %v3321_v54 = vrot.slane %v3320_v14, 4 }
 0x241   : > { %5630 = vst.msk [vmem:[#allocation3 + $0x2c] sm:$0xf] %vm5618_vm4, %v5497_v4  ;;  %5512 = vrot.lane.b32.xlu1 %v5389_v9, %s8798_s17  ;;  %v10641_v4 = vld [vmem:[#allocation2 + $0x60] sm:$0xf]  ;;  %v10681_v9 = vld [vmem:[#allocation2 + $0x6c] sm:$0xf] }
 0x242   : > { %v2498_v20 = vrot.slane %v10641_v4, 5  ;;  %1583 = vst.msk [vmem:[#allocation3 + $0x88] sm:$0xf] %vm1251_vm3, %v1535_v36  ;;  %v3941_v43 = vsel %vm8918_vm6, %v3939_v51, %v3940_v29  ;;  %v3341_v13 = vrot.slane %v3340_v23, 4  ;;  %v4528_v36 = vld [vmem:[#allocation2 + $0x74] sm:$0xf] }
 0x243   : > { %2616 = vrot.lane.b32.xlu0 %v2496_v8, %s8792_s29  ;;  %v10629_v15 = vpop.permute.xlu1 %5492  ;;  %v3803_v8 = vld [vmem:[#allocation2 + $0x68] sm:$0xf] }
 0x244   : > { %v3616_v34 = vpop.permute.xlu0 %3615  ;;  %v2499_v61 = vsel %vm8918_vm6, %v2497_v39, %v2498_v20  ;;  %v3946_v24 = vrot.slane %v3803_v8, 5  ;;  %v10750_v8 = vld [vmem:[#allocation2 + $0x6c] sm:$0xf] }
 0x245   : > { %3746 = vst.msk [vmem:[#allocation3 + $0x38] sm:$0xf] %vm3731_vm14, %v3616_v34  ;;  %2179 = vrot.lane.b32.xlu1 %v1892_v38, %s8793_s30  ;;  %v2788_v38 = vld [vmem:[#allocation2 + $0x68] sm:$0xf] }
 0x246   : > { %4182 = vst.msk [vmem:[#allocation3 + $0x38] sm:$0xf] %vm4167_vm15, %v4052_v2  ;;  %v1533_v2 = vld [vmem:[#allocation2 + $0x80] sm:$0xf]  ;;  %v3948_v32 = vrot.slane %v3946_v24, 4 }
 0x247   : > { %2901 = vrot.lane.b32.xlu0 %v2785_v58, %s8794_s13  ;;  %v10643_v59 = vpop.permute.xlu1 %2602  ;;  %1581 = vst.msk [vmem:[#allocation3 + $0x80] sm:$0xf] %vm1251_vm3, %v1533_v2  ;;  %v3343_v58 = vshll.u32 %v10681_v9, 16  ;;  %v3949_v2 = vrot.slane %v10720_v57, 5 }
 0x248   : > { %v4048_v60 = vpop.permute.xlu0 %4047 }
 0x249   : > { %2614 = vrot.lane.b32.xlu1 %v2493_v1, %s8792_s29  ;;  %v10704_v39 = vrot.slane %v3343_v58, 5  ;;  %v4774_v1 = vshll.u32 %v4527_v28, 16  ;;  %v5390_v58 = vrot.slane %v5388_v63, 4 }
 0x24b   : > { %2905 = vrot.lane.b32.xlu0 %v2787_v62, %s8794_s13  ;;  %v2168_v3 = vpop.permute.xlu1 %2167  ;;  %v4760_v62 = vrot.slane %v4758_v12, 4  ;;  %v5391_v12 = vrot.slane %v10750_v8, 5  ;;  %v2351_v8 = vld [vmem:[#allocation2 + $0x64] sm:$0xf] }
 0x24c   : > { %v10653_v18 = vpop.permute.xlu0 %2893  ;;  %2295 = vst.msk [vmem:[#allocation3 + $0x44] sm:$0xf] %vm2277_vm10, %v2168_v3 }
 0x24d   : > { %2734 = vst.msk [vmem:[#allocation3 + $0x44] sm:$0xf] %vm2716_vm11, %v10581_v40  ;;  %2618 = vrot.lane.b32.xlu1 %v2499_v61, %s8792_s29  ;;  %v3943_v40 = vrot.slane %v10662_v45, 5  ;;  %v4761_v7 = vor.u32 %v4760_v62, %v10551_v48  ;;  %v10771_v62 = vld [vmem:[#allocation2 + $0x70] sm:$0xf] }
 0x24f   : > { %3627 = vrot.lane.b32.xlu0 %v3316_v22, %s8797_s16  ;;  %v10670_v49 = vpop.permute.xlu1 %4338  ;;  %v3945_v34 = vrot.slane %v3943_v40, 4  ;;  %v10726_v22 = vrot.slane %v4774_v1, 5  ;;  %v5392_v1 = vsel %vm8918_vm6, %v5390_v58, %v5391_v12 }
 0x250   : > { %v10672_v55 = vpop.permute.xlu0 %5494 }
 0x251   : > { %2903 = vrot.lane.b32.xlu1 %v2786_v5, %s8794_s13  ;;  %v3947_v37 = vsel %vm8918_vm6, %v3945_v34, %v3946_v24  ;;  %v4762_v5 = vrot.slane %v4761_v7, 4  ;;  %v1623_v24 = vld [vmem:[#allocation2 + $0x68] sm:$0xf]  ;;  %v4239_v7 = vld [vmem:[#allocation2 + $0x74] sm:$0xf] }
 0x253   : > { %3631 = vrot.lane.b32.xlu0 %v3336_v21, %s8797_s16  ;;  %v5057_v46 = vpop.permute.xlu1 %5056  ;;  %v4781_v21 = vor.u32 %v4780_v27, %v10726_v22 }
 0x254   : > { %v3612_v19 = vpop.permute.xlu0 %3611  ;;  %5192 = vst.msk [vmem:[#allocation3 + $0x24] sm:$0xf] %vm5182_vm1, %v5057_v46 }
 0x255   : > { %3744 = vst.msk [vmem:[#allocation3 + $0x30] sm:$0xf] %vm3731_vm14, %v3612_v19  ;;  %2907 = vrot.lane.b32.xlu1 %v2788_v38, %s8794_s13  ;;  %v4782_v46 = vrot.slane %v4781_v21, 4  ;;  %v4788_v19 = vshrl.u32 %v4528_v36, 16 }
 0x256   : > { %5628 = vst.msk [vmem:[#allocation3 + $0x24] sm:$0xf] %vm5618_vm4, %v10629_v15  ;;  %v3326_v15 = vsel %vm8925_vm9, %v3321_v54, %v10636_v11  ;;  %v3942_v11 = vrot.slane %v3940_v29, 4 }
 0x257   : > { %4180 = vst.msk [vmem:[#allocation3 + $0x30] sm:$0xf] %vm4167_vm15, %v4048_v60  ;;  %4063 = vrot.lane.b32.xlu0 %v3941_v43, %s8796_s15  ;;  %v2164_v17 = vpop.permute.xlu1 %2163  ;;  %v4526_v60 = vld [vmem:[#allocation2 + $0x6c] sm:$0xf]  ;;  %v1622_v43 = vld [vmem:[#allocation2 + $0x64] sm:$0xf] }
 0x258   : > { %4469 = vst.msk [vmem:[#allocation3 + $0x30] sm:$0xf] %vm4456_vm0, %v10455_v6  ;;  %v10700_v41 = vpop.permute.xlu0 %2604  ;;  %v4764_v3 = vshll.u32 %v4526_v60, 16  ;;  %v3944_v48 = vsel %vm8918_vm6, %v3942_v11, %v3943_v40  ;;  %v4768_v30 = vshrl.u32 %v4526_v60, 16  ;;  %v3950_v40 = vsel %vm8918_vm6, %v3948_v32, %v3949_v2 }
 0x259   : > { %2293 = vst.msk [vmem:[#allocation3 + $0x3c] sm:$0xf] %vm2277_vm10, %v2164_v17  ;;  %3629 = vrot.lane.b32.xlu1 %v3326_v15, %s8797_s16  ;;  %v1909_v17 = vshll.u32 %v1623_v24, 16  ;;  %v4790_v53 = vrot.slane %v4788_v19, 4  ;;  %v1899_v63 = vshll.u32 %v1622_v43, 16  ;;  %v5394_v32 = vrot.slane %v10771_v62, 5 }
 0x25a   : > { %2732 = vst.msk [vmem:[#allocation3 + $0x3c] sm:$0xf] %vm2716_vm11, %v10643_v59  ;;  %v3346_v59 = vsel %vm8925_vm9, %v3341_v13, %v10704_v39  ;;  %v4766_v33 = vrot.slane %v4764_v3, 5  ;;  %v4770_v34 = vrot.slane %v4768_v30, 4  ;;  %v4237_v13 = vld [vmem:[#allocation2 + $0x6c] sm:$0xf] }
 0x25b   : > { %4067 = vrot.lane.b32.xlu0 %v3947_v37, %s8796_s15  ;;  %3021 = vst.msk [vmem:[#allocation3 + $0x3c] sm:$0xf] %vm3005_vm12, %v10471_v26  ;;  %v10716_v6 = vpop.permute.xlu1 %4049  ;;  %v1893_v26 = vshrl.u32 %v10606_v56, 16  ;;  %v4784_v56 = vshll.u32 %v4528_v36, 16  ;;  %v1913_v37 = vshrl.u32 %v1623_v24, 16  ;;  %v1903_v3 = vshrl.u32 %v1622_v43, 16 }
 0x25c   : > { %v10718_v47 = vpop.permute.xlu0 %5498  ;;  %v4767_v29 = vsel %vm8925_vm9, %v4762_v5, %v4766_v33  ;;  %v4771_v60 = vor.u32 %v4770_v34, %v4766_v33  ;;  %v1901_v36 = vrot.slane %v1899_v63, 5  ;;  %v10795_v30 = vld [vmem:[#allocation2 + $0x74] sm:$0xf]  ;;  %v10830_v43 = vld [vmem:[#allocation2 + $0x68] sm:$0xf]  ;;  %v2501_v63 = vrot.slane %v2351_v8, 5 }
 0x25d   : > { %v8352_v61 = vld [vmem:[#allocation3 + $0x20] sm:$0xff]   ;;  %3633 = vrot.lane.b32.xlu1 %v3346_v59, %s8797_s16  ;;  %v1895_v14 = vrot.slane %v1893_v26, 4  ;;  %v4786_v23 = vrot.slane %v4784_v56, 5  ;;  %v10777_v59 = vld [vmem:[#allocation2 + $0x6c] sm:$0xf] }
 0x25e   : > { %8224 = vmatprep.mubr.msk.bf16.mxu1 %vm5855_vm2, %v8352_v61  ;;  %v1915_v61 = vrot.slane %v1913_v37, 4  ;;  %v4772_v27 = vrot.slane %v4771_v60, 4  ;;  %v1919_v21 = vshll.u32 %v10777_v59, 16  ;;  %v1923_v58 = vshrl.u32 %v10777_v59, 16  ;;  %v10859_v62 = vld [vmem:[#allocation2 + $0x78] sm:$0xf] }
 0x25f   : > { %4352 = vrot.lane.b32.xlu0 %v4236_v16, %s8795_s14  ;;  %v10734_v0 = vpop.permute.xlu1 %2899  ;;  %v1896_v28 = vor.u32 %v1895_v14, %v10627_v10  ;;  %v4787_v15 = vsel %vm8925_vm9, %v4782_v46, %v4786_v23  ;;  %v10769_v10 = vld [vmem:[#allocation2 + $0x78] sm:$0xf]  ;;  %v4791_v26 = vor.u32 %v4790_v53, %v4786_v23  ;;  %v5396_v14 = vrot.slane %v5394_v32, 4 }
 0x260   : > { %v10732_v50 = vpop.permute.xlu0 %2608  ;;  %v5393_v23 = vrot.slane %v5391_v12, 4  ;;  %v2500_v12 = vrot.slane %v2498_v20, 4  ;;  %v1925_v20 = vrot.slane %v1923_v58, 4 }
 0x261   : > { %4065 = vrot.lane.b32.xlu1 %v3944_v48, %s8796_s15  ;;  %v1897_v11 = vrot.slane %v1896_v28, 4  ;;  %v4794_v48 = vshll.u32 %v10769_v10, 16 }
 0x262   : > { %v2502_v59 = vsel %vm8918_vm6, %v2500_v12, %v2501_v63  ;;  %v10901_v12 = vld [vmem:[#allocation2 + $0x70] sm:$0xf] }
 0x263   : > { %4356 = vrot.lane.b32.xlu0 %v4238_v42, %s8795_s14  ;;  %v10744_v51 = vpop.permute.xlu1 %4053  ;;  %v1902_v33 = vsel %vm8925_vm9, %v1897_v11, %v1901_v36 }
 0x264   : > { %v4341_v45 = vpop.permute.xlu0 %4340 }
 0x265   : > { %4471 = vst.msk [vmem:[#allocation3 + $0x38] sm:$0xf] %vm4456_vm0, %v4341_v45  ;;  %4069 = vrot.lane.b32.xlu1 %v3950_v40, %s8796_s15  ;;  %v4792_v45 = vrot.slane %v4791_v26, 4  ;;  %v10804_v40 = vrot.slane %v4794_v48, 5  ;;  %v5400_v48 = vrot.slane %v10859_v62, 5 }
 0x267   : > { %5078 = vrot.lane.b32.xlu0 %v4767_v29, %s8799_s18  ;;  %v2896_v54 = vpop.permute.xlu1 %2895  ;;  %v10818_v29 = vpop.f32.mrf.mxu0 }
 0x268   : > { %3023 = vst.msk [vmem:[#allocation3 + $0x44] sm:$0xf] %vm3005_vm12, %v2896_v54  ;;  %v7865_v24 = vmul.f32 -1.442695, %v10818_v29 }
 0x269   : > { %v5059_v38 = vpop.permute.xlu0 %5058  ;;  %4354 = vrot.lane.b32.xlu1 %v4237_v13, %s8795_s14 }
 0x26a   : > { %5193 = vst.msk [vmem:[#allocation3 + $0x28] sm:$0xf] %vm5182_vm1, %v5059_v38  ;;  %v10832_v38 = vpop.f32.mrf.mxu0  ;;  %8524 = vpow2.f32 %v7865_v24 }
 0x26b   : > { %5629 = vst.msk [vmem:[#allocation3 + $0x28] sm:$0xf] %vm5618_vm4, %v10672_v55  ;;  %5082 = vrot.lane.b32.xlu0 %v4787_v15, %s8799_s18  ;;  %v3614_v16 = vpop.permute.xlu1 %3613  ;;  %v10779_v55 = vrot.slane %v1909_v17, 5  ;;  %v7863_v54 = vmul.f32 -1.442695, %v10832_v38  ;;  %v2504_v15 = vrot.slane %v10830_v43, 5 }
 0x26c   : > { %3745 = vst.msk [vmem:[#allocation3 + $0x34] sm:$0xf] %vm3731_vm14, %v3614_v16  ;;  %v10843_v28 = vpop.f32.mrf.mxu0  ;;  %v2510_v43 = vrot.slane %v10901_v12, 5 }
 0x26d   : > { %v5063_v31 = vpop.permute.xlu0 %5062  ;;  %4181 = vst.msk [vmem:[#allocation3 + $0x34] sm:$0xf] %vm4167_vm15, %v10716_v6  ;;  %4358 = vrot.lane.b32.xlu1 %v4239_v7, %s8795_s14  ;;  %v1905_v6 = vrot.slane %v1903_v3, 4  ;;  %8526 = vpow2.f32 %v7863_v54  ;;  %v7868_v60 = vmul.f32 -1.442695, %v10843_v28 }
 0x26e   : > { %5195 = vst.msk [vmem:[#allocation3 + $0x30] sm:$0xf] %vm5182_vm1, %v5063_v31  ;;  %v10854_v53 = vpop.f32.mrf.mxu0  ;;  %v10870_v7 = vld [vmem:[#allocation2 + $0x70] sm:$0xf] }
 0x26f   : > { %5631 = vst.msk [vmem:[#allocation3 + $0x30] sm:$0xf] %vm5618_vm4, %v10718_v47  ;;  %5514 = vrot.lane.b32.xlu0 %v5392_v1, %s8798_s17  ;;  %v3618_v5 = vpop.permute.xlu1 %3617  ;;  %v1916_v47 = vor.u32 %v1915_v61, %v10779_v55  ;;  %v1906_v34 = vor.u32 %v1905_v6, %v1901_v36  ;;  %8528 = vpow2.f32 %v7868_v60  ;;  %v7866_v1 = vmul.f32 -1.442695, %v10854_v53  ;;  %v3080_v36 = vld [vmem:[#allocation2 + $0x74] sm:$0xf] }
 0x270   : > { %4470 = vst.msk [vmem:[#allocation3 + $0x34] sm:$0xf] %vm4456_vm0, %v10670_v49  ;;  %v4777_v49 = vsel %vm8925_vm9, %v4772_v27, %v10726_v22  ;;  %v5397_v22 = vrot.slane %v10795_v30, 5  ;;  %v2506_v61 = vrot.slane %v2504_v15, 4  ;;  %v3347_v27 = vshrl.u32 %v10681_v9, 16 }
 0x271   : > { %v2166_v42 = vpop.permute.xlu0 %2165  ;;  %3747 = vst.msk [vmem:[#allocation3 + $0x3c] sm:$0xf] %vm3731_vm14, %v3618_v5  ;;  %5080 = vrot.lane.b32.xlu1 %v4777_v49, %s8799_s18  ;;  %v1917_v19 = vrot.slane %v1916_v47, 4  ;;  %v1907_v13 = vrot.slane %v1906_v34, 4  ;;  %8530 = vpow2.f32 %v7866_v1  ;;  %v3367_v6 = vshrl.u32 %v3080_v36, 16 }
 0x272   : > { %2294 = vst.msk [vmem:[#allocation3 + $0x40] sm:$0xf] %vm2277_vm10, %v2166_v42  ;;  %v8353_v56 = vld [vmem:[#allocation3 + $0x28] sm:$0xff]   ;;  %v5399_v26 = vrot.slane %v5397_v22, 4 }
 0x273   : > { %2733 = vst.msk [vmem:[#allocation3 + $0x40] sm:$0xf] %vm2716_vm11, %v10700_v41  ;;  %2181 = vrot.lane.b32.xlu0 %v1902_v33, %s8793_s30  ;;  %8225 = vmatmul.mubr.msk.bf16.gmra.mxu1 %vm5855_vm2, %v8353_v56  ;;  %v5505_v46 = vpop.permute.xlu1 %5504  ;;  %v1912_v3 = vsel %vm8925_vm9, %v1907_v13, %v10779_v55  ;;  %v1929_v55 = vshll.u32 %v10870_v7, 16  ;;  %v3363_v33 = vshll.u32 %v3080_v36, 16 }
 0x274   : > { %4183 = vst.msk [vmem:[#allocation3 + $0x3c] sm:$0xf] %vm4167_vm15, %v10744_v51  ;;  %v1921_v51 = vrot.slane %v1919_v21, 5  ;;  %v5401_v30 = vsel %vm8918_vm6, %v5399_v26, %v5400_v48  ;;  %v3349_v21 = vrot.slane %v3347_v27, 4  ;;  %v1536_v27 = vld [vmem:[#allocation2 + $0x8c] sm:$0xf] }
 0x275   : > { %3022 = vst.msk [vmem:[#allocation3 + $0x40] sm:$0xf] %vm3005_vm12, %v10653_v18  ;;  %v2170_v41 = vpop.permute.xlu0 %2169  ;;  %v4797_v18 = vsel %vm8925_vm9, %v4792_v45, %v10804_v40  ;;  %v10887_v56 = vrot.slane %v1929_v55, 5 }
 0x276   : > { %4472 = vst.msk [vmem:[#allocation3 + $0x3c] sm:$0xf] %vm4456_vm0, %v10600_v52  ;;  %v5398_v52 = vsel %vm8918_vm6, %v5396_v14, %v5397_v22  ;;  %5084 = vrot.lane.b32.xlu1 %v4797_v18, %s8799_s18  ;;  %v1922_v4 = vsel %vm8925_vm9, %v1917_v19, %v1921_v51  ;;  %v2503_v22 = vrot.slane %v2501_v63, 4  ;;  %v3350_v24 = vor.u32 %v3349_v21, %v10704_v39  ;;  %v3805_v21 = vld [vmem:[#allocation2 + $0x70] sm:$0xf] }
 0x277   : > { %2296 = vst.msk [vmem:[#allocation3 + $0x48] sm:$0xf] %vm2277_vm10, %v2170_v41  ;;  %5518 = vrot.lane.b32.xlu0 %v5398_v52, %s8798_s17  ;;  %v5069_v37 = vpop.permute.xlu1 %5068  ;;  %v8525_v49 = vpop.eup %8524  ;;  %v3079_v41 = vld [vmem:[#allocation2 + $0x70] sm:$0xf]  ;;  %v10894_v18 = vrot.slane %v3363_v33, 5  ;;  %v3369_v52 = vrot.slane %v3367_v6, 4 }
 0x278   : > { %2735 = vst.msk [vmem:[#allocation3 + $0x48] sm:$0xf] %vm2716_vm11, %v10732_v50  ;;  %v10845_v50 = vld [vmem:[#allocation2 + $0x6c] sm:$0xf]  ;;  %v3353_v8 = vshll.u32 %v3079_v41, 16  ;;  %v2505_v39 = vsel %vm8918_vm6, %v2503_v22, %v2504_v15 }
 0x279   : > { %3024 = vst.msk [vmem:[#allocation3 + $0x48] sm:$0xf] %vm3005_vm12, %v10615_v44  ;;  %v4060_v17 = vpop.permute.xlu0 %4059  ;;  %v5395_v44 = vsel %vm8918_vm6, %v5393_v23, %v5394_v32  ;;  %v2507_v31 = vrot.slane %v10845_v50, 5  ;;  %v1926_v32 = vor.u32 %v1925_v20, %v1921_v51  ;;  %v2789_v51 = vld [vmem:[#allocation2 + $0x6c] sm:$0xf]  ;;  %v3357_v20 = vshrl.u32 %v3079_v41, 16 }
 0x27a   : > { %5198 = vst.msk [vmem:[#allocation3 + $0x3c] sm:$0xf] %vm5182_vm1, %v5069_v37  ;;  %5516 = vrot.lane.b32.xlu1 %v5395_v44, %s8798_s17  ;;  %v8527_v19 = vpop.eup %8526  ;;  %v10899_v23 = vld [vmem:[#allocation2 + $0x78] sm:$0xf]  ;;  %v2791_v44 = vld [vmem:[#allocation2 + $0x74] sm:$0xf]  ;;  %v3370_v63 = vor.u32 %v3369_v52, %v10894_v18 }
 0x27b   : > { %5634 = vst.msk [vmem:[#allocation3 + $0x3c] sm:$0xf] %vm5618_vm4, %v5505_v46  ;;  %2185 = vrot.lane.b32.xlu0 %v1922_v4, %s8793_s30  ;;  %v5501_v11 = vpop.permute.xlu1 %5500  ;;  %v2508_v9 = vsel %vm8918_vm6, %v2506_v61, %v2507_v31  ;;  %v1927_v47 = vrot.slane %v1926_v32, 4  ;;  %v1098_v46 = vadd.f32 1.0, %v8525_v49  ;;  %v1096_v58 = vadd.f32 1.0, %v8527_v19 }
 0x27c   : > { %v8529_v54 = vpop.eup %8528  ;;  %v2509_v13 = vrot.slane %v2507_v31, 4  ;;  %v3351_v4 = vrot.slane %v3350_v24, 4  ;;  %v3373_v1 = vshll.u32 %v10899_v23, 16  ;;  %v3355_v31 = vrot.slane %v3353_v8, 5  ;;  %v10923_v61 = vld [vmem:[#allocation2 + $0x74] sm:$0xf] }
 0x27d   : > { %v3624_v16 = vpop.permute.xlu0 %3623  ;;  %v1932_v34 = vsel %vm8925_vm9, %v1927_v47, %v10887_v56  ;;  %8532 = vrcp.f32 %v1098_v46  ;;  %v1101_v50 = vadd.f32 1.0, %v8529_v54  ;;  %v3371_v32 = vrot.slane %v3370_v63, 4  ;;  %1584 = vst.msk [vmem:[#allocation3 + $0x8c] sm:$0xf] %vm1251_vm3, %v1536_v27  ;;  %v1538_v33 = vld [vmem:[#allocation2 + $0x94] sm:$0xf] }
 0x27e   : > { %3750 = vst.msk [vmem:[#allocation3 + $0x48] sm:$0xf] %vm3731_vm14, %v3624_v16  ;;  %2183 = vrot.lane.b32.xlu1 %v1912_v3, %s8793_s30  ;;  %8534 = vrcp.f32 %v1096_v58  ;;  %v8531_v60 = vpop.eup %8530  ;;  %v2511_v3 = vsel %vm8918_vm6, %v2509_v13, %v2510_v43  ;;  %v3356_v26 = vsel %vm8925_vm9, %v3351_v4, %v3355_v31  ;;  %v10928_v36 = vrot.slane %v3373_v1, 5  ;;  %v10937_v6 = vld [vmem:[#allocation2 + $0x78] sm:$0xf] }
 0x27f   : > { %4186 = vst.msk [vmem:[#allocation3 + $0x48] sm:$0xf] %vm4167_vm15, %v4060_v17  ;;  %2620 = vrot.lane.b32.xlu0 %v2502_v59, %s8792_s29  ;;  %v2611_v5 = vpop.permute.xlu1 %2610  ;;  %8536 = vrcp.f32 %v1101_v50  ;;  %v1099_v15 = vadd.f32 1.0, %v8531_v60  ;;  %v3377_v59 = vshrl.u32 %v10899_v23, 16  ;;  %v3359_v55 = vrot.slane %v3357_v20, 4 }
 0x280   : > { %1586 = vst.msk [vmem:[#allocation3 + $0x94] sm:$0xf] %vm1251_vm3, %v1538_v33  ;;  %v3376_v49 = vsel %vm8925_vm9, %v3371_v32, %v10928_v36  ;;  %v10947_v41 = vld [vmem:[#allocation2 + $0x7c] sm:$0xf]  ;;  %v3958_v24 = vrot.slane %v10937_v6, 5  ;;  %v4798_v52 = vshrl.u32 %v10769_v10, 16 }
 0x281   : > { %v4056_v42 = vpop.permute.xlu0 %4055  ;;  %8538 = vrcp.f32 %v1099_v15  ;;  %v3360_v22 = vor.u32 %v3359_v55, %v3355_v31  ;;  %v3379_v46 = vrot.slane %v3377_v59, 4  ;;  %v4531_v10 = vld [vmem:[#allocation2 + $0x80] sm:$0xf]  ;;  %v10991_v33 = vld [vmem:[#allocation2 + $0x7c] sm:$0xf] }
 0x282   : > { %5520 = vrot.lane.b32.xlu1 %v5401_v30, %s8798_s17  ;;  %v4800_v1 = vrot.slane %v4798_v52, 4  ;;  %v4814_v59 = vshll.u32 %v4531_v10, 16  ;;  %v4818_v27 = vshrl.u32 %v4531_v10, 16  ;;  %v1626_v10 = vld [vmem:[#allocation2 + $0x74] sm:$0xf] }
 0x283   : > { %2624 = vrot.lane.b32.xlu0 %v2508_v9, %s8792_s29  ;;  %v5065_v14 = vpop.permute.xlu1 %5064  ;;  %v1539_v9 = vld [vmem:[#allocation2 + $0x98] sm:$0xf]  ;;  %v3380_v13 = vor.u32 %v3379_v46, %v10928_v36  ;;  %v4532_v46 = vld [vmem:[#allocation2 + $0x84] sm:$0xf] }
 0x284   : > { %5196 = vst.msk [vmem:[#allocation3 + $0x34] sm:$0xf] %vm5182_vm1, %v5065_v14  ;;  %v3951_v14 = vrot.slane %v3949_v2, 4  ;;  %v3383_v2 = vshll.u32 %v10947_v41, 16 }
 0x285   : > { %v5503_v45 = vpop.permute.xlu0 %5502  ;;  %5632 = vst.msk [vmem:[#allocation3 + $0x34] sm:$0xf] %vm5618_vm4, %v5501_v11 }
 0x286   : > { %2187 = vrot.lane.b32.xlu1 %v1932_v34, %s8793_s30  ;;  %1587 = vst.msk [vmem:[#allocation3 + $0x98] sm:$0xf] %vm1251_vm3, %v1539_v9  ;;  %v10971_v63 = vrot.slane %v3383_v2, 5 }
 0x287   : > { %2909 = vrot.lane.b32.xlu0 %v2789_v51, %s8794_s13  ;;  %v2172_v37 = vpop.permute.xlu1 %2171  ;;  %v3952_v51 = vrot.slane %v3805_v21, 5  ;;  %v1933_v21 = vshrl.u32 %v10870_v7, 16 }
 0x288   : > { %2297 = vst.msk [vmem:[#allocation3 + $0x4c] sm:$0xf] %vm2277_vm10, %v2172_v37 }
 0x289   : > { %v3620_v17 = vpop.permute.xlu0 %3619  ;;  %2736 = vst.msk [vmem:[#allocation3 + $0x4c] sm:$0xf] %vm2716_vm11, %v2611_v5  ;;  %v3955_v5 = vrot.slane %v10923_v61, 5  ;;  %v3953_v8 = vsel %vm8918_vm6, %v3951_v14, %v3952_v51  ;;  %v3954_v36 = vrot.slane %v3952_v51, 4  ;;  %v4824_v61 = vshll.u32 %v4532_v46, 16 }
 0x28a   : > { %3748 = vst.msk [vmem:[#allocation3 + $0x40] sm:$0xf] %vm3731_vm14, %v3620_v17  ;;  %2622 = vrot.lane.b32.xlu1 %v2505_v39, %s8792_s29  ;;  %v8533_v19 = vpop.eup %8532  ;;  %v2792_v17 = vld [vmem:[#allocation2 + $0x78] sm:$0xf]  ;;  %v3361_v39 = vrot.slane %v3360_v22, 4  ;;  %v3961_v22 = vrot.slane %v10991_v33, 5 }
 0x28b   : > { %4184 = vst.msk [vmem:[#allocation3 + $0x40] sm:$0xf] %vm4167_vm15, %v4056_v42  ;;  %2913 = vrot.lane.b32.xlu0 %v2791_v44, %s8794_s13  ;;  %v4058_v11 = vpop.permute.xlu1 %4057  ;;  %v1537_v42 = vld [vmem:[#allocation2 + $0x90] sm:$0xf]  ;;  %v3957_v34 = vrot.slane %v3955_v5, 4  ;;  %v1242_v58 = vmul.f32 %v8533_v19, %v10818_v29  ;;  %v8535_v54 = vpop.eup %8534  ;;  %v3956_v14 = vsel %vm8918_vm6, %v3954_v36, %v3955_v5 }
 0x28c   : > { %3025 = vst.msk [vmem:[#allocation3 + $0x4c] sm:$0xf] %vm3005_vm12, %v10734_v0  ;;  %v8354_v0 = vld [vmem:[#allocation3 + $0x30] sm:$0xff]   ;;  %v1240_v50 = vmul.f32 %v8535_v54, %v10832_v38  ;;  %v8537_v60 = vpop.eup %8536  ;;  %v3366_v38 = vsel %vm8925_vm9, %v3361_v39, %v10894_v18  ;;  %v4242_v19 = vld [vmem:[#allocation2 + $0x80] sm:$0xf]  ;;  %v4828_v54 = vshrl.u32 %v4532_v46, 16 }
 0x28d   : > { %v5067_v16 = vpop.permute.xlu0 %5066  ;;  %8228 = vmatprep.mubr.msk.bf16.mxu1 %vm5855_vm2, %v8354_v0  ;;  %1585 = vst.msk [vmem:[#allocation3 + $0x90] sm:$0xf] %vm1251_vm3, %v1537_v42  ;;  %v8085_v29 = vpack.c.bf16 %v1242_v58, %v1242_v58  ;;  %v3959_v44 = vsel %vm8918_vm6, %v3957_v34, %v3958_v24  ;;  %v1245_v31 = vmul.f32 %v8537_v60, %v10843_v28  ;;  %v4240_v42 = vld [vmem:[#allocation2 + $0x78] sm:$0xf]  ;;  %v5402_v39 = vrot.slane %v5400_v48, 4 }
 0x28e   : > { %5197 = vst.msk [vmem:[#allocation3 + $0x38] sm:$0xf] %vm5182_vm1, %v5067_v16  ;;  %2626 = vrot.lane.b32.xlu1 %v2511_v3, %s8792_s29  ;;  %v8083_v15 = vpack.c.bf16 %v1240_v50, %v1240_v50  ;;  %v8539_v16 = vpop.eup %8538  ;;  %v4530_v3 = vld [vmem:[#allocation2 + $0x7c] sm:$0xf]  ;;  %v4830_v62 = vrot.slane %v4828_v54, 4  ;;  %v1939_v48 = vshll.u32 %v1626_v10, 16 }
 0x28f   : > { %5633 = vst.msk [vmem:[#allocation3 + $0x38] sm:$0xf] %vm5618_vm4, %v5503_v45  ;;  %3635 = vrot.lane.b32.xlu0 %v3356_v26, %s8797_s16  ;;  %v4062_v47 = vpop.permute.xlu1 %4061  ;;  %v2790_v45 = vld [vmem:[#allocation2 + $0x70] sm:$0xf]  ;;  %v8088_v28 = vpack.c.bf16 %v1245_v31, %v1245_v31  ;;  %v1243_v26 = vmul.f32 %v8539_v16, %v10854_v53  ;;  %v4804_v55 = vshll.u32 %v4530_v3, 16  ;;  %v4801_v53 = vor.u32 %v4800_v1, %v10804_v40 }
 0x290   : > { %1486 = vst.msk [vmem:[#allocation2 + $0xa8] sm:$0xf] %vm1251_vm3, %v8085_v29  ;;  %1484 = vst.msk [vmem:[#allocation2 + $0xa0] sm:$0xf] %vm1251_vm3, %v8083_v15  ;;  %v3960_v40 = vrot.slane %v3958_v24, 4  ;;  %v4808_v34 = vshrl.u32 %v4530_v3, 16 }
 0x291   : > { %v4345_v30 = vpop.permute.xlu0 %4344  ;;  %1489 = vst.msk [vmem:[#allocation2 + $0xb4] sm:$0xf] %vm1251_vm3, %v8088_v28  ;;  %v8086_v18 = vpack.c.bf16 %v1243_v26, %v1243_v26  ;;  %v4802_v51 = vrot.slane %v4801_v53, 4  ;;  %v4806_v7 = vrot.slane %v4804_v55, 5  ;;  %v11034_v31 = vld [vmem:[#allocation2 + $0x88] sm:$0xf] }
 0x292   : > { %4473 = vst.msk [vmem:[#allocation3 + $0x40] sm:$0xf] %vm4456_vm0, %v4345_v30  ;;  %2911 = vrot.lane.b32.xlu1 %v2790_v45, %s8794_s13  ;;  %v10994_v30 = vrot.slane %v4814_v59, 5  ;;  %v3962_v24 = vsel %vm8918_vm6, %v3960_v40, %v3961_v22  ;;  %v1943_v59 = vshrl.u32 %v1626_v10, 16  ;;  %v4834_v55 = vshll.u32 %v11034_v31, 16 }
 0x293   : > { %3639 = vrot.lane.b32.xlu0 %v3376_v49, %s8797_s16  ;;  %v3622_v23 = vpop.permute.xlu1 %3621  ;;  %1487 = vst.msk [vmem:[#allocation2 + $0xac] sm:$0xf] %vm1251_vm3, %v8086_v18  ;;  %v4807_v2 = vsel %vm8925_vm9, %v4802_v51, %v4806_v7 }
 0x294   : > { %3749 = vst.msk [vmem:[#allocation3 + $0x44] sm:$0xf] %vm3731_vm14, %v3622_v23  ;;  %v11016_v23 = vld [vmem:[#allocation2 + $0x7c] sm:$0xf] }
 0x295   : > { %v4349_v57 = vpop.permute.xlu0 %4348  ;;  %4185 = vst.msk [vmem:[#allocation3 + $0x44] sm:$0xf] %vm4167_vm15, %v4058_v11  ;;  %v3381_v11 = vrot.slane %v3380_v13, 4  ;;  %v5403_v13 = vrot.slane %v11016_v23, 5 }
 0x296   : > { %4475 = vst.msk [vmem:[#allocation3 + $0x48] sm:$0xf] %vm4456_vm0, %v4349_v57  ;;  %v8355_v37 = vld [vmem:[#allocation3 + $0x38] sm:$0xff]   ;;  %2915 = vrot.lane.b32.xlu1 %v2792_v17, %s8794_s13  ;;  %v1935_v57 = vrot.slane %v1933_v21, 4  ;;  %v1627_v17 = vld [vmem:[#allocation2 + $0x78] sm:$0xf] }
 0x297   : > { %4071 = vrot.lane.b32.xlu0 %v3953_v8, %s8796_s15  ;;  %8229 = vmatmul.mubr.msk.bf16.gmra.mxu1 %vm5855_vm2, %v8355_v37  ;;  %v3626_v4 = vpop.permute.xlu1 %3625  ;;  %v3386_v9 = vsel %vm8925_vm9, %v3381_v11, %v10971_v63  ;;  %v4810_v8 = vrot.slane %v4808_v34, 4  ;;  %v4826_v37 = vrot.slane %v4824_v61, 5  ;;  %v5404_v16 = vsel %vm8918_vm6, %v5402_v39, %v5403_v13 }
 0x298   : > { %3751 = vst.msk [vmem:[#allocation3 + $0x4c] sm:$0xf] %vm3731_vm14, %v3626_v4  ;;  %v1936_v60 = vor.u32 %v1935_v57, %v10887_v56  ;;  %v1953_v4 = vshrl.u32 %v1627_v17, 16  ;;  %v11036_v56 = vld [vmem:[#allocation2 + $0x80] sm:$0xf] }
 0x299   : > { %v5071_v20 = vpop.permute.xlu0 %5070  ;;  %4187 = vst.msk [vmem:[#allocation3 + $0x4c] sm:$0xf] %vm4167_vm15, %v4062_v47  ;;  %v4820_v47 = vrot.slane %v4818_v27, 4  ;;  %v4811_v15 = vor.u32 %v4810_v8, %v4806_v7  ;;  %v11042_v27 = vld [vmem:[#allocation2 + $0x7c] sm:$0xf]  ;;  %v4831_v36 = vor.u32 %v4830_v62, %v4826_v37  ;;  %v5406_v18 = vrot.slane %v11036_v56, 5  ;;  %v11065_v7 = vpop.f32.mrf.mxu0 }
 0x29a   : > { %5199 = vst.msk [vmem:[#allocation3 + $0x40] sm:$0xf] %vm5182_vm1, %v5071_v20  ;;  %3637 = vrot.lane.b32.xlu1 %v3366_v38, %s8797_s16  ;;  %v4241_v20 = vld [vmem:[#allocation2 + $0x7c] sm:$0xf]  ;;  %v1937_v3 = vrot.slane %v1936_v60, 4  ;;  %v1955_v26 = vrot.slane %v1953_v4, 4 }
 0x29b   : > { %4075 = vrot.lane.b32.xlu0 %v3959_v44, %s8796_s15  ;;  %v4347_v0 = vpop.permute.xlu1 %4346  ;;  %v4821_v52 = vor.u32 %v4820_v47, %v10994_v30  ;;  %v1949_v44 = vshll.u32 %v1627_v17, 16  ;;  %v4832_v46 = vrot.slane %v4831_v36, 4  ;;  %v5408_v51 = vrot.slane %v5406_v18, 4  ;;  %v11098_v60 = vld [vmem:[#allocation2 + $0x74] sm:$0xf] }
 0x29c   : > { %4474 = vst.msk [vmem:[#allocation3 + $0x44] sm:$0xf] %vm4456_vm0, %v4347_v0  ;;  %v4243_v0 = vld [vmem:[#allocation2 + $0x84] sm:$0xf]  ;;  %v7869_v34 = vmul.f32 -1.442695, %v11065_v7 }
 0x29d   : > { %v5075_v32 = vpop.permute.xlu0 %5074  ;;  %v4822_v58 = vrot.slane %v4821_v52, 4  ;;  %v11044_v28 = vrot.slane %v1949_v44, 5  ;;  %v1963_v39 = vshrl.u32 %v11042_v27, 16  ;;  %v11111_v62 = vld [vmem:[%s13279_s4] ss:$0 sm:$0xff] }
 0x29e   : > { %5201 = vst.msk [vmem:[#allocation3 + $0x48] sm:$0xf] %vm5182_vm1, %v5075_v32  ;;  %3641 = vrot.lane.b32.xlu1 %v3386_v9, %s8797_s16  ;;  %v4812_v32 = vrot.slane %v4811_v15, 4  ;;  %v1959_v9 = vshll.u32 %v11042_v27, 16  ;;  %8540 = vpow2.f32 %v7869_v34 }
 0x29f   : > { %4360 = vrot.lane.b32.xlu0 %v4240_v42, %s8795_s14  ;;  %v4351_v49 = vpop.permute.xlu1 %4350  ;;  %v4827_v1 = vsel %vm8925_vm9, %v4822_v58, %v4826_v37  ;;  %v1941_v42 = vrot.slane %v1939_v48, 5  ;;  %v5405_v37 = vrot.slane %v5403_v13, 4 }
 0x2a0   : > { %4476 = vst.msk [vmem:[#allocation3 + $0x4c] sm:$0xf] %vm4456_vm0, %v4351_v49  ;;  %v11055_v49 = vld [vmem:[#allocation2 + $0x84] sm:$0xf]  ;;  %v4817_v40 = vsel %vm8925_vm9, %v4812_v32, %v10994_v30  ;;  %v11071_v61 = vrot.slane %v1959_v9, 5  ;;  %v3387_v32 = vshrl.u32 %v10947_v41, 16 }
 0x2a1   : > { %v5507_v45 = vpop.permute.xlu0 %5506  ;;  %v1942_v21 = vsel %vm8925_vm9, %v1937_v3, %v1941_v42  ;;  %v5409_v52 = vrot.slane %v11055_v49, 5  ;;  %v5407_v56 = vsel %vm8918_vm6, %v5405_v37, %v5406_v18  ;;  %v11124_v3 = vld [vmem:[#allocation2 + $0x88] sm:$0xf] }
 0x2a2   : > { %5635 = vst.msk [vmem:[#allocation3 + $0x40] sm:$0xf] %vm5618_vm4, %v5507_v45  ;;  %4073 = vrot.lane.b32.xlu1 %v3956_v14, %s8796_s15  ;;  %v1956_v45 = vor.u32 %v1955_v26, %v11044_v28  ;;  %v1945_v14 = vrot.slane %v1943_v59, 4  ;;  %v11129_v59 = vld [vmem:[%s13280_s5] ss:$0 sm:$0xff] }
 0x2a3   : > { %4364 = vrot.lane.b32.xlu0 %v4242_v19, %s8795_s14  ;;  %v5073_v5 = vpop.permute.xlu1 %5072  ;;  %v11063_v19 = vrot.slane %v4834_v55, 5  ;;  %v5410_v17 = vsel %vm8918_vm6, %v5408_v51, %v5409_v52  ;;  %v3084_v51 = vld [vmem:[#allocation2 + $0x84] sm:$0xf] }
 0x2a4   : > { %5200 = vst.msk [vmem:[#allocation3 + $0x44] sm:$0xf] %vm5182_vm1, %v5073_v5  ;;  %v11073_v5 = vld [vmem:[#allocation2 + $0x78] sm:$0xf]  ;;  %v1946_v58 = vor.u32 %v1945_v14, %v1941_v42 }
 0x2a5   : > { %v2174_v6 = vpop.permute.xlu0 %2173  ;;  %v4837_v8 = vsel %vm8925_vm9, %v4832_v46, %v11063_v19  ;;  %v2516_v23 = vrot.slane %v11073_v5, 5 }
 0x2a6   : > { %2298 = vst.msk [vmem:[#allocation3 + $0x50] sm:$0xf] %vm2277_vm10, %v2174_v6  ;;  %4077 = vrot.lane.b32.xlu1 %v3962_v24, %s8796_s15  ;;  %v11075_v6 = vpop.f32.mrf.mxu0 }
 0x2a7   : > { %5086 = vrot.lane.b32.xlu0 %v4807_v2, %s8799_s18  ;;  %v5077_v29 = vpop.permute.xlu1 %5076  ;;  %v1957_v2 = vrot.slane %v1956_v45, 4  ;;  %v7867_v54 = vmul.f32 -1.442695, %v11075_v6  ;;  %v2518_v26 = vrot.slane %v2516_v23, 4  ;;  %v5412_v45 = vrot.slane %v11124_v3, 5 }
 0x2a8   : > { %5202 = vst.msk [vmem:[#allocation3 + $0x4c] sm:$0xf] %vm5182_vm1, %v5077_v29  ;;  %v11090_v10 = vpop.f32.mrf.mxu0 }
 0x2a9   : > { %v5511_v50 = vpop.permute.xlu0 %5510  ;;  %8542 = vpow2.f32 %v7867_v54  ;;  %v7872_v29 = vmul.f32 -1.442695, %v11090_v10  ;;  %v1962_v12 = vsel %vm8925_vm9, %v1957_v2, %v11071_v61  ;;  %v3407_v54 = vshrl.u32 %v3084_v51, 16 }
 0x2aa   : > { %5637 = vst.msk [vmem:[#allocation3 + $0x48] sm:$0xf] %vm5618_vm4, %v5511_v50  ;;  %4362 = vrot.lane.b32.xlu1 %v4241_v20, %s8795_s14  ;;  %v11101_v13 = vpop.f32.mrf.mxu0  ;;  %v2512_v20 = vrot.slane %v2510_v43, 4  ;;  %v1947_v43 = vrot.slane %v1946_v58, 4  ;;  %v3403_v58 = vshll.u32 %v3084_v51, 16 }
 0x2ab   : > { %5090 = vrot.lane.b32.xlu0 %v4827_v1, %s8799_s18  ;;  %v5509_v38 = vpop.permute.xlu1 %5508  ;;  %v11105_v1 = vld [vmem:[#allocation2 + $0x7c] sm:$0xf]  ;;  %8544 = vpow2.f32 %v7872_v29  ;;  %v7870_v15 = vmul.f32 -1.442695, %v11101_v13 }
 0x2ac   : > { %5636 = vst.msk [vmem:[#allocation3 + $0x44] sm:$0xf] %vm5618_vm4, %v5509_v38  ;;  %v1952_v41 = vsel %vm8925_vm9, %v1947_v43, %v11044_v28  ;;  %v3409_v43 = vrot.slane %v3407_v54, 4 }
 0x2ad   : > { %v2178_v11 = vpop.permute.xlu0 %2177  ;;  %8546 = vpow2.f32 %v7870_v15 }
 0x2ae   : > { %2300 = vst.msk [vmem:[#allocation3 + $0x58] sm:$0xf] %vm2277_vm10, %v2178_v11  ;;  %4366 = vrot.lane.b32.xlu1 %v4243_v0, %s8795_s14  ;;  %v2513_v11 = vrot.slane %v11098_v60, 5  ;;  %v2519_v0 = vrot.slane %v11105_v1, 5 }
 0x2af   : > { %5522 = vrot.lane.b32.xlu0 %v5404_v16, %s8798_s17  ;;  %v2176_v53 = vpop.permute.xlu1 %2175  ;;  %v1965_v16 = vrot.slane %v1963_v39, 4 }
 0x2b0   : > { %2299 = vst.msk [vmem:[#allocation3 + $0x54] sm:$0xf] %vm2277_vm10, %v2176_v53  ;;  %v2514_v9 = vsel %vm8918_vm6, %v2512_v20, %v2513_v11  ;;  %v2515_v60 = vrot.slane %v2513_v11, 4 }
 0x2b1   : > { %v2613_v47 = vpop.permute.xlu0 %2612  ;;  %v1966_v14 = vor.u32 %v1965_v16, %v11071_v61  ;;  %v2520_v61 = vsel %vm8918_vm6, %v2518_v26, %v2519_v0 }
 0x2b2   : > { %2737 = vst.msk [vmem:[#allocation3 + $0x50] sm:$0xf] %vm2716_vm11, %v2613_v47  ;;  %5088 = vrot.lane.b32.xlu1 %v4817_v40, %s8799_s18  ;;  %v11141_v47 = vld [vmem:[#allocation2 + $0x80] sm:$0xf] }
 0x2b3   : > { %2189 = vrot.lane.b32.xlu0 %v1942_v21, %s8793_s30  ;;  %v5513_v30 = vpop.permute.xlu1 %5512  ;;  %v8356_v57 = vld [vmem:[#allocation3 + $0x40] sm:$0xff]   ;;  %v5411_v21 = vrot.slane %v5409_v52, 4  ;;  %v1969_v28 = vshll.u32 %v11141_v47, 16  ;;  %v1967_v2 = vrot.slane %v1966_v14, 4 }
 0x2b4   : > { %5638 = vst.msk [vmem:[#allocation3 + $0x4c] sm:$0xf] %vm5618_vm4, %v5513_v30  ;;  %8232 = vmatprep.mubr.msk.bf16.mxu1 %vm5855_vm2, %v8356_v57  ;;  %v3389_v30 = vrot.slane %v3387_v32, 4 }
 0x2b5   : > { %v2617_v24 = vpop.permute.xlu0 %2616  ;;  %v5413_v57 = vsel %vm8918_vm6, %v5411_v21, %v5412_v45  ;;  %v11173_v37 = vrot.slane %v1969_v28, 5  ;;  %v11203_v28 = vld [vmem:[#allocation2 + $0x84] sm:$0xf] }
 0x2b6   : > { %2739 = vst.msk [vmem:[#allocation3 + $0x58] sm:$0xf] %vm2716_vm11, %v2617_v24  ;;  %5092 = vrot.lane.b32.xlu1 %v4837_v8, %s8799_s18  ;;  %v11096_v50 = vpop.f32.mrf.mxu1  ;;  %v8541_v24 = vpop.eup %8540  ;;  %v3967_v54 = vrot.slane %v11203_v28, 5 }
 0x2b7   : > { %5526 = vrot.lane.b32.xlu0 %v5410_v17, %s8798_s17  ;;  %v2180_v4 = vpop.permute.xlu1 %2179  ;;  %v1102_v8 = vadd.f32 1.0, %v8541_v24  ;;  %v8543_v17 = vpop.eup %8542 }
 0x2b8   : > { %2301 = vst.msk [vmem:[#allocation3 + $0x5c] sm:$0xf] %vm2277_vm10, %v2180_v4  ;;  %v5966_v48 = vpop.f32.mrf.mxu1  ;;  %v3390_v4 = vor.u32 %v3389_v30, %v10971_v63  ;;  %v1100_v20 = vadd.f32 1.0, %v8543_v17  ;;  %v8545_v15 = vpop.eup %8544  ;;  %v3085_v63 = vld [vmem:[#allocation2 + $0x88] sm:$0xf] }
 0x2b9   : > { %v2902_v44 = vpop.permute.xlu0 %2901  ;;  %v6164_v38 = vmul.f32 %v11111_v62, %v5966_v48  ;;  %v2793_v48 = vld [vmem:[#allocation2 + $0x7c] sm:$0xf]  ;;  %v1105_v16 = vadd.f32 1.0, %v8545_v15  ;;  %v3413_v14 = vshll.u32 %v3085_v63, 16  ;;  %v3417_v51 = vshrl.u32 %v3085_v63, 16 }
 0x2ba   : > { %3026 = vst.msk [vmem:[#allocation3 + $0x50] sm:$0xf] %vm3005_vm12, %v2902_v44  ;;  %5524 = vrot.lane.b32.xlu1 %v5407_v56, %s8798_s17  ;;  %v8219_v27 = vpop.f32.mrf.mxu1  ;;  %v3083_v44 = vld [vmem:[#allocation2 + $0x80] sm:$0xf]  ;;  %v1972_v56 = vsel %vm8925_vm9, %v1967_v2, %v11173_v37  ;;  %v11225_v15 = vld [vmem:[#allocation2 + $0x8c] sm:$0xf] }
 0x2bb   : > { %2193 = vrot.lane.b32.xlu0 %v1962_v12, %s8793_s30  ;;  %v11136_v36 = vadd.f32 %v11129_v59, %v6164_v38  ;;  %v6167_v55 = vmul.f32 %v8219_v27, %v11111_v62  ;;  %v2615_v42 = vpop.permute.xlu1 %2614  ;;  %v8357_v53 = vld [vmem:[#allocation3 + $0x48] sm:$0xff]   ;;  %v11181_v12 = vrot.slane %v3403_v58, 5  ;;  %v8547_v38 = vpop.eup %8546  ;;  %v3393_v11 = vshll.u32 %v3083_v44, 16  ;;  %v11185_v27 = vld [vmem:[#allocation2 + $0x80] sm:$0xf] }
 0x2bc   : > { %2738 = vst.msk [vmem:[#allocation3 + $0x54] sm:$0xf] %vm2716_vm11, %v2615_v42  ;;  %8233 = vmatmul.mubr.msk.bf16.gmra.mxu1 %vm5855_vm2, %v8357_v53  ;;  %v1103_v42 = vadd.f32 1.0, %v8547_v38  ;;  %v3391_v53 = vrot.slane %v3390_v4, 4  ;;  %v2522_v5 = vrot.slane %v11185_v27, 5  ;;  %v3963_v4 = vrot.slane %v3961_v22, 4 }
 0x2bd   : > { %v2906_v18 = vpop.permute.xlu0 %2905  ;;  %v7978_v40 = vmul.f32 -1.442695, %v11136_v36  ;;  %v11154_v46 = vadd.f32 %v11129_v59, %v6167_v55  ;;  %v2517_v55 = vsel %vm8918_vm6, %v2515_v60, %v2516_v23  ;;  %v3410_v21 = vor.u32 %v3409_v43, %v11181_v12  ;;  %v2794_v2 = vld [vmem:[#allocation2 + $0x80] sm:$0xf]  ;;  %v1540_v60 = vld [vmem:[#allocation2 + $0x9c] sm:$0xf] }
 0x2be   : > { %3028 = vst.msk [vmem:[#allocation3 + $0x58] sm:$0xf] %vm3005_vm12, %v2906_v18  ;;  %2191 = vrot.lane.b32.xlu1 %v1952_v41, %s8793_s30  ;;  %v2521_v18 = vrot.slane %v2519_v0, 4  ;;  %v3397_v41 = vshrl.u32 %v3083_v44, 16  ;;  %v3395_v23 = vrot.slane %v3393_v11, 5  ;;  %v3969_v22 = vrot.slane %v3967_v54, 4 }
 0x2bf   : > { %2628 = vrot.lane.b32.xlu0 %v2514_v9, %s8792_s29  ;;  %8548 = vpow2.f32 %v7978_v40  ;;  %v7981_v49 = vmul.f32 -1.442695, %v11154_v46  ;;  %v2619_v52 = vpop.permute.xlu1 %2618  ;;  %v2795_v9 = vld [vmem:[#allocation2 + $0x84] sm:$0xf]  ;;  %v11213_v58 = vld [vmem:[#allocation2 + $0x80] sm:$0xf] }
 0x2c0   : > { %2740 = vst.msk [vmem:[#allocation3 + $0x5c] sm:$0xf] %vm2716_vm11, %v2619_v52  ;;  %v2523_v40 = vsel %vm8918_vm6, %v2521_v18, %v2522_v5  ;;  %v3411_v52 = vrot.slane %v3410_v21, 4  ;;  %v3399_v30 = vrot.slane %v3397_v41, 4  ;;  %v1543_v63 = vld [vmem:[#allocation2 + $0xa8] sm:$0xf] }
 0x2c1   : > { %v3628_v34 = vpop.permute.xlu0 %3627  ;;  %8550 = vpow2.f32 %v7981_v49  ;;  %1588 = vst.msk [vmem:[#allocation3 + $0x9c] sm:$0xf] %vm1251_vm3, %v1540_v60  ;;  %v3964_v33 = vrot.slane %v11213_v58, 5  ;;  %1591 = vst.msk [vmem:[#allocation3 + $0xa8] sm:$0xf] %vm1251_vm3, %v1543_v63 }
 0x2c2   : > { %3752 = vst.msk [vmem:[#allocation3 + $0x50] sm:$0xf] %vm3731_vm14, %v3628_v34  ;;  %5528 = vrot.lane.b32.xlu1 %v5413_v57, %s8798_s17  ;;  %8552 = vrcp.f32 %v1102_v8  ;;  %v3396_v34 = vsel %vm8925_vm9, %v3391_v53, %v3395_v23  ;;  %v2796_v41 = vld [vmem:[#allocation2 + $0x88] sm:$0xf] }
 0x2c3   : > { %2632 = vrot.lane.b32.xlu0 %v2520_v61, %s8792_s29  ;;  %v2904_v29 = vpop.permute.xlu1 %2903  ;;  %8554 = vrcp.f32 %v1100_v20  ;;  %v11209_v61 = vrot.slane %v3413_v14, 5  ;;  %v3400_v20 = vor.u32 %v3399_v30, %v3395_v23 }
 0x2c4   : > { %3027 = vst.msk [vmem:[#allocation3 + $0x54] sm:$0xf] %vm3005_vm12, %v2904_v29  ;;  %8556 = vrcp.f32 %v1105_v16  ;;  %v11216_v29 = vld [vmem:[#allocation2 + $0x88] sm:$0xf]  ;;  %v1542_v16 = vld [vmem:[#allocation2 + $0xa4] sm:$0xf] }
 0x2c5   : > { %v3632_v39 = vpop.permute.xlu0 %3631  ;;  %8558 = vrcp.f32 %v1103_v42  ;;  %v3416_v44 = vsel %vm8925_vm9, %v3411_v52, %v11209_v61  ;;  %v3970_v11 = vrot.slane %v11216_v29, 5  ;;  %1590 = vst.msk [vmem:[#allocation3 + $0xa4] sm:$0xf] %vm1251_vm3, %v1542_v16  ;;  %v3423_v42 = vshll.u32 %v11225_v15, 16 }
 0x2c6   : > { %3754 = vst.msk [vmem:[#allocation3 + $0x58] sm:$0xf] %vm3731_vm14, %v3632_v39  ;;  %2195 = vrot.lane.b32.xlu1 %v1972_v56, %s8793_s30  ;;  %v1541_v56 = vld [vmem:[#allocation2 + $0xa0] sm:$0xf]  ;;  %v3401_v21 = vrot.slane %v3400_v20, 4  ;;  %v1973_v16 = vshrl.u32 %v11141_v47, 16 }
 0x2c7   : > { %2917 = vrot.lane.b32.xlu0 %v2793_v48, %s8794_s13  ;;  %v2908_v32 = vpop.permute.xlu1 %2907  ;;  %v3419_v48 = vrot.slane %v3417_v51, 4  ;;  %1589 = vst.msk [vmem:[#allocation3 + $0xa0] sm:$0xf] %vm1251_vm3, %v1541_v56  ;;  %v4246_v47 = vld [vmem:[#allocation2 + $0x90] sm:$0xf] }
 0x2c8   : > { %3029 = vst.msk [vmem:[#allocation3 + $0x5c] sm:$0xf] %vm3005_vm12, %v2908_v32  ;;  %v4838_v32 = vshrl.u32 %v11034_v31, 16  ;;  %v4535_v31 = vld [vmem:[#allocation2 + $0x90] sm:$0xf] }
 0x2c9   : > { %v4064_v26 = vpop.permute.xlu0 %4063  ;;  %v3420_v14 = vor.u32 %v3419_v48, %v11209_v61  ;;  %v4858_v58 = vshrl.u32 %v4535_v31, 16 }
 0x2ca   : > { %4188 = vst.msk [vmem:[#allocation3 + $0x50] sm:$0xf] %vm4167_vm15, %v4064_v26  ;;  %2630 = vrot.lane.b32.xlu1 %v2517_v55, %s8792_s29  ;;  %v4840_v52 = vrot.slane %v4838_v32, 4 }
 0x2cb   : > { %2921 = vrot.lane.b32.xlu0 %v2795_v9, %s8794_s13  ;;  %v3630_v0 = vpop.permute.xlu1 %3629  ;;  %v4860_v56 = vrot.slane %v4858_v58, 4  ;;  %v4245_v58 = vld [vmem:[#allocation2 + $0x8c] sm:$0xf] }
 0x2cc   : > { %v8549_v49 = vpop.eup %8548  ;;  %3753 = vst.msk [vmem:[#allocation3 + $0x54] sm:$0xf] %vm3731_vm14, %v3630_v0  ;;  %v4841_v20 = vor.u32 %v4840_v52, %v11063_v19  ;;  %v1630_v52 = vld [vmem:[#allocation2 + $0x84] sm:$0xf] }
 0x2cd   : > { %v4068_v1 = vpop.permute.xlu0 %4067  ;;  %v6411_v24 = vadd.f32 1.0, %v8549_v49 }
 0x2ce   : > { %4190 = vst.msk [vmem:[#allocation3 + $0x58] sm:$0xf] %vm4167_vm15, %v4068_v1  ;;  %2634 = vrot.lane.b32.xlu1 %v2523_v40, %s8792_s29  ;;  %v8551_v57 = vpop.eup %8550  ;;  %v3971_v40 = vsel %vm8918_vm6, %v3969_v22, %v3970_v11 }
 0x2cf   : > { %3643 = vrot.lane.b32.xlu0 %v3396_v34, %s8797_s16  ;;  %8560 = vrcp.f32 %v6411_v24  ;;  %v6414_v8 = vadd.f32 1.0, %v8551_v57  ;;  %v3634_v39 = vpop.permute.xlu1 %3633  ;;  %v8553_v43 = vpop.eup %8552  ;;  %v11252_v34 = vrot.slane %v3423_v42, 5  ;;  %v3421_v24 = vrot.slane %v3420_v14, 4  ;;  %v4534_v57 = vld [vmem:[#allocation2 + $0x8c] sm:$0xf] }
 0x2d0   : > { %3755 = vst.msk [vmem:[#allocation3 + $0x5c] sm:$0xf] %vm3731_vm14, %v3634_v39  ;;  %v8555_v38 = vpop.eup %8554  ;;  %v1246_v26 = vmul.f32 %v8553_v43, %v11065_v7  ;;  %v3965_v7 = vsel %vm8918_vm6, %v3963_v4, %v3964_v33  ;;  %v3966_v39 = vrot.slane %v3964_v33, 4  ;;  %v4844_v29 = vshll.u32 %v4534_v57, 16  ;;  %v11270_v4 = vld [vmem:[#allocation2 + $0x8c] sm:$0xf] }
 0x2d1   : > { %v4353_v17 = vpop.permute.xlu0 %4352  ;;  %8562 = vrcp.f32 %v6414_v8  ;;  %v1244_v9 = vmul.f32 %v8555_v38, %v11075_v6  ;;  %v8557_v53 = vpop.eup %8556  ;;  %v3972_v38 = vrot.slane %v3970_v11, 4  ;;  %v4842_v11 = vrot.slane %v4841_v20, 4 }
 0x2d2   : > { %4477 = vst.msk [vmem:[#allocation3 + $0x50] sm:$0xf] %vm4456_vm0, %v4353_v17  ;;  %2919 = vrot.lane.b32.xlu1 %v2794_v2, %s8794_s13  ;;  %v8089_v23 = vpack.c.bf16 %v1246_v26, %v1246_v26  ;;  %v1249_v6 = vmul.f32 %v8557_v53, %v11090_v10  ;;  %v8559_v0 = vpop.eup %8558  ;;  %v3406_v10 = vsel %vm8925_vm9, %v3401_v21, %v11181_v12  ;;  %v4854_v2 = vshll.u32 %v4535_v31, 16  ;;  %v4244_v12 = vld [vmem:[#allocation2 + $0x88] sm:$0xf] }
 0x2d3   : > { %3647 = vrot.lane.b32.xlu0 %v3416_v44, %s8797_s16  ;;  %v4066_v55 = vpop.permute.xlu1 %4065  ;;  %v8087_v1 = vpack.c.bf16 %v1244_v9, %v1244_v9  ;;  %v1247_v30 = vmul.f32 %v8559_v0, %v11101_v13  ;;  %v3426_v44 = vsel %vm8925_vm9, %v3421_v24, %v11252_v34  ;;  %v3968_v19 = vsel %vm8918_vm6, %v3966_v39, %v3967_v54  ;;  %v11310_v21 = vld [vmem:[#allocation2 + $0x8c] sm:$0xf]  ;;  %v1631_v0 = vld [vmem:[#allocation2 + $0x88] sm:$0xf] }
 0x2d4   : > { %4189 = vst.msk [vmem:[#allocation3 + $0x54] sm:$0xf] %vm4167_vm15, %v4066_v55  ;;  %v8092_v61 = vpack.c.bf16 %v1249_v6, %v1249_v6  ;;  %v11273_v48 = vrot.slane %v4854_v2, 5  ;;  %v4846_v32 = vrot.slane %v4844_v29, 5  ;;  %v4536_v55 = vld [vmem:[#allocation2 + $0x94] sm:$0xf]  ;;  %v5969_v2 = vpop.f32.mrf.mxu1 }
 0x2d5   : > { %v4357_v18 = vpop.permute.xlu0 %4356  ;;  %1490 = vst.msk [vmem:[#allocation2 + $0xb8] sm:$0xf] %vm1251_vm3, %v8089_v23  ;;  %1488 = vst.msk [vmem:[#allocation2 + $0xb0] sm:$0xf] %vm1251_vm3, %v8087_v1  ;;  %v8090_v8 = vpack.c.bf16 %v1247_v30, %v1247_v30  ;;  %v4864_v9 = vshll.u32 %v4536_v55, 16  ;;  %v1975_v14 = vrot.slane %v1973_v16, 4 }
 0x2d6   : > { %4479 = vst.msk [vmem:[#allocation3 + $0x58] sm:$0xf] %vm4456_vm0, %v4357_v18  ;;  %2923 = vrot.lane.b32.xlu1 %v2796_v41, %s8794_s13  ;;  %v4861_v18 = vor.u32 %v4860_v56, %v11273_v48  ;;  %v4847_v23 = vsel %vm8925_vm9, %v4842_v11, %v4846_v32  ;;  %v4868_v1 = vshrl.u32 %v4536_v55, 16  ;;  %v1989_v24 = vshll.u32 %v1631_v0, 16  ;;  %v11337_v56 = vld [vmem:[#allocation2 + $0x8c] sm:$0xf] }
 0x2d7   : > { %4079 = vrot.lane.b32.xlu0 %v3965_v7, %s8796_s15  ;;  %v4070_v51 = vpop.permute.xlu1 %4069  ;;  %1493 = vst.msk [vmem:[#allocation2 + $0xc4] sm:$0xf] %vm1251_vm3, %v8092_v61  ;;  %1491 = vst.msk [vmem:[#allocation2 + $0xbc] sm:$0xf] %vm1251_vm3, %v8090_v8  ;;  %v1983_v29 = vshrl.u32 %v1630_v52, 16 }
 0x2d8   : > { %4191 = vst.msk [vmem:[#allocation3 + $0x5c] sm:$0xf] %vm4167_vm15, %v4070_v51  ;;  %v4862_v31 = vrot.slane %v4861_v18, 4  ;;  %v5414_v51 = vrot.slane %v5412_v45, 4  ;;  %v4870_v45 = vrot.slane %v4868_v1, 4 }
 0x2d9   : > { %v5079_v49 = vpop.permute.xlu0 %5078  ;;  %v1985_v11 = vrot.slane %v1983_v29, 4  ;;  %v2524_v29 = vrot.slane %v2522_v5, 4 }
 0x2da   : > { %5203 = vst.msk [vmem:[#allocation3 + $0x50] sm:$0xf] %vm5182_vm1, %v5079_v49  ;;  %3645 = vrot.lane.b32.xlu1 %v3406_v10, %s8797_s16  ;;  %v5415_v49 = vrot.slane %v11310_v21, 5  ;;  %v1976_v10 = vor.u32 %v1975_v14, %v11173_v37  ;;  %v11330_v37 = vld [vmem:[#allocation2 + $0x90] sm:$0xf] }
 0x2db   : > { %4083 = vrot.lane.b32.xlu0 %v3971_v40, %s8796_s15  ;;  %v4355_v13 = vpop.permute.xlu1 %4354  ;;  %v4866_v40 = vrot.slane %v4864_v9, 5 }
 0x2dc   : > { %v8561_v60 = vpop.eup %8560  ;;  %4478 = vst.msk [vmem:[#allocation3 + $0x54] sm:$0xf] %vm4456_vm0, %v4355_v13  ;;  %v1979_v13 = vshll.u32 %v1630_v52, 16  ;;  %v5416_v39 = vsel %vm8918_vm6, %v5414_v51, %v5415_v49  ;;  %v1977_v20 = vrot.slane %v1976_v10, 4 }
 0x2dd   : > { %v5083_v17 = vpop.permute.xlu0 %5082  ;;  %v11276_v43 = vmul.f32 %v8561_v60, %v11136_v36  ;;  %v3973_v36 = vrot.slane %v11270_v4, 5  ;;  %v4867_v8 = vsel %vm8925_vm9, %v4862_v31, %v4866_v40  ;;  %v6165_v60 = vmul.f32 %v11111_v62, %v5969_v2 }
 0x2de   : > { %5205 = vst.msk [vmem:[#allocation3 + $0x58] sm:$0xf] %vm5182_vm1, %v5083_v17  ;;  %3649 = vrot.lane.b32.xlu1 %v3426_v44, %s8797_s16  ;;  %v8563_v63 = vpop.eup %8562  ;;  %v11328_v17 = vld [vmem:[#allocation2 + $0x98] sm:$0xf]  ;;  %v1981_v55 = vrot.slane %v1979_v13, 5  ;;  %v2003_v13 = vshrl.u32 %v11337_v56, 16 }
 0x2df   : > { %4368 = vrot.lane.b32.xlu0 %v4244_v12, %s8795_s14  ;;  %v11282_v33 = vmul.f32 %v8563_v63, %v11154_v46  ;;  %v4359_v22 = vpop.permute.xlu1 %4358  ;;  %v4848_v46 = vshrl.u32 %v4534_v57, 16  ;;  %v11294_v28 = vsel %vm6603_vm5, %v11276_v43, 0.0  ;;  %v3974_v41 = vsel %vm8918_vm6, %v3972_v38, %v3973_v36  ;;  %v4247_v38 = vld [vmem:[#allocation2 + $0x94] sm:$0xf] }
 0x2e0   : > { %4480 = vst.msk [vmem:[#allocation3 + $0x5c] sm:$0xf] %vm4456_vm0, %v4359_v22  ;;  %v1993_v57 = vshrl.u32 %v1631_v0, 16  ;;  %v11339_v63 = vrot.slane %v1989_v24, 5  ;;  %v11351_v18 = vadd.f32 %v11129_v59, %v6165_v60 }
 0x2e1   : > { %v5515_v26 = vpop.permute.xlu0 %5514  ;;  %v11298_v54 = vsel %vm6603_vm5, %v11282_v33, 0.0  ;;  %v4850_v6 = vrot.slane %v4848_v46, 4  ;;  %v11348_v46 = vpop.f32.mrf.mxu0 }
 0x2e2   : > { %5639 = vst.msk [vmem:[#allocation3 + $0x50] sm:$0xf] %vm5618_vm4, %v5515_v26  ;;  %4081 = vrot.lane.b32.xlu1 %v3968_v19, %s8796_s15  ;;  %v11304_v42 = vadd.f32 %v11298_v54, %v11294_v28  ;;  %v1995_v16 = vrot.slane %v1993_v57, 4  ;;  %v4871_v26 = vor.u32 %v4870_v45, %v4866_v40  ;;  %v4874_v19 = vshll.u32 %v11328_v17, 16 }
 0x2e3   : > { %4372 = vrot.lane.b32.xlu0 %v4246_v47, %s8795_s14  ;;  %v5081_v53 = vpop.permute.xlu1 %5080  ;;  %v4851_v3 = vor.u32 %v4850_v6, %v4846_v32  ;;  %v5418_v32 = vrot.slane %v11330_v37, 5  ;;  %v1999_v47 = vshll.u32 %v11337_v56, 16  ;;  %v11366_v40 = vpop.f32.mrf.mxu0  ;;  %v5417_v45 = vrot.slane %v5415_v49, 4  ;;  %v11387_v37 = vld [vmem:[#allocation2 + $0x84] sm:$0xf] }
 0x2e4   : > { %5204 = vst.msk [vmem:[#allocation3 + $0x54] sm:$0xf] %vm5182_vm1, %v5081_v53  ;;  %v1996_v14 = vor.u32 %v1995_v16, %v11339_v63  ;;  %v4872_v1 = vrot.slane %v4871_v26, 4  ;;  %v11364_v6 = vrot.slane %v4874_v19, 5  ;;  %v7871_v51 = vmul.f32 -1.442695, %v11366_v40 }
 0x2e5   : > { %v2182_v7 = vpop.permute.xlu0 %2181  ;;  %v4852_v22 = vrot.slane %v4851_v3, 4  ;;  %v5420_v0 = vrot.slane %v5418_v32, 4  ;;  %v5419_v27 = vsel %vm8918_vm6, %v5417_v45, %v5418_v32  ;;  %v11412_v19 = vld [vmem:[#allocation2 + $0x98] sm:$0xf] }
 0x2e6   : > { %2302 = vst.msk [vmem:[#allocation3 + $0x60] sm:$0xf] %vm2277_vm10, %v2182_v7  ;;  %4085 = vrot.lane.b32.xlu1 %v3974_v41, %s8796_s15  ;;  %v1982_v7 = vsel %vm8925_vm9, %v1977_v20, %v1981_v55  ;;  %v11355_v41 = vld [vmem:[#allocation2 + $0x94] sm:$0xf]  ;;  %v1997_v2 = vrot.slane %v1996_v14, 4 }
 0x2e7   : > { %5094 = vrot.lane.b32.xlu0 %v4847_v23, %s8799_s18  ;;  %v7873_v23 = vmul.f32 -1.442695, %v11348_v46  ;;  %v4857_v31 = vsel %vm8925_vm9, %v4852_v22, %v11273_v48  ;;  %v5421_v52 = vrot.slane %v11355_v41, 5  ;;  %v7979_v48 = vmul.f32 -1.442695, %v11351_v18 }
 0x2e8   : > { %v5085_v61 = vpop.permute.xlu1 %5084  ;;  %v11397_v20 = vld [vmem:[#allocation2 + $0x8c] sm:$0xf] }
 0x2e9   : > { %v5519_v30 = vpop.permute.xlu0 %5518  ;;  %5206 = vst.msk [vmem:[#allocation3 + $0x5c] sm:$0xf] %vm5182_vm1, %v5085_v61  ;;  %8564 = vpow2.f32 %v7873_v23  ;;  %v11372_v61 = vrot.slane %v1999_v47, 5  ;;  %v5422_v3 = vsel %vm8918_vm6, %v5420_v0, %v5421_v52 }
 0x2ea   : > { %5641 = vst.msk [vmem:[#allocation3 + $0x58] sm:$0xf] %vm5618_vm4, %v5519_v30  ;;  %4370 = vrot.lane.b32.xlu1 %v4245_v58, %s8795_s14  ;;  %v11374_v30 = vld [vmem:[#allocation2 + $0x88] sm:$0xf]  ;;  %v1986_v58 = vor.u32 %v1985_v11, %v1981_v55  ;;  %8566 = vpow2.f32 %v7871_v51  ;;  %v2531_v11 = vrot.slane %v11397_v20, 5  ;;  %v5423_v51 = vrot.slane %v5421_v52, 4 }
 0x2eb   : > { %5098 = vrot.lane.b32.xlu0 %v4867_v8, %s8799_s18  ;;  %v4877_v8 = vsel %vm8925_vm9, %v4872_v1, %v11364_v6  ;;  %v2528_v60 = vrot.slane %v11374_v30, 5  ;;  %8568 = vpow2.f32 %v7979_v48  ;;  %v2002_v5 = vsel %vm8925_vm9, %v1997_v2, %v11372_v61 }
 0x2ec   : > { %v5517_v12 = vpop.permute.xlu1 %5516  ;;  %v1987_v16 = vrot.slane %v1986_v58, 4 }
 0x2ed   : > { %v2186_v44 = vpop.permute.xlu0 %2185  ;;  %5640 = vst.msk [vmem:[#allocation3 + $0x54] sm:$0xf] %vm5618_vm4, %v5517_v12  ;;  %v2530_v47 = vrot.slane %v2528_v60, 4 }
 0x2ee   : > { %2304 = vst.msk [vmem:[#allocation3 + $0x68] sm:$0xf] %vm2277_vm10, %v2186_v44  ;;  %4374 = vrot.lane.b32.xlu1 %v4247_v38, %s8795_s14  ;;  %v2525_v44 = vrot.slane %v11387_v37, 5  ;;  %v2005_v38 = vrot.slane %v2003_v13, 4  ;;  %v1992_v0 = vsel %vm8925_vm9, %v1987_v16, %v11339_v63 }
 0x2ef   : > { %5530 = vrot.lane.b32.xlu0 %v5416_v39, %s8798_s17  ;;  %v2532_v63 = vsel %vm8918_vm6, %v2530_v47, %v2531_v11  ;;  %v11467_v47 = vld [vmem:[#allocation2 + $0x90] sm:$0xf] }
 0x2f0   : > { %v2184_v9 = vpop.permute.xlu1 %2183  ;;  %v2526_v32 = vsel %vm8918_vm6, %v2524_v29, %v2525_v44  ;;  %v2006_v48 = vor.u32 %v2005_v38, %v11372_v61  ;;  %v2797_v38 = vld [vmem:[#allocation2 + $0x8c] sm:$0xf]  ;;  %v2534_v30 = vrot.slane %v11467_v47, 5 }
 0x2f1   : > { %v2621_v53 = vpop.permute.xlu0 %2620  ;;  %2303 = vst.msk [vmem:[#allocation3 + $0x64] sm:$0xf] %vm2277_vm10, %v2184_v9  ;;  %v11419_v9 = vld [vmem:[#allocation2 + $0x90] sm:$0xf] }
 0x2f2   : > { %2741 = vst.msk [vmem:[#allocation3 + $0x60] sm:$0xf] %vm2716_vm11, %v2621_v53  ;;  %5096 = vrot.lane.b32.xlu1 %v4857_v31, %s8799_s18  ;;  %v3427_v53 = vshrl.u32 %v11225_v15, 16  ;;  %v5424_v15 = vrot.slane %v11412_v19, 5  ;;  %v2009_v52 = vshll.u32 %v11419_v9, 16  ;;  %v2007_v13 = vrot.slane %v2006_v48, 4 }
 0x2f3   : > { %2197 = vrot.lane.b32.xlu0 %v1982_v7, %s8793_s30 }
 0x2f4   : > { %v5521_v10 = vpop.permute.xlu1 %5520  ;;  %v8358_v57 = vld [vmem:[#allocation3 + $0x50] sm:$0xff]   ;;  %v3429_v58 = vrot.slane %v3427_v53, 4  ;;  %v5425_v45 = vsel %vm8918_vm6, %v5423_v51, %v5424_v15 }
 0x2f5   : > { %v2625_v24 = vpop.permute.xlu0 %2624  ;;  %5642 = vst.msk [vmem:[#allocation3 + $0x5c] sm:$0xf] %vm5618_vm4, %v5521_v10  ;;  %8236 = vmatprep.mubr.msk.bf16.mxu1 %vm5855_vm2, %v8358_v57 }
 0x2f6   : > { %2743 = vst.msk [vmem:[#allocation3 + $0x68] sm:$0xf] %vm2716_vm11, %v2625_v24  ;;  %5100 = vrot.lane.b32.xlu1 %v4877_v8, %s8799_s18  ;;  %v8222_v39 = vpop.f32.mrf.mxu1  ;;  %v3088_v24 = vld [vmem:[#allocation2 + $0x94] sm:$0xf]  ;;  %v8565_v57 = vpop.eup %8564 }
 0x2f7   : > { %5534 = vrot.lane.b32.xlu0 %v5422_v3, %s8798_s17  ;;  %v6170_v21 = vmul.f32 %v8222_v39, %v11111_v62  ;;  %v1106_v8 = vadd.f32 1.0, %v8565_v57  ;;  %v8567_v3 = vpop.eup %8566  ;;  %v3443_v37 = vshll.u32 %v3088_v24, 16  ;;  %v3447_v39 = vshrl.u32 %v3088_v24, 16 }
 0x2f8   : > { %v2188_v12 = vpop.permute.xlu1 %2187  ;;  %v5982_v56 = vpop.f32.mrf.mxu1  ;;  %v1104_v29 = vadd.f32 1.0, %v8567_v3 }
 0x2f9   : > { %v2910_v49 = vpop.permute.xlu0 %2909  ;;  %2305 = vst.msk [vmem:[#allocation3 + $0x6c] sm:$0xf] %vm2277_vm10, %v2188_v12  ;;  %v11407_v22 = vadd.f32 %v11129_v59, %v6170_v21  ;;  %v6168_v26 = vmul.f32 %v11111_v62, %v5982_v56  ;;  %v11455_v21 = vrot.slane %v2009_v52, 5  ;;  %v2527_v56 = vrot.slane %v2525_v44, 4  ;;  %v8569_v16 = vpop.eup %8568  ;;  %v3089_v44 = vld [vmem:[#allocation2 + $0x98] sm:$0xf] }
 0x2fa   : > { %3030 = vst.msk [vmem:[#allocation3 + $0x60] sm:$0xf] %vm3005_vm12, %v2910_v49  ;;  %5532 = vrot.lane.b32.xlu1 %v5419_v27, %s8798_s17  ;;  %v8223_v55 = vpop.f32.mrf.mxu1  ;;  %v3087_v27 = vld [vmem:[#allocation2 + $0x90] sm:$0xf]  ;;  %v6412_v53 = vadd.f32 1.0, %v8569_v16  ;;  %v3457_v52 = vshrl.u32 %v3089_v44, 16 }
 0x2fb   : > { %2201 = vrot.lane.b32.xlu0 %v2002_v5, %s8793_s30  ;;  %v7984_v7 = vmul.f32 -1.442695, %v11407_v22  ;;  %v11424_v41 = vadd.f32 %v11129_v59, %v6168_v26  ;;  %v6171_v14 = vmul.f32 %v8223_v55, %v11111_v62  ;;  %v3430_v5 = vor.u32 %v3429_v58, %v11252_v34 }
 0x2fc   : > { %v2623_v31 = vpop.permute.xlu1 %2622  ;;  %v8359_v1 = vld [vmem:[#allocation3 + $0x58] sm:$0xff]   ;;  %v2012_v26 = vsel %vm8925_vm9, %v2007_v13, %v11455_v21  ;;  %v11463_v55 = vrot.slane %v3443_v37, 5  ;;  %v3433_v34 = vshll.u32 %v3087_v27, 16  ;;  %v3437_v51 = vshrl.u32 %v3087_v27, 16  ;;  %v11496_v37 = vld [vmem:[#allocation2 + $0x90] sm:$0xf] }
 0x2fd   : > { %v2914_v23 = vpop.permute.xlu0 %2913  ;;  %2742 = vst.msk [vmem:[#allocation3 + $0x64] sm:$0xf] %vm2716_vm11, %v2623_v31  ;;  %8570 = vpow2.f32 %v7984_v7  ;;  %v7982_v10 = vmul.f32 -1.442695, %v11424_v41  ;;  %v11436_v62 = vadd.f32 %v11129_v59, %v6171_v14  ;;  %8237 = vmatmul.mubr.msk.bf16.gmra.mxu1 %vm5855_vm2, %v8359_v1  ;;  %v2533_v31 = vrot.slane %v2531_v11, 4 }
 0x2fe   : > { %3032 = vst.msk [vmem:[#allocation3 + $0x68] sm:$0xf] %vm3005_vm12, %v2914_v23  ;;  %2199 = vrot.lane.b32.xlu1 %v1992_v0, %s8793_s30  ;;  %v2529_v23 = vsel %vm8918_vm6, %v2527_v56, %v2528_v60  ;;  %v2799_v1 = vld [vmem:[#allocation2 + $0x94] sm:$0xf]  ;;  %v3431_v0 = vrot.slane %v3430_v5, 4  ;;  %v11481_v24 = vrot.slane %v3433_v34, 5 }
 0x2ff   : > { %2636 = vrot.lane.b32.xlu0 %v2526_v32, %s8792_s29  ;;  %8572 = vpow2.f32 %v7982_v10  ;;  %v7985_v61 = vmul.f32 -1.442695, %v11436_v62  ;;  %v3449_v32 = vrot.slane %v3447_v39, 4  ;;  %v3453_v10 = vshll.u32 %v3089_v44, 16  ;;  %v2798_v56 = vld [vmem:[#allocation2 + $0x90] sm:$0xf] }
 0x300   : > { %v2627_v2 = vpop.permute.xlu1 %2626  ;;  %v3439_v3 = vrot.slane %v3437_v51, 4  ;;  %v3459_v5 = vrot.slane %v3457_v52, 4  ;;  %v11508_v44 = vld [vmem:[#allocation2 + $0x9c] sm:$0xf] }
 0x301   : > { %v3636_v59 = vpop.permute.xlu0 %3635  ;;  %2744 = vst.msk [vmem:[#allocation3 + $0x6c] sm:$0xf] %vm2716_vm11, %v2627_v2  ;;  %8574 = vpow2.f32 %v7985_v61  ;;  %v3450_v48 = vor.u32 %v3449_v32, %v11463_v55  ;;  %v3455_v58 = vrot.slane %v3453_v10, 5 }
 0x302   : > { %3756 = vst.msk [vmem:[#allocation3 + $0x60] sm:$0xf] %vm3731_vm14, %v3636_v59  ;;  %5536 = vrot.lane.b32.xlu1 %v5425_v45, %s8798_s17  ;;  %8576 = vrcp.f32 %v1106_v8  ;;  %v3436_v59 = vsel %vm8925_vm9, %v3431_v0, %v11481_v24  ;;  %v11492_v8 = vld [vmem:[#allocation2 + $0x94] sm:$0xf]  ;;  %v3440_v32 = vor.u32 %v3439_v3, %v11481_v24 }
 0x303   : > { %2640 = vrot.lane.b32.xlu0 %v2532_v63, %s8792_s29  ;;  %8578 = vrcp.f32 %v1104_v29  ;;  %v2535_v63 = vsel %vm8918_vm6, %v2533_v31, %v2534_v30  ;;  %v3451_v2 = vrot.slane %v3450_v48, 4  ;;  %v3979_v27 = vrot.slane %v11492_v8, 5  ;;  %v1547_v31 = vld [vmem:[#allocation2 + $0xb8] sm:$0xf] }
 0x304   : > { %v2912_v12 = vpop.permute.xlu1 %2911  ;;  %8580 = vrcp.f32 %v6412_v53  ;;  %v3460_v10 = vor.u32 %v3459_v5, %v3455_v58  ;;  %1595 = vst.msk [vmem:[#allocation3 + $0xb8] sm:$0xf] %vm1251_vm3, %v1547_v31 }
 0x305   : > { %v3640_v49 = vpop.permute.xlu0 %3639  ;;  %3031 = vst.msk [vmem:[#allocation3 + $0x64] sm:$0xf] %vm3005_vm12, %v2912_v12  ;;  %v3456_v16 = vsel %vm8925_vm9, %v3451_v2, %v3455_v58  ;;  %v3981_v51 = vrot.slane %v3979_v27, 4 }
 0x306   : > { %3758 = vst.msk [vmem:[#allocation3 + $0x68] sm:$0xf] %vm3731_vm14, %v3640_v49  ;;  %2203 = vrot.lane.b32.xlu1 %v2012_v26, %s8793_s30  ;;  %v11505_v26 = vld [vmem:[#allocation2 + $0x98] sm:$0xf] }
 0x307   : > { %2925 = vrot.lane.b32.xlu0 %v2797_v38, %s8794_s13  ;;  %v3975_v38 = vrot.slane %v3973_v36, 4  ;;  %v3982_v48 = vrot.slane %v11505_v26, 5 }
 0x308   : > { %v2916_v14 = vpop.permute.xlu1 %2915 }
 0x309   : > { %v4072_v7 = vpop.permute.xlu0 %4071  ;;  %3033 = vst.msk [vmem:[#allocation3 + $0x6c] sm:$0xf] %vm3005_vm12, %v2916_v14  ;;  %v1545_v14 = vld [vmem:[#allocation2 + $0xb0] sm:$0xf]  ;;  %v3984_v31 = vrot.slane %v3982_v48, 4 }
 0x30a   : > { %4192 = vst.msk [vmem:[#allocation3 + $0x60] sm:$0xf] %vm4167_vm15, %v4072_v7  ;;  %2638 = vrot.lane.b32.xlu1 %v2529_v23, %s8792_s29  ;;  %v8571_v60 = vpop.eup %8570  ;;  %v1544_v7 = vld [vmem:[#allocation2 + $0xac] sm:$0xf]  ;;  %v3976_v23 = vrot.slane %v11496_v37, 5 }
 0x30b   : > { %2929 = vrot.lane.b32.xlu0 %v2799_v1, %s8794_s13  ;;  %v6417_v20 = vadd.f32 1.0, %v8571_v60  ;;  %1592 = vst.msk [vmem:[#allocation3 + $0xac] sm:$0xf] %vm1251_vm3, %v1544_v7  ;;  %1593 = vst.msk [vmem:[#allocation3 + $0xb0] sm:$0xf] %vm1251_vm3, %v1545_v14  ;;  %v3463_v60 = vshll.u32 %v11508_v44, 16 }
 0x30c   : > { %v3638_v57 = vpop.permute.xlu1 %3637  ;;  %v8573_v61 = vpop.eup %8572  ;;  %v1546_v1 = vld [vmem:[#allocation2 + $0xb4] sm:$0xf]  ;;  %v3977_v24 = vsel %vm8918_vm6, %v3975_v38, %v3976_v23  ;;  %v11549_v38 = vld [vmem:[#allocation2 + $0x9c] sm:$0xf] }
 0x30d   : > { %v4076_v11 = vpop.permute.xlu0 %4075  ;;  %3757 = vst.msk [vmem:[#allocation3 + $0x64] sm:$0xf] %vm3731_vm14, %v3638_v57  ;;  %8582 = vrcp.f32 %v6417_v20  ;;  %v6415_v45 = vadd.f32 1.0, %v8573_v61  ;;  %v2800_v20 = vld [vmem:[#allocation2 + $0x98] sm:$0xf]  ;;  %v3983_v61 = vsel %vm8918_vm6, %v3981_v51, %v3982_v48  ;;  %v11534_v2 = vrot.slane %v3463_v60, 5 }
 0x30e   : > { %4194 = vst.msk [vmem:[#allocation3 + $0x68] sm:$0xf] %vm4167_vm15, %v4076_v11  ;;  %2642 = vrot.lane.b32.xlu1 %v2535_v63, %s8792_s29  ;;  %v8575_v13 = vpop.eup %8574  ;;  %v3441_v11 = vrot.slane %v3440_v32, 4  ;;  %v4539_v63 = vld [vmem:[#allocation2 + $0xa0] sm:$0xf] }
 0x30f   : > { %3651 = vrot.lane.b32.xlu0 %v3436_v59, %s8797_s16  ;;  %v8577_v39 = vpop.eup %8576  ;;  %8584 = vrcp.f32 %v6415_v45  ;;  %v6418_v29 = vadd.f32 1.0, %v8575_v13  ;;  %1594 = vst.msk [vmem:[#allocation3 + $0xb4] sm:$0xf] %vm1251_vm3, %v1546_v1  ;;  %v3461_v59 = vrot.slane %v3460_v10, 4  ;;  %v4538_v45 = vld [vmem:[#allocation2 + $0x9c] sm:$0xf] }
 0x310   : > { %v3642_v12 = vpop.permute.xlu1 %3641  ;;  %v1250_v34 = vmul.f32 %v8577_v39, %v11348_v46  ;;  %v8579_v53 = vpop.eup %8578  ;;  %v3446_v3 = vsel %vm8925_vm9, %v3441_v11, %v11463_v55  ;;  %v4894_v37 = vshll.u32 %v4539_v63, 16  ;;  %v4898_v39 = vshrl.u32 %v4539_v63, 16  ;;  %v4248_v32 = vld [vmem:[#allocation2 + $0x98] sm:$0xf]  ;;  %v4540_v51 = vld [vmem:[#allocation2 + $0xa4] sm:$0xf] }
 0x311   : > { %v4361_v49 = vpop.permute.xlu0 %4360  ;;  %3759 = vst.msk [vmem:[#allocation3 + $0x6c] sm:$0xf] %vm3731_vm14, %v3642_v12  ;;  %8586 = vrcp.f32 %v6418_v29  ;;  %v1248_v36 = vmul.f32 %v8579_v53, %v11366_v40  ;;  %v4878_v40 = vshrl.u32 %v11328_v17, 16  ;;  %v8581_v58 = vpop.eup %8580  ;;  %v4884_v55 = vshll.u32 %v4538_v45, 16  ;;  %v4250_v48 = vld [vmem:[#allocation2 + $0xa0] sm:$0xf] }
 0x312   : > { %4481 = vst.msk [vmem:[#allocation3 + $0x60] sm:$0xf] %vm4456_vm0, %v4361_v49  ;;  %2927 = vrot.lane.b32.xlu1 %v2798_v56, %s8794_s13  ;;  %v8093_v4 = vpack.c.bf16 %v1250_v34, %v1250_v34  ;;  %v3978_v49 = vrot.slane %v3976_v23, 4  ;;  %v11544_v12 = vmul.f32 %v8581_v58, %v11351_v18  ;;  %v3466_v34 = vsel %vm8925_vm9, %v3461_v59, %v11534_v2 }
 0x313   : > { %3655 = vrot.lane.b32.xlu0 %v3456_v16, %s8797_s16  ;;  %v8091_v57 = vpack.c.bf16 %v1248_v36, %v1248_v36  ;;  %v4880_v13 = vrot.slane %v4878_v40, 4  ;;  %v11557_v53 = vrot.slane %v4894_v37, 5  ;;  %v2013_v23 = vshrl.u32 %v11419_v9, 16 }
 0x314   : > { %v4074_v46 = vpop.permute.xlu1 %4073  ;;  %1494 = vst.msk [vmem:[#allocation2 + $0xc8] sm:$0xf] %vm1251_vm3, %v8093_v4  ;;  %13339 = vst [vmem:[#allocation4_spill] sm:$0xff] %v11544_v12  ;;  %v3980_v36 = vsel %vm8918_vm6, %v3978_v49, %v3979_v27  ;;  %v11580_v9 = vsel %vm6603_vm5, %v11544_v12, 0.0  ;;  %v4886_v8 = vrot.slane %v4884_v55, 5  ;;  %v4888_v60 = vshrl.u32 %v4538_v45, 16 }
 0x315   : > { %v4365_v0 = vpop.permute.xlu0 %4364  ;;  %4193 = vst.msk [vmem:[#allocation3 + $0x64] sm:$0xf] %vm4167_vm15, %v4074_v46  ;;  %v4881_v18 = vor.u32 %v4880_v13, %v11364_v6  ;;  %v4908_v58 = vshrl.u32 %v4540_v51, 16  ;;  %v1635_v45 = vld [vmem:[#allocation2 + $0x98] sm:$0xf]  ;;  %v5426_v37 = vrot.slane %v5424_v15, 4 }
 0x316   : > { %4483 = vst.msk [vmem:[#allocation3 + $0x68] sm:$0xf] %vm4456_vm0, %v4365_v0  ;;  %2931 = vrot.lane.b32.xlu1 %v2800_v20, %s8794_s13  ;;  %v4904_v20 = vshll.u32 %v4540_v51, 16  ;;  %v2029_v55 = vshll.u32 %v1635_v45, 16 }
 0x317   : > { %4087 = vrot.lane.b32.xlu0 %v3977_v24, %s8796_s15  ;;  %1492 = vst.msk [vmem:[#allocation2 + $0xc0] sm:$0xf] %vm1251_vm3, %v8091_v57  ;;  %v4882_v10 = vrot.slane %v4881_v18, 4  ;;  %v4910_v19 = vrot.slane %v4908_v58, 4 }
 0x318   : > { %v4078_v17 = vpop.permute.xlu1 %4077  ;;  %v4906_v13 = vrot.slane %v4904_v20, 5 }
 0x319   : > { %v5087_v52 = vpop.permute.xlu0 %5086  ;;  %4195 = vst.msk [vmem:[#allocation3 + $0x6c] sm:$0xf] %vm4167_vm15, %v4078_v17  ;;  %v11607_v17 = vld [vmem:[#allocation2 + $0x9c] sm:$0xf] }
 0x31a   : > { %5207 = vst.msk [vmem:[#allocation3 + $0x60] sm:$0xf] %vm5182_vm1, %v5087_v52  ;;  %3653 = vrot.lane.b32.xlu1 %v3446_v3, %s8797_s16  ;;  %v8583_v29 = vpop.eup %8582  ;;  %v2015_v52 = vrot.slane %v2013_v23, 4  ;;  %v4890_v3 = vrot.slane %v4888_v60, 4 }
 0x31b   : > { %4091 = vrot.lane.b32.xlu0 %v3983_v61, %s8796_s15  ;;  %v11547_v56 = vmul.f32 %v8583_v29, %v11407_v22  ;;  %v4900_v22 = vrot.slane %v4898_v39, 4  ;;  %v4887_v61 = vsel %vm8925_vm9, %v4882_v10, %v4886_v8  ;;  %v5427_v39 = vrot.slane %v11607_v17, 5  ;;  %v1634_v29 = vld [vmem:[#allocation2 + $0x94] sm:$0xf] }
 0x31c   : > { %v4363_v5 = vpop.permute.xlu1 %4362  ;;  %v8585_v26 = vpop.eup %8584  ;;  %v4891_v18 = vor.u32 %v4890_v3, %v4886_v8  ;;  %v2019_v15 = vshll.u32 %v1634_v29, 16  ;;  %v11635_v8 = vrot.slane %v2029_v55, 5  ;;  %v4911_v10 = vor.u32 %v4910_v19, %v4906_v13  ;;  %v11666_v55 = vld [vmem:[%s13279_s4] ss:$0 sm:$0xff]  ;;  %v2363_v17 = vld [vmem:[#allocation2 + $0x94] sm:$0xf] }
 0x31d   : > { %v5091_v16 = vpop.permute.xlu0 %5090  ;;  %4482 = vst.msk [vmem:[#allocation3 + $0x64] sm:$0xf] %vm4456_vm0, %v4363_v5  ;;  %v11561_v7 = vsel %vm6603_vm5, %v11547_v56, 0.0  ;;  %v11564_v14 = vmul.f32 %v8585_v26, %v11424_v41  ;;  %v3985_v41 = vrot.slane %v11549_v38, 5  ;;  %v4901_v40 = vor.u32 %v4900_v22, %v11557_v53  ;;  %v11625_v22 = vld [vmem:[#allocation2 + $0xa8] sm:$0xf]  ;;  %v11649_v3 = vpop.f32.mrf.mxu1 }
 0x31e   : > { %5209 = vst.msk [vmem:[#allocation3 + $0x68] sm:$0xf] %vm5182_vm1, %v5091_v16  ;;  %3657 = vrot.lane.b32.xlu1 %v3466_v34, %s8797_s16  ;;  %v8587_v4 = vpop.eup %8586  ;;  %v11571_v6 = vadd.f32 %v11304_v42, %v11561_v7  ;;  %v2016_v16 = vor.u32 %v2015_v52, %v11455_v21  ;;  %v2033_v26 = vshrl.u32 %v1635_v45, 16  ;;  %v11627_v21 = vld [vmem:[#allocation2 + $0xa0] sm:$0xf]  ;;  %v5428_v23 = vsel %vm8918_vm6, %v5426_v37, %v5427_v39 }
 0x31f   : > { %13340 = vst [vmem:[#allocation5_spill] sm:$0xff] %v11564_v14  ;;  %4376 = vrot.lane.b32.xlu0 %v4248_v32, %s8795_s14  ;;  %v11584_v1 = vsel %vm6603_vm5, %v11564_v14, 0.0  ;;  %v11587_v46 = vmul.f32 %v8587_v4, %v11436_v62  ;;  %v3986_v63 = vsel %vm8918_vm6, %v3984_v31, %v3985_v41  ;;  %v4902_v59 = vrot.slane %v4901_v40, 4  ;;  %v4249_v32 = vld [vmem:[#allocation2 + $0x9c] sm:$0xf] }
 0x320   : > { %v4367_v42 = vpop.permute.xlu1 %4366  ;;  %v6779_v27 = vadd.f32 %v11584_v1, %v11580_v9  ;;  %v2017_v31 = vrot.slane %v2016_v16, 4  ;;  %v2035_v51 = vrot.slane %v2033_v26, 4  ;;  %v4914_v60 = vshll.u32 %v11625_v22, 16  ;;  %v11645_v52 = vld [vmem:[#allocation2 + $0xa4] sm:$0xf] }
 0x321   : > { %13341 = vst [vmem:[#allocation6_spill] sm:$0xff] %v11587_v46  ;;  %v5523_v0 = vpop.permute.xlu0 %5522  ;;  %4484 = vst.msk [vmem:[#allocation3 + $0x6c] sm:$0xf] %vm4456_vm0, %v4367_v42  ;;  %v11596_v62 = vsel %vm6603_vm5, %v11587_v46, 0.0  ;;  %v4907_v34 = vsel %vm8925_vm9, %v4902_v59, %v4906_v13  ;;  %v2023_v42 = vshrl.u32 %v1634_v29, 16  ;;  %v5430_v40 = vrot.slane %v11627_v21, 5 }
 0x322   : > { %5643 = vst.msk [vmem:[#allocation3 + $0x60] sm:$0xf] %vm5618_vm4, %v5523_v0  ;;  %4089 = vrot.lane.b32.xlu1 %v3980_v36, %s8796_s15  ;;  %v11601_v24 = vadd.f32 %v6779_v27, %v11596_v62  ;;  %v11633_v0 = vld [vmem:[#allocation2 + $0x9c] sm:$0xf]  ;;  %v4251_v27 = vld [vmem:[#allocation2 + $0xa4] sm:$0xf] }
 0x323   : > { %4380 = vrot.lane.b32.xlu0 %v4250_v48, %s8795_s14  ;;  %v4892_v48 = vrot.slane %v4891_v18, 4  ;;  %v2021_v20 = vrot.slane %v2019_v15, 5  ;;  %v2039_v59 = vshll.u32 %v11633_v0, 16  ;;  %v2025_v58 = vrot.slane %v2023_v42, 4  ;;  %v11661_v16 = vld [vmem:[#allocation2 + $0x98] sm:$0xf] }
 0x324   : > { %v5089_v11 = vpop.permute.xlu1 %5088  ;;  %v4912_v13 = vrot.slane %v4911_v10, 4  ;;  %v11656_v37 = vrot.slane %v4914_v60, 5  ;;  %v5432_v29 = vrot.slane %v5430_v40, 4  ;;  %v11686_v42 = vld [vmem:[%s13280_s5] ss:$0 sm:$0xff]  ;;  %v2536_v60 = vrot.slane %v2534_v30, 4 }
 0x325   : > { %v2190_v57 = vpop.permute.xlu0 %2189  ;;  %5208 = vst.msk [vmem:[#allocation3 + $0x64] sm:$0xf] %vm5182_vm1, %v5089_v11  ;;  %v4897_v45 = vsel %vm8925_vm9, %v4892_v48, %v11557_v53  ;;  %v11669_v19 = vrot.slane %v2039_v59, 5  ;;  %v2026_v15 = vor.u32 %v2025_v58, %v2021_v20  ;;  %v2537_v30 = vrot.slane %v2363_v17, 5  ;;  %v11712_v59 = vld [vmem:[#allocation2 + $0xa8] sm:$0xf] }
 0x326   : > { %2306 = vst.msk [vmem:[#allocation3 + $0x70] sm:$0xf] %vm2277_vm10, %v2190_v57  ;;  %4093 = vrot.lane.b32.xlu1 %v3986_v63, %s8796_s15  ;;  %v2022_v63 = vsel %vm8925_vm9, %v2017_v31, %v2021_v20  ;;  %v2043_v31 = vshrl.u32 %v11633_v0, 16  ;;  %v11700_v20 = vld [vmem:[#allocation2 + $0x9c] sm:$0xf] }
 0x327   : > { %5102 = vrot.lane.b32.xlu0 %v4887_v61, %s8799_s18  ;;  %v2036_v61 = vor.u32 %v2035_v51, %v11635_v8 }
 0x328   : > { %v5093_v49 = vpop.permute.xlu1 %5092 }
 0x329   : > { %v5527_v5 = vpop.permute.xlu0 %5526  ;;  %5210 = vst.msk [vmem:[#allocation3 + $0x6c] sm:$0xf] %vm5182_vm1, %v5093_v49  ;;  %v2037_v18 = vrot.slane %v2036_v61, 4  ;;  %v2045_v61 = vrot.slane %v2043_v31, 4 }
 0x32a   : > { %5645 = vst.msk [vmem:[#allocation3 + $0x68] sm:$0xf] %vm5618_vm4, %v5527_v5  ;;  %4378 = vrot.lane.b32.xlu1 %v4249_v32, %s8795_s14  ;;  %v5433_v5 = vrot.slane %v11645_v52, 5  ;;  %v2027_v52 = vrot.slane %v2026_v15, 4 }
 0x32b   : > { %5106 = vrot.lane.b32.xlu0 %v4907_v34, %s8799_s18  ;;  %v2046_v15 = vor.u32 %v2045_v61, %v11669_v19 }
 0x32c   : > { %v5525_v4 = vpop.permute.xlu1 %5524 }
 0x32d   : > { %v2194_v36 = vpop.permute.xlu0 %2193  ;;  %5644 = vst.msk [vmem:[#allocation3 + $0x64] sm:$0xf] %vm5618_vm4, %v5525_v4  ;;  %v5434_v4 = vsel %vm8918_vm6, %v5432_v29, %v5433_v5 }
 0x32e   : > { %2308 = vst.msk [vmem:[#allocation3 + $0x78] sm:$0xf] %vm2277_vm10, %v2194_v36  ;;  %4382 = vrot.lane.b32.xlu1 %v4251_v27, %s8795_s14  ;;  %v5429_v36 = vrot.slane %v5427_v39, 4  ;;  %v2540_v39 = vrot.slane %v11661_v16, 5 }
 0x32f   : > { %5538 = vrot.lane.b32.xlu0 %v5428_v23, %s8798_s17  ;;  %v4917_v23 = vsel %vm8925_vm9, %v4912_v13, %v11656_v37 }
 0x330   : > { %v2192_v11 = vpop.permute.xlu1 %2191  ;;  %v2542_v58 = vrot.slane %v2540_v39, 4 }
 0x331   : > { %v2629_v57 = vpop.permute.xlu0 %2628  ;;  %2307 = vst.msk [vmem:[#allocation3 + $0x74] sm:$0xf] %vm2277_vm10, %v2192_v11 }
 0x332   : > { %2745 = vst.msk [vmem:[#allocation3 + $0x70] sm:$0xf] %vm2716_vm11, %v2629_v57  ;;  %5104 = vrot.lane.b32.xlu1 %v4897_v45, %s8799_s18  ;;  %v5431_v57 = vsel %vm8918_vm6, %v5429_v36, %v5430_v40  ;;  %v2543_v40 = vrot.slane %v11700_v20, 5  ;;  %v3467_v45 = vshrl.u32 %v11508_v44, 16  ;;  %v5435_v44 = vrot.slane %v5433_v5, 4 }
 0x333   : > { %2205 = vrot.lane.b32.xlu0 %v2022_v63, %s8793_s30  ;;  %v8226_v49 = vpop.f32.mrf.mxu1  ;;  %v2042_v63 = vsel %vm8925_vm9, %v2037_v18, %v11669_v19  ;;  %v5436_v18 = vrot.slane %v11712_v59, 5 }
 0x334   : > { %v6174_v53 = vmul.f32 %v11666_v55, %v8226_v49  ;;  %v5529_v26 = vpop.permute.xlu1 %5528  ;;  %v8360_v34 = vld [vmem:[#allocation3 + $0x60] sm:$0xff]   ;;  %v3469_v5 = vrot.slane %v3467_v45, 4 }
 0x335   : > { %v2633_v32 = vpop.permute.xlu0 %2632  ;;  %5646 = vst.msk [vmem:[#allocation3 + $0x6c] sm:$0xf] %vm5618_vm4, %v5529_v26  ;;  %v11673_v21 = vpop.f32.mrf.mxu1  ;;  %8240 = vmatprep.mubr.msk.bf16.mxu1 %vm5855_vm2, %v8360_v34  ;;  %v2032_v34 = vsel %vm8925_vm9, %v2027_v52, %v11635_v8  ;;  %v2544_v8 = vsel %vm8918_vm6, %v2542_v58, %v2543_v40  ;;  %v5437_v19 = vsel %vm8918_vm6, %v5435_v44, %v5436_v18  ;;  %v2801_v52 = vld [vmem:[#allocation2 + $0x9c] sm:$0xf] }
 0x336   : > { %2747 = vst.msk [vmem:[#allocation3 + $0x78] sm:$0xf] %vm2716_vm11, %v2633_v32  ;;  %v11689_v51 = vadd.f32 %v11686_v42, %v6174_v53  ;;  %5108 = vrot.lane.b32.xlu1 %v4917_v23, %s8799_s18  ;;  %v2538_v53 = vsel %vm8918_vm6, %v2536_v60, %v2537_v30  ;;  %v11723_v32 = vld [vmem:[#allocation2 + $0xa0] sm:$0xf] }
 0x337   : > { %5542 = vrot.lane.b32.xlu0 %v5434_v4, %s8798_s17  ;;  %v11694_v27 = vpop.f32.mrf.mxu1  ;;  %v3092_v4 = vld [vmem:[#allocation2 + $0xa4] sm:$0xf]  ;;  %v2049_v36 = vshll.u32 %v11723_v32, 16 }
 0x338   : > { %v7988_v0 = vmul.f32 -1.442695, %v11689_v51  ;;  %v2196_v10 = vpop.permute.xlu1 %2195 }
 0x339   : > { %v2918_v48 = vpop.permute.xlu0 %2917  ;;  %2309 = vst.msk [vmem:[#allocation3 + $0x7c] sm:$0xf] %vm2277_vm10, %v2196_v10  ;;  %v6001_v11 = vpop.f32.mrf.mxu1  ;;  %v3487_v10 = vshrl.u32 %v3092_v4, 16  ;;  %v11747_v60 = vrot.slane %v2049_v36, 5 }
 0x33a   : > { %3034 = vst.msk [vmem:[#allocation3 + $0x70] sm:$0xf] %vm3005_vm12, %v2918_v48  ;;  %8588 = vpow2.f32 %v7988_v0  ;;  %v6173_v47 = vmul.f32 %v11666_v55, %v6001_v11  ;;  %5540 = vrot.lane.b32.xlu1 %v5431_v57, %s8798_s17  ;;  %v2047_v0 = vrot.slane %v2046_v15, 4  ;;  %v3483_v48 = vshll.u32 %v3092_v4, 16 }
 0x33b   : > { %2209 = vrot.lane.b32.xlu0 %v2042_v63, %s8793_s30  ;;  %v2539_v57 = vrot.slane %v2537_v30, 4  ;;  %v3091_v63 = vld [vmem:[#allocation2 + $0xa0] sm:$0xf]  ;;  %v3489_v45 = vrot.slane %v3487_v10, 4  ;;  %v3093_v30 = vld [vmem:[#allocation2 + $0xa8] sm:$0xf] }
 0x33c   : > { %v11719_v13 = vadd.f32 %v11686_v42, %v6173_v47  ;;  %v2631_v49 = vpop.permute.xlu1 %2630  ;;  %v8361_v26 = vld [vmem:[#allocation3 + $0x68] sm:$0xff]   ;;  %v2052_v61 = vsel %vm8925_vm9, %v2047_v0, %v11747_v60  ;;  %v3470_v47 = vor.u32 %v3469_v5, %v11534_v2  ;;  %v11755_v58 = vrot.slane %v3483_v48, 5 }
 0x33d   : > { %v2922_v29 = vpop.permute.xlu0 %2921  ;;  %2746 = vst.msk [vmem:[#allocation3 + $0x74] sm:$0xf] %vm2716_vm11, %v2631_v49  ;;  %8241 = vmatmul.mubr.msk.bf16.gmra.mxu1 %vm5855_vm2, %v8361_v26  ;;  %v3473_v49 = vshll.u32 %v3091_v63, 16  ;;  %v2541_v2 = vsel %vm8918_vm6, %v2539_v57, %v2540_v39  ;;  %v2545_v15 = vrot.slane %v2543_v40, 4  ;;  %v3477_v36 = vshrl.u32 %v3091_v63, 16 }
 0x33e   : > { %3036 = vst.msk [vmem:[#allocation3 + $0x78] sm:$0xf] %vm3005_vm12, %v2922_v29  ;;  %v7987_v23 = vmul.f32 -1.442695, %v11719_v13  ;;  %2207 = vrot.lane.b32.xlu1 %v2032_v34, %s8793_s30  ;;  %v3471_v4 = vrot.slane %v3470_v47, 4  ;;  %v3497_v0 = vshrl.u32 %v3093_v30, 16 }
 0x33f   : > { %2644 = vrot.lane.b32.xlu0 %v2538_v53, %s8792_s29  ;;  %v11759_v53 = vld [vmem:[#allocation2 + $0xa0] sm:$0xf]  ;;  %v1548_v39 = vld [vmem:[#allocation2 + $0xbc] sm:$0xf]  ;;  %v11780_v57 = vld [vmem:[#allocation2 + $0xa4] sm:$0xf] }
 0x340   : > { %8590 = vpow2.f32 %v7987_v23  ;;  %v2635_v17 = vpop.permute.xlu1 %2634  ;;  %v2803_v23 = vld [vmem:[#allocation2 + $0xa4] sm:$0xf]  ;;  %v13289_v16 = vrot.slane %v11759_v53, 5  ;;  %1596 = vst.msk [vmem:[#allocation3 + $0xbc] sm:$0xf] %vm1251_vm3, %v1548_v39  ;;  %v3479_v63 = vrot.slane %v3477_v36, 4 }
 0x341   : > { %v3644_v31 = vpop.permute.xlu0 %3643  ;;  %2748 = vst.msk [vmem:[#allocation3 + $0x7c] sm:$0xf] %vm2716_vm11, %v2635_v17  ;;  %v3493_v17 = vshll.u32 %v3093_v30, 16  ;;  %v3991_v30 = vrot.slane %v11780_v57, 5  ;;  %v2804_v39 = vld [vmem:[#allocation2 + $0xa8] sm:$0xf] }
 0x342   : > { %3760 = vst.msk [vmem:[#allocation3 + $0x70] sm:$0xf] %vm3731_vm14, %v3644_v31  ;;  %5544 = vrot.lane.b32.xlu1 %v5437_v19, %s8798_s17  ;;  %v3490_v31 = vor.u32 %v3489_v45, %v11755_v58  ;;  %v2547_v19 = vsel %vm8918_vm6, %v2545_v15, %v13289_v16  ;;  %v3817_v45 = vld [vmem:[#allocation2 + $0xa0] sm:$0xf]  ;;  %v11795_v15 = vld [vmem:[#allocation2 + $0xac] sm:$0xf] }
 0x343   : > { %2648 = vrot.lane.b32.xlu0 %v2544_v8, %s8792_s29  ;;  %v3475_v8 = vrot.slane %v3473_v49, 5  ;;  %vm6852_vm3 = vcmask 1041409  }
 0x344   : > { %v2920_v11 = vpop.permute.xlu1 %2919 }
 0x345   : > { %v3648_v20 = vpop.permute.xlu0 %3647  ;;  %3035 = vst.msk [vmem:[#allocation3 + $0x74] sm:$0xf] %vm3005_vm12, %v2920_v11  ;;  %v3476_v10 = vsel %vm8925_vm9, %v3471_v4, %v3475_v8  ;;  %v3495_v11 = vrot.slane %v3493_v17, 5  ;;  %v4918_v4 = vshrl.u32 %v11625_v22, 16  ;;  %v3993_v17 = vrot.slane %v3991_v30, 4 }
 0x346   : > { %3762 = vst.msk [vmem:[#allocation3 + $0x78] sm:$0xf] %vm3731_vm14, %v3648_v20  ;;  %2211 = vrot.lane.b32.xlu1 %v2052_v61, %s8793_s30  ;;  %v3491_v20 = vrot.slane %v3490_v31, 4  ;;  %v4543_v22 = vld [vmem:[#allocation2 + $0xb0] sm:$0xf] }
 0x347   : > { %2933 = vrot.lane.b32.xlu0 %v2801_v52, %s8794_s13  ;;  %v8589_v29 = vpop.eup %8588 }
 0x348   : > { %v6421_v26 = vadd.f32 1.0, %v8589_v29  ;;  %v2924_v44 = vpop.permute.xlu1 %2923  ;;  %v3499_v29 = vrot.slane %v3497_v0, 4  ;;  %v3496_v49 = vsel %vm8925_vm9, %v3491_v20, %v3495_v11 }
 0x349   : > { %v4080_v34 = vpop.permute.xlu0 %4079  ;;  %3037 = vst.msk [vmem:[#allocation3 + $0x7c] sm:$0xf] %vm3005_vm12, %v2924_v44  ;;  %v11791_v44 = vld [vmem:[#allocation2 + $0xa8] sm:$0xf] }
 0x34a   : > { %4196 = vst.msk [vmem:[#allocation3 + $0x70] sm:$0xf] %vm4167_vm15, %v4080_v34  ;;  %8592 = vrcp.f32 %v6421_v26  ;;  %2646 = vrot.lane.b32.xlu1 %v2541_v2, %s8792_s29  ;;  %v2802_v26 = vld [vmem:[#allocation2 + $0xa0] sm:$0xf]  ;;  %v3987_v34 = vrot.slane %v3985_v41, 4  ;;  %v3480_v2 = vor.u32 %v3479_v63, %v3475_v8  ;;  %v3994_v38 = vrot.slane %v11791_v44, 5 }
 0x34b   : > { %2937 = vrot.lane.b32.xlu0 %v2803_v23, %s8794_s13  ;;  %v3988_v23 = vrot.slane %v3817_v45, 5  ;;  %v3500_v41 = vor.u32 %v3499_v29, %v3495_v11  ;;  %v4934_v29 = vshll.u32 %v4543_v22, 16 }
 0x34c   : > { %v3646_v5 = vpop.permute.xlu1 %3645  ;;  %v3995_v11 = vsel %vm8918_vm6, %v3993_v17, %v3994_v38 }
 0x34d   : > { %v4084_v40 = vpop.permute.xlu0 %4083  ;;  %v8591_v48 = vpop.eup %8590  ;;  %3761 = vst.msk [vmem:[#allocation3 + $0x74] sm:$0xf] %vm3731_vm14, %v3646_v5  ;;  %v3989_v8 = vsel %vm8918_vm6, %v3987_v34, %v3988_v23  ;;  %v3503_v5 = vshll.u32 %v11795_v15, 16  ;;  %v3501_v63 = vrot.slane %v3500_v41, 4  ;;  %v3990_v44 = vrot.slane %v3988_v23, 4 }
 0x34e   : > { %4198 = vst.msk [vmem:[#allocation3 + $0x78] sm:$0xf] %vm4167_vm15, %v4084_v40  ;;  %v6420_v52 = vadd.f32 1.0, %v8591_v48  ;;  %2650 = vrot.lane.b32.xlu1 %v2547_v19, %s8792_s29  ;;  %v3481_v40 = vrot.slane %v3480_v2, 4 }
 0x34f   : > { %3659 = vrot.lane.b32.xlu0 %v3476_v10, %s8797_s16 }
 0x350   : > { %8594 = vrcp.f32 %v6420_v52  ;;  %v3650_v47 = vpop.permute.xlu1 %3649  ;;  %v11815_v52 = vld [vmem:[#allocation2 + $0xac] sm:$0xf]  ;;  %v3486_v45 = vsel %vm8925_vm9, %v3481_v40, %v11755_v58 }
 0x351   : > { %v4369_v61 = vpop.permute.xlu0 %4368  ;;  %3763 = vst.msk [vmem:[#allocation3 + $0x7c] sm:$0xf] %vm3731_vm14, %v3650_v47 }
 0x352   : > { %4485 = vst.msk [vmem:[#allocation3 + $0x70] sm:$0xf] %vm4456_vm0, %v4369_v61  ;;  %2935 = vrot.lane.b32.xlu1 %v2802_v26, %s8794_s13  ;;  %v4920_v61 = vrot.slane %v4918_v4, 4  ;;  %v4924_v4 = vshll.u32 %v11815_v52, 16 }
 0x353   : > { %3663 = vrot.lane.b32.xlu0 %v3496_v49, %s8797_s16  ;;  %v4938_v49 = vshrl.u32 %v4543_v22, 16  ;;  %v11849_v22 = vrot.slane %v4934_v29, 5 }
 0x354   : > { %v4082_v36 = vpop.permute.xlu1 %4081 }
 0x355   : > { %v4373_v31 = vpop.permute.xlu0 %4372  ;;  %4197 = vst.msk [vmem:[#allocation3 + $0x74] sm:$0xf] %vm4167_vm15, %v4082_v36  ;;  %v2053_v36 = vshrl.u32 %v11723_v32, 16 }
 0x356   : > { %4487 = vst.msk [vmem:[#allocation3 + $0x78] sm:$0xf] %vm4456_vm0, %v4373_v31  ;;  %2939 = vrot.lane.b32.xlu1 %v2804_v39, %s8794_s13  ;;  %v4921_v39 = vor.u32 %v4920_v61, %v11656_v37 }
 0x357   : > { %4095 = vrot.lane.b32.xlu0 %v3989_v8, %s8796_s15  ;;  %v8593_v19 = vpop.eup %8592  ;;  %v11808_v0 = vpop.f32.mrf.mxu1  ;;  %v11840_v8 = vld [vmem:[#allocation2 + $0xac] sm:$0xf] }
 0x358   : > { %v11811_v48 = vmul.f32 %v8593_v19, %v11689_v51  ;;  %v4086_v10 = vpop.permute.xlu1 %4085  ;;  %v11822_v51 = vrot.slane %v3503_v5, 5  ;;  %v4252_v5 = vld [vmem:[#allocation2 + $0xa8] sm:$0xf]  ;;  %v4940_v19 = vrot.slane %v4938_v49, 4  ;;  %v4922_v49 = vrot.slane %v4921_v39, 4 }
 0x359   : > { %v5095_v20 = vpop.permute.xlu0 %5094  ;;  %4199 = vst.msk [vmem:[#allocation3 + $0x7c] sm:$0xf] %vm4167_vm15, %v4086_v10  ;;  %v6014_v47 = vpop.f32.mrf.mxu1 }
 0x35a   : > { %13342 = vst [vmem:[#allocation7_spill] sm:$0xff] %v11811_v48  ;;  %5211 = vst.msk [vmem:[#allocation3 + $0x70] sm:$0xf] %vm5182_vm1, %v5095_v20  ;;  %v11826_v26 = vsel %vm6603_vm5, %v11811_v48, 0.0  ;;  %v6176_v34 = vmul.f32 %v11666_v55, %v6014_v47  ;;  %3661 = vrot.lane.b32.xlu1 %v3486_v45, %s8797_s16  ;;  %v3506_v32 = vsel %vm8925_vm9, %v3501_v63, %v11822_v51  ;;  %v11866_v47 = vrot.slane %v4924_v4, 5 }
 0x35b   : > { %4099 = vrot.lane.b32.xlu0 %v3995_v11, %s8796_s15  ;;  %v11833_v2 = vadd.f32 %v11601_v24, %v11826_v26  ;;  %v8231_v58 = vpop.f32.mrf.mxu1  ;;  %v3992_v20 = vsel %vm8918_vm6, %v3990_v44, %v3991_v30  ;;  %v3996_v11 = vrot.slane %v3994_v38, 4  ;;  %v4928_v30 = vshrl.u32 %v11815_v52, 16  ;;  %v4544_v38 = vld [vmem:[#allocation2 + $0xb4] sm:$0xf]  ;;  %v4254_v4 = vld [vmem:[#allocation2 + $0xb0] sm:$0xf] }
 0x35c   : > { %v11838_v31 = vadd.f32 %v11686_v42, %v6176_v34  ;;  %v4371_v17 = vpop.permute.xlu1 %4370  ;;  %v6179_v23 = vmul.f32 %v11666_v55, %v8231_v58  ;;  %v4944_v52 = vshll.u32 %v4544_v38, 16 }
 0x35d   : > { %v5099_v41 = vpop.permute.xlu0 %5098  ;;  %v8595_v40 = vpop.eup %8594  ;;  %4486 = vst.msk [vmem:[#allocation3 + $0x74] sm:$0xf] %vm4456_vm0, %v4371_v17  ;;  %v4941_v17 = vor.u32 %v4940_v19, %v11849_v22  ;;  %v4930_v19 = vrot.slane %v4928_v30, 4  ;;  %v4253_v30 = vld [vmem:[#allocation2 + $0xac] sm:$0xf] }
 0x35e   : > { %5213 = vst.msk [vmem:[#allocation3 + $0x78] sm:$0xf] %vm5182_vm1, %v5099_v41  ;;  %v6017_v24 = vpop.f32.mrf.mxu1  ;;  %v11852_v10 = vmul.f32 %v8595_v40, %v11719_v13  ;;  %v7990_v37 = vmul.f32 -1.442695, %v11838_v31  ;;  %3665 = vrot.lane.b32.xlu1 %v3506_v32, %s8797_s16  ;;  %v11862_v63 = vadd.f32 %v11686_v42, %v6179_v23  ;;  %v13288_v13 = vrot.slane %v11840_v8, 5 }
 0x35f   : > { %4384 = vrot.lane.b32.xlu0 %v4252_v5, %s8795_s14  ;;  %v6177_v61 = vmul.f32 %v11666_v55, %v6017_v24  ;;  %v4927_v23 = vsel %vm8925_vm9, %v4922_v49, %v11866_v47  ;;  %v2055_v24 = vrot.slane %v2053_v36, 4  ;;  %v4942_v5 = vrot.slane %v4941_v17, 4 }
 0x360   : > { %v11870_v45 = vsel %vm6603_vm5, %v11852_v10, 0.0  ;;  %8596 = vpow2.f32 %v7990_v37  ;;  %v4375_v29 = vpop.permute.xlu1 %4374  ;;  %v7993_v44 = vmul.f32 -1.442695, %v11862_v63  ;;  %v3998_v40 = vsel %vm8918_vm6, %v3996_v11, %v13288_v13  ;;  %v1639_v37 = vld [vmem:[#allocation2 + $0xa8] sm:$0xf] }
 0x361   : > { %v5531_v57 = vpop.permute.xlu0 %5530  ;;  %v11875_v34 = vadd.f32 %v11571_v6, %v11870_v45  ;;  %v11879_v58 = vadd.f32 %v11686_v42, %v6177_v61  ;;  %4488 = vst.msk [vmem:[#allocation3 + $0x7c] sm:$0xf] %vm4456_vm0, %v4375_v29  ;;  %v4948_v32 = vshrl.u32 %v4544_v38, 16  ;;  %v4946_v11 = vrot.slane %v4944_v52, 5  ;;  %v1638_v61 = vld [vmem:[#allocation2 + $0xa4] sm:$0xf] }
 0x362   : > { %5647 = vst.msk [vmem:[#allocation3 + $0x70] sm:$0xf] %vm5618_vm4, %v5531_v57  ;;  %4097 = vrot.lane.b32.xlu1 %v3992_v20, %s8796_s15  ;;  %8598 = vpow2.f32 %v7993_v44  ;;  %v11898_v20 = vld [vmem:[#allocation2 + $0xac] sm:$0xf]  ;;  %v5438_v36 = vrot.slane %v5436_v18, 4  ;;  %v2056_v49 = vor.u32 %v2055_v24, %v11747_v60  ;;  %v2069_v44 = vshll.u32 %v1639_v37, 16 }
 0x363   : > { %4388 = vrot.lane.b32.xlu0 %v4254_v4, %s8795_s14  ;;  %v7991_v6 = vmul.f32 -1.442695, %v11879_v58  ;;  %v2073_v4 = vshrl.u32 %v1639_v37, 16  ;;  %v4947_v38 = vsel %vm8925_vm9, %v4942_v5, %v4946_v11  ;;  %v13290_v17 = vrot.slane %v11898_v20, 5  ;;  %v11909_v52 = vld [vmem:[#allocation2 + $0xb8] sm:$0xf] }
 0x364   : > { %v5097_v41 = vpop.permute.xlu1 %5096  ;;  %v4950_v59 = vrot.slane %v4948_v32, 4  ;;  %v2059_v18 = vshll.u32 %v1638_v61, 16  ;;  %v11913_v60 = vld [vmem:[#allocation2 + $0xb0] sm:$0xf]  ;;  %v4954_v24 = vshll.u32 %v11909_v52, 16  ;;  %v11916_v37 = vrot.slane %v2069_v44, 5 }
 0x365   : > { %v2198_v39 = vpop.permute.xlu0 %2197  ;;  %8600 = vpow2.f32 %v7991_v6  ;;  %5212 = vst.msk [vmem:[#allocation3 + $0x74] sm:$0xf] %vm5182_vm1, %v5097_v41  ;;  %v4931_v6 = vor.u32 %v4930_v19, %v11866_v47  ;;  %v2063_v41 = vshrl.u32 %v1638_v61, 16  ;;  %v1640_v5 = vld [vmem:[#allocation2 + $0xac] sm:$0xf]  ;;  %v2075_v47 = vrot.slane %v2073_v4, 4 }
 0x366   : > { %2310 = vst.msk [vmem:[#allocation3 + $0x80] sm:$0xf] %vm2277_vm10, %v2198_v39  ;;  %4101 = vrot.lane.b32.xlu1 %v3998_v40, %s8796_s15  ;;  %v4255_v32 = vld [vmem:[#allocation2 + $0xb4] sm:$0xf]  ;;  %v5440_v61 = vsel %vm8918_vm6, %v5438_v36, %v13290_v17  ;;  %v2061_v44 = vrot.slane %v2059_v18, 5  ;;  %v2079_v4 = vshll.u32 %v1640_v5, 16 }
 0x367   : > { %5110 = vrot.lane.b32.xlu0 %v4927_v23, %s8799_s18  ;;  %v2057_v23 = vrot.slane %v2056_v49, 4  ;;  %v5442_v49 = vrot.slane %v11913_v60, 5  ;;  %v11929_v36 = vrot.slane %v4954_v24, 5 }
 0x368   : > { %v5101_v29 = vpop.permute.xlu1 %5100 }
 0x369   : > { %v5535_v57 = vpop.permute.xlu0 %5534  ;;  %5214 = vst.msk [vmem:[#allocation3 + $0x7c] sm:$0xf] %vm5182_vm1, %v5101_v29  ;;  %v4932_v29 = vrot.slane %v4931_v6, 4  ;;  %v2062_v16 = vsel %vm8925_vm9, %v2057_v23, %v2061_v44  ;;  %v2076_v6 = vor.u32 %v2075_v47, %v11916_v37  ;;  %v11939_v47 = vld [vmem:[#allocation2 + $0xa8] sm:$0xf] }
 0x36a   : > { %5649 = vst.msk [vmem:[#allocation3 + $0x78] sm:$0xf] %vm5618_vm4, %v5535_v57  ;;  %4386 = vrot.lane.b32.xlu1 %v4253_v30, %s8795_s14  ;;  %v4951_v57 = vor.u32 %v4950_v59, %v4946_v11  ;;  %v5270_v11 = vld [vmem:[#allocation2 + $0xb4] sm:$0xf] }
 0x36b   : > { %5114 = vrot.lane.b32.xlu0 %v4947_v38, %s8799_s18  ;;  %v2065_v38 = vrot.slane %v2063_v41, 4  ;;  %v4937_v18 = vsel %vm8925_vm9, %v4932_v29, %v11849_v22  ;;  %v5444_v41 = vrot.slane %v5442_v49, 4  ;;  %v5445_v24 = vrot.slane %v5270_v11, 5  ;;  %v11954_v11 = vld [vmem:[#allocation2 + $0xac] sm:$0xf] }
 0x36c   : > { %v5533_v39 = vpop.permute.xlu1 %5532  ;;  %v4952_v60 = vrot.slane %v4951_v57, 4  ;;  %v13343_v29 = vrot.slane %v11898_v20, 5 }
 0x36d   : > { %v2202_v40 = vpop.permute.xlu0 %2201  ;;  %v8597_v19 = vpop.eup %8596  ;;  %5648 = vst.msk [vmem:[#allocation3 + $0x74] sm:$0xf] %vm5618_vm4, %v5533_v39  ;;  %v2066_v17 = vor.u32 %v2065_v38, %v2061_v44  ;;  %v5446_v22 = vsel %vm8918_vm6, %v5444_v41, %v5445_v24  ;;  %v2367_v38 = vld [vmem:[#allocation2 + $0xa4] sm:$0xf] }
 0x36e   : > { %2312 = vst.msk [vmem:[#allocation3 + $0x88] sm:$0xf] %vm2277_vm10, %v2202_v40  ;;  %v6423_v30 = vadd.f32 1.0, %v8597_v19  ;;  %4390 = vrot.lane.b32.xlu1 %v4255_v32, %s8795_s14  ;;  %v5441_v57 = vrot.slane %v13343_v29, 4 }
 0x36f   : > { %5546 = vrot.lane.b32.xlu0 %v5440_v61, %s8798_s17  ;;  %v8599_v39 = vpop.eup %8598 }
 0x370   : > { %8602 = vrcp.f32 %v6423_v30  ;;  %v2200_v40 = vpop.permute.xlu1 %2199  ;;  %v6426_v59 = vadd.f32 1.0, %v8599_v39  ;;  %v2081_v39 = vrot.slane %v2079_v4, 5  ;;  %v5443_v20 = vsel %vm8918_vm6, %v5441_v57, %v5442_v49 }
 0x371   : > { %v2637_v13 = vpop.permute.xlu0 %2636  ;;  %2311 = vst.msk [vmem:[#allocation3 + $0x84] sm:$0xf] %vm2277_vm10, %v2200_v40  ;;  %v2083_v40 = vshrl.u32 %v1640_v5, 16  ;;  %v2552_v5 = vrot.slane %v11939_v47, 5  ;;  %v2555_v49 = vrot.slane %v11954_v11, 5 }
 0x372   : > { %2749 = vst.msk [vmem:[#allocation3 + $0x80] sm:$0xf] %vm2716_vm11, %v2637_v13  ;;  %v8601_v19 = vpop.eup %8600  ;;  %5112 = vrot.lane.b32.xlu1 %v4937_v18, %s8799_s18  ;;  %8604 = vrcp.f32 %v6426_v59  ;;  %v2077_v13 = vrot.slane %v2076_v6, 4  ;;  %v2067_v18 = vrot.slane %v2066_v17, 4 }
 0x373   : > { %2213 = vrot.lane.b32.xlu0 %v2062_v16, %s8793_s30  ;;  %v6424_v23 = vadd.f32 1.0, %v8601_v19  ;;  %v4957_v16 = vsel %vm8925_vm9, %v4952_v60, %v11929_v36  ;;  %v2085_v6 = vrot.slane %v2083_v40, 4  ;;  %v13344_v60 = vrot.slane %v11759_v53, 5  ;;  %v11964_v19 = vld [vmem:[#allocation2 + $0xb8] sm:$0xf] }
 0x374   : > { %v5537_v32 = vpop.permute.xlu1 %5536  ;;  %v8362_v30 = vld [vmem:[#allocation3 + $0x70] sm:$0xff]   ;;  %v2082_v59 = vsel %vm8925_vm9, %v2077_v13, %v2081_v39  ;;  %v5447_v40 = vrot.slane %v5445_v24, 4 }
 0x375   : > { %v2641_v61 = vpop.permute.xlu0 %2640  ;;  %8606 = vrcp.f32 %v6424_v23  ;;  %5650 = vst.msk [vmem:[#allocation3 + $0x7c] sm:$0xf] %vm5618_vm4, %v5537_v32  ;;  %8244 = vmatprep.mubr.msk.bf16.mxu1 %vm5855_vm2, %v8362_v30  ;;  %v2548_v41 = vrot.slane %v13344_v60, 4  ;;  %v3507_v23 = vshrl.u32 %v11795_v15, 16  ;;  %v2549_v32 = vrot.slane %v2367_v38, 5 }
 0x376   : > { %2751 = vst.msk [vmem:[#allocation3 + $0x88] sm:$0xf] %vm2716_vm11, %v2641_v61  ;;  %5116 = vrot.lane.b32.xlu1 %v4957_v16, %s8799_s18  ;;  %v2554_v61 = vrot.slane %v2552_v5, 4  ;;  %v11972_v30 = vld [vmem:[#allocation2 + $0xb0] sm:$0xf]  ;;  %v13292_v16 = vrot.slane %v11964_v19, 5  ;;  %v2072_v15 = vsel %vm8925_vm9, %v2067_v18, %v11916_v37 }
 0x377   : > { %5550 = vrot.lane.b32.xlu0 %v5446_v22, %s8798_s17  ;;  %v2086_v22 = vor.u32 %v2085_v6, %v2081_v39  ;;  %v2550_v57 = vsel %vm8918_vm6, %v2548_v41, %v2549_v32  ;;  %v3096_v24 = vld [vmem:[#allocation2 + $0xb4] sm:$0xf]  ;;  %v2089_v37 = vshll.u32 %v11972_v30, 16  ;;  %v3509_v38 = vrot.slane %v3507_v23, 4 }
 0x378   : > { %v2204_v4 = vpop.permute.xlu1 %2203  ;;  %v5449_v60 = vsel %vm8918_vm6, %v5447_v40, %v13292_v16 }
 0x379   : > { %v2926_v44 = vpop.permute.xlu0 %2925  ;;  %2313 = vst.msk [vmem:[#allocation3 + $0x8c] sm:$0xf] %vm2277_vm10, %v2204_v4  ;;  %v2556_v4 = vsel %vm8918_vm6, %v2554_v61, %v2555_v49  ;;  %v2087_v41 = vrot.slane %v2086_v22, 4 }
 0x37a   : > { %3038 = vst.msk [vmem:[#allocation3 + $0x80] sm:$0xf] %vm3005_vm12, %v2926_v44  ;;  %5548 = vrot.lane.b32.xlu1 %v5443_v20, %s8798_s17 }
 0x37b   : > { %2217 = vrot.lane.b32.xlu0 %v2082_v59, %s8793_s30 }
 0x37c   : > { %v2639_v13 = vpop.permute.xlu1 %2638  ;;  %v8363_v53 = vld [vmem:[#allocation3 + $0x78] sm:$0xff]   ;;  %v8234_v39 = vpop.f32.mrf.mxu1 }
 0x37d   : > { %v2930_v17 = vpop.permute.xlu0 %2929  ;;  %v8603_v29 = vpop.eup %8602  ;;  %2750 = vst.msk [vmem:[#allocation3 + $0x84] sm:$0xf] %vm2716_vm11, %v2639_v13  ;;  %8245 = vmatmul.mubr.msk.bf16.gmra.mxu1 %vm5855_vm2, %v8363_v53  ;;  %v6182_v20 = vmul.f32 %v11666_v55, %v8234_v39  ;;  %v3523_v13 = vshll.u32 %v3096_v24, 16  ;;  %v3527_v53 = vshrl.u32 %v3096_v24, 16  ;;  %v12022_v24 = vrot.slane %v2089_v37, 5 }
 0x37e   : > { %3040 = vst.msk [vmem:[#allocation3 + $0x88] sm:$0xf] %vm3005_vm12, %v2930_v17  ;;  %v11983_v44 = vmul.f32 %v8603_v29, %v11838_v31  ;;  %2215 = vrot.lane.b32.xlu1 %v2072_v15, %s8793_s30  ;;  %v6030_v17 = vpop.f32.mrf.mxu1  ;;  %v3510_v39 = vor.u32 %v3509_v38, %v11822_v51  ;;  %v2805_v51 = vld [vmem:[#allocation2 + $0xac] sm:$0xf] }
 0x37f   : > { %2652 = vrot.lane.b32.xlu0 %v2550_v57, %s8792_s29  ;;  %v8605_v6 = vpop.eup %8604  ;;  %v12010_v15 = vadd.f32 %v11686_v42, %v6182_v20  ;;  %v6180_v40 = vmul.f32 %v11666_v55, %v6030_v17  ;;  %v2092_v37 = vsel %vm8925_vm9, %v2087_v41, %v12022_v24  ;;  %v12042_v38 = vrot.slane %v3523_v13, 5  ;;  %v12054_v41 = vld [vmem:[#allocation2 + $0xb0] sm:$0xf] }
 0x380   : > { %v11995_v31 = vsel %vm6603_vm5, %v11983_v44, 0.0  ;;  %v2643_v18 = vpop.permute.xlu1 %2642  ;;  %v12005_v23 = vmul.f32 %v8605_v6, %v11862_v63  ;;  %v8235_v57 = vpop.f32.mrf.mxu1  ;;  %v13291_v47 = vrot.slane %v12054_v41, 5 }
 0x381   : > { %v3652_v59 = vpop.permute.xlu0 %3651  ;;  %v6767_v61 = vadd.f32 %v11875_v34, %v11995_v31  ;;  %2752 = vst.msk [vmem:[#allocation3 + $0x8c] sm:$0xf] %vm2716_vm11, %v2643_v18  ;;  %v2551_v34 = vrot.slane %v2549_v32, 4  ;;  %v7996_v20 = vmul.f32 -1.442695, %v12010_v15  ;;  %v6183_v32 = vmul.f32 %v11666_v55, %v8235_v57 }
 0x382   : > { %3764 = vst.msk [vmem:[#allocation3 + $0x80] sm:$0xf] %vm3731_vm14, %v3652_v59  ;;  %v8607_v29 = vpop.eup %8606  ;;  %5552 = vrot.lane.b32.xlu1 %v5449_v60, %s8798_s17  ;;  %v12017_v63 = vsel %vm6603_vm5, %v12005_v23, 0.0  ;;  %v3095_v60 = vld [vmem:[#allocation2 + $0xb0] sm:$0xf] }
 0x383   : > { %2656 = vrot.lane.b32.xlu0 %v2556_v4, %s8792_s29  ;;  %v12020_v22 = vmul.f32 %v8607_v29, %v11879_v58  ;;  %v12026_v6 = vadd.f32 %v6767_v61, %v12017_v63  ;;  %v12030_v4 = vadd.f32 %v11686_v42, %v6180_v40  ;;  %v3529_v61 = vrot.slane %v3527_v53, 4  ;;  %v3097_v29 = vld [vmem:[#allocation2 + $0xb8] sm:$0xf] }
 0x384   : > { %v2928_v18 = vpop.permute.xlu1 %2927  ;;  %8608 = vpow2.f32 %v7996_v20  ;;  %v12052_v40 = vadd.f32 %v11686_v42, %v6183_v32  ;;  %v3513_v57 = vshll.u32 %v3095_v60, 16  ;;  %v3517_v20 = vshrl.u32 %v3095_v60, 16  ;;  %v2807_v42 = vld [vmem:[#allocation2 + $0xb4] sm:$0xf] }
 0x385   : > { %13345 = vst [vmem:[#allocation8_spill] sm:$0xff] %v12020_v22  ;;  %v3656_v59 = vpop.permute.xlu0 %3655  ;;  %v12035_v58 = vsel %vm6603_vm5, %v12020_v22, 0.0  ;;  %3039 = vst.msk [vmem:[#allocation3 + $0x84] sm:$0xf] %vm3005_vm12, %v2928_v18  ;;  %v7994_v17 = vmul.f32 -1.442695, %v12030_v4 }
 0x386   : > { %3766 = vst.msk [vmem:[#allocation3 + $0x88] sm:$0xf] %vm3731_vm14, %v3656_v59  ;;  %v12046_v55 = vadd.f32 %v11833_v2, %v12035_v58  ;;  %2219 = vrot.lane.b32.xlu1 %v2092_v37, %s8793_s30  ;;  %v2553_v2 = vsel %vm8918_vm6, %v2551_v34, %v2552_v5  ;;  %v2557_v59 = vrot.slane %v2555_v49, 4  ;;  %v7997_v18 = vmul.f32 -1.442695, %v12052_v40 }
 0x387   : > { %2941 = vrot.lane.b32.xlu0 %v2805_v51, %s8794_s13  ;;  %8610 = vpow2.f32 %v7994_v17  ;;  %v3511_v32 = vrot.slane %v3510_v39, 4  ;;  %v3530_v51 = vor.u32 %v3529_v61, %v12042_v38  ;;  %v3533_v37 = vshll.u32 %v3097_v29, 16  ;;  %v12073_v39 = vld [vmem:[#allocation2 + $0xb4] sm:$0xf] }
 0x388   : > { %v2932_v53 = vpop.permute.xlu1 %2931  ;;  %8612 = vpow2.f32 %v7997_v18  ;;  %v3515_v5 = vrot.slane %v3513_v57, 5  ;;  %v2559_v34 = vsel %vm8918_vm6, %v2557_v59, %v13291_v47  ;;  %v3537_v60 = vshrl.u32 %v3097_v29, 16  ;;  %v3821_v59 = vld [vmem:[#allocation2 + $0xb0] sm:$0xf]  ;;  %v12082_v18 = vld [vmem:[#allocation2 + $0xb8] sm:$0xf] }
 0x389   : > { %v4088_v13 = vpop.permute.xlu0 %4087  ;;  %3041 = vst.msk [vmem:[#allocation3 + $0x8c] sm:$0xf] %vm3005_vm12, %v2932_v53  ;;  %v3531_v17 = vrot.slane %v3530_v51, 4  ;;  %v3519_v57 = vrot.slane %v3517_v20, 4  ;;  %v13293_v53 = vrot.slane %v12073_v39, 5  ;;  %v13346_v51 = vrot.slane %v11840_v8, 5 }
 0x38a   : > { %4200 = vst.msk [vmem:[#allocation3 + $0x80] sm:$0xf] %vm4167_vm15, %v4088_v13  ;;  %2654 = vrot.lane.b32.xlu1 %v2553_v2, %s8792_s29  ;;  %v3516_v61 = vsel %vm8925_vm9, %v3511_v32, %v3515_v5  ;;  %v3535_v13 = vrot.slane %v3533_v37, 5  ;;  %v2806_v20 = vld [vmem:[#allocation2 + $0xb0] sm:$0xf] }
 0x38b   : > { %2945 = vrot.lane.b32.xlu0 %v2807_v42, %s8794_s13  ;;  %v3539_v42 = vrot.slane %v3537_v60, 4  ;;  %v3999_v37 = vrot.slane %v13346_v51, 4  ;;  %v4000_v60 = vrot.slane %v3821_v59, 5 }
 0x38c   : > { %v3654_v49 = vpop.permute.xlu1 %3653  ;;  %v3536_v32 = vsel %vm8925_vm9, %v3531_v17, %v3535_v13  ;;  %v4958_v17 = vshrl.u32 %v11909_v52, 16  ;;  %v4547_v52 = vld [vmem:[#allocation2 + $0xc0] sm:$0xf] }
 0x38d   : > { %v4092_v11 = vpop.permute.xlu0 %4091  ;;  %3765 = vst.msk [vmem:[#allocation3 + $0x84] sm:$0xf] %vm3731_vm14, %v3654_v49  ;;  %v12090_v49 = vld [vmem:[#allocation2 + $0xbc] sm:$0xf]  ;;  %v3540_v51 = vor.u32 %v3539_v42, %v3535_v13  ;;  %v4001_v59 = vsel %vm8918_vm6, %v3999_v37, %v4000_v60 }
 0x38e   : > { %4202 = vst.msk [vmem:[#allocation3 + $0x88] sm:$0xf] %vm4167_vm15, %v4092_v11  ;;  %2658 = vrot.lane.b32.xlu1 %v2559_v34, %s8792_s29  ;;  %v3520_v11 = vor.u32 %v3519_v57, %v3515_v5  ;;  %v3543_v5 = vshll.u32 %v12090_v49, 16  ;;  %v4960_v37 = vrot.slane %v4958_v17, 4  ;;  %v4002_v17 = vrot.slane %v4000_v60, 4 }
 0x38f   : > { %3667 = vrot.lane.b32.xlu0 %v3516_v61, %s8797_s16  ;;  %v4005_v61 = vrot.slane %v13293_v53, 4  ;;  %v2093_v60 = vshrl.u32 %v11972_v30, 16 }
 0x390   : > { %v3658_v29 = vpop.permute.xlu1 %3657  ;;  %v12107_v16 = vrot.slane %v3543_v5, 5 }
 0x391   : > { %v4377_v2 = vpop.permute.xlu0 %4376  ;;  %3767 = vst.msk [vmem:[#allocation3 + $0x8c] sm:$0xf] %vm3731_vm14, %v3658_v29  ;;  %v8609_v34 = vpop.eup %8608 }
 0x392   : > { %4489 = vst.msk [vmem:[#allocation3 + $0x80] sm:$0xf] %vm4456_vm0, %v4377_v2  ;;  %2943 = vrot.lane.b32.xlu1 %v2806_v20, %s8794_s13  ;;  %v4006_v2 = vrot.slane %v12082_v18, 5  ;;  %v6429_v29 = vadd.f32 1.0, %v8609_v34  ;;  %v3521_v20 = vrot.slane %v3520_v11, 4 }
 0x393   : > { %3671 = vrot.lane.b32.xlu0 %v3536_v32, %s8797_s16  ;;  %v2808_v32 = vld [vmem:[#allocation2 + $0xb8] sm:$0xf] }
 0x394   : > { %v4090_v47 = vpop.permute.xlu1 %4089  ;;  %v8611_v57 = vpop.eup %8610  ;;  %8614 = vrcp.f32 %v6429_v29  ;;  %v4007_v13 = vsel %vm8918_vm6, %v4005_v61, %v4006_v2  ;;  %v3526_v11 = vsel %vm8925_vm9, %v3521_v20, %v12042_v38  ;;  %v4546_v29 = vld [vmem:[#allocation2 + $0xbc] sm:$0xf]  ;;  %v4978_v61 = vshrl.u32 %v4547_v52, 16 }
 0x395   : > { %v4381_v8 = vpop.permute.xlu0 %4380  ;;  %4201 = vst.msk [vmem:[#allocation3 + $0x84] sm:$0xf] %vm4167_vm15, %v4090_v47  ;;  %v6427_v18 = vadd.f32 1.0, %v8611_v57  ;;  %v8613_v42 = vpop.eup %8612  ;;  %v4974_v57 = vshll.u32 %v4547_v52, 16  ;;  %v12121_v20 = vld [vmem:[#allocation2 + $0xbc] sm:$0xf] }
 0x396   : > { %4491 = vst.msk [vmem:[#allocation3 + $0x88] sm:$0xf] %vm4456_vm0, %v4381_v8  ;;  %2947 = vrot.lane.b32.xlu1 %v2808_v32, %s8794_s13  ;;  %v3541_v8 = vrot.slane %v3540_v51, 4  ;;  %v6430_v53 = vadd.f32 1.0, %v8613_v42  ;;  %v4256_v32 = vld [vmem:[#allocation2 + $0xb8] sm:$0xf] }
 0x397   : > { %4103 = vrot.lane.b32.xlu0 %v4001_v59, %s8796_s15  ;;  %8616 = vrcp.f32 %v6427_v18  ;;  %v4964_v59 = vshll.u32 %v4546_v29, 16  ;;  %v4961_v18 = vor.u32 %v4960_v37, %v11929_v36  ;;  %v12124_v52 = vrot.slane %v4974_v57, 5  ;;  %v4258_v57 = vld [vmem:[#allocation2 + $0xc0] sm:$0xf] }
 0x398   : > { %v4094_v47 = vpop.permute.xlu1 %4093  ;;  %8618 = vrcp.f32 %v6430_v53  ;;  %v3546_v38 = vsel %vm8925_vm9, %v3541_v8, %v12107_v16  ;;  %v4980_v53 = vrot.slane %v4978_v61, 4  ;;  %v4548_v8 = vld [vmem:[#allocation2 + $0xc4] sm:$0xf]  ;;  %v13347_v36 = vrot.slane %v12073_v39, 5 }
 0x399   : > { %v5103_v34 = vpop.permute.xlu0 %5102  ;;  %4203 = vst.msk [vmem:[#allocation3 + $0x8c] sm:$0xf] %vm4167_vm15, %v4094_v47  ;;  %v4008_v47 = vrot.slane %v4006_v2, 4  ;;  %v4962_v61 = vrot.slane %v4961_v18, 4 }
 0x39a   : > { %5215 = vst.msk [vmem:[#allocation3 + $0x80] sm:$0xf] %vm5182_vm1, %v5103_v34  ;;  %3669 = vrot.lane.b32.xlu1 %v3526_v11, %s8797_s16  ;;  %v13294_v34 = vrot.slane %v12121_v20, 5  ;;  %v4968_v11 = vshrl.u32 %v4546_v29, 16  ;;  %v4004_v37 = vsel %vm8918_vm6, %v4002_v17, %v13347_v36  ;;  %v4981_v30 = vor.u32 %v4980_v53, %v12124_v52 }
 0x39b   : > { %4107 = vrot.lane.b32.xlu0 %v4007_v13, %s8796_s15  ;;  %v4984_v29 = vshll.u32 %v4548_v8, 16  ;;  %v4988_v53 = vshrl.u32 %v4548_v8, 16 }
 0x39c   : > { %v4379_v51 = vpop.permute.xlu1 %4378  ;;  %v4970_v17 = vrot.slane %v4968_v11, 4 }
 0x39d   : > { %v5107_v5 = vpop.permute.xlu0 %5106  ;;  %4490 = vst.msk [vmem:[#allocation3 + $0x84] sm:$0xf] %vm4456_vm0, %v4379_v51  ;;  %v4966_v51 = vrot.slane %v4964_v59, 5  ;;  %v4010_v59 = vsel %vm8918_vm6, %v4008_v47, %v13294_v34  ;;  %v4986_v8 = vrot.slane %v4984_v29, 5 }
 0x39e   : > { %5217 = vst.msk [vmem:[#allocation3 + $0x88] sm:$0xf] %vm5182_vm1, %v5107_v5  ;;  %3673 = vrot.lane.b32.xlu1 %v3546_v38, %s8797_s16  ;;  %v2095_v5 = vrot.slane %v2093_v60, 4  ;;  %v1643_v60 = vld [vmem:[#allocation2 + $0xb8] sm:$0xf] }
 0x39f   : > { %4392 = vrot.lane.b32.xlu0 %v4256_v32, %s8795_s14  ;;  %v4967_v18 = vsel %vm8925_vm9, %v4962_v61, %v4966_v51 }
 0x3a0   : > { %v4383_v13 = vpop.permute.xlu1 %4382 }
 0x3a1   : > { %v5539_v42 = vpop.permute.xlu0 %5538  ;;  %4492 = vst.msk [vmem:[#allocation3 + $0x8c] sm:$0xf] %vm4456_vm0, %v4383_v13  ;;  %v8615_v2 = vpop.eup %8614  ;;  %v12142_v13 = vld [vmem:[#allocation2 + $0xbc] sm:$0xf] }
 0x3a2   : > { %5651 = vst.msk [vmem:[#allocation3 + $0x80] sm:$0xf] %vm5618_vm4, %v5539_v42  ;;  %4105 = vrot.lane.b32.xlu1 %v4004_v37, %s8796_s15  ;;  %v12140_v32 = vmul.f32 %v8615_v2, %v12010_v15  ;;  %v4982_v15 = vrot.slane %v4981_v30, 4  ;;  %v13349_v37 = vrot.slane %v11964_v19, 5  ;;  %v13298_v61 = vrot.slane %v12142_v13, 5 }
 0x3a3   : > { %4396 = vrot.lane.b32.xlu0 %v4258_v57, %s8795_s14  ;;  %v1642_v30 = vld [vmem:[#allocation2 + $0xb4] sm:$0xf]  ;;  %v2096_v2 = vor.u32 %v2095_v5, %v12022_v24  ;;  %v2109_v19 = vshll.u32 %v1643_v60, 16  ;;  %v4257_v24 = vld [vmem:[#allocation2 + $0xbc] sm:$0xf] }
 0x3a4   : > { %v5105_v38 = vpop.permute.xlu1 %5104  ;;  %v8617_v42 = vpop.eup %8616  ;;  %v12154_v36 = vsel %vm6603_vm5, %v12140_v32, 0.0  ;;  %v5450_v47 = vrot.slane %v13349_v37, 4  ;;  %v4987_v5 = vsel %vm8925_vm9, %v4982_v15, %v4986_v8  ;;  %v4990_v37 = vrot.slane %v4988_v53, 4 }
 0x3a5   : > { %v2206_v39 = vpop.permute.xlu0 %2205  ;;  %5216 = vst.msk [vmem:[#allocation3 + $0x84] sm:$0xf] %vm5182_vm1, %v5105_v38  ;;  %v12157_v11 = vmul.f32 %v8617_v42, %v12030_v4  ;;  %v12165_v57 = vadd.f32 %v12026_v6, %v12154_v36  ;;  %v8619_v38 = vpop.eup %8618  ;;  %v2103_v15 = vshrl.u32 %v1642_v30, 16 }
 0x3a6   : > { %2314 = vst.msk [vmem:[#allocation3 + $0x90] sm:$0xf] %vm2277_vm10, %v2206_v39  ;;  %4109 = vrot.lane.b32.xlu1 %v4010_v59, %s8796_s15  ;;  %v4971_v59 = vor.u32 %v4970_v17, %v4966_v51  ;;  %v12176_v29 = vmul.f32 %v8619_v38, %v12052_v40  ;;  %v2099_v51 = vshll.u32 %v1642_v30, 16  ;;  %v12184_v17 = vld [vmem:[#allocation2 + $0xc8] sm:$0xf]  ;;  %v4991_v22 = vor.u32 %v4990_v37, %v4986_v8 }
 0x3a7   : > { %13348 = vst [vmem:[#allocation9_spill] sm:$0xff] %v12157_v11  ;;  %5118 = vrot.lane.b32.xlu0 %v4967_v18, %s8799_s18  ;;  %v12171_v4 = vsel %vm6603_vm5, %v12157_v11, 0.0  ;;  %v2113_v18 = vshrl.u32 %v1643_v60, 16  ;;  %v5452_v60 = vsel %vm8918_vm6, %v5450_v47, %v13298_v61  ;;  %v4994_v47 = vshll.u32 %v12184_v17, 16 }
 0x3a8   : > { %v5109_v39 = vpop.permute.xlu1 %5108  ;;  %v6783_v6 = vadd.f32 %v12046_v55, %v12171_v4  ;;  %13350 = vst [vmem:[#allocation10_spill] sm:$0xff] %v12176_v29  ;;  %v12186_v55 = vld [vmem:[#allocation2 + $0xc0] sm:$0xf]  ;;  %v12190_v40 = vsel %vm6603_vm5, %v12176_v29, 0.0  ;;  %v4259_v29 = vld [vmem:[#allocation2 + $0xc4] sm:$0xf] }
 0x3a9   : > { %v5543_v42 = vpop.permute.xlu0 %5542  ;;  %5218 = vst.msk [vmem:[#allocation3 + $0x8c] sm:$0xf] %vm5182_vm1, %v5109_v39  ;;  %v2115_v34 = vrot.slane %v2113_v18, 4  ;;  %v4972_v11 = vrot.slane %v4971_v59, 4  ;;  %v5454_v30 = vrot.slane %v12186_v55, 5  ;;  %v2105_v59 = vrot.slane %v2103_v15, 4 }
 0x3aa   : > { %5653 = vst.msk [vmem:[#allocation3 + $0x88] sm:$0xf] %vm5618_vm4, %v5543_v42  ;;  %4394 = vrot.lane.b32.xlu1 %v4257_v24, %s8795_s14  ;;  %v12197_v53 = vadd.f32 %v6783_v6, %v12190_v40  ;;  %v2097_v42 = vrot.slane %v2096_v2, 4  ;;  %v1644_v24 = vld [vmem:[#allocation2 + $0xbc] sm:$0xf]  ;;  %v2101_v2 = vrot.slane %v2099_v51, 5 }
 0x3ab   : > { %5122 = vrot.lane.b32.xlu0 %v4987_v5, %s8799_s18  ;;  %v12199_v5 = vrot.slane %v2109_v19, 5  ;;  %v2119_v61 = vshll.u32 %v1644_v24, 16  ;;  %v4977_v8 = vsel %vm8925_vm9, %v4972_v11, %v12124_v52  ;;  %v12215_v37 = vrot.slane %v4994_v47, 5 }
 0x3ac   : > { %v5541_v38 = vpop.permute.xlu1 %5540  ;;  %v2102_v18 = vsel %vm8925_vm9, %v2097_v42, %v2101_v2  ;;  %v5456_v51 = vrot.slane %v5454_v30, 4  ;;  %v2106_v48 = vor.u32 %v2105_v59, %v2101_v2  ;;  %v13351_v11 = vrot.slane %v12142_v13, 5 }
 0x3ad   : > { %v2210_v39 = vpop.permute.xlu0 %2209  ;;  %5652 = vst.msk [vmem:[#allocation3 + $0x84] sm:$0xf] %vm5618_vm4, %v5541_v38  ;;  %v5274_v38 = vld [vmem:[#allocation2 + $0xc4] sm:$0xf]  ;;  %v13352_v59 = vrot.slane %v12054_v41, 5 }
 0x3ae   : > { %2316 = vst.msk [vmem:[#allocation3 + $0x98] sm:$0xf] %vm2277_vm10, %v2210_v39  ;;  %4398 = vrot.lane.b32.xlu1 %v4259_v29, %s8795_s14  ;;  %v2116_v39 = vor.u32 %v2115_v34, %v12199_v5  ;;  %v4992_v29 = vrot.slane %v4991_v22, 4  ;;  %v5457_v55 = vrot.slane %v5274_v38, 5  ;;  %v12219_v34 = vld [vmem:[#allocation2 + $0xb8] sm:$0xf] }
 0x3af   : > { %5554 = vrot.lane.b32.xlu0 %v5452_v60, %s8798_s17  ;;  %v5453_v47 = vrot.slane %v13351_v11, 4  ;;  %v1645_v41 = vld [vmem:[#allocation2 + $0xc0] sm:$0x1] }
 0x3b0   : > { %v2208_v6 = vpop.permute.xlu1 %2207  ;;  %v4997_v22 = vsel %vm8925_vm9, %v4992_v29, %v12215_v37  ;;  %v5458_v52 = vsel %vm8918_vm6, %v5456_v51, %v5457_v55  ;;  %v12236_v29 = vld [vmem:[#allocation2 + $0xbc] sm:$0xf]  ;;  %v2107_v51 = vrot.slane %v2106_v48, 4  ;;  %v5459_v48 = vrot.slane %v5457_v55, 4  ;;  %v3100_v55 = vld [vmem:[#allocation2 + $0xc4] sm:$0xf] }
 0x3b1   : > { %v2645_v19 = vpop.permute.xlu0 %2644  ;;  %2315 = vst.msk [vmem:[#allocation3 + $0x94] sm:$0xf] %vm2277_vm10, %v2208_v6  ;;  %v2117_v6 = vrot.slane %v2116_v39, 4  ;;  %v2371_v39 = vld [vmem:[#allocation2 + $0xb4] sm:$0xf]  ;;  %v5455_v13 = vsel %vm8918_vm6, %v5453_v47, %v5454_v30  ;;  %v3547_v30 = vshrl.u32 %v12090_v49, 16 }
 0x3b2   : > { %2753 = vst.msk [vmem:[#allocation3 + $0x90] sm:$0xf] %vm2716_vm11, %v2645_v19  ;;  %5120 = vrot.lane.b32.xlu1 %v4977_v8, %s8799_s18  ;;  %v2121_v19 = vrot.slane %v2119_v61, 5  ;;  %v13302_v61 = vrot.slane %v12219_v34, 5  ;;  %v2560_v8 = vrot.slane %v13352_v59, 4  ;;  %v2129_v59 = vshll.u32 %v1645_v41, 16 }
 0x3b3   : > { %2221 = vrot.lane.b32.xlu0 %v2102_v18, %s8793_s30  ;;  %v2123_v18 = vshrl.u32 %v1644_v24, 16 }
 0x3b4   : > { %v5545_v60 = vpop.permute.xlu1 %5544  ;;  %v8364_v42 = vld [vmem:[#allocation3 + $0x80] sm:$0xff]   ;;  %v2122_v24 = vsel %vm8925_vm9, %v2117_v6, %v2121_v19 }
 0x3b5   : > { %v2649_v15 = vpop.permute.xlu0 %2648  ;;  %5654 = vst.msk [vmem:[#allocation3 + $0x8c] sm:$0xf] %vm5618_vm4, %v5545_v60  ;;  %8248 = vmatprep.mubr.msk.bf16.mxu1 %vm5855_vm2, %v8364_v42  ;;  %v12244_v60 = vld [vmem:[#allocation2 + $0xc8] sm:$0xf]  ;;  %v2561_v42 = vrot.slane %v2371_v39, 5 }
 0x3b6   : > { %2755 = vst.msk [vmem:[#allocation3 + $0x98] sm:$0xf] %vm2716_vm11, %v2649_v15  ;;  %5124 = vrot.lane.b32.xlu1 %v4997_v22, %s8799_s18  ;;  %v2125_v15 = vrot.slane %v2123_v18, 4  ;;  %v2566_v22 = vrot.slane %v13302_v61, 4  ;;  %v12253_v18 = vpop.f32.mrf.mxu1 }
 0x3b7   : > { %5558 = vrot.lane.b32.xlu0 %v5458_v52, %s8798_s17  ;;  %v13301_v52 = vrot.slane %v12236_v29, 5  ;;  %v2562_v39 = vsel %vm8918_vm6, %v2560_v8, %v2561_v42 }
 0x3b8   : > { %v2212_v38 = vpop.permute.xlu1 %2211  ;;  %v2126_v49 = vor.u32 %v2125_v15, %v2121_v19  ;;  %v3549_v15 = vrot.slane %v3547_v30, 4 }
 0x3b9   : > { %v2934_v2 = vpop.permute.xlu0 %2933  ;;  %2317 = vst.msk [vmem:[#allocation3 + $0x9c] sm:$0xf] %vm2277_vm10, %v2212_v38  ;;  %v2112_v38 = vsel %vm8925_vm9, %v2107_v51, %v12199_v5  ;;  %v2568_v8 = vsel %vm8918_vm6, %v2566_v22, %v13301_v52 }
 0x3ba   : > { %3042 = vst.msk [vmem:[#allocation3 + $0x90] sm:$0xf] %vm3005_vm12, %v2934_v2  ;;  %5556 = vrot.lane.b32.xlu1 %v5455_v13, %s8798_s17  ;;  %v13300_v2 = vrot.slane %v12244_v60, 5 }
 0x3bb   : > { %2225 = vrot.lane.b32.xlu0 %v2122_v24, %s8793_s30  ;;  %v12268_v24 = vld [vmem:[%s13279_s4] ss:$0 sm:$0xff] }
 0x3bc   : > { %v2647_v47 = vpop.permute.xlu1 %2646  ;;  %v8365_v6 = vld [vmem:[#allocation3 + $0x88] sm:$0xff]   ;;  %v5461_v19 = vsel %vm8918_vm6, %v5459_v48, %v13300_v2  ;;  %v12286_v48 = vld [vmem:[%s13280_s5] ss:$0 sm:$0xff]  ;;  %v2809_v2 = vld [vmem:[#allocation2 + $0xbc] sm:$0xf] }
 0x3bd   : > { %v2938_v11 = vpop.permute.xlu0 %2937  ;;  %2754 = vst.msk [vmem:[#allocation3 + $0x94] sm:$0xf] %vm2716_vm11, %v2647_v47  ;;  %v8238_v13 = vpop.f32.mrf.mxu1  ;;  %8249 = vmatmul.mubr.msk.bf16.gmra.mxu1 %vm5855_vm2, %v8365_v6  ;;  %v2127_v47 = vrot.slane %v2126_v49, 4  ;;  %v2131_v6 = vrot.slane %v2129_v59, 5 }
 0x3be   : > { %3044 = vst.msk [vmem:[#allocation3 + $0x98] sm:$0xf] %vm3005_vm12, %v2938_v11  ;;  %2223 = vrot.lane.b32.xlu1 %v2112_v38, %s8793_s30  ;;  %v6186_v5 = vmul.f32 %v12268_v24, %v8238_v13  ;;  %v3563_v38 = vshll.u32 %v3100_v55, 16 }
 0x3bf   : > { %2660 = vrot.lane.b32.xlu0 %v2562_v39, %s8792_s29  ;;  %v12281_v41 = vpop.f32.mrf.mxu1  ;;  %v3567_v39 = vshrl.u32 %v3100_v55, 16  ;;  %v3099_v55 = vld [vmem:[#allocation2 + $0xc0] sm:$0xf] }
 0x3c0   : > { %v2651_v11 = vpop.permute.xlu1 %2650  ;;  %v12289_v13 = vadd.f32 %v12286_v48, %v6186_v5  ;;  %v2132_v5 = vsel %vm8925_vm9, %v2127_v47, %v2131_v6  ;;  %v12301_v52 = vrot.slane %v3563_v38, 5  ;;  %v13354_v6 = vrot.slane %v12236_v29, 5 }
 0x3c1   : > { %v3660_v51 = vpop.permute.xlu0 %3659  ;;  %2756 = vst.msk [vmem:[#allocation3 + $0x9c] sm:$0xf] %vm2716_vm11, %v2651_v11  ;;  %v12293_v22 = vpop.f32.mrf.mxu1  ;;  %v3569_v61 = vrot.slane %v3567_v39, 4 }
 0x3c2   : > { %3768 = vst.msk [vmem:[#allocation3 + $0x90] sm:$0xf] %vm3731_vm14, %v3660_v51  ;;  %5560 = vrot.lane.b32.xlu1 %v5461_v19, %s8798_s17  ;;  %v8000_v30 = vmul.f32 -1.442695, %v12289_v13  ;;  %v2563_v51 = vrot.slane %v2561_v42, 4  ;;  %v3550_v19 = vor.u32 %v3549_v15, %v12107_v16  ;;  %v13353_v16 = vrot.slane %v12219_v34, 5 }
 0x3c3   : > { %2664 = vrot.lane.b32.xlu0 %v2568_v8, %s8792_s29  ;;  %v6049_v11 = vpop.f32.mrf.mxu1  ;;  %v2374_v8 = vld [vmem:[#allocation2 + $0xc0] sm:$0x1]  ;;  %v3101_v42 = vld [vmem:[#allocation2 + $0xc8] sm:$0xf]  ;;  %v2569_v38 = vrot.slane %v13354_v6, 4 }
 0x3c4   : > { %v2936_v59 = vpop.permute.xlu1 %2935  ;;  %8620 = vpow2.f32 %v8000_v30  ;;  %v6185_v46 = vmul.f32 %v12268_v24, %v6049_v11  ;;  %v2565_v15 = vsel %vm8918_vm6, %v2563_v51, %v13353_v16  ;;  %v2570_v39 = vrot.slane %v2374_v8, 5  ;;  %v12333_v6 = vld [vmem:[#allocation2 + $0xc0] sm:$0xf] }
 0x3c5   : > { %v3664_v49 = vpop.permute.xlu0 %3663  ;;  %3043 = vst.msk [vmem:[#allocation3 + $0x94] sm:$0xf] %vm3005_vm12, %v2936_v59  ;;  %v3551_v30 = vrot.slane %v3550_v19, 4  ;;  %v3557_v11 = vshrl.u32 %v3099_v55, 16  ;;  %v3577_v8 = vshrl.u32 %v3101_v42, 16 }
 0x3c6   : > { %3770 = vst.msk [vmem:[#allocation3 + $0x98] sm:$0xf] %vm3731_vm14, %v3664_v49  ;;  %2227 = vrot.lane.b32.xlu1 %v2132_v5, %s8793_s30  ;;  %v3553_v49 = vshll.u32 %v3099_v55, 16  ;;  %v12307_v59 = vadd.f32 %v12286_v48, %v6185_v46  ;;  %v3570_v46 = vor.u32 %v3569_v61, %v12301_v52  ;;  %v3573_v5 = vshll.u32 %v3101_v42, 16 }
 0x3c7   : > { %2949 = vrot.lane.b32.xlu0 %v2809_v2, %s8794_s13  ;;  %v2811_v2 = vld [vmem:[#allocation2 + $0xc4] sm:$0xf]  ;;  %v3559_v16 = vrot.slane %v3557_v11, 4  ;;  %v12342_v11 = vld [vmem:[#allocation2 + $0xc8] sm:$0xf] }
 0x3c8   : > { %v2940_v47 = vpop.permute.xlu1 %2939  ;;  %v7999_v12 = vmul.f32 -1.442695, %v12307_v59  ;;  %v3555_v34 = vrot.slane %v3553_v49, 5  ;;  %v3571_v55 = vrot.slane %v3570_v46, 4  ;;  %v3575_v19 = vrot.slane %v3573_v5, 5 }
 0x3c9   : > { %v4096_v14 = vpop.permute.xlu0 %4095  ;;  %3045 = vst.msk [vmem:[#allocation3 + $0x9c] sm:$0xf] %vm3005_vm12, %v2940_v47  ;;  %v12327_v47 = vld [vmem:[#allocation2 + $0xc4] sm:$0xf]  ;;  %v3579_v46 = vrot.slane %v3577_v8, 4  ;;  %v6615_v5 = vadd.f32 %v11584_v1, %v11298_v54  ;;  %v4018_v8 = vrot.slane %v12342_v11, 5 }
 0x3ca   : > { %4204 = vst.msk [vmem:[#allocation3 + $0x90] sm:$0xf] %vm4167_vm15, %v4096_v14  ;;  %2662 = vrot.lane.b32.xlu1 %v2565_v15, %s8792_s29  ;;  %8622 = vpow2.f32 %v7999_v12  ;;  %v2571_v14 = vsel %vm8918_vm6, %v2569_v38, %v2570_v39  ;;  %v3556_v61 = vsel %vm8925_vm9, %v3551_v30, %v3555_v34  ;;  %v6606_v12 = vadd.f32 %v11580_v9, %v11294_v28  ;;  %v2810_v15 = vld [vmem:[#allocation2 + $0xc0] sm:$0xf]  ;;  %v3102_v9 = vld [vmem:[#allocation2 + $0xcc] sm:$0x1] }
 0x3cb   : > { %2953 = vrot.lane.b32.xlu0 %v2811_v2, %s8794_s13  ;;  %v4015_v38 = vrot.slane %v12327_v47, 5  ;;  %v3576_v39 = vsel %vm8925_vm9, %v3571_v55, %v3575_v19  ;;  %v13355_v2 = vrot.slane %v12121_v20, 5  ;;  %v3560_v28 = vor.u32 %v3559_v16, %v3555_v34  ;;  %v4551_v1 = vld [vmem:[#allocation2 + $0xd0] sm:$0xf]  ;;  %v2812_v16 = vld [vmem:[#allocation2 + $0xc8] sm:$0xf] }
 0x3cc   : > { %v3662_v51 = vpop.permute.xlu1 %3661  ;;  %v4012_v20 = vrot.slane %v12333_v6, 5  ;;  %v3583_v54 = vshll.u32 %v3102_v9, 16  ;;  %v6616_v6 = vrot.slane %v6615_v5, 4  ;;  %v5014_v9 = vshll.u32 %v4551_v1, 16 }
 0x3cd   : > { %v4100_v29 = vpop.permute.xlu0 %4099  ;;  %3769 = vst.msk [vmem:[#allocation3 + $0x94] sm:$0xf] %vm3731_vm14, %v3662_v51  ;;  %v4011_v30 = vrot.slane %v13355_v2, 4  ;;  %v4017_v34 = vrot.slane %v4015_v38, 4  ;;  %v6633_v2 = vadd.f32 %v11826_v26, %v11870_v45  ;;  %v6651_v45 = vadd.f32 %v12171_v4, %v12017_v63 }
 0x3ce   : > { %4206 = vst.msk [vmem:[#allocation3 + $0x98] sm:$0xf] %vm4167_vm15, %v4100_v29  ;;  %2666 = vrot.lane.b32.xlu1 %v2571_v14, %s8792_s29  ;;  %v6624_v29 = vadd.f32 %v11596_v62, %v11561_v7  ;;  %v6607_v14 = vrot.slane %v6606_v12, 4  ;;  %v4998_v7 = vshrl.u32 %v12184_v17, 16  ;;  %v12378_v4 = vrot.slane %v5014_v9, 5  ;;  %s8298_s29 = smul.u32 384, %s13421_s22 }
 0x3cf   : > { %3675 = vrot.lane.b32.xlu0 %v3556_v61, %s8797_s16  ;;  %v4013_v62 = vsel %vm8918_vm6, %v4011_v30, %v4012_v20 }
 0x3d0   : > { %v3666_v49 = vpop.permute.xlu1 %3665  ;;  %v6608_v17 = vadd.f32 %v6607_v14, %v6606_v12  ;;  %v5000_v12 = vrot.slane %v4998_v7, 4 }
 0x3d1   : > { %v4385_v42 = vpop.permute.xlu0 %4384  ;;  %3771 = vst.msk [vmem:[#allocation3 + $0x9c] sm:$0xf] %vm3731_vm14, %v3666_v49  ;;  %v8621_v51 = vpop.eup %8620  ;;  %v3561_v49 = vrot.slane %v3560_v28, 4  ;;  %v3585_v28 = vrot.slane %v3583_v54, 5 }
 0x3d2   : > { %4493 = vst.msk [vmem:[#allocation3 + $0x90] sm:$0xf] %vm4456_vm0, %v4385_v42  ;;  %2951 = vrot.lane.b32.xlu1 %v2810_v15, %s8794_s13  ;;  %v6433_v61 = vadd.f32 1.0, %v8621_v51  ;;  %v3580_v15 = vor.u32 %v3579_v46, %v3575_v19  ;;  %v5018_v51 = vshrl.u32 %v4551_v1, 16  ;;  %v4019_v19 = vsel %vm8918_vm6, %v4017_v34, %v4018_v8  ;;  %v4550_v34 = vld [vmem:[#allocation2 + $0xcc] sm:$0xf] }
 0x3d3   : > { %3679 = vrot.lane.b32.xlu0 %v3576_v39, %s8797_s16  ;;  %v6625_v39 = vrot.slane %v6624_v29, 4  ;;  %v6617_v46 = vadd.f32 %v6616_v6, %v6615_v5  ;;  %v6609_v63 = vrot.slane %v6608_v17, 2  ;;  %v4014_v5 = vrot.slane %v4012_v20, 4  ;;  %v3828_v20 = vld [vmem:[#allocation2 + $0xcc] sm:$0x1] }
 0x3d4   : > { %v4098_v55 = vpop.permute.xlu1 %4097  ;;  %8624 = vrcp.f32 %v6433_v61  ;;  %v6634_v61 = vrot.slane %v6633_v2, 4  ;;  %v5020_v54 = vrot.slane %v5018_v51, 4  ;;  %v5004_v9 = vshll.u32 %v4550_v34, 16 }
 0x3d5   : > { %v4389_v42 = vpop.permute.xlu0 %4388  ;;  %4205 = vst.msk [vmem:[#allocation3 + $0x94] sm:$0xf] %vm4167_vm15, %v4098_v55  ;;  %v6642_v55 = vadd.f32 %v12035_v58, %v11995_v31  ;;  %v3566_v31 = vsel %vm8925_vm9, %v3561_v49, %v12301_v52  ;;  %v3581_v58 = vrot.slane %v3580_v15, 4  ;;  %v6626_v14 = vadd.f32 %v6625_v39, %v6624_v29  ;;  %v12382_v29 = vld [vmem:[#allocation2 + $0xd4] sm:$0xf] }
 0x3d6   : > { %4495 = vst.msk [vmem:[#allocation3 + $0x98] sm:$0xf] %vm4456_vm0, %v4389_v42  ;;  %2955 = vrot.lane.b32.xlu1 %v2812_v16, %s8794_s13  ;;  %v6660_v16 = vadd.f32 %v12190_v40, %v12154_v36  ;;  %v6652_v49 = vrot.slane %v6651_v45, 4  ;;  %v4260_v15 = vld [vmem:[#allocation2 + $0xc8] sm:$0xf]  ;;  %v5001_v39 = vor.u32 %v5000_v12, %v12215_v37  ;;  %v6618_v51 = vrot.slane %v6617_v46, 2 }
 0x3d7   : > { %4111 = vrot.lane.b32.xlu0 %v4013_v62, %s8796_s15  ;;  %v8623_v26 = vpop.eup %8622  ;;  %v6643_v62 = vrot.slane %v6642_v55, 4  ;;  %v3586_v6 = vsel %vm8925_vm9, %v3581_v58, %v3585_v28  ;;  %v6627_v36 = vrot.slane %v6626_v14, 2  ;;  %v6635_v40 = vadd.f32 %v6634_v61, %v6633_v2 }
 0x3d8   : > { %v4102_v30 = vpop.permute.xlu1 %4101  ;;  %v6432_v1 = vadd.f32 1.0, %v8623_v26  ;;  %v5021_v26 = vor.u32 %v5020_v54, %v12378_v4  ;;  %v6661_v28 = vrot.slane %v6660_v16, 4  ;;  %v4016_v2 = vsel %vm8918_vm6, %v4014_v5, %v4015_v38 }
 0x3d9   : > { %v5111_v42 = vpop.permute.xlu0 %5110  ;;  %4207 = vst.msk [vmem:[#allocation3 + $0x9c] sm:$0xf] %vm4167_vm15, %v4102_v30  ;;  %v6610_v30 = vadd.f32 %v6609_v63, %v6608_v17  ;;  %v4020_v12 = vrot.slane %v4018_v8, 4  ;;  %v6653_v61 = vadd.f32 %v6652_v49, %v6651_v45  ;;  %v5002_v17 = vrot.slane %v5001_v39, 4  ;;  %v12415_v39 = vld [vmem:[#allocation2 + $0xcc] sm:$0xf] }
 0x3da   : > { %5219 = vst.msk [vmem:[#allocation3 + $0x90] sm:$0xf] %vm5182_vm1, %v5111_v42  ;;  %3677 = vrot.lane.b32.xlu1 %v3566_v31, %s8797_s16  ;;  %8626 = vrcp.f32 %v6432_v1  ;;  %v4262_v42 = vld [vmem:[#allocation2 + $0xd0] sm:$0xf]  ;;  %v5024_v31 = vshll.u32 %v12382_v29, 16  ;;  %v6644_v1 = vadd.f32 %v6643_v62, %v6642_v55  ;;  %v4021_v63 = vrot.slane %v3828_v20, 5 }
 0x3db   : > { %4115 = vrot.lane.b32.xlu0 %v4019_v19, %s8796_s15  ;;  %v5008_v19 = vshrl.u32 %v4550_v34, 16  ;;  %v5006_v34 = vrot.slane %v5004_v9, 5  ;;  %v6619_v55 = vadd.f32 %v6618_v51, %v6617_v46  ;;  %v6628_v54 = vadd.f32 %v6627_v36, %v6626_v14  ;;  %v12421_v36 = vld [vmem:[#allocation2 + $0xd0] sm:$0xf] }
 0x3dc   : > { %v4387_v52 = vpop.permute.xlu1 %4386  ;;  %v6636_v62 = vrot.slane %v6635_v40, 2  ;;  %v5022_v38 = vrot.slane %v5021_v26, 4  ;;  %v5028_v11 = vshrl.u32 %v12382_v29, 16  ;;  %v6645_v45 = vrot.slane %v6644_v1, 2 }
 0x3dd   : > { %v5115_v7 = vpop.permute.xlu0 %5114  ;;  %4494 = vst.msk [vmem:[#allocation3 + $0x94] sm:$0xf] %vm4456_vm0, %v4387_v52  ;;  %v12403_v52 = vrot.slane %v5024_v31, 5  ;;  %v5010_v8 = vrot.slane %v5008_v19, 4  ;;  %v6611_v14 = vrot.slane %v6610_v30, 1  ;;  %v4022_v29 = vsel %vm8918_vm6, %v4020_v12, %v4021_v63 }
 0x3de   : > { %5221 = vst.msk [vmem:[#allocation3 + $0x98] sm:$0xf] %vm5182_vm1, %v5115_v7  ;;  %3681 = vrot.lane.b32.xlu1 %v3586_v6, %s8797_s16  ;;  %v6662_v7 = vadd.f32 %v6661_v28, %v6660_v16  ;;  %v5007_v6 = vsel %vm8925_vm9, %v5002_v17, %v5006_v34  ;;  %v6620_v16 = vrot.slane %v6619_v55, 1  ;;  %v6629_v9 = vrot.slane %v6628_v54, 1  ;;  %v4261_v19 = vld [vmem:[#allocation2 + $0xcc] sm:$0xf] }
 0x3df   : > { %4400 = vrot.lane.b32.xlu0 %v4260_v15, %s8795_s14  ;;  %v6654_v15 = vrot.slane %v6653_v61, 2  ;;  %v5011_v26 = vor.u32 %v5010_v8, %v5006_v34  ;;  %v4553_v31 = vld [vmem:[#allocation2 + $0xd8] sm:$0x1]  ;;  %v6646_v28 = vadd.f32 %v6645_v45, %v6644_v1  ;;  %v13357_v12 = vrot.slane %v12244_v60, 5  ;;  %v12440_v8 = vld [vmem:[#allocation2 + $0xd4] sm:$0xf] }
 0x3e0   : > { %v4391_v58 = vpop.permute.xlu1 %4390  ;;  %v5463_v63 = vrot.slane %v12415_v39, 5  ;;  %v5466_v34 = vrot.slane %v12421_v36, 5  ;;  %v5034_v60 = vshll.u32 %v4553_v31, 16 }
 0x3e1   : > { %v5547_v37 = vpop.permute.xlu0 %5546  ;;  %4496 = vst.msk [vmem:[#allocation3 + $0x9c] sm:$0xf] %vm4456_vm0, %v4391_v58  ;;  %v8625_v47 = vpop.eup %8624  ;;  %v6663_v58 = vrot.slane %v6662_v7, 2  ;;  %v5462_v17 = vrot.slane %v13357_v12, 4  ;;  %v5012_v45 = vrot.slane %v5011_v26, 4 }
 0x3e2   : > { %5655 = vst.msk [vmem:[#allocation3 + $0x90] sm:$0xf] %vm5618_vm4, %v5547_v37  ;;  %4113 = vrot.lane.b32.xlu1 %v4016_v2, %s8796_s15  ;;  %v12407_v5 = vmul.f32 %v8625_v47, %v12289_v13  ;;  %v6637_v13 = vadd.f32 %v6636_v62, %v6635_v40  ;;  %v5030_v40 = vrot.slane %v5028_v11, 4  ;;  %v6655_v47 = vadd.f32 %v6654_v15, %v6653_v61  ;;  %v4263_v61 = vld [vmem:[#allocation2 + $0xd4] sm:$0xf] }
 0x3e3   : > { %4404 = vrot.lane.b32.xlu0 %v4262_v42, %s8795_s14  ;;  %v5027_v42 = vsel %vm8925_vm9, %v5022_v38, %v12403_v52  ;;  %v6621_v38 = vadd.f32 %v6620_v16, %v6619_v55  ;;  %v6647_v55 = vrot.slane %v6646_v28, 1 }
 0x3e4   : > { %13356 = vst [vmem:[#allocation11_spill] sm:$0xff] %v12407_v5  ;;  %v5113_v49 = vpop.permute.xlu1 %5112  ;;  %v6668_v51 = vsel %vm6603_vm5, %v12407_v5, 0.0  ;;  %v6638_v11 = vrot.slane %v6637_v13, 1  ;;  %v6656_v39 = vrot.slane %v6655_v47, 1 }
 0x3e5   : > { %v2214_v46 = vpop.permute.xlu0 %2213  ;;  %5220 = vst.msk [vmem:[#allocation3 + $0x94] sm:$0xf] %vm5182_vm1, %v5113_v49  ;;  %v12424_v20 = vadd.f32 %v12197_v53, %v6668_v51  ;;  %v6612_v53 = vadd.f32 %v6611_v14, %v6610_v30  ;;  %v6630_v30 = vadd.f32 %v6629_v9, %v6628_v54  ;;  %v5031_v49 = vor.u32 %v5030_v40, %v12403_v52 }
 0x3e6   : > { %2318 = vst.msk [vmem:[#allocation3 + $0xa0] sm:$0xf] %vm2277_vm10, %v2214_v46  ;;  %4117 = vrot.lane.b32.xlu1 %v4022_v29, %s8796_s15  ;;  %v5468_v46 = vrot.slane %v5466_v34, 4  ;;  %v6664_v14 = vadd.f32 %v6663_v58, %v6662_v7  ;;  %v5464_v29 = vsel %vm8918_vm6, %v5462_v17, %v5463_v63  ;;  %v5469_v52 = vrot.slane %v12440_v8, 5 }
 0x3e7   : > { %5126 = vrot.lane.b32.xlu0 %v5007_v6, %s8799_s18  ;;  %v8627_v62 = vpop.eup %8626  ;;  %v6749_v7 = vmul.f32 0.0625, %v6621_v38  ;;  %v6639_v9 = vadd.f32 %v6638_v11, %v6637_v13  ;;  %v6748_v31 = vmul.f32 0.0625, %v6612_v53  ;;  %v6648_v40 = vadd.f32 %v6647_v55, %v6646_v28 }
 0x3e8   : > { %v5117_v37 = vpop.permute.xlu1 %5116  ;;  %v12436_v1 = vmul.f32 %v8627_v62, %v12307_v59  ;;  %v5470_v26 = vsel %vm8918_vm6, %v5468_v46, %v5469_v52  ;;  %v6665_v13 = vrot.slane %v6664_v14, 1  ;;  %v6657_v17 = vadd.f32 %v6656_v39, %v6655_v47  ;;  %v5279_v47 = vld [vmem:[#allocation2 + $0xd8] sm:$0x1] }
 0x3e9   : > { %v5551_v2 = vpop.permute.xlu0 %5550  ;;  %5222 = vst.msk [vmem:[#allocation3 + $0x9c] sm:$0xf] %vm5182_vm1, %v5117_v37  ;;  %v6751_v62 = vmul.f32 0.0625, %v6639_v9  ;;  %v5465_v38 = vrot.slane %v5463_v63, 4  ;;  %v6752_v11 = vmul.f32 0.0625, %v6648_v40 }
 0x3ea   : > { %5657 = vst.msk [vmem:[#allocation3 + $0x98] sm:$0xf] %vm5618_vm4, %v5551_v2  ;;  %4402 = vrot.lane.b32.xlu1 %v4261_v19, %s8795_s14  ;;  %v6667_v59 = vsel %vm6603_vm5, %v12436_v1, 0.0  ;;  %v6750_v2 = vmul.f32 0.0625, %v6630_v30 }
 0x3eb   : > { %5130 = vrot.lane.b32.xlu0 %v5027_v42, %s8799_s18  ;;  %v6669_v16 = vadd.f32 %v6668_v51, %v6667_v59  ;;  %v12450_v54 = vadd.f32 %v12165_v57, %v6667_v59  ;;  %v5036_v42 = vrot.slane %v5034_v60, 5  ;;  %v5017_v57 = vsel %vm8925_vm9, %v5012_v45, %v12378_v4 }
 0x3ec   : > { %v5549_v15 = vpop.permute.xlu1 %5548  ;;  %v5032_v51 = vrot.slane %v5031_v49, 4  ;;  %v6853_v4 = vsel %vm6852_vm3, %v6749_v7, %v6748_v31  ;;  %v6753_v49 = vmul.f32 0.0625, %v6657_v17  ;;  %v5467_v63 = vsel %vm8918_vm6, %v5465_v38, %v5466_v34 }
 0x3ed   : > { %v2218_v6 = vpop.permute.xlu0 %2217  ;;  %5656 = vst.msk [vmem:[#allocation3 + $0x94] sm:$0xf] %vm5618_vm4, %v5549_v15  ;;  %v6670_v19 = vrot.slane %v6669_v16, 4  ;;  %v6855_v46 = vsel %vm13307_vm7, %v6750_v2, %v6853_v4  ;;  %v5472_v59 = vrot.slane %v5279_v47, 5  ;;  %vm6864_vm7 = vcmask 1047559  }
 0x3ee   : > { %2320 = vst.msk [vmem:[#allocation3 + $0xa8] sm:$0xf] %vm2277_vm10, %v2218_v6  ;;  %4406 = vrot.lane.b32.xlu1 %v4263_v61, %s8795_s14  ;;  %v5037_v28 = vsel %vm8925_vm9, %v5032_v51, %v5036_v42  ;;  %v6666_v61 = vadd.f32 %v6665_v13, %v6664_v14  ;;  %v6857_v35 = vsel %vm13306_vm8, %v6751_v62, %v6855_v46  ;;  %vm6860_vm9 = vcmask 1045509   ;;  %s13005_s14 = scalar_lea.vmem %s13276_s1, %s8298_s29 }
 0x3ef   : > { %5562 = vrot.lane.b32.xlu0 %v5464_v29, %s8798_s17  ;;  %v6671_v12 = vadd.f32 %v6670_v19, %v6669_v16  ;;  %v5471_v14 = vrot.slane %v5469_v52, 4  ;;  %v6859_v39 = vsel %vm6858_vm13, %v6752_v11, %v6857_v35  ;;  %vm6862_vm8 = vcmask 1046534  }
 0x3f0   : > { %v2216_v58 = vpop.permute.xlu1 %2215  ;;  %v6754_v29 = vmul.f32 0.0625, %v6666_v61  ;;  %v6861_v7 = vsel %vm6860_vm9, %v6753_v49, %v6859_v39 }
 0x3f1   : > { %v2653_v37 = vpop.permute.xlu0 %2652  ;;  %2319 = vst.msk [vmem:[#allocation3 + $0xa4] sm:$0xf] %vm2277_vm10, %v2216_v58  ;;  %v6672_v53 = vrot.slane %v6671_v12, 2  ;;  %v5473_v34 = vsel %vm8918_vm6, %v5471_v14, %v5472_v59  ;;  %vm13370_vm6 = vcmask 1042434  }
 0x3f2   : > { %2757 = vst.msk [vmem:[#allocation3 + $0xa0] sm:$0xf] %vm2716_vm11, %v2653_v37  ;;  %5128 = vrot.lane.b32.xlu1 %v5017_v57, %s8799_s18  ;;  %v6863_v42 = vsel %vm6862_vm8, %v6754_v29, %v6861_v7 }
 0x3f3   : > { %5566 = vrot.lane.b32.xlu0 %v5470_v26, %s8798_s17  ;;  %v6673_v45 = vadd.f32 %v6672_v53, %v6671_v12 }
 0x3f4   : > { %v5553_v60 = vpop.permute.xlu1 %5552  ;;  %v8366_v30 = vld [vmem:[#allocation3 + $0x90] sm:$0xff]  }
 0x3f5   : > { %v2657_v8 = vpop.permute.xlu0 %2656  ;;  %5658 = vst.msk [vmem:[#allocation3 + $0x9c] sm:$0xf] %vm5618_vm4, %v5553_v60  ;;  %8252 = vmatprep.mubr.msk.bf16.mxu1 %vm5855_vm2, %v8366_v30  ;;  %v6674_v55 = vrot.slane %v6673_v45, 1 }
 0x3f6   : > { %2759 = vst.msk [vmem:[#allocation3 + $0xa8] sm:$0xf] %vm2716_vm11, %v2657_v8  ;;  %5132 = vrot.lane.b32.xlu1 %v5037_v28, %s8799_s18 }
 0x3f7   : > { %v6675_v16 = vadd.f32 %v6674_v55, %v6673_v45 }
 0x3f8   : > { %v2220_v6 = vpop.permute.xlu1 %2219 }
 0x3f9   : > { %v2942_v15 = vpop.permute.xlu0 %2941  ;;  %2321 = vst.msk [vmem:[#allocation3 + $0xac] sm:$0xf] %vm2277_vm10, %v2220_v6  ;;  %v6755_v36 = vmul.f32 0.0625, %v6675_v16 }
 0x3fa   : > { %3046 = vst.msk [vmem:[#allocation3 + $0xa0] sm:$0xf] %vm3005_vm12, %v2942_v15  ;;  %5564 = vrot.lane.b32.xlu1 %v5467_v63, %s8798_s17 }
 0x3fb   : > { %v6865_v57 = vsel %vm6864_vm7, %v6755_v36, %v6863_v42 }
 0x3fc   : > { %v2655_v9 = vpop.permute.xlu1 %2654  ;;  %v8367_v19 = vld [vmem:[#allocation3 + $0x98] sm:$0xff]   ;;  %8266 = vmatprep.mubr.msk.f32.mxu0 %vm6603_vm5, %v6865_v57 }
 0x3fd   : > { %v2946_v52 = vpop.permute.xlu0 %2945  ;;  %2758 = vst.msk [vmem:[#allocation3 + $0xa4] sm:$0xf] %vm2716_vm11, %v2655_v9  ;;  %v12492_v51 = vpop.f32.mrf.mxu1  ;;  %8253 = vmatmul.mubr.msk.bf16.gmra.mxu1 %vm5855_vm2, %v8367_v19 }
 0x3fe   : > { %3048 = vst.msk [vmem:[#allocation3 + $0xa8] sm:$0xf] %vm3005_vm12, %v2946_v52  ;;  %5568 = vrot.lane.b32.xlu1 %v5473_v34, %s8798_s17  ;;  %s13050_s17 = scalar_lea.vmem %s13287_s12, %s8298_s29 }
 0x3ff   : > { %v6062_v31 = vpop.f32.mrf.mxu1 }
 0x400   : > { %v2659_v26 = vpop.permute.xlu1 %2658  ;;  %v6188_v40 = vmul.f32 %v12268_v24, %v6062_v31 }
 0x401   : > { %v3668_v25 = vpop.permute.xlu0 %3667  ;;  %2760 = vst.msk [vmem:[#allocation3 + $0xac] sm:$0xf] %vm2716_vm11, %v2659_v26  ;;  %v8243_v58 = vpop.f32.mrf.mxu1 }
 0x402   : > { %3772 = vst.msk [vmem:[#allocation3 + $0xa0] sm:$0xf] %vm3731_vm14, %v3668_v25  ;;  %v6243_v37 = vadd.f32 %v12286_v48, %v6188_v40  ;;  %v6191_v13 = vmul.f32 %v12268_v24, %v8243_v58 }
 0x403   : > { %v6065_v17 = vpop.f32.mrf.mxu1 }
 0x404   : > { %v2944_v12 = vpop.permute.xlu1 %2943  ;;  %v8002_v62 = vmul.f32 -1.442695, %v6243_v37  ;;  %v6246_v4 = vadd.f32 %v12286_v48, %v6191_v13  ;;  %v6189_v53 = vmul.f32 %v12268_v24, %v6065_v17 }
 0x405   : > { %v3672_v2 = vpop.permute.xlu0 %3671  ;;  %3047 = vst.msk [vmem:[#allocation3 + $0xa4] sm:$0xf] %vm3005_vm12, %v2944_v12 }
 0x406   : > { %3774 = vst.msk [vmem:[#allocation3 + $0xa8] sm:$0xf] %vm3731_vm14, %v3672_v2  ;;  %8628 = vpow2.f32 %v8002_v62  ;;  %v8005_v28 = vmul.f32 -1.442695, %v6246_v4  ;;  %v6244_v38 = vadd.f32 %v12286_v48, %v6189_v53 }
 0x408   : > { %v2948_v60 = vpop.permute.xlu1 %2947  ;;  %8630 = vpow2.f32 %v8005_v28  ;;  %v8003_v8 = vmul.f32 -1.442695, %v6244_v38 }
 0x409   : > { %v4104_v11 = vpop.permute.xlu0 %4103  ;;  %3049 = vst.msk [vmem:[#allocation3 + $0xac] sm:$0xf] %vm3005_vm12, %v2948_v60 }
 0x40a   : > { %4208 = vst.msk [vmem:[#allocation3 + $0xa0] sm:$0xf] %vm4167_vm15, %v4104_v11  ;;  %8632 = vpow2.f32 %v8003_v8 }
 0x40c   : > { %v3670_v61 = vpop.permute.xlu1 %3669 }
 0x40d   : > { %v4108_v30 = vpop.permute.xlu0 %4107  ;;  %3773 = vst.msk [vmem:[#allocation3 + $0xa4] sm:$0xf] %vm3731_vm14, %v3670_v61 }
 0x40e   : > { %4210 = vst.msk [vmem:[#allocation3 + $0xa8] sm:$0xf] %vm4167_vm15, %v4108_v30 }
 0x410   : > { %v3674_v45 = vpop.permute.xlu1 %3673 }
 0x411   : > { %v4393_v47 = vpop.permute.xlu0 %4392  ;;  %3775 = vst.msk [vmem:[#allocation3 + $0xac] sm:$0xf] %vm3731_vm14, %v3674_v45 }
 0x412   : > { %4497 = vst.msk [vmem:[#allocation3 + $0xa0] sm:$0xf] %vm4456_vm0, %v4393_v47 }
 0x413   : > { %v8629_v35 = vpop.eup %8628 }
 0x414   : > { %v4106_v49 = vpop.permute.xlu1 %4105  ;;  %v6435_v63 = vadd.f32 1.0, %v8629_v35 }
 0x415   : > { %v4397_v46 = vpop.permute.xlu0 %4396  ;;  %4209 = vst.msk [vmem:[#allocation3 + $0xa4] sm:$0xf] %vm4167_vm15, %v4106_v49  ;;  %v8631_v55 = vpop.eup %8630 }
 0x416   : > { %4499 = vst.msk [vmem:[#allocation3 + $0xa8] sm:$0xf] %vm4456_vm0, %v4397_v46  ;;  %8634 = vrcp.f32 %v6435_v63  ;;  %v6438_v14 = vadd.f32 1.0, %v8631_v55 }
 0x417   : > { %v8633_v6 = vpop.eup %8632 }
 0x418   : > { %v4110_v59 = vpop.permute.xlu1 %4109  ;;  %8636 = vrcp.f32 %v6438_v14  ;;  %v6436_v29 = vadd.f32 1.0, %v8633_v6 }
 0x419   : > { %v5119_v15 = vpop.permute.xlu0 %5118  ;;  %4211 = vst.msk [vmem:[#allocation3 + $0xac] sm:$0xf] %vm4167_vm15, %v4110_v59 }
 0x41a   : > { %5223 = vst.msk [vmem:[#allocation3 + $0xa0] sm:$0xf] %vm5182_vm1, %v5119_v15  ;;  %8638 = vrcp.f32 %v6436_v29 }
 0x41c   : > { %v4395_v39 = vpop.permute.xlu1 %4394 }
 0x41d   : > { %v5123_v16 = vpop.permute.xlu0 %5122  ;;  %4498 = vst.msk [vmem:[#allocation3 + $0xa4] sm:$0xf] %vm4456_vm0, %v4395_v39 }
 0x41e   : > { %5225 = vst.msk [vmem:[#allocation3 + $0xa8] sm:$0xf] %vm5182_vm1, %v5123_v16 }
 0x420   : > { %v4399_v7 = vpop.permute.xlu1 %4398 }
 0x421   : > { %v5555_v36 = vpop.permute.xlu0 %5554  ;;  %4500 = vst.msk [vmem:[#allocation3 + $0xac] sm:$0xf] %vm4456_vm0, %v4399_v7 }
 0x422   : > { %5659 = vst.msk [vmem:[#allocation3 + $0xa0] sm:$0xf] %vm5618_vm4, %v5555_v36 }
 0x423   : > { %v8635_v9 = vpop.eup %8634 }
 0x424   : > { %v5121_v34 = vpop.permute.xlu1 %5120  ;;  %v12521_v42 = vmul.f32 %v8635_v9, %v6243_v37 }
 0x425   : > { %v2222_v52 = vpop.permute.xlu0 %2221  ;;  %5224 = vst.msk [vmem:[#allocation3 + $0xa4] sm:$0xf] %vm5182_vm1, %v5121_v34  ;;  %v8637_v19 = vpop.eup %8636 }
 0x426   : > { %2322 = vst.msk [vmem:[#allocation3 + $0xb0] sm:$0xf] %vm2277_vm10, %v2222_v52  ;;  %v12525_v57 = vsel %vm6603_vm5, %v12521_v42, 0.0  ;;  %v12527_v25 = vmul.f32 %v8637_v19, %v6246_v4 }
 0x427   : > { %v8639_v40 = vpop.eup %8638  ;;  %v6771_v58 = vadd.f32 %v12450_v54, %v12525_v57 }
 0x428   : > { %v5125_v26 = vpop.permute.xlu1 %5124  ;;  %v12535_v37 = vsel %vm6603_vm5, %v12527_v25, 0.0  ;;  %v12537_v13 = vmul.f32 %v8639_v40, %v6244_v38 }
 0x429   : > { %v5559_v31 = vpop.permute.xlu0 %5558  ;;  %5226 = vst.msk [vmem:[#allocation3 + $0xac] sm:$0xf] %vm5182_vm1, %v5125_v26  ;;  %v12540_v2 = vadd.f32 %v6771_v58, %v12535_v37 }
 0x42a   : > { %5661 = vst.msk [vmem:[#allocation3 + $0xa8] sm:$0xf] %vm5618_vm4, %v5559_v31  ;;  %13358 = vst [vmem:[#allocation12_spill] sm:$0xff] %v12537_v13  ;;  %v12544_v12 = vsel %vm6603_vm5, %v12537_v13, 0.0 }
 0x42b   : > { %v12548_v54 = vadd.f32 %v12424_v20, %v12544_v12 }
 0x42c   : > { %v5557_v17 = vpop.permute.xlu1 %5556 }
 0x42d   : > { %v2226_v62 = vpop.permute.xlu0 %2225  ;;  %5660 = vst.msk [vmem:[#allocation3 + $0xa4] sm:$0xf] %vm5618_vm4, %v5557_v17 }
 0x42e   : > { %2324 = vst.msk [vmem:[#allocation3 + $0xb8] sm:$0xf] %vm2277_vm10, %v2226_v62 }
 0x430   : > { %v2224_v4 = vpop.permute.xlu1 %2223 }
 0x431   : > { %v2661_v53 = vpop.permute.xlu0 %2660  ;;  %2323 = vst.msk [vmem:[#allocation3 + $0xb4] sm:$0xf] %vm2277_vm10, %v2224_v4 }
 0x432   : > { %2761 = vst.msk [vmem:[#allocation3 + $0xb0] sm:$0xf] %vm2716_vm11, %v2661_v53 }
 0x434   : > { %v5561_v28 = vpop.permute.xlu1 %5560  ;;  %v8368_v11 = vld [vmem:[#allocation3 + $0xa0] sm:$0xff]  }
 0x435   : > { %v2665_v38 = vpop.permute.xlu0 %2664  ;;  %5662 = vst.msk [vmem:[#allocation3 + $0xac] sm:$0xf] %vm5618_vm4, %v5561_v28  ;;  %8256 = vmatprep.mubr.msk.bf16.mxu1 %vm5855_vm2, %v8368_v11 }
 0x436   : > { %2763 = vst.msk [vmem:[#allocation3 + $0xb8] sm:$0xf] %vm2716_vm11, %v2665_v38 }
 0x438   : > { %v2228_v60 = vpop.permute.xlu1 %2227 }
 0x439   : > { %v2950_v20 = vpop.permute.xlu0 %2949  ;;  %2325 = vst.msk [vmem:[#allocation3 + $0xbc] sm:$0xf] %vm2277_vm10, %v2228_v60  ;;  %vm13371_vm10 = vcmask 1043459  }
 0x43a   : > { %3050 = vst.msk [vmem:[#allocation3 + $0xb0] sm:$0xf] %vm3005_vm12, %v2950_v20 }
 0x43c   : > { %v2663_v30 = vpop.permute.xlu1 %2662  ;;  %v8369_v61 = vld [vmem:[#allocation3 + $0xa8] sm:$0xff]  }
 0x43d   : > { %v2954_v8 = vpop.permute.xlu0 %2953  ;;  %2762 = vst.msk [vmem:[#allocation3 + $0xb4] sm:$0xf] %vm2716_vm11, %v2663_v30  ;;  %8257 = vmatmul.mubr.msk.bf16.gmra.mxu1 %vm5855_vm2, %v8369_v61  ;;  %v8246_v47 = vpop.f32.mrf.mxu1 }
 0x43e   : > { %3052 = vst.msk [vmem:[#allocation3 + $0xb8] sm:$0xf] %vm3005_vm12, %v2954_v8  ;;  %v6194_v45 = vmul.f32 %v12268_v24, %v8246_v47 }
 0x43f   : > { %v6078_v35 = vpop.f32.mrf.mxu1 }
 0x440   : > { %v2667_v46 = vpop.permute.xlu1 %2666  ;;  %v6249_v63 = vadd.f32 %v12286_v48, %v6194_v45  ;;  %v6192_v55 = vmul.f32 %v12268_v24, %v6078_v35 }
 0x441   : > { %v3676_v49 = vpop.permute.xlu0 %3675  ;;  %2764 = vst.msk [vmem:[#allocation3 + $0xbc] sm:$0xf] %vm2716_vm11, %v2667_v46  ;;  %v8247_v14 = vpop.f32.mrf.mxu1  ;;  %vm8801_vm11 = vmmov 0  }
 0x442   : > { %3776 = vst.msk [vmem:[#allocation3 + $0xb0] sm:$0xf] %vm3731_vm14, %v3676_v49  ;;  %v8008_v59 = vmul.f32 -1.442695, %v6249_v63  ;;  %v6247_v15 = vadd.f32 %v12286_v48, %v6192_v55  ;;  %v6195_v6 = vmul.f32 %v12268_v24, %v8247_v14 }
 0x444   : > { %v2952_v39 = vpop.permute.xlu1 %2951  ;;  %8640 = vpow2.f32 %v8008_v59  ;;  %v8006_v16 = vmul.f32 -1.442695, %v6247_v15  ;;  %v6250_v7 = vadd.f32 %v12286_v48, %v6195_v6 }
 0x445   : > { %v3680_v29 = vpop.permute.xlu0 %3679  ;;  %3051 = vst.msk [vmem:[#allocation3 + $0xb4] sm:$0xf] %vm3005_vm12, %v2952_v39 }
 0x446   : > { %3778 = vst.msk [vmem:[#allocation3 + $0xb8] sm:$0xf] %vm3731_vm14, %v3680_v29  ;;  %8642 = vpow2.f32 %v8006_v16  ;;  %v8009_v36 = vmul.f32 -1.442695, %v6250_v7 }
 0x448   : > { %v2956_v52 = vpop.permute.xlu1 %2955  ;;  %8644 = vpow2.f32 %v8009_v36 }
 0x449   : > { %v4112_v34 = vpop.permute.xlu0 %4111  ;;  %3053 = vst.msk [vmem:[#allocation3 + $0xbc] sm:$0xf] %vm3005_vm12, %v2956_v52 }
 0x44a   : > { %4212 = vst.msk [vmem:[#allocation3 + $0xb0] sm:$0xf] %vm4167_vm15, %v4112_v34 }
 0x44c   : > { %v3678_v9 = vpop.permute.xlu1 %3677 }
 0x44d   : > { %v4116_v24 = vpop.permute.xlu0 %4115  ;;  %3777 = vst.msk [vmem:[#allocation3 + $0xb4] sm:$0xf] %vm3731_vm14, %v3678_v9 }
 0x44e   : > { %4214 = vst.msk [vmem:[#allocation3 + $0xb8] sm:$0xf] %vm4167_vm15, %v4116_v24  ;;  %v12621_v24 = vld [vmem:[%s13279_s4] ss:$0 sm:$0xff] }
 0x450   : > { %v3682_v26 = vpop.permute.xlu1 %3681 }
 0x451   : > { %v4401_v19 = vpop.permute.xlu0 %4400  ;;  %3779 = vst.msk [vmem:[#allocation3 + $0xbc] sm:$0xf] %vm3731_vm14, %v3682_v26  ;;  %v8641_v31 = vpop.eup %8640 }
 0x452   : > { %4501 = vst.msk [vmem:[#allocation3 + $0xb0] sm:$0xf] %vm4456_vm0, %v4401_v19  ;;  %v6441_v40 = vadd.f32 1.0, %v8641_v31 }
 0x453   : > { %v8643_v62 = vpop.eup %8642 }
 0x454   : > { %v4114_v17 = vpop.permute.xlu1 %4113  ;;  %8646 = vrcp.f32 %v6441_v40  ;;  %v6439_v4 = vadd.f32 1.0, %v8643_v62  ;;  %v12633_v62 = vld [vmem:[%s13280_s5] ss:$0 sm:$0xff] }
 0x455   : > { %v4405_v58 = vpop.permute.xlu0 %4404  ;;  %4213 = vst.msk [vmem:[#allocation3 + $0xb4] sm:$0xf] %vm4167_vm15, %v4114_v17  ;;  %v8645_v53 = vpop.eup %8644 }
 0x456   : > { %4503 = vst.msk [vmem:[#allocation3 + $0xb8] sm:$0xf] %vm4456_vm0, %v4405_v58  ;;  %8648 = vrcp.f32 %v6439_v4  ;;  %v6442_v28 = vadd.f32 1.0, %v8645_v53 }
 0x458   : > { %v4118_v11 = vpop.permute.xlu1 %4117  ;;  %8650 = vrcp.f32 %v6442_v28 }
 0x459   : > { %v5127_v38 = vpop.permute.xlu0 %5126  ;;  %4215 = vst.msk [vmem:[#allocation3 + $0xbc] sm:$0xf] %vm4167_vm15, %v4118_v11 }
 0x45a   : > { %5227 = vst.msk [vmem:[#allocation3 + $0xb0] sm:$0xf] %vm5182_vm1, %v5127_v38 }
 0x45c   : > { %v4403_v60 = vpop.permute.xlu1 %4402 }
 0x45d   : > { %v5131_v20 = vpop.permute.xlu0 %5130  ;;  %4502 = vst.msk [vmem:[#allocation3 + $0xb4] sm:$0xf] %vm4456_vm0, %v4403_v60 }
 0x45e   : > { %5229 = vst.msk [vmem:[#allocation3 + $0xb8] sm:$0xf] %vm5182_vm1, %v5131_v20 }
 0x460   : > { %v4407_v30 = vpop.permute.xlu1 %4406 }
 0x461   : > { %v5563_v8 = vpop.permute.xlu0 %5562  ;;  %4504 = vst.msk [vmem:[#allocation3 + $0xbc] sm:$0xf] %vm4456_vm0, %v4407_v30  ;;  %v8647_v61 = vpop.eup %8646 }
 0x462   : > { %5663 = vst.msk [vmem:[#allocation3 + $0xb0] sm:$0xf] %vm5618_vm4, %v5563_v8  ;;  %v12586_v47 = vmul.f32 %v8647_v61, %v6249_v63 }
 0x463   : > { %v8649_v46 = vpop.eup %8648 }
 0x464   : > { %13359 = vst [vmem:[#allocation13_spill] sm:$0xff] %v12586_v47  ;;  %v5129_v45 = vpop.permute.xlu1 %5128  ;;  %v12592_v35 = vsel %vm6603_vm5, %v12586_v47, 0.0  ;;  %v12594_v55 = vmul.f32 %v8649_v46, %v6247_v15 }
 0x465   : > { %v5567_v49 = vpop.permute.xlu0 %5566  ;;  %5228 = vst.msk [vmem:[#allocation3 + $0xb4] sm:$0xf] %vm5182_vm1, %v5129_v45  ;;  %v8651_v14 = vpop.eup %8650  ;;  %v6773_v59 = vadd.f32 %v12540_v2, %v12592_v35 }
 0x466   : > { %5665 = vst.msk [vmem:[#allocation3 + $0xb8] sm:$0xf] %vm5618_vm4, %v5567_v49  ;;  %13360 = vst [vmem:[#allocation14_spill] sm:$0xff] %v12594_v55  ;;  %v12600_v63 = vsel %vm6603_vm5, %v12594_v55, 0.0  ;;  %v12602_v6 = vmul.f32 %v8651_v14, %v6250_v7  ;;  %v12653_v14 = vld [vmem:[%s13281_s6] sm:$0xff] }
 0x467   : > { %v6787_v39 = vadd.f32 %v12548_v54, %v12600_v63  ;;  %v12616_v54 = vpop.f32.mrf.mxu1  ;;  %8264 = vmatprep.subr.mxu0 %v12653_v14 }
 0x468   : > { %13361 = vst [vmem:[#allocation15_spill] sm:$0xff] %v12602_v6  ;;  %v5133_v29 = vpop.permute.xlu1 %5132  ;;  %v12609_v15 = vsel %vm6603_vm5, %v12602_v6, 0.0  ;;  %8265 = vmatpush3.msra.mxu0 %v12653_v14  ;;  %v6678_v6 = vadd.f32 %v12544_v12, %v12525_v57 }
 0x469   : > { %5230 = vst.msk [vmem:[#allocation3 + $0xbc] sm:$0xf] %vm5182_vm1, %v5133_v29  ;;  %v6788_v16 = vadd.f32 %v6787_v39, %v12609_v15 }
 0x46c   : > { %v5565_v36 = vpop.permute.xlu1 %5564 }
 0x46d   : > { %5664 = vst.msk [vmem:[#allocation3 + $0xb4] sm:$0xf] %vm5618_vm4, %v5565_v36 }
 0x470   : > { %v5569_v2 = vpop.permute.xlu1 %5568 }
 0x471   : > { %5666 = vst.msk [vmem:[#allocation3 + $0xbc] sm:$0xf] %vm5618_vm4, %v5569_v2 }
 0x474   : > { %v8370_v7 = vld [vmem:[#allocation3 + $0xb0] sm:$0xff]  }
 0x475   : > { %8260 = vmatprep.mubr.msk.bf16.mxu1 %vm5855_vm2, %v8370_v7 }
 0x478   : > { %v8371_v34 = vld [vmem:[#allocation3 + $0xb8] sm:$0xff]  }
 0x479   : > { %8261 = vmatmul.mubr.msk.bf16.gmra.mxu1 %vm5855_vm2, %v8371_v34 }
 0x47d   : > { %v8250_v52 = vpop.f32.mrf.mxu1 }
 0x47e   : > { %v6198_v9 = vmul.f32 %v12621_v24, %v8250_v52 }
 0x47f   : > { %v12624_v19 = vpop.f32.mrf.mxu1 }
 0x480   : > { %v6253_v26 = vadd.f32 %v12286_v48, %v6198_v9 }
 0x481   : > { %v12627_v31 = vpop.f32.mrf.mxu1 }
 0x482   : > { %v8012_v40 = vmul.f32 -1.442695, %v6253_v26 }
 0x483   : > { %v6097_v58 = vpop.f32.mrf.mxu1 }
 0x484   : > { %8652 = vpow2.f32 %v8012_v40  ;;  %v6197_v17 = vmul.f32 %v12621_v24, %v6097_v58 }
 0x486   : > { %v6252_v4 = vadd.f32 %v12633_v62, %v6197_v17 }
 0x488   : > { %v8011_v53 = vmul.f32 -1.442695, %v6252_v4 }
 0x48a   : > { %8654 = vpow2.f32 %v8011_v53 }
 0x491   : > { %v8653_v28 = vpop.eup %8652 }
 0x492   : > { %v6445_v38 = vadd.f32 1.0, %v8653_v28 }
 0x494   : > { %8656 = vrcp.f32 %v6445_v38 }
 0x497   : > { %v8655_v48 = vpop.eup %8654 }
 0x498   : > { %v6444_v11 = vadd.f32 1.0, %v8655_v48 }
 0x49a   : > { %8658 = vrcp.f32 %v6444_v11 }
 0x4a1   : > { %v8657_v20 = vpop.eup %8656 }
 0x4a2   : > { %v12636_v60 = vmul.f32 %v8657_v20, %v6253_v26 }
 0x4a4   : > { %13362 = vst [vmem:[#allocation16_spill] sm:$0xff] %v12636_v60  ;;  %v12640_v8 = vsel %vm6603_vm5, %v12636_v60, 0.0 }
 0x4a5   : > { %v6789_v30 = vadd.f32 %v6788_v16, %v12640_v8 }
 0x4a7   : > { %v8659_v61 = vpop.eup %8658 }
 0x4a8   : > { %v12643_v45 = vmul.f32 %v8659_v61, %v6252_v4 }
 0x4aa   : > { %13363 = vst [vmem:[#allocation17_spill] sm:$0xff] %v12643_v45  ;;  %v12647_v49 = vsel %vm6603_vm5, %v12643_v45, 0.0 }
 0x4ab   : > { %v6774_v46 = vadd.f32 %v6773_v59, %v12647_v49 }
 0x4bd   : > { %v12657_v29 = vpop.f32.mrf.mxu1 }
 0x4bf   : > { %v6110_v39 = vpop.f32.mrf.mxu1 }
 0x4c0   : > { %v6200_v16 = vmul.f32 %v12621_v24, %v6110_v39 }
 0x4c1   : > { %v8255_v36 = vpop.f32.mrf.mxu1 }
 0x4c2   : > { %v6255_v2 = vadd.f32 %v12633_v62, %v6200_v16  ;;  %v6203_v7 = vmul.f32 %v12621_v24, %v8255_v36 }
 0x4c3   : > { %v6113_v59 = vpop.f32.mrf.mxu1 }
 0x4c4   : > { %v8014_v34 = vmul.f32 -1.442695, %v6255_v2  ;;  %v6258_v52 = vadd.f32 %v12633_v62, %v6203_v7  ;;  %v6201_v9 = vmul.f32 %v12621_v24, %v6113_v59 }
 0x4c6   : > { %8660 = vpow2.f32 %v8014_v34  ;;  %v8017_v26 = vmul.f32 -1.442695, %v6258_v52  ;;  %v6256_v40 = vadd.f32 %v12633_v62, %v6201_v9 }
 0x4c8   : > { %8662 = vpow2.f32 %v8017_v26  ;;  %v8015_v58 = vmul.f32 -1.442695, %v6256_v40 }
 0x4ca   : > { %8664 = vpow2.f32 %v8015_v58 }
 0x4d3   : > { %v8661_v17 = vpop.eup %8660 }
 0x4d4   : > { %v6447_v4 = vadd.f32 1.0, %v8661_v17 }
 0x4d5   : > { %v8663_v53 = vpop.eup %8662 }
 0x4d6   : > { %8666 = vrcp.f32 %v6447_v4  ;;  %v6450_v28 = vadd.f32 1.0, %v8663_v53 }
 0x4d7   : > { %v8665_v38 = vpop.eup %8664 }
 0x4d8   : > { %8668 = vrcp.f32 %v6450_v28  ;;  %v6448_v48 = vadd.f32 1.0, %v8665_v38 }
 0x4da   : > { %8670 = vrcp.f32 %v6448_v48 }
 0x4e3   : > { %v8667_v11 = vpop.eup %8666 }
 0x4e4   : > { %v12665_v20 = vmul.f32 %v8667_v11, %v6255_v2 }
 0x4e5   : > { %v8669_v61 = vpop.eup %8668 }
 0x4e6   : > { %13364 = vst [vmem:[#allocation18_spill] sm:$0xff] %v12665_v20  ;;  %v12669_v39 = vsel %vm6603_vm5, %v12665_v20, 0.0  ;;  %v12671_v16 = vmul.f32 %v8669_v61, %v6258_v52 }
 0x4e7   : > { %v8671_v36 = vpop.eup %8670  ;;  %v6775_v7 = vadd.f32 %v6774_v46, %v12669_v39 }
 0x4e8   : > { %13365 = vst [vmem:[#allocation19_spill] sm:$0xff] %v12671_v16  ;;  %v12676_v59 = vsel %vm6603_vm5, %v12671_v16, 0.0  ;;  %v12678_v34 = vmul.f32 %v8671_v36, %v6256_v40 }
 0x4e9   : > { %v6776_v9 = vadd.f32 %v6775_v7, %v12676_v59 }
 0x4ea   : > { %13366 = vst [vmem:[#allocation20_spill] sm:$0xff] %v12678_v34  ;;  %v6713_v2 = vsel %vm6603_vm5, %v12678_v34, 0.0 }
 0x4eb   : > { %v6790_v26 = vadd.f32 %v6789_v30, %v6713_v2 }
 0x4fd   : > { %v8258_v58 = vpop.f32.mrf.mxu1 }
 0x4fe   : > { %v6206_v17 = vmul.f32 %v12621_v24, %v8258_v58 }
 0x4ff   : > { %v6126_v52 = vpop.f32.mrf.mxu1 }
 0x500   : > { %v6261_v4 = vadd.f32 %v12633_v62, %v6206_v17  ;;  %v6204_v46 = vmul.f32 %v12621_v24, %v6126_v52 }
 0x501   : > { %v8259_v53 = vpop.f32.mrf.mxu1 }
 0x502   : > { %v8020_v28 = vmul.f32 -1.442695, %v6261_v4  ;;  %v6259_v38 = vadd.f32 %v12633_v62, %v6204_v46  ;;  %v6207_v40 = vmul.f32 %v12621_v24, %v8259_v53 }
 0x504   : > { %8672 = vpow2.f32 %v8020_v28  ;;  %v8018_v48 = vmul.f32 -1.442695, %v6259_v38  ;;  %v6262_v11 = vadd.f32 %v12633_v62, %v6207_v40 }
 0x506   : > { %8674 = vpow2.f32 %v8018_v48  ;;  %v8021_v30 = vmul.f32 -1.442695, %v6262_v11 }
 0x508   : > { %8676 = vpow2.f32 %v8021_v30 }
 0x511   : > { %v8673_v61 = vpop.eup %8672 }
 0x512   : > { %v6453_v36 = vadd.f32 1.0, %v8673_v61 }
 0x513   : > { %v8675_v7 = vpop.eup %8674 }
 0x514   : > { %8678 = vrcp.f32 %v6453_v36  ;;  %v6451_v58 = vadd.f32 1.0, %v8675_v7 }
 0x515   : > { %v8677_v17 = vpop.eup %8676 }
 0x516   : > { %8680 = vrcp.f32 %v6451_v58  ;;  %v6454_v52 = vadd.f32 1.0, %v8677_v17 }
 0x518   : > { %8682 = vrcp.f32 %v6454_v52 }
 0x521   : > { %v8679_v34 = vpop.eup %8678 }
 0x522   : > { %v12689_v46 = vmul.f32 %v8679_v34, %v6261_v4  ;;  %v12703_v4 = vpop.f32.mrf.mxu1 }
 0x523   : > { %v8681_v53 = vpop.eup %8680 }
 0x524   : > { %13367 = vst [vmem:[#allocation21_spill] sm:$0xff] %v12689_v46  ;;  %v6730_v28 = vsel %vm6603_vm5, %v12689_v46, 0.0  ;;  %v12693_v40 = vmul.f32 %v8681_v53, %v6259_v38 }
 0x525   : > { %v8683_v48 = vpop.eup %8682  ;;  %v12695_v30 = vadd.f32 %v6776_v9, %v6730_v28 }
 0x526   : > { %13368 = vst [vmem:[#allocation22_spill] sm:$0xff] %v12693_v40  ;;  %v6722_v61 = vsel %vm6603_vm5, %v12693_v40, 0.0  ;;  %v12699_v36 = vmul.f32 %v8683_v48, %v6262_v11 }
 0x527   : > { %v6791_v7 = vadd.f32 %v6790_v26, %v6722_v61  ;;  %v6723_v13 = vadd.f32 %v6722_v61, %v12676_v59 }
 0x528   : > { %13369 = vst [vmem:[#allocation23_spill] sm:$0xff] %v12699_v36  ;;  %v6731_v58 = vsel %vm6603_vm5, %v12699_v36, 0.0  ;;  %v6687_v36 = vadd.f32 %v12600_v63, %v12535_v37 }
 0x529   : > { %v6792_v34 = vadd.f32 %v6791_v7, %v6731_v58  ;;  %v6732_v57 = vadd.f32 %v6731_v58, %v6730_v28 }
 0x52a   : > { %v6688_v55 = vrot.slane %v6687_v36, 4 }
 0x52c   : > { %v6689_v63 = vadd.f32 %v6688_v55, %v6687_v36 }
 0x539   : > { %v8262_v17 = vpop.f32.mrf.mxu1 }
 0x53a   : > { %v6210_v52 = vmul.f32 %v12621_v24, %v8262_v17 }
 0x53b   : > { %v12706_v38 = vpop.f32.mrf.mxu1 }
 0x53c   : > { %v6265_v9 = vadd.f32 %v12633_v62, %v6210_v52  ;;  %v6696_v52 = vadd.f32 %v12609_v15, %v12592_v35  ;;  %v6724_v35 = vrot.slane %v6723_v13, 4 }
 0x53d   : > { %v12709_v53 = vpop.f32.mrf.mxu1 }
 0x53e   : > { %v8024_v60 = vmul.f32 -1.442695, %v6265_v9  ;;  %v6697_v5 = vrot.slane %v6696_v52, 4 }
 0x53f   : > { %v6145_v40 = vpop.f32.mrf.mxu1 }
 0x540   : > { %8684 = vpow2.f32 %v8024_v60  ;;  %v6209_v26 = vmul.f32 %v12621_v24, %v6145_v40  ;;  %v6705_v60 = vadd.f32 %v12640_v8, %v12647_v49  ;;  %v6714_v40 = vadd.f32 %v6713_v2, %v12669_v39 }
 0x541   : > { %v6698_v15 = vadd.f32 %v6697_v5, %v6696_v52  ;;  %v6733_v8 = vrot.slane %v6732_v57, 4  ;;  %v6725_v39 = vadd.f32 %v6724_v35, %v6723_v13 }
 0x542   : > { %v6264_v11 = vadd.f32 %v12633_v62, %v6209_v26  ;;  %v6715_v46 = vrot.slane %v6714_v40, 4 }
 0x543   : > { %v6699_v2 = vrot.slane %v6698_v15, 2  ;;  %v6726_v28 = vrot.slane %v6725_v39, 2 }
 0x544   : > { %v8023_v48 = vmul.f32 -1.442695, %v6264_v11  ;;  %v6716_v20 = vadd.f32 %v6715_v46, %v6714_v40 }
 0x545   : > { %v6700_v58 = vadd.f32 %v6699_v2, %v6698_v15 }
 0x546   : > { %8686 = vpow2.f32 %v8023_v48  ;;  %v6679_v48 = vrot.slane %v6678_v6, 4  ;;  %v6717_v61 = vrot.slane %v6716_v20, 2 }
 0x548   : > { %v6680_v12 = vadd.f32 %v6679_v48, %v6678_v6 }
 0x54a   : > { %v6681_v49 = vrot.slane %v6680_v12, 2 }
 0x54c   : > { %v6682_v36 = vadd.f32 %v6681_v49, %v6680_v12 }
 0x54d   : > { %v8685_v7 = vpop.eup %8684 }
 0x54e   : > { %v6457_v17 = vadd.f32 1.0, %v8685_v7  ;;  %v6706_v7 = vrot.slane %v6705_v60, 4  ;;  %v6683_v48 = vrot.slane %v6682_v36, 1 }
 0x550   : > { %8688 = vrcp.f32 %v6457_v17  ;;  %v6690_v17 = vrot.slane %v6689_v63, 2  ;;  %v6707_v16 = vadd.f32 %v6706_v7, %v6705_v60  ;;  %v6718_v60 = vadd.f32 %v6717_v61, %v6716_v20 }
 0x551   : > { %v6684_v15 = vadd.f32 %v6683_v48, %v6682_v36 }
 0x552   : > { %v6691_v47 = vadd.f32 %v6690_v17, %v6689_v63  ;;  %v6708_v59 = vrot.slane %v6707_v16, 2  ;;  %v6701_v63 = vrot.slane %v6700_v58, 1 }
 0x553   : > { %v8687_v26 = vpop.eup %8686 }
 0x554   : > { %v6456_v37 = vadd.f32 1.0, %v8687_v26  ;;  %v6734_v26 = vadd.f32 %v6733_v8, %v6732_v57  ;;  %v6692_v6 = vrot.slane %v6691_v47, 1  ;;  %v6709_v52 = vadd.f32 %v6708_v59, %v6707_v16 }
 0x555   : > { %v6719_v57 = vrot.slane %v6718_v60, 1  ;;  %v6702_v20 = vadd.f32 %v6701_v63, %v6700_v58  ;;  %v6756_v59 = vmul.f32 0.0625, %v6684_v15  ;;  %v8800_v15 = vmov 0.0  }
 0x556   : > { %8690 = vrcp.f32 %v6456_v37  ;;  %v6735_v13 = vrot.slane %v6734_v26, 2  ;;  %v6727_v37 = vadd.f32 %v6726_v28, %v6725_v39  ;;  %8285 = vmatprep.subr.mxu1 %v8800_v15  ;;  %8287 = vmatprep.mubr.msk.f32.mxu1 %vm8801_vm11, %v8800_v15 }
 0x557   : > { %v6720_v2 = vadd.f32 %v6719_v57, %v6718_v60  ;;  %v6758_v28 = vmul.f32 0.0625, %v6702_v20  ;;  %v6169_v20 = vmul.f32 %v12621_v24, %v11649_v3  ;;  %v6178_v3 = vmul.f32 %v12621_v24, %v11808_v0 }
 0x558   : > { %v6736_v12 = vadd.f32 %v6735_v13, %v6734_v26  ;;  %v6728_v17 = vrot.slane %v6727_v37, 1 }
 0x559   : > { %v6760_v36 = vmul.f32 0.0625, %v6720_v2 }
 0x55d   : > { %v8689_v45 = vpop.eup %8688 }
 0x55e   : > { %v12723_v55 = vmul.f32 %v8689_v45, %v6265_v9  ;;  %v6693_v45 = vadd.f32 %v6692_v6, %v6691_v47  ;;  %v6710_v9 = vrot.slane %v6709_v52, 1  ;;  %v6729_v47 = vadd.f32 %v6728_v17, %v6727_v37  ;;  %v7167_v17 = vld [vmem:[%s13285_s10] sm:$0xff] }
 0x55f   : > { %8286 = vmatpush3.msra.mxu1 %v7167_v17 }
 0x560   : > { %v6740_v5 = vsel %vm6603_vm5, %v12723_v55, 0.0  ;;  %v6757_v8 = vmul.f32 0.0625, %v6693_v45  ;;  %v6711_v49 = vadd.f32 %v6710_v9, %v6709_v52 }
 0x561   : > { %v12727_v46 = vadd.f32 %v6792_v34, %v6740_v5 }
 0x562   : > { %v6866_v26 = vsel %vm6852_vm3, %v6757_v8, %v6756_v59  ;;  %v6759_v6 = vmul.f32 0.0625, %v6711_v49  ;;  %v6172_v49 = vmul.f32 %v12621_v24, %v11673_v21 }
 0x563   : > { %v8691_v40 = vpop.eup %8690 }
 0x564   : > { %v12729_v7 = vmul.f32 %v8691_v40, %v6264_v11  ;;  %v6737_v11 = vrot.slane %v6736_v12, 1 }
 0x566   : > { %v6739_v35 = vsel %vm6603_vm5, %v12729_v7, 0.0  ;;  %v6738_v40 = vadd.f32 %v6737_v11, %v6736_v12  ;;  %v6962_v12 = vld [vmem:[%s13283_s8] sm:$0xff]  ;;  %v12768_v11 = vadd.f32 %v12633_v62, %v6172_v49  ;;  %v6205_v49 = vmul.f32 %v12621_v24, %v12703_v4 }
 0x567   : > { %v6741_v16 = vadd.f32 %v6740_v5, %v6739_v35  ;;  %v12734_v34 = vadd.f32 %v12695_v30, %v6739_v35  ;;  %v6761_v5 = vmul.f32 0.0625, %v6729_v47  ;;  %v6867_v30 = vsel %vm13370_vm6, %v6758_v28, %v6866_v26  ;;  %8269 = vmatprep.subr.mxu0 %v6962_v12 }
 0x568   : > { %v6868_v52 = vsel %vm13371_vm10, %v6759_v6, %v6867_v30  ;;  %v6762_v63 = vmul.f32 0.0625, %v6738_v40  ;;  %v7986_v47 = vmul.f32 -1.442695, %v12768_v11  ;;  %v12782_v28 = vadd.f32 %v12633_v62, %v6178_v3 }
 0x569   : > { %v6742_v39 = vrot.slane %v6741_v16, 4  ;;  %v6869_v60 = vsel %vm6858_vm13, %v6760_v36, %v6868_v52 }
 0x56a   : > { %v6870_v37 = vsel %vm6860_vm9, %v6761_v5, %v6869_v60  ;;  %v7992_v6 = vmul.f32 -1.442695, %v12782_v28 }
 0x56b   : > { %v6743_v61 = vadd.f32 %v6742_v39, %v6741_v16  ;;  %v6871_v57 = vsel %vm6862_vm8, %v6762_v63, %v6870_v37  ;;  %v6166_v16 = vmul.f32 %v12621_v24, %v11096_v50  ;;  %v12764_v39 = vadd.f32 %v12633_v62, %v6169_v20 }
 0x56c   : > { %v6175_v50 = vmul.f32 %v12621_v24, %v11694_v27  ;;  %v6184_v27 = vmul.f32 %v12621_v24, %v12281_v41  ;;  %v6190_v41 = vmul.f32 %v12621_v24, %v12492_v51 }
 0x56d   : > { %v6744_v13 = vrot.slane %v6743_v61, 2  ;;  %v12759_v8 = vadd.f32 %v12633_v62, %v6166_v16  ;;  %v7983_v59 = vmul.f32 -1.442695, %v12764_v39 }
 0x56e   : > { %v12777_v21 = vadd.f32 %v12633_v62, %v6175_v50 }
 0x56f   : > { %v6745_v48 = vadd.f32 %v6744_v13, %v6743_v61  ;;  %v7980_v2 = vmul.f32 -1.442695, %v12759_v8  ;;  %v6181_v61 = vmul.f32 %v12621_v24, %v12253_v18  ;;  %v12792_v13 = vadd.f32 %v12633_v62, %v6184_v27 }
 0x570   : > { %v7989_v26 = vmul.f32 -1.442695, %v12777_v21  ;;  %v6187_v18 = vmul.f32 %v12621_v24, %v12293_v22  ;;  %v6196_v22 = vmul.f32 %v12621_v24, %v12624_v19 }
 0x571   : > { %v6746_v58 = vrot.slane %v6745_v48, 1  ;;  %8692 = vpow2.f32 %v7980_v2  ;;  %v12788_v0 = vadd.f32 %v12633_v62, %v6181_v61  ;;  %v7998_v40 = vmul.f32 -1.442695, %v12792_v13 }
 0x572   : > { %8694 = vpow2.f32 %v7983_v59  ;;  %v12801_v5 = vadd.f32 %v12633_v62, %v6187_v18 }
 0x573   : > { %v6747_v45 = vadd.f32 %v6746_v58, %v6745_v48  ;;  %8696 = vpow2.f32 %v7986_v47  ;;  %v7995_v36 = vmul.f32 -1.442695, %v12788_v0  ;;  %v6193_v48 = vmul.f32 %v12621_v24, %v12616_v54 }
 0x574   : > { %8698 = vpow2.f32 %v7989_v26  ;;  %v12806_v58 = vadd.f32 %v12633_v62, %v6190_v41  ;;  %v8001_v51 = vmul.f32 -1.442695, %v12801_v5  ;;  %v12816_v54 = vadd.f32 %v12633_v62, %v6196_v22 }
 0x575   : > { %v6763_v9 = vmul.f32 0.0625, %v6747_v45  ;;  %8700 = vpow2.f32 %v7992_v6  ;;  %v12812_v63 = vadd.f32 %v12633_v62, %v6193_v48  ;;  %v12836_v47 = vadd.f32 %v12633_v62, %v6205_v49 }
 0x576   : > { %8702 = vpow2.f32 %v7995_v36  ;;  %v8004_v37 = vmul.f32 -1.442695, %v12806_v58  ;;  %v8010_v16 = vmul.f32 -1.442695, %v12816_v54  ;;  %v6211_v6 = vmul.f32 %v12621_v24, %v12709_v53 }
 0x577   : > { %v6872_v35 = vsel %vm6864_vm7, %v6763_v9, %v6871_v57  ;;  %8704 = vpow2.f32 %v7998_v40  ;;  %v6199_v9 = vmul.f32 %v12621_v24, %v12627_v31  ;;  %v8007_v19 = vmul.f32 -1.442695, %v12812_v63 }
 0x578   : > { %8267 = vmatmul.mubr.msk.f32.vlgmr.msra.gmra.mxu0 %vm6603_vm5, %v6872_v35  ;;  %8706 = vpow2.f32 %v8001_v51  ;;  %v6202_v35 = vmul.f32 %v12621_v24, %v12657_v29  ;;  %v6208_v29 = vmul.f32 %v12621_v24, %v12706_v38  ;;  %v8019_v18 = vmul.f32 -1.442695, %v12836_v47 }
 0x579   : > { %8270 = vmatpush3.msra.mxu0 %v6962_v12  ;;  %v12825_v20 = vadd.f32 %v12633_v62, %v6199_v9  ;;  %v12847_v48 = vadd.f32 %v12633_v62, %v6211_v6 }
 0x57a   : > { %8274 = vmatprep.subr.mxu0 %v8800_v15  ;;  %v12830_v2 = vadd.f32 %v12633_v62, %v6202_v35  ;;  %v12840_v26 = vadd.f32 %v12633_v62, %v6208_v29 }
 0x57b   : > { %v8013_v3 = vmul.f32 -1.442695, %v12825_v20  ;;  %v8025_v51 = vmul.f32 -1.442695, %v12847_v48 }
 0x57c   : > { %v8016_v27 = vmul.f32 -1.442695, %v12830_v2  ;;  %v8022_v40 = vmul.f32 -1.442695, %v12840_v26 }
 0x57e   : > { %v8693_v30 = vpop.eup %8692 }
 0x57f   : > { %v8695_v52 = vpop.eup %8694  ;;  %v6413_v60 = vadd.f32 1.0, %v8693_v30 }
 0x580   : > { %v8697_v45 = vpop.eup %8696  ;;  %v6416_v57 = vadd.f32 1.0, %v8695_v52 }
 0x581   : > { %8708 = vrcp.f32 %v6413_v60  ;;  %v6419_v12 = vadd.f32 1.0, %v8697_v45  ;;  %v8699_v17 = vpop.eup %8698 }
 0x582   : > { %8710 = vpow2.f32 %v8004_v37  ;;  %v8701_v31 = vpop.eup %8700  ;;  %v6422_v50 = vadd.f32 1.0, %v8699_v17 }
 0x583   : > { %8712 = vrcp.f32 %v6416_v57  ;;  %v8703_v59 = vpop.eup %8702  ;;  %v6425_v61 = vadd.f32 1.0, %v8701_v31 }
 0x584   : > { %8714 = vpow2.f32 %v8007_v19  ;;  %v8705_v4 = vpop.eup %8704  ;;  %v6428_v38 = vadd.f32 1.0, %v8703_v59 }
 0x585   : > { %8716 = vrcp.f32 %v6419_v12  ;;  %v6431_v36 = vadd.f32 1.0, %v8705_v4  ;;  %v8707_v41 = vpop.eup %8706 }
 0x586   : > { %8718 = vpow2.f32 %v8010_v16  ;;  %v6434_v24 = vadd.f32 1.0, %v8707_v41 }
 0x587   : > { %8720 = vrcp.f32 %v6422_v50 }
 0x588   : > { %8722 = vpow2.f32 %v8013_v3 }
 0x589   : > { %8724 = vrcp.f32 %v6425_v61 }
 0x58a   : > { %8726 = vpow2.f32 %v8016_v27 }
 0x58b   : > { %8728 = vrcp.f32 %v6428_v38 }
 0x58c   : > { %8730 = vpow2.f32 %v8019_v18 }
 0x58d   : > { %8732 = vrcp.f32 %v6431_v36 }
 0x58e   : > { %v8709_v30 = vpop.eup %8708  ;;  %8734 = vpow2.f32 %v8022_v40 }
 0x58f   : > { %v8711_v22 = vpop.eup %8710  ;;  %8736 = vrcp.f32 %v6434_v24  ;;  %v12854_v57 = vmul.f32 %v8709_v30, %v12759_v8 }
 0x590   : > { %v8713_v53 = vpop.eup %8712  ;;  %v6437_v45 = vadd.f32 1.0, %v8711_v22  ;;  %8738 = vpow2.f32 %v8025_v51 }
 0x591   : > { %v8715_v52 = vpop.eup %8714  ;;  %v12851_v9 = vmul.f32 %v8713_v53, %v12764_v39  ;;  %v6794_v39 = vsel %vm6603_vm5, %v12854_v57, 0.0 }
 0x592   : > { %v8717_v60 = vpop.eup %8716  ;;  %v6440_v62 = vadd.f32 1.0, %v8715_v52  ;;  %8740 = vrcp.f32 %v6437_v45 }
 0x593   : > { %v8719_v37 = vpop.eup %8718  ;;  %v12857_v35 = vmul.f32 %v8717_v60, %v12768_v11  ;;  %v6795_v49 = vsel %vm6603_vm5, %v12851_v9, 0.0 }
 0x594   : > { %v8721_v19 = vpop.eup %8720  ;;  %v6443_v12 = vadd.f32 1.0, %v8719_v37  ;;  %8742 = vrcp.f32 %v6440_v62  ;;  %v6796_v3 = vadd.f32 %v6795_v49, %v6794_v39 }
 0x595   : > { %13372 = vst [vmem:[#allocation24_spill] sm:$0xff] %v12857_v35  ;;  %v8723_v17 = vpop.eup %8722  ;;  %v6797_v8 = vsel %vm6603_vm5, %v12857_v35, 0.0  ;;  %v12866_v50 = vmul.f32 %v8721_v19, %v12777_v21 }
 0x596   : > { %v8725_v16 = vpop.eup %8724  ;;  %8744 = vrcp.f32 %v6443_v12  ;;  %v6446_v11 = vadd.f32 1.0, %v8723_v17  ;;  %v6798_v38 = vadd.f32 %v6797_v8, %v6796_v3  ;;  %v12894_v17 = vld [vmem:[%s13282_s7] ss:$0 sm:$0xff] }
 0x597   : > { %v8727_v31 = vpop.eup %8726  ;;  %13373 = vst [vmem:[#allocation25_spill] sm:$0xff] %v12866_v50  ;;  %v12869_v4 = vmul.f32 %v8725_v16, %v12782_v28  ;;  %v6799_v18 = vsel %vm6603_vm5, %v12866_v50, 0.0 }
 0x598   : > { %v8729_v29 = vpop.eup %8728  ;;  %v6449_v27 = vadd.f32 1.0, %v8727_v31  ;;  %8746 = vrcp.f32 %v6446_v11  ;;  %v6800_v24 = vadd.f32 %v6799_v18, %v6798_v38 }
 0x599   : > { %v8731_v59 = vpop.eup %8730  ;;  %13374 = vst [vmem:[#allocation26_spill] sm:$0xff] %v12869_v4  ;;  %v12874_v36 = vmul.f32 %v8729_v29, %v12788_v0  ;;  %v6801_v40 = vsel %vm6603_vm5, %v12869_v4, 0.0 }
 0x59a   : > { %v8733_v61 = vpop.eup %8732  ;;  %v6452_v21 = vadd.f32 1.0, %v8731_v59  ;;  %8748 = vrcp.f32 %v6449_v27  ;;  %v6802_v0 = vadd.f32 %v6801_v40, %v6800_v24 }
 0x59b   : > { %v8735_v6 = vpop.eup %8734  ;;  %13375 = vst [vmem:[#allocation27_spill] sm:$0xff] %v12874_v36  ;;  %v12879_v30 = vmul.f32 %v8733_v61, %v12792_v13  ;;  %v6803_v53 = vsel %vm6603_vm5, %v12874_v36, 0.0 }
 0x59c   : > { %v8737_v41 = vpop.eup %8736  ;;  %v6455_v28 = vadd.f32 1.0, %v8735_v6  ;;  %8750 = vrcp.f32 %v6452_v21  ;;  %v6804_v37 = vadd.f32 %v6803_v53, %v6802_v0 }
 0x59d   : > { %13376 = vst [vmem:[#allocation28_spill] sm:$0xff] %v12879_v30  ;;  %v8739_v22 = vpop.eup %8738  ;;  %v6805_v52 = vsel %vm6603_vm5, %v12879_v30, 0.0  ;;  %v12886_v60 = vmul.f32 %v8737_v41, %v12801_v5 }
 0x59e   : > { %8752 = vrcp.f32 %v6455_v28  ;;  %v6458_v45 = vadd.f32 1.0, %v8739_v22  ;;  %v6806_v12 = vadd.f32 %v6805_v52, %v6804_v37 }
 0x59f   : > { %v8741_v51 = vpop.eup %8740  ;;  %13377 = vst [vmem:[#allocation29_spill] sm:$0xff] %v12886_v60  ;;  %v6807_v16 = vsel %vm6603_vm5, %v12886_v60, 0.0 }
 0x5a0   : > { %v12889_v62 = vmul.f32 %v8741_v51, %v12806_v58  ;;  %8754 = vrcp.f32 %v6458_v45  ;;  %v6808_v8 = vadd.f32 %v6807_v16, %v6806_v12 }
 0x5a1   : > { %v8743_v13 = vpop.eup %8742 }
 0x5a2   : > { %13378 = vst [vmem:[#allocation30_spill] sm:$0xff] %v12889_v62  ;;  %v12899_v5 = vmul.f32 %v8743_v13, %v12812_v63  ;;  %v6809_v31 = vsel %vm6603_vm5, %v12889_v62, 0.0 }
 0x5a3   : > { %v8745_v19 = vpop.eup %8744  ;;  %v6810_v27 = vadd.f32 %v6809_v31, %v6808_v8  ;;  %v6825_v8 = vmul.f32 0.0625, %v12734_v34 }
 0x5a4   : > { %13379 = vst [vmem:[#allocation31_spill] sm:$0xff] %v12899_v5  ;;  %v12904_v58 = vmul.f32 %v8745_v19, %v12816_v54  ;;  %v6811_v59 = vsel %vm6603_vm5, %v12899_v5, 0.0 }
 0x5a5   : > { %v8747_v29 = vpop.eup %8746  ;;  %v6812_v41 = vadd.f32 %v6811_v59, %v6810_v27  ;;  %v6826_v59 = vmul.f32 0.0625, %v12727_v46 }
 0x5a6   : > { %13380 = vst [vmem:[#allocation32_spill] sm:$0xff] %v12904_v58  ;;  %v6813_v6 = vsel %vm6603_vm5, %v12904_v58, 0.0  ;;  %v12913_v38 = vmul.f32 %v8747_v29, %v12825_v20 }
 0x5a7   : > { %v8749_v61 = vpop.eup %8748  ;;  %v6814_v53 = vadd.f32 %v6813_v6, %v6812_v41 }
 0x5a8   : > { %13381 = vst [vmem:[#allocation33_spill] sm:$0xff] %v12913_v38  ;;  %v12916_v40 = vmul.f32 %v8749_v61, %v12830_v2  ;;  %v6815_v51 = vsel %vm6603_vm5, %v12913_v38, 0.0  ;;  %v7603_v38 = vld [vmem:[%s13005_s14 + $0x168] sm:$0xff] }
 0x5a9   : > { %v8751_v21 = vpop.eup %8750  ;;  %v6816_v19 = vadd.f32 %v6815_v51, %v6814_v53 }
 0x5aa   : > { %13382 = vst [vmem:[#allocation34_spill] sm:$0xff] %v12916_v40  ;;  %v12921_v0 = vmul.f32 %v8751_v21, %v12836_v47  ;;  %v6817_v45 = vsel %vm6603_vm5, %v12916_v40, 0.0  ;;  %v7600_v40 = vld [vmem:[%s13005_s14 + $0x150] sm:$0xff] }
 0x5ab   : > { %v8753_v24 = vpop.eup %8752 }
 0x5ac   : > { %13383 = vst [vmem:[#allocation35_spill] sm:$0xff] %v12921_v0  ;;  %v12926_v13 = vmul.f32 %v8753_v24, %v12840_v26  ;;  %v6819_v12 = vsel %vm6603_vm5, %v12921_v0, 0.0  ;;  %v7597_v0 = vld [vmem:[%s13005_s14 + $0x138] sm:$0xff] }
 0x5ad   : > { %v8755_v37 = vpop.eup %8754 }
 0x5ae   : > { %13384 = vst [vmem:[#allocation36_spill] sm:$0xff] %v12926_v13  ;;  %v6821_v47 = vsel %vm6603_vm5, %v12926_v13, 0.0  ;;  %v7591_v13 = vld [vmem:[%s13005_s14 + $0x108] sm:$0xff] }
 0x638   : > { %v8268_v49 = vpop.f32.mrf.mxu0 }
 0x639   : > { %v6949_v39 = vadd.f32 %v8268_v49, %v12894_v17  ;;  %v6818_v49 = vadd.f32 %v6817_v45, %v6816_v19 }
 0x63a   : > { %v6943_v11 = vpop.f32.mrf.mxu0 }
 0x63b   : > { %v6953_v3 = vadd.f32 3.0, %v6949_v39  ;;  %v6944_v63 = vadd.f32 %v12894_v17, %v6943_v11  ;;  %v6820_v29 = vadd.f32 %v6819_v12, %v6818_v49 }
 0x63d   : > { %v6955_v54 = vmax.f32 %v6953_v3, 0.0  ;;  %v6952_v18 = vadd.f32 3.0, %v6944_v63  ;;  %v6822_v26 = vadd.f32 %v6821_v47, %v6820_v29 }
 0x63f   : > { %v6957_v28 = vmin.f32 %v6955_v54, 6.0  ;;  %v6954_v22 = vmax.f32 %v6952_v18, 0.0 }
 0x641   : > { %v6956_v52 = vmin.f32 %v6954_v22, 6.0  ;;  %v6959_v20 = vmul.f32 %v6957_v28, %v6949_v39  ;;  %v12933_v39 = vmul.f32 %v8755_v37, %v12847_v48 }
 0x643   : > { %v6958_v2 = vmul.f32 %v6956_v52, %v6944_v63  ;;  %v6961_v31 = vmul.f32 0.16666667, %v6959_v20  ;;  %13385 = vst [vmem:[#allocation37_spill] sm:$0xff] %v12933_v39  ;;  %v6823_v11 = vsel %vm6603_vm5, %v12933_v39, 0.0 }
 0x644   : > { %v6824_v48 = vadd.f32 %v6823_v11, %v6822_v26 }
 0x645   : > { %v6960_v16 = vmul.f32 0.16666667, %v6958_v2 }
 0x647   : > { %8271 = vmatprep.mubr.msk.f32.mxu0 %vm6603_vm5, %v6960_v16 }
 0x648   : > { %8272 = vmatmul.mubr.msk.f32.vlgmr.msra.gmra.mxu0 %vm6603_vm5, %v6961_v31  ;;  %v8029_v31 = vld [vmem:[%s13284_s9] ss:$0 sm:$0xff] }
 0x649   : > { %8275 = vmatpush3.msra.mxu0 %v12653_v14  ;;  %8276 = vmatprep.mubr.msk.f32.mxu0 %vm8801_vm11, %v8800_v15  ;;  %v6827_v14 = vmul.f32 0.0625, %v6824_v48 }
 0x64c   : > { %8277 = vmatmul.mubr.msk.f32.vlgmr.msra.gmra.mxu0 %vm6603_vm5, %v6825_v8 }
 0x64d   : > { %8279 = vmatprep.mubr.msk.f32.mxu0 %vm8801_vm11, %v8800_v15 }
 0x650   : > { %8280 = vmatmul.mubr.msk.f32.gmra.mxu0 %vm6603_vm5, %v6826_v59 }
 0x651   : > { %8282 = vmatprep.mubr.msk.f32.mxu0 %vm8801_vm11, %v8800_v15 }
 0x654   : > { %8283 = vmatmul.mubr.msk.f32.gmra.mxu0 %vm6603_vm5, %v6827_v14 }
 0x708   : > { %v8273_v34 = vpop.f32.mrf.mxu0 }
 0x709   : > { %v7048_v47 = vadd.f32 %v8273_v34, %v8029_v31 }
 0x70a   : > { %v7042_v3 = vpop.f32.mrf.mxu0 }
 0x70b   : > { %v7043_v29 = vadd.f32 %v8029_v31, %v7042_v3  ;;  %v8033_v26 = vmul.f32 -1.442695, %v7048_v47  ;;  %v7336_v3 = vlaneseq }
 0x70c   : > { %v7138_v63 = vpop.f32.mrf.mxu0 }
 0x70d   : > { %v7139_v61 = vadd.f32 %v12894_v17, %v7138_v63  ;;  %v8032_v8 = vmul.f32 -1.442695, %v7043_v29  ;;  %8756 = vpow2.f32 %v8033_v26 }
 0x70e   : > { %v8278_v27 = vpop.f32.mrf.mxu0 }
 0x70f   : > { %v7152_v6 = vadd.f32 3.0, %v7139_v61  ;;  %8758 = vpow2.f32 %v8032_v8 }
 0x710   : > { %v7143_v54 = vpop.f32.mrf.mxu0 }
 0x711   : > { %v7155_v18 = vmax.f32 %v7152_v6, 0.0  ;;  %v7144_v21 = vadd.f32 %v12894_v17, %v7143_v54  ;;  %v8802_v6 = vmov 1966171168  }
 0x712   : > { %v8281_v46 = vpop.f32.mrf.mxu0  ;;  %v7334_v34 = vunpack.c.l.s4 %v8802_v6 }
 0x713   : > { %v7158_v41 = vmin.f32 %v7155_v18, 6.0  ;;  %v7153_v28 = vadd.f32 3.0, %v7144_v21 }
 0x714   : > { %v7148_v22 = vpop.f32.mrf.mxu0 }
 0x715   : > { %v7161_v24 = vmul.f32 %v7158_v41, %v7139_v61  ;;  %v7156_v53 = vmax.f32 %v7153_v28, 0.0  ;;  %v7149_v51 = vadd.f32 %v12894_v17, %v7148_v22  ;;  %v7335_v41 = vunpack.c.0.s8 %v7334_v34 }
 0x716   : > { %v8284_v52 = vpop.f32.mrf.mxu0  ;;  %v7337_v28 = vshrl.u32 %v7336_v3, 7 }
 0x717   : > { %v7164_v20 = vmul.f32 0.16666667, %v7161_v24  ;;  %v7159_v45 = vmin.f32 %v7156_v53, 6.0  ;;  %v7154_v2 = vadd.f32 3.0, %v7149_v51 }
 0x719   : > { %v7162_v37 = vmul.f32 %v7159_v45, %v7144_v21  ;;  %v7157_v19 = vmax.f32 %v7154_v2, 0.0  ;;  %8288 = vmatmul.mubr.msk.f32.vlgmr.msra.gmra.mxu1 %vm6603_vm5, %v7164_v20  ;;  %v7338_v45 = vsub.s32 %v7335_v41, %v7337_v28 }
 0x71a   : > { %8290 = vmatprep.mubr.msk.f32.mxu1 %vm8801_vm11, %v8800_v15  ;;  %v8757_v11 = vpop.eup %8756 }
 0x71b   : > { %v7165_v12 = vmul.f32 0.16666667, %v7162_v37  ;;  %v7160_v16 = vmin.f32 %v7157_v19, 6.0  ;;  %v7058_v59 = vadd.f32 1.0, %v8757_v11 }
 0x71c   : > { %v8759_v48 = vpop.eup %8758 }
 0x71d   : > { %v7163_v49 = vmul.f32 %v7160_v16, %v7149_v51  ;;  %8291 = vmatmul.mubr.msk.f32.gmra.mxu1 %vm6603_vm5, %v7165_v12  ;;  %v7057_v14 = vadd.f32 1.0, %v8759_v48  ;;  %8760 = vrcp.f32 %v7058_v59 }
 0x71e   : > { %8293 = vmatprep.mubr.msk.f32.mxu1 %vm8801_vm11, %v8800_v15  ;;  %v8037_v15 = vld [vmem:[%s13286_s11] ss:$0 sm:$0xff] }
 0x71f   : > { %v7166_v17 = vmul.f32 0.16666667, %v7163_v49  ;;  %8762 = vrcp.f32 %v7057_v14 }
 0x721   : > { %8294 = vmatmul.mubr.msk.f32.gmra.mxu1 %vm6603_vm5, %v7166_v17 }
 0x72a   : > { %v8761_v53 = vpop.eup %8760 }
 0x72b   : > { %v7381_v37 = vcombine.high %v8761_v53, %v8761_v53  ;;  %v7388_v12 = vrot.slane %v8761_v53, %v7338_v45 }
 0x72c   : > { %v8763_v20 = vpop.eup %8762 }
 0x72d   : > { %v7332_v19 = vcombine.high %v8763_v20, %v8763_v20  ;;  %v7395_v16 = vrot.slane %v7381_v37, %v7338_v45  ;;  %v7339_v17 = vrot.slane %v8763_v20, %v7338_v45  ;;  %v7396_v47 = vcombine.high %v7388_v12, %v7388_v12 }
 0x72e   : > { %v7404_v48 = vrot.slane %v7388_v12, %v7338_v45 }
 0x72f   : > { %v7346_v31 = vrot.slane %v7332_v19, %v7338_v45  ;;  %v7397_v26 = vcombine.high %v7395_v16, %v7395_v16  ;;  %v7347_v8 = vcombine.high %v7339_v17, %v7339_v17  ;;  %v7418_v59 = vrot.slane %v7396_v47, %v7338_v45 }
 0x731   : > { %v7348_v11 = vcombine.high %v7346_v31, %v7346_v31  ;;  %v7362_v6 = vrot.slane %v7346_v31, %v7338_v45  ;;  %v7369_v34 = vrot.slane %v7347_v8, %v7338_v45 }
 0x733   : > { %v7376_v3 = vrot.slane %v7348_v11, %v7338_v45  ;;  %v7379_v20 = vcombine.high %v7369_v34, %v7369_v34 }
 0x7d9   : > { %v7250_v63 = vpop.f32.mrf.mxu1 }
 0x7da   : > { %v7251_v61 = vadd.f32 %v8037_v15, %v7250_v63  ;;  %v7425_v63 = vrot.slane %v7397_v26, %v7338_v45 }
 0x7db   : > { %v8289_v27 = vpop.f32.mrf.mxu1 }
 0x7dc   : > { %v8041_v54 = vmul.f32 -1.442695, %v7251_v61  ;;  %v7432_v61 = vsub.s32 0, %v7337_v28  ;;  %v7355_v27 = vrot.slane %v7339_v17, %v7338_v45 }
 0x7dd   : > { %v7255_v18 = vpop.f32.mrf.mxu1 }
 0x7de   : > { %8764 = vpow2.f32 %v8041_v54  ;;  %v7256_v21 = vadd.f32 %v8037_v15, %v7255_v18  ;;  %v7426_v18 = vcombine.high %v7404_v48, %v7404_v48  ;;  %v12969_v53 = vrot.slane %v7418_v59, %v7432_v61 }
 0x7df   : > { %v8292_v46 = vpop.f32.mrf.mxu1  ;;  %v12978_v12 = vrot.slane %v7425_v63, %v7432_v61  ;;  %v12984_v17 = vrot.slane %v7355_v27, %v7432_v61  ;;  %v12986_v31 = vrot.slane %v7369_v34, %v7432_v61  ;;  %v12992_v26 = vrot.slane %v7376_v3, %v7432_v61 }
 0x7e0   : > { %v8042_v22 = vmul.f32 -1.442695, %v7256_v21  ;;  %v7428_v21 = vcombine.high %v7418_v59, %v7418_v59  ;;  %v12972_v37 = vrot.slane %v7426_v18, %v7432_v61  ;;  %v12994_v11 = vrot.slane %v7379_v20, %v7432_v61  ;;  %v7561_v20 = vld [vmem:[%s13005_s14 + $0x18] sm:$0xff] }
 0x7e1   : > { %v7260_v24 = vpop.f32.mrf.mxu1 }
 0x7e2   : > { %v7261_v51 = vadd.f32 %v8037_v15, %v7260_v24  ;;  %8766 = vpow2.f32 %v8042_v22  ;;  %v7411_v15 = vrot.slane %v7395_v16, %v7338_v45  ;;  %v7429_v22 = vcombine.high %v7425_v63, %v7425_v63 }
 0x7e3   : > { %v8295_v52 = vpop.f32.mrf.mxu1  ;;  %v12967_v24 = vrot.slane %v7404_v48, %v7432_v61  ;;  %v12974_v19 = vrot.slane %v7428_v21, %v7432_v61 }
 0x7e4   : > { %v8043_v2 = vmul.f32 -1.442695, %v7261_v51  ;;  %v7427_v41 = vcombine.high %v7411_v15, %v7411_v15  ;;  %v7377_v51 = vcombine.high %v7355_v27, %v7355_v27  ;;  %v7378_v52 = vcombine.high %v7362_v6, %v7362_v6 }
 0x7e5   : > { %v12976_v45 = vrot.slane %v7411_v15, %v7432_v61 }
 0x7e6   : > { %8768 = vpow2.f32 %v8043_v2  ;;  %v7380_v2 = vcombine.high %v7376_v3, %v7376_v3  ;;  %v12980_v16 = vrot.slane %v7427_v41, %v7432_v61  ;;  %v12988_v47 = vrot.slane %v7377_v51, %v7432_v61  ;;  %v13390_v41 = vld [vmem:[#allocation21_spill] sm:$0xff] }
 0x7e7   : > { %v12996_v48 = vrot.slane %v7378_v52, %v7432_v61 }
 0x7e8   : > { %v12998_v59 = vrot.slane %v7380_v2, %v7432_v61  ;;  %v7564_v2 = vld [vmem:[%s13005_s14 + $0x30] sm:$0xff] }
 0x7eb   : > { %v8765_v49 = vpop.eup %8764 }
 0x7ec   : > { %v7273_v29 = vadd.f32 1.0, %v8765_v49  ;;  %v12982_v49 = vrot.slane %v7429_v22, %v7432_v61  ;;  %v7558_v22 = vld [vmem:[%s13005_s14] sm:$0xff] }
 0x7ee   : > { %8770 = vrcp.f32 %v7273_v29  ;;  %v12990_v29 = vrot.slane %v7362_v6, %v7432_v61 }
 0x7ef   : > { %v8767_v14 = vpop.eup %8766 }
 0x7f0   : > { %v7274_v46 = vadd.f32 1.0, %v8767_v14 }
 0x7f2   : > { %8772 = vrcp.f32 %v7274_v46 }
 0x7f3   : > { %v8769_v54 = vpop.eup %8768 }
 0x7f4   : > { %v7275_v28 = vadd.f32 1.0, %v8769_v54 }
 0x7f6   : > { %8774 = vrcp.f32 %v7275_v28  ;;  %v7567_v28 = vld [vmem:[%s13005_s14 + $0x48] sm:$0xff] }
 0x7fb   : > { %v8771_v8 = vpop.eup %8770 }
 0x7fc   : > { %v7282_v14 = vmul.f32 %v8771_v8, %v11276_v43  ;;  %v7285_v15 = vmul.f32 %v8771_v8, %v11282_v33  ;;  %v7288_v63 = vmul.f32 %v8771_v8, %v11547_v56  ;;  %v7291_v27 = vmul.f32 %v8771_v8, %v11852_v10  ;;  %v13386_v33 = vld [vmem:[#allocation13_spill] sm:$0xff]  ;;  %v13388_v10 = vld [vmem:[#allocation18_spill] sm:$0xff] }
 0x7fd   : > { %v7294_v6 = vmul.f32 %v8771_v8, %v11983_v44  ;;  %v7297_v61 = vmul.f32 %v8771_v8, %v12005_v23  ;;  %v7300_v34 = vmul.f32 %v8771_v8, %v12140_v32  ;;  %v7303_v3 = vmul.f32 %v8771_v8, %v12436_v1  ;;  %v13387_v56 = vld [vmem:[#allocation17_spill] sm:$0xff]  ;;  %v13389_v44 = vld [vmem:[#allocation19_spill] sm:$0xff] }
 0x7fe   : > { %v7306_v43 = vmul.f32 %v8771_v8, %v12521_v42  ;;  %v7309_v54 = vmul.f32 %v8771_v8, %v12527_v25  ;;  %v7312_v18 = vmul.f32 %v8771_v8, %v13386_v33  ;;  %v7315_v21 = vmul.f32 %v8771_v8, %v13387_v56 }
 0x7ff   : > { %v7318_v46 = vmul.f32 %v8771_v8, %v13388_v10  ;;  %v7321_v23 = vmul.f32 %v8771_v8, %v13389_v44  ;;  %v7324_v32 = vmul.f32 %v8771_v8, %v13390_v41  ;;  %v7327_v1 = vmul.f32 %v8771_v8, %v12729_v7  ;;  %v7582_v44 = vld [vmem:[%s13005_s14 + $0xc0] sm:$0xff]  ;;  %v8773_v60 = vpop.eup %8772 }
 0x800   : > { %v7510_v42 = vmul.f32 %v12984_v17, %v7282_v14  ;;  %v7513_v25 = vmul.f32 %v12986_v31, %v7285_v15  ;;  %v7516_v51 = vmul.f32 %v12988_v47, %v7288_v63  ;;  %v7519_v52 = vmul.f32 %v12994_v11, %v7291_v27  ;;  %v7570_v15 = vld [vmem:[%s13005_s14 + $0x60] sm:$0xff]  ;;  %v7573_v63 = vld [vmem:[%s13005_s14 + $0x78] sm:$0xff]  ;;  %v7576_v27 = vld [vmem:[%s13005_s14 + $0x90] sm:$0xff] }
 0x801   : > { %v7522_v33 = vmul.f32 %v12990_v29, %v7294_v6  ;;  %v7525_v7 = vmul.f32 %v12992_v26, %v7297_v61  ;;  %v7528_v8 = vmul.f32 %v12996_v48, %v7300_v34  ;;  %v7531_v14 = vmul.f32 %v12998_v59, %v7303_v3  ;;  %v7579_v34 = vld [vmem:[%s13005_s14 + $0xa8] sm:$0xff]  ;;  %v7585_v3 = vld [vmem:[%s13005_s14 + $0xd8] sm:$0xff] }
 0x802   : > { %v7534_v56 = vmul.f32 %v12967_v24, %v7306_v43  ;;  %v7537_v10 = vmul.f32 %v12969_v53, %v7309_v54  ;;  %v7540_v6 = vmul.f32 %v12972_v37, %v7312_v18  ;;  %v7543_v61 = vmul.f32 %v12974_v19, %v7315_v21  ;;  %v7588_v18 = vld [vmem:[%s13005_s14 + $0xf0] sm:$0xff]  ;;  %v7594_v21 = vld [vmem:[%s13005_s14 + $0x120] sm:$0xff] }
 0x803   : > { %v7546_v41 = vmul.f32 %v12976_v45, %v7318_v46  ;;  %v7549_v43 = vmul.f32 %v12978_v12, %v7321_v23  ;;  %v7552_v54 = vmul.f32 %v12980_v16, %v7324_v32  ;;  %v7555_v39 = vmul.f32 %v12982_v49, %v7327_v1 }
 0x804   : > { %v7606_v58 = vadd.f32 %v7558_v22, %v7510_v42  ;;  %v7609_v5 = vadd.f32 %v7561_v20, %v7513_v25  ;;  %v7612_v62 = vadd.f32 %v7564_v2, %v7516_v51  ;;  %v7615_v46 = vadd.f32 %v7567_v28, %v7519_v52  ;;  %v13398_v2 = vld [vmem:[#allocation11_spill] sm:$0xff] }
 0x805   : > { %v7618_v23 = vadd.f32 %v7570_v15, %v7522_v33  ;;  %v7621_v32 = vadd.f32 %v7573_v63, %v7525_v7  ;;  %v7624_v1 = vadd.f32 %v7576_v27, %v7528_v8  ;;  %v7627_v30 = vadd.f32 %v7579_v34, %v7531_v14  ;;  %v13399_v33 = vld [vmem:[#allocation12_spill] sm:$0xff]  ;;  %v13400_v8 = vld [vmem:[#allocation14_spill] sm:$0xff]  ;;  %v13401_v15 = vld [vmem:[#allocation15_spill] sm:$0xff] }
 0x806   : > { %v7630_v36 = vadd.f32 %v7582_v44, %v7534_v56  ;;  %v7633_v4 = vadd.f32 %v7585_v3, %v7537_v10  ;;  %v7636_v50 = vadd.f32 %v7588_v18, %v7540_v6  ;;  %v7639_v35 = vadd.f32 %v7591_v13, %v7543_v61  ;;  %7654 = vst.msk [vmem:[%s13050_s17] sm:$0xff] %vm6603_vm5, %v7606_v58  ;;  %v13402_v27 = vld [vmem:[#allocation16_spill] sm:$0xff]  ;;  %v13404_v61 = vld [vmem:[#allocation22_spill] sm:$0xff]  ;;  %v13405_v44 = vld [vmem:[#allocation23_spill] sm:$0xff] }
 0x807   : > { %7657 = vst.msk [vmem:[%s13050_s17 + $0x18] sm:$0xff] %vm6603_vm5, %v7609_v5  ;;  %7660 = vst.msk [vmem:[%s13050_s17 + $0x30] sm:$0xff] %vm6603_vm5, %v7612_v62  ;;  %v7642_v22 = vadd.f32 %v7594_v21, %v7546_v41  ;;  %v7645_v42 = vadd.f32 %v7597_v0, %v7549_v43  ;;  %v7648_v25 = vadd.f32 %v7600_v40, %v7552_v54  ;;  %v13078_v5 = vpop.eup %8774  ;;  %v13391_v62 = vld [vmem:[#allocation4_spill] sm:$0xff]  ;;  %v13393_v0 = vld [vmem:[#allocation6_spill] sm:$0xff] }
 0x808   : > { %7663 = vst.msk [vmem:[%s13050_s17 + $0x48] sm:$0xff] %vm6603_vm5, %v7615_v46  ;;  %v7651_v51 = vadd.f32 %v7603_v38, %v7555_v39  ;;  %7666 = vst.msk [vmem:[%s13050_s17 + $0x60] sm:$0xff] %vm6603_vm5, %v7618_v23  ;;  %v7283_v58 = vmul.f32 %v8773_v60, %v13391_v62  ;;  %v13392_v38 = vld [vmem:[#allocation5_spill] sm:$0xff]  ;;  %v7289_v13 = vmul.f32 %v8773_v60, %v13393_v0  ;;  %v13394_v39 = vld [vmem:[#allocation7_spill] sm:$0xff] }
 0x809   : > { %7669 = vst.msk [vmem:[%s13050_s17 + $0x78] sm:$0xff] %vm6603_vm5, %v7621_v32  ;;  %7672 = vst.msk [vmem:[%s13050_s17 + $0x90] sm:$0xff] %vm6603_vm5, %v7624_v1  ;;  %v7286_v40 = vmul.f32 %v8773_v60, %v13392_v38  ;;  %v7292_v52 = vmul.f32 %v8773_v60, %v13394_v39  ;;  %v7304_v28 = vmul.f32 %v8773_v60, %v13398_v2  ;;  %v13403_v10 = vld [vmem:[#allocation20_spill] sm:$0xff]  ;;  %v7565_v32 = vld [vmem:[%s13005_s14 + $0x38] sm:$0xff] }
 0x80a   : > { %7675 = vst.msk [vmem:[%s13050_s17 + $0xa8] sm:$0xff] %vm6603_vm5, %v7627_v30  ;;  %7678 = vst.msk [vmem:[%s13050_s17 + $0xc0] sm:$0xff] %vm6603_vm5, %v7630_v36  ;;  %v13397_v30 = vld [vmem:[#allocation10_spill] sm:$0xff]  ;;  %v7307_v7 = vmul.f32 %v8773_v60, %v13399_v33  ;;  %v7310_v14 = vmul.f32 %v8773_v60, %v13400_v8  ;;  %v7313_v63 = vmul.f32 %v8773_v60, %v13401_v15  ;;  %v7559_v43 = vld [vmem:[%s13005_s14 + $0x8] sm:$0xff] }
 0x80b   : > { %7681 = vst.msk [vmem:[%s13050_s17 + $0xd8] sm:$0xff] %vm6603_vm5, %v7633_v4  ;;  %7684 = vst.msk [vmem:[%s13050_s17 + $0xf0] sm:$0xff] %vm6603_vm5, %v7636_v50  ;;  %v13395_v50 = vld [vmem:[#allocation8_spill] sm:$0xff]  ;;  %v7301_v20 = vmul.f32 %v8773_v60, %v13397_v30  ;;  %v7316_v56 = vmul.f32 %v8773_v60, %v13402_v27  ;;  %v7319_v6 = vmul.f32 %v8773_v60, %v13403_v10  ;;  %v7568_v1 = vld [vmem:[%s13005_s14 + $0x50] sm:$0xff] }
 0x80c   : > { %7687 = vst.msk [vmem:[%s13050_s17 + $0x108] sm:$0xff] %vm6603_vm5, %v7639_v35  ;;  %7690 = vst.msk [vmem:[%s13050_s17 + $0x120] sm:$0xff] %vm6603_vm5, %v7642_v22  ;;  %v7295_v4 = vmul.f32 %v8773_v60, %v13395_v50  ;;  %v13396_v35 = vld [vmem:[#allocation9_spill] sm:$0xff]  ;;  %v7322_v34 = vmul.f32 %v8773_v60, %v13404_v61  ;;  %v7325_v3 = vmul.f32 %v8773_v60, %v13405_v44  ;;  %v7562_v23 = vld [vmem:[%s13005_s14 + $0x20] sm:$0xff] }
 0x80d   : > { %7693 = vst.msk [vmem:[%s13050_s17 + $0x138] sm:$0xff] %vm6603_vm5, %v7645_v42  ;;  %7696 = vst.msk [vmem:[%s13050_s17 + $0x150] sm:$0xff] %vm6603_vm5, %v7648_v25  ;;  %v7298_v36 = vmul.f32 %v8773_v60, %v13396_v35  ;;  %v7328_v41 = vmul.f32 %v8773_v60, %v12723_v55  ;;  %v7511_v54 = vmul.f32 %v12984_v17, %v7283_v58  ;;  %v7571_v25 = vld [vmem:[%s13005_s14 + $0x68] sm:$0xff]  ;;  %v7577_v62 = vld [vmem:[%s13005_s14 + $0x98] sm:$0xff] }
 0x80e   : > { %7699 = vst.msk [vmem:[%s13050_s17 + $0x168] sm:$0xff] %vm6603_vm5, %v7651_v51  ;;  %v7514_v18 = vmul.f32 %v12986_v31, %v7286_v40  ;;  %v7517_v21 = vmul.f32 %v12988_v47, %v7289_v13  ;;  %v7520_v46 = vmul.f32 %v12994_v11, %v7292_v52  ;;  %v7523_v22 = vmul.f32 %v12990_v29, %v7295_v4  ;;  %v7574_v51 = vld [vmem:[%s13005_s14 + $0x80] sm:$0xff]  ;;  %v7580_v13 = vld [vmem:[%s13005_s14 + $0xb0] sm:$0xff]  ;;  %v7583_v39 = vld [vmem:[%s13005_s14 + $0xc8] sm:$0xff] }
 0x80f   : > { %v7526_v42 = vmul.f32 %v12992_v26, %v7298_v36  ;;  %v7529_v55 = vmul.f32 %v12996_v48, %v7301_v20  ;;  %v7532_v60 = vmul.f32 %v12998_v59, %v7304_v28  ;;  %v7535_v58 = vmul.f32 %v12967_v24, %v7307_v7  ;;  %v7586_v52 = vld [vmem:[%s13005_s14 + $0xe0] sm:$0xff]  ;;  %v7589_v30 = vld [vmem:[%s13005_s14 + $0xf8] sm:$0xff]  ;;  %v7592_v20 = vld [vmem:[%s13005_s14 + $0x110] sm:$0xff] }
 0x810   : > { %v7538_v38 = vmul.f32 %v12969_v53, %v7310_v14  ;;  %v7541_v40 = vmul.f32 %v12972_v37, %v7313_v63  ;;  %v7544_v0 = vmul.f32 %v12974_v19, %v7316_v56  ;;  %v7547_v50 = vmul.f32 %v12976_v45, %v7319_v6  ;;  %v7595_v2 = vld [vmem:[%s13005_s14 + $0x128] sm:$0xff]  ;;  %v7598_v28 = vld [vmem:[%s13005_s14 + $0x140] sm:$0xff]  ;;  %v7601_v33 = vld [vmem:[%s13005_s14 + $0x158] sm:$0xff] }
 0x811   : > { %v7550_v4 = vmul.f32 %v12978_v12, %v7322_v34  ;;  %v7553_v35 = vmul.f32 %v12980_v16, %v7325_v3  ;;  %v7556_v36 = vmul.f32 %v12982_v49, %v7328_v41  ;;  %v7604_v7 = vld [vmem:[%s13005_s14 + $0x170] sm:$0xff]  ;;  %v7607_v8 = vadd.f32 %v7559_v43, %v7511_v54 }
 0x812   : > { %v7610_v14 = vadd.f32 %v7562_v23, %v7514_v18  ;;  %v7613_v15 = vadd.f32 %v7565_v32, %v7517_v21  ;;  %v7616_v63 = vadd.f32 %v7568_v1, %v7520_v46  ;;  %v7619_v27 = vadd.f32 %v7571_v25, %v7523_v22  ;;  %v13406_v23 = vld [vmem:[#allocation24_spill] sm:$0xff]  ;;  %v13407_v1 = vld [vmem:[#allocation25_spill] sm:$0xff] }
 0x813   : > { %v7622_v56 = vadd.f32 %v7574_v51, %v7526_v42  ;;  %v7625_v10 = vadd.f32 %v7577_v62, %v7529_v55  ;;  %v7628_v6 = vadd.f32 %v7580_v13, %v7532_v60  ;;  %v7631_v61 = vadd.f32 %v7583_v39, %v7535_v58  ;;  %7655 = vst.msk [vmem:[%s13050_s17 + $0x8] sm:$0xff] %vm6603_vm5, %v7607_v8  ;;  %v13408_v42 = vld [vmem:[#allocation26_spill] sm:$0xff]  ;;  %v13409_v55 = vld [vmem:[#allocation27_spill] sm:$0xff]  ;;  %v13410_v60 = vld [vmem:[#allocation28_spill] sm:$0xff] }
 0x814   : > { %v7634_v34 = vadd.f32 %v7586_v52, %v7538_v38  ;;  %v7637_v44 = vadd.f32 %v7589_v30, %v7541_v40  ;;  %v7640_v3 = vadd.f32 %v7592_v20, %v7544_v0  ;;  %7658 = vst.msk [vmem:[%s13050_s17 + $0x20] sm:$0xff] %vm6603_vm5, %v7610_v14  ;;  %7661 = vst.msk [vmem:[%s13050_s17 + $0x38] sm:$0xff] %vm6603_vm5, %v7613_v15  ;;  %v13411_v51 = vld [vmem:[#allocation29_spill] sm:$0xff]  ;;  %v13412_v58 = vld [vmem:[#allocation30_spill] sm:$0xff] }
 0x815   : > { %7664 = vst.msk [vmem:[%s13050_s17 + $0x50] sm:$0xff] %vm6603_vm5, %v7616_v63  ;;  %v7643_v41 = vadd.f32 %v7595_v2, %v7547_v50  ;;  %v7646_v43 = vadd.f32 %v7598_v28, %v7550_v4  ;;  %v7649_v54 = vadd.f32 %v7601_v33, %v7553_v35  ;;  %v7652_v18 = vadd.f32 %v7604_v7, %v7556_v36  ;;  %v13413_v40 = vld [vmem:[#allocation31_spill] sm:$0xff]  ;;  %v13414_v13 = vld [vmem:[#allocation32_spill] sm:$0xff]  ;;  %v13415_v52 = vld [vmem:[#allocation33_spill] sm:$0xff] }
 0x816   : > { %7667 = vst.msk [vmem:[%s13050_s17 + $0x68] sm:$0xff] %vm6603_vm5, %v7619_v27  ;;  %7670 = vst.msk [vmem:[%s13050_s17 + $0x80] sm:$0xff] %vm6603_vm5, %v7622_v56  ;;  %v7284_v21 = vmul.f32 %v13078_v5, %v12854_v57  ;;  %v7287_v46 = vmul.f32 %v13078_v5, %v12851_v9  ;;  %v7290_v32 = vmul.f32 %v13078_v5, %v13406_v23  ;;  %v13416_v4 = vld [vmem:[#allocation34_spill] sm:$0xff]  ;;  %v13417_v36 = vld [vmem:[#allocation35_spill] sm:$0xff] }
 0x817   : > { %7673 = vst.msk [vmem:[%s13050_s17 + $0x98] sm:$0xff] %vm6603_vm5, %v7625_v10  ;;  %7676 = vst.msk [vmem:[%s13050_s17 + $0xb0] sm:$0xff] %vm6603_vm5, %v7628_v6  ;;  %v7293_v22 = vmul.f32 %v13078_v5, %v13407_v1  ;;  %v7296_v57 = vmul.f32 %v13078_v5, %v13408_v42  ;;  %v7299_v9 = vmul.f32 %v13078_v5, %v13409_v55  ;;  %v13418_v20 = vld [vmem:[#allocation36_spill] sm:$0xff]  ;;  %v13419_v28 = vld [vmem:[#allocation37_spill] sm:$0xff] }
 0x818   : > { %7679 = vst.msk [vmem:[%s13050_s17 + $0xc8] sm:$0xff] %vm6603_vm5, %v7631_v61  ;;  %7682 = vst.msk [vmem:[%s13050_s17 + $0xe0] sm:$0xff] %vm6603_vm5, %v7634_v34  ;;  %v7302_v25 = vmul.f32 %v13078_v5, %v13410_v60  ;;  %v7305_v62 = vmul.f32 %v13078_v5, %v13411_v51  ;;  %v7308_v38 = vmul.f32 %v13078_v5, %v13412_v58  ;;  %v7560_v7 = vld [vmem:[%s13005_s14 + $0x10] sm:$0xff]  ;;  %v7563_v27 = vld [vmem:[%s13005_s14 + $0x28] sm:$0xff] }
 0x819   : > { %7685 = vst.msk [vmem:[%s13050_s17 + $0xf8] sm:$0xff] %vm6603_vm5, %v7637_v44  ;;  %7688 = vst.msk [vmem:[%s13050_s17 + $0x110] sm:$0xff] %vm6603_vm5, %v7640_v3  ;;  %v7311_v0 = vmul.f32 %v13078_v5, %v13413_v40  ;;  %v7314_v39 = vmul.f32 %v13078_v5, %v13414_v13  ;;  %v7317_v50 = vmul.f32 %v13078_v5, %v13415_v52  ;;  %v7566_v56 = vld [vmem:[%s13005_s14 + $0x40] sm:$0xff]  ;;  %v7569_v10 = vld [vmem:[%s13005_s14 + $0x58] sm:$0xff] }
 0x81a   : > { %7691 = vst.msk [vmem:[%s13050_s17 + $0x128] sm:$0xff] %vm6603_vm5, %v7643_v41  ;;  %7694 = vst.msk [vmem:[%s13050_s17 + $0x140] sm:$0xff] %vm6603_vm5, %v7646_v43  ;;  %v7320_v35 = vmul.f32 %v13078_v5, %v13416_v4  ;;  %v7323_v30 = vmul.f32 %v13078_v5, %v13417_v36  ;;  %v7326_v2 = vmul.f32 %v13078_v5, %v13418_v20  ;;  %v7584_v3 = vld [vmem:[%s13005_s14 + $0xd0] sm:$0xff]  ;;  %v7587_v41 = vld [vmem:[%s13005_s14 + $0xe8] sm:$0xff] }
 0x81b   : > { %7697 = vst.msk [vmem:[%s13050_s17 + $0x158] sm:$0xff] %vm6603_vm5, %v7649_v54  ;;  %7700 = vst.msk [vmem:[%s13050_s17 + $0x170] sm:$0xff] %vm6603_vm5, %v7652_v18  ;;  %v7329_v33 = vmul.f32 %v13078_v5, %v13419_v28  ;;  %v7512_v8 = vmul.f32 %v12984_v17, %v7284_v21  ;;  %v7515_v14 = vmul.f32 %v12986_v31, %v7287_v46  ;;  %v7572_v31 = vld [vmem:[%s13005_s14 + $0x70] sm:$0xff]  ;;  %v7590_v21 = vld [vmem:[%s13005_s14 + $0x100] sm:$0xff] }
 0x81c   : > { %v7518_v15 = vmul.f32 %v12988_v47, %v7290_v32  ;;  %v7521_v63 = vmul.f32 %v12994_v11, %v7293_v22  ;;  %v7524_v6 = vmul.f32 %v12990_v29, %v7296_v57  ;;  %v7527_v61 = vmul.f32 %v12992_v26, %v7299_v9  ;;  %v7575_v47 = vld [vmem:[%s13005_s14 + $0x88] sm:$0xff]  ;;  %v7578_v11 = vld [vmem:[%s13005_s14 + $0xa0] sm:$0xff]  ;;  %v7596_v46 = vld [vmem:[%s13005_s14 + $0x130] sm:$0xff] }
 0x81d   : > { %v7530_v5 = vmul.f32 %v12996_v48, %v7302_v25  ;;  %v7533_v17 = vmul.f32 %v12998_v59, %v7305_v62  ;;  %v7536_v34 = vmul.f32 %v12967_v24, %v7308_v38  ;;  %v7539_v44 = vmul.f32 %v12969_v53, %v7311_v0  ;;  %v7581_v48 = vld [vmem:[%s13005_s14 + $0xb8] sm:$0xff]  ;;  %v7599_v53 = vld [vmem:[%s13005_s14 + $0x148] sm:$0xff] }
 0x81e   : > { %v7542_v29 = vmul.f32 %v12972_v37, %v7314_v39  ;;  %v7545_v26 = vmul.f32 %v12974_v19, %v7317_v50  ;;  %v7548_v59 = vmul.f32 %v12976_v45, %v7320_v35  ;;  %v7551_v43 = vmul.f32 %v12978_v12, %v7323_v30  ;;  %v7593_v24 = vld [vmem:[%s13005_s14 + $0x118] sm:$0xff]  ;;  %v7602_v37 = vld [vmem:[%s13005_s14 + $0x160] sm:$0xff] }
 0x81f   : > { %v7554_v54 = vmul.f32 %v12980_v16, %v7326_v2  ;;  %v7557_v18 = vmul.f32 %v12982_v49, %v7329_v33  ;;  %v7605_v19 = vld [vmem:[%s13005_s14 + $0x178] sm:$0xff]  ;;  %v7608_v23 = vadd.f32 %v7560_v7, %v7512_v8  ;;  %v7611_v32 = vadd.f32 %v7563_v27, %v7515_v14 }
 0x820   : > { %v7614_v1 = vadd.f32 %v7566_v56, %v7518_v15  ;;  %v7617_v45 = vadd.f32 %v7569_v10, %v7521_v63  ;;  %v7620_v22 = vadd.f32 %v7572_v31, %v7524_v6  ;;  %v7623_v12 = vadd.f32 %v7575_v47, %v7527_v61 }
 0x821   : > { %v7626_v16 = vadd.f32 %v7578_v11, %v7530_v5  ;;  %v7629_v49 = vadd.f32 %v7581_v48, %v7533_v17  ;;  %v7632_v42 = vadd.f32 %v7584_v3, %v7536_v34  ;;  %v7635_v57 = vadd.f32 %v7587_v41, %v7539_v44  ;;  %7656 = vst.msk [vmem:[%s13050_s17 + $0x10] sm:$0xff] %vm6603_vm5, %v7608_v23 }
 0x822   : > { %v7638_v55 = vadd.f32 %v7590_v21, %v7542_v29  ;;  %v7641_v9 = vadd.f32 %v7593_v24, %v7545_v26  ;;  %7659 = vst.msk [vmem:[%s13050_s17 + $0x28] sm:$0xff] %vm6603_vm5, %v7611_v32  ;;  %7662 = vst.msk [vmem:[%s13050_s17 + $0x40] sm:$0xff] %vm6603_vm5, %v7614_v1  ;;  %v7644_v60 = vadd.f32 %v7596_v46, %v7548_v59 }
 0x823   : > { %7665 = vst.msk [vmem:[%s13050_s17 + $0x58] sm:$0xff] %vm6603_vm5, %v7617_v45  ;;  %v7647_v25 = vadd.f32 %v7599_v53, %v7551_v43  ;;  %v7650_v51 = vadd.f32 %v7602_v37, %v7554_v54  ;;  %v7653_v62 = vadd.f32 %v7605_v19, %v7557_v18  ;;  %7668 = vst.msk [vmem:[%s13050_s17 + $0x70] sm:$0xff] %vm6603_vm5, %v7620_v22 }
 0x824   : > { %7671 = vst.msk [vmem:[%s13050_s17 + $0x88] sm:$0xff] %vm6603_vm5, %v7623_v12  ;;  %7674 = vst.msk [vmem:[%s13050_s17 + $0xa0] sm:$0xff] %vm6603_vm5, %v7626_v16 }
 0x825   : > { %7677 = vst.msk [vmem:[%s13050_s17 + $0xb8] sm:$0xff] %vm6603_vm5, %v7629_v49  ;;  %7680 = vst.msk [vmem:[%s13050_s17 + $0xd0] sm:$0xff] %vm6603_vm5, %v7632_v42 }
 0x826   : > { %7683 = vst.msk [vmem:[%s13050_s17 + $0xe8] sm:$0xff] %vm6603_vm5, %v7635_v57  ;;  %7686 = vst.msk [vmem:[%s13050_s17 + $0x100] sm:$0xff] %vm6603_vm5, %v7638_v55 }
 0x827   : > { %7689 = vst.msk [vmem:[%s13050_s17 + $0x118] sm:$0xff] %vm6603_vm5, %v7641_v9  ;;  %7692 = vst.msk [vmem:[%s13050_s17 + $0x130] sm:$0xff] %vm6603_vm5, %v7644_v60 }
 0x828   : > { %7695 = vst.msk [vmem:[%s13050_s17 + $0x148] sm:$0xff] %vm6603_vm5, %v7647_v25  ;;  %7698 = vst.msk [vmem:[%s13050_s17 + $0x160] sm:$0xff] %vm6603_vm5, %v7650_v51 }
 0x829   : > { %7701 = vst.msk [vmem:[%s13050_s17 + $0x178] sm:$0xff] %vm6603_vm5, %v7653_v62 }
 0x82a PF: > { %s22_s21 = sadd.s32 1, %s8788_s21  }
 0x82b   : > { %p19_p4 = scmp.ge.s32.totalorder %s22_s21, 4  }
 0x82d   :  { %21 = sbr.rel (!%p19_p4) target bundleno = 1 (0x1), region = 101 }

</bundles_post_ra>
